<compile_context>
chip_gen: v7x
topology: tpu7x:2x2x1
jax: 0.10.0
libtpu: 0.0.40
codegen_flags: <defaults>
</compile_context>

<pallas_src>
from functools import partial

import jax
import jax.numpy as jnp
from jax import lax
from jax.experimental import pallas as pl
from jax.experimental.pallas import tpu as pltpu


# ------------------------------ Pallas kernels ------------------------------

def _conv3x3_relu_pool_kernel(x_ref, w_ref, b_ref, o_ref):
    """Fused 3x3 SAME conv + bias + ReLU + 2x2 maxpool on one pooled-row strip.

    x_ref: (Rs, Wo, 16*Cin) bf16 -- per pooled output pixel, its 4x4 padded
           input patch packed on the channel (lane / K) dim.
    w_ref: (4, 16*Cin, Cout) bf16 -- one weight slab per 2x2 pool-window
           position q = 2*py + px; patch slot (di, dj) carries tap
           (di - py, dj - px) when valid, zero otherwise.
    b_ref: (1, Cout) f32
    o_ref: (Rs, Wo, Cout)
    """
    Rs, Wo, Cout = o_ref.shape
    K = x_ref.shape[-1]
    xs = x_ref[...].reshape(Rs * Wo, K)          # load once, reuse for all 4 dots
    acc = jnp.dot(xs, w_ref[0], preferred_element_type=jnp.float32)
    for q in range(1, 4):                        # 2x2 maxpool == running max over
        acc = jnp.maximum(                       # the four window positions: pure
            acc, jnp.dot(xs, w_ref[q],           # VPU max, no relayout needed.
                         preferred_element_type=jnp.float32))
    y = jnp.maximum(acc + b_ref[...], 0.0)       # bias + ReLU commute past the max
    o_ref[...] = y.reshape(Rs, Wo, Cout).astype(o_ref.dtype)


def conv3x3_relu_pool(xg, wp, b, *, rows_per_strip=8, out_dtype=jnp.bfloat16):
    B, Ho, Wo, K = xg.shape
    Cout = wp.shape[-1]
    rs = min(rows_per_strip, Ho)
    assert Ho % rs == 0
    n_strips = Ho // rs
    return pl.pallas_call(
        _conv3x3_relu_pool_kernel,
        out_shape=jax.ShapeDtypeStruct((B, Ho, Wo, Cout), out_dtype),
        grid_spec=pltpu.PrefetchScalarGridSpec(
            num_scalar_prefetch=0,
            grid=(B, n_strips),
            in_specs=[
                pl.BlockSpec((None, rs, Wo, K), lambda bi, s: (bi, s, 0, 0)),
                pl.BlockSpec((4, K, Cout), lambda bi, s: (0, 0, 0)),
                pl.BlockSpec((1, Cout), lambda bi, s: (0, 0)),
            ],
            out_specs=pl.BlockSpec((None, rs, Wo, Cout),
                                   lambda bi, s: (bi, s, 0, 0)),
        ),
        compiler_params=pltpu.CompilerParams(
            dimension_semantics=("parallel", "parallel")),
    )(xg, wp, b)


def _linear_kernel(x_ref, w_ref, b_ref, o_ref, acc_ref):
    @pl.when(pl.program_id(1) == 0)
    def _():
        acc_ref[...] = jnp.zeros_like(acc_ref)
    acc_ref[...] += jnp.dot(x_ref[...], w_ref[...],
                            preferred_element_type=jnp.float32)
    @pl.when(pl.program_id(1) == pl.num_programs(1) - 1)
    def _():
        o_ref[...] = (acc_ref[...] + b_ref[...]).astype(o_ref.dtype)


def linear(x, w, b, *, tm=128, tk=8192):
    M, K = x.shape
    Kw, N = w.shape
    assert K == Kw and b.shape == (1, N)
    tm = M if M <= tm else tm
    assert M % tm == 0, "pad the batch to a multiple of the row tile"
    tk = min(tk, K)
    assert K % tk == 0
    return pl.pallas_call(
        _linear_kernel,
        out_shape=jax.ShapeDtypeStruct((M, N), jnp.float32),
        grid_spec=pltpu.PrefetchScalarGridSpec(
            num_scalar_prefetch=0,
            grid=(M // tm, K // tk),
            in_specs=[
                pl.BlockSpec((tm, tk), lambda m, k: (m, k)),
                pl.BlockSpec((tk, N), lambda m, k: (k, 0)),
                pl.BlockSpec((1, N), lambda m, k: (0, 0)),
            ],
            out_specs=pl.BlockSpec((tm, N), lambda m, k: (m, 0)),
            scratch_shapes=[pltpu.VMEM((tm, N), jnp.float32)]),
        compiler_params=pltpu.CompilerParams(
            dimension_semantics=("parallel", "arbitrary")),
    )(x, w, b)


# ------------------------------- JAX-side glue -------------------------------

def gather_pool_patches(x):
    """(B, H, W, C) NHWC -> (B, H//2, W//2, 16*C).

    Pads H and W by 1 (SAME conv) and, for every 2x2-pooled output pixel, packs
    its 4x4 padded input patch (the union of the four 3x3 conv patches under
    the pool window) onto the channel dim.  One fused pad+slice+concat in XLA.
    """
    B, H, W, C = x.shape
    assert H % 2 == 0 and W % 2 == 0
    xp = jnp.pad(x, ((0, 0), (1, 1), (1, 1), (0, 0)))
    slabs = [xp[:, di:di + H:2, dj:dj + W:2, :]
             for di in range(4) for dj in range(4)]
    return jnp.concatenate(slabs, axis=-1)


def prep_conv_weight(w):
    """OIHW (Cout, Cin, 3, 3) -> (4, 16*Cin, Cout).

    Slab q = 2*py + px computes the conv output at pool-window position
    (py, px); patch slot (di, dj) holds tap (ky, kx) = (di - py, dj - px)
    when 0 <= ky, kx <= 2, zero otherwise.
    """
    Cout, Cin, _, _ = w.shape
    w_hw = jnp.transpose(w, (2, 3, 1, 0))               # (ky, kx, Cin, Cout)
    wp = jnp.zeros((4, 4, 4, Cin, Cout), w.dtype)       # (q, di, dj, Cin, Cout)
    for py in range(2):
        for px in range(2):
            q = 2 * py + px
            for ky in range(3):
                for kx in range(3):
                    wp = wp.at[q, py + ky, px + kx].set(w_hw[ky, kx])
    return wp.reshape(4, 16 * Cin, Cout)


def prepare_params(params):
    """Fold all layout transforms once, outside the forward pass."""
    w1, b1, w2, b2, wl, bl = params
    nc = wl.shape[0]
    wp1 = prep_conv_weight(w1).astype(jnp.bfloat16)                 # (4, 48, 32)
    wp2 = prep_conv_weight(w2).astype(jnp.bfloat16)                 # (4, 512, 64)
    # PyTorch flattens NCHW (c, h, w); our features are (h, w, c) -> permute + T.
    wlp = (wl.reshape(nc, 64, 32, 32).transpose(0, 2, 3, 1)
             .reshape(nc, 32 * 32 * 64).T)                          # (65536, nc)
    # Pad the classifier N to full 128-lane tiles; sliced back after the kernel.
    n_out = max(128, ((nc + 127) // 128) * 128)
    wlp = jnp.pad(wlp, ((0, 0), (0, n_out - nc))).astype(jnp.bfloat16)
    blp = jnp.pad(bl, (0, n_out - nc)).reshape(1, n_out).astype(jnp.float32)
    return (wp1, b1.reshape(1, -1).astype(jnp.float32),
            wp2, b2.reshape(1, -1).astype(jnp.float32),
            wlp, blp)


def init_params(key, num_classes):
    k1, k2, k3 = jax.random.split(key, 3)
    w1 = jax.random.normal(k1, (32, 3, 3, 3), jnp.float32) * 0.1        # OIHW
    b1 = jnp.linspace(-0.1, 0.1, 32).astype(jnp.float32)
    w2 = jax.random.normal(k2, (64, 32, 3, 3), jnp.float32) * 0.05      # OIHW
    b2 = jnp.linspace(-0.1, 0.1, 64).astype(jnp.float32)
    wl = jax.random.normal(k3, (num_classes, 64 * 32 * 32), jnp.float32) * 0.01
    bl = jnp.linspace(-0.1, 0.1, num_classes).astype(jnp.float32)
    return w1, b1, w2, b2, wl, bl


@partial(jax.jit, static_argnames=("num_classes",))
def net_forward(x_nchw, prepped, num_classes):
    wp1, b1r, wp2, b2r, wlp, blr = prepped
    B = x_nchw.shape[0]
    x = x_nchw.transpose(0, 2, 3, 1).astype(jnp.bfloat16)       # NCHW -> NHWC, bf16

    xg1 = gather_pool_patches(x)                                # (B, 64, 64, 48)
    y1 = conv3x3_relu_pool(xg1, wp1, b1r, rows_per_strip=8)     # (B, 64, 64, 32)

    xg2 = gather_pool_patches(y1)                               # (B, 32, 32, 512)
    y2 = conv3x3_relu_pool(xg2, wp2, b2r, rows_per_strip=8)     # (B, 32, 32, 64)

    feat = y2.reshape(B, 32 * 32 * 64)                          # NHWC flatten
    logits = linear(feat, wlp, blr)                             # (B, 128) f32
    return logits[:, :num_classes]


def net_reference(x, params):
    # Pure-JAX f32 reference (NCHW, same semantics as the PyTorch module).
    w1, b1, w2, b2, wl, bl = params
    dn = ('NCHW', 'OIHW', 'NCHW')
    y = lax.conv_general_dilated(x, w1, (1, 1), 'SAME', dimension_numbers=dn)
    y = jnp.maximum(y + b1[None, :, None, None], 0.0)
    y = lax.reduce_window(y, -jnp.inf, lax.max, (1, 1, 2, 2), (1, 1, 2, 2), 'VALID')
    y = lax.conv_general_dilated(y, w2, (1, 1), 'SAME', dimension_numbers=dn)
    y = jnp.maximum(y + b2[None, :, None, None], 0.0)
    y = lax.reduce_window(y, -jnp.inf, lax.max, (1, 1, 2, 2), (1, 1, 2, 2), 'VALID')
    feat = y.reshape(y.shape[0], -1)
    return feat @ wl.T + bl


if __name__ == "__main__":
    num_classes = 10
    key = jax.random.PRNGKey(0)
    kx, kp = jax.random.split(key)
    # Linear(64*32*32) pins the input spatial size to 128x128; keep batch small.
    x = jax.random.normal(kx, (2, 3, 128, 128), jnp.float32)
    params = init_params(kp, num_classes)
    prepped = prepare_params(params)

    out = net_forward(x, prepped, num_classes)
    out = jax.block_until_ready(out)

    assert out.shape == (2, num_classes)
    assert bool(jnp.all(jnp.isfinite(out)))
    ref = net_reference(x, params)
    assert bool(jnp.allclose(out, ref, rtol=3e-2, atol=3e-2)), "mismatch vs reference"
    print("KERNEL_OK")
</pallas_src>

<mosaic_0001>
module attributes {stable_mosaic.version = 11 : i64} {
  func.func @_conv3x3_relu_pool_kernel(%arg0: i32, %arg1: i32, %arg2: memref<1x8x64x48xbf16, #tpu.memory_space<vmem>>, %arg3: memref<4x48x32xbf16, #tpu.memory_space<vmem>>, %arg4: memref<1x32xf32, #tpu.memory_space<vmem>>, %arg5: memref<1x8x64x32xbf16, #tpu.memory_space<vmem>>) attributes {dimension_semantics = [#tpu.dimension_semantics<parallel>, #tpu.dimension_semantics<parallel>], iteration_bounds = array<i64: 2, 8>, scalar_prefetch = 0 : i64, scratch_operands = 0 : i64, tpu.core_type = #tpu.core_type<tc>, window_params = [{transform_indices = @transform_0, window_bounds = array<i64: 1, 8, 64, 48>}, {pipeline_mode = #tpu.pipeline_mode<synchronous>, transform_indices = @transform_1, window_bounds = array<i64: 4, 48, 32>}, {pipeline_mode = #tpu.pipeline_mode<synchronous>, transform_indices = @transform_2, window_bounds = array<i64: 1, 32>}, {transform_indices = @transform_3, window_bounds = array<i64: 1, 8, 64, 32>}]} {
    %c0 = arith.constant 0 : index
    %c0_0 = arith.constant 0 : index
    %c0_1 = arith.constant 0 : index
    %c0_2 = arith.constant 0 : index
    %0 = vector.load %arg2[%c0, %c0_0, %c0_1, %c0_2] : memref<1x8x64x48xbf16, #tpu.memory_space<vmem>>, vector<1x8x64x48xbf16>
    %1 = vector.shape_cast %0 : vector<1x8x64x48xbf16> to vector<8x64x48xbf16>
    %2 = vector.shape_cast %1 : vector<8x64x48xbf16> to vector<512x48xbf16>
    %c0_3 = arith.constant 0 : index
    %c0_4 = arith.constant 0 : index
    %c0_5 = arith.constant 0 : index
    %3 = vector.load %arg3[%c0_3, %c0_4, %c0_5] : memref<4x48x32xbf16, #tpu.memory_space<vmem>>, vector<1x48x32xbf16>
    %4 = vector.shape_cast %3 : vector<1x48x32xbf16> to vector<48x32xbf16>
    %cst = arith.constant dense<0.000000e+00> : vector<512x32xf32>
    %5 = tpu.matmul %2, %4, %cst {dimension_numbers = #tpu.dot_dimension_numbers<[1], [0], [0], [1], [0, 0, 1, 1], [], []>} : vector<512x48xbf16>, vector<48x32xbf16>, vector<512x32xf32> -> vector<512x32xf32>
    %c1 = arith.constant 1 : index
    %c0_6 = arith.constant 0 : index
    %c0_7 = arith.constant 0 : index
    %6 = vector.load %arg3[%c1, %c0_6, %c0_7] : memref<4x48x32xbf16, #tpu.memory_space<vmem>>, vector<1x48x32xbf16>
    %7 = vector.shape_cast %6 : vector<1x48x32xbf16> to vector<48x32xbf16>
    %cst_8 = arith.constant dense<0.000000e+00> : vector<512x32xf32>
    %8 = tpu.matmul %2, %7, %cst_8 {dimension_numbers = #tpu.dot_dimension_numbers<[1], [0], [0], [1], [0, 0, 1, 1], [], []>} : vector<512x48xbf16>, vector<48x32xbf16>, vector<512x32xf32> -> vector<512x32xf32>
    %9 = arith.maximumf %5, %8 : vector<512x32xf32>
    %c2 = arith.constant 2 : index
    %c0_9 = arith.constant 0 : index
    %c0_10 = arith.constant 0 : index
    %10 = vector.load %arg3[%c2, %c0_9, %c0_10] : memref<4x48x32xbf16, #tpu.memory_space<vmem>>, vector<1x48x32xbf16>
    %11 = vector.shape_cast %10 : vector<1x48x32xbf16> to vector<48x32xbf16>
    %cst_11 = arith.constant dense<0.000000e+00> : vector<512x32xf32>
    %12 = tpu.matmul %2, %11, %cst_11 {dimension_numbers = #tpu.dot_dimension_numbers<[1], [0], [0], [1], [0, 0, 1, 1], [], []>} : vector<512x48xbf16>, vector<48x32xbf16>, vector<512x32xf32> -> vector<512x32xf32>
    %13 = arith.maximumf %9, %12 : vector<512x32xf32>
    %c3 = arith.constant 3 : index
    %c0_12 = arith.constant 0 : index
    %c0_13 = arith.constant 0 : index
    %14 = vector.load %arg3[%c3, %c0_12, %c0_13] : memref<4x48x32xbf16, #tpu.memory_space<vmem>>, vector<1x48x32xbf16>
    %15 = vector.shape_cast %14 : vector<1x48x32xbf16> to vector<48x32xbf16>
    %cst_14 = arith.constant dense<0.000000e+00> : vector<512x32xf32>
    %16 = tpu.matmul %2, %15, %cst_14 {dimension_numbers = #tpu.dot_dimension_numbers<[1], [0], [0], [1], [0, 0, 1, 1], [], []>} : vector<512x48xbf16>, vector<48x32xbf16>, vector<512x32xf32> -> vector<512x32xf32>
    %17 = arith.maximumf %13, %16 : vector<512x32xf32>
    %c0_15 = arith.constant 0 : index
    %c0_16 = arith.constant 0 : index
    %18 = vector.load %arg4[%c0_15, %c0_16] : memref<1x32xf32, #tpu.memory_space<vmem>>, vector<1x32xf32>
    %19 = vector.broadcast %18 : vector<1x32xf32> to vector<512x32xf32>
    %20 = arith.addf %17, %19 : vector<512x32xf32>
    %cst_17 = arith.constant 0.000000e+00 : f32
    %21 = vector.broadcast %cst_17 : f32 to vector<512x32xf32>
    %22 = arith.maximumf %20, %21 : vector<512x32xf32>
    %23 = vector.shape_cast %22 : vector<512x32xf32> to vector<8x64x32xf32>
    %24 = arith.truncf %23 : vector<8x64x32xf32> to vector<8x64x32xbf16>
    %c0_18 = arith.constant 0 : index
    %c0_19 = arith.constant 0 : index
    %c0_20 = arith.constant 0 : index
    %c0_21 = arith.constant 0 : index
    %25 = vector.load %arg5[%c0_18, %c0_19, %c0_20, %c0_21] : memref<1x8x64x32xbf16, #tpu.memory_space<vmem>>, vector<1x8x64x32xbf16>
    %26 = vector.shape_cast %25 : vector<1x8x64x32xbf16> to vector<8x64x32xbf16>
    %27 = vector.shape_cast %24 : vector<8x64x32xbf16> to vector<1x8x64x32xbf16>
    tpu.vector_store %arg5[%c0_18, %c0_19, %c0_20, %c0_21], %27 {strides = array<i32>} : memref<1x8x64x32xbf16, #tpu.memory_space<vmem>>, vector<1x8x64x32xbf16>,
    return
  }
  func.func @transform_0(%arg0: i32, %arg1: i32) -> (i32, i32, i32, i32) {
    %c0_i32 = arith.constant 0 : i32
    %c0_i32_0 = arith.constant 0 : i32
    %c0_i32_1 = arith.constant 0 : i32
    return %arg0, %arg1, %c0_i32, %c0_i32_0 : i32, i32, i32, i32
  }
  func.func @transform_1(%arg0: i32, %arg1: i32) -> (i32, i32, i32) {
    %c0_i32 = arith.constant 0 : i32
    %c0_i32_0 = arith.constant 0 : i32
    %c0_i32_1 = arith.constant 0 : i32
    %c0_i32_2 = arith.constant 0 : i32
    return %c0_i32, %c0_i32_0, %c0_i32_1 : i32, i32, i32
  }
  func.func @transform_2(%arg0: i32, %arg1: i32) -> (i32, i32) {
    %c0_i32 = arith.constant 0 : i32
    %c0_i32_0 = arith.constant 0 : i32
    %c0_i32_1 = arith.constant 0 : i32
    return %c0_i32, %c0_i32_0 : i32, i32
  }
  func.func @transform_3(%arg0: i32, %arg1: i32) -> (i32, i32, i32, i32) {
    %c0_i32 = arith.constant 0 : i32
    %c0_i32_0 = arith.constant 0 : i32
    %c0_i32_1 = arith.constant 0 : i32
    return %arg0, %arg1, %c0_i32, %c0_i32_0 : i32, i32, i32, i32
  }
}

module attributes {stable_mosaic.version = 11 : i64} {
  func.func @_conv3x3_relu_pool_kernel(%arg0: i32, %arg1: i32, %arg2: memref<1x8x32x512xbf16, #tpu.memory_space<vmem>>, %arg3: memref<4x512x64xbf16, #tpu.memory_space<vmem>>, %arg4: memref<1x64xf32, #tpu.memory_space<vmem>>, %arg5: memref<1x8x32x64xbf16, #tpu.memory_space<vmem>>) attributes {dimension_semantics = [#tpu.dimension_semantics<parallel>, #tpu.dimension_semantics<parallel>], iteration_bounds = array<i64: 2, 4>, scalar_prefetch = 0 : i64, scratch_operands = 0 : i64, tpu.core_type = #tpu.core_type<tc>, window_params = [{transform_indices = @transform_0, window_bounds = array<i64: 1, 8, 32, 512>}, {pipeline_mode = #tpu.pipeline_mode<synchronous>, transform_indices = @transform_1, window_bounds = array<i64: 4, 512, 64>}, {pipeline_mode = #tpu.pipeline_mode<synchronous>, transform_indices = @transform_2, window_bounds = array<i64: 1, 64>}, {transform_indices = @transform_3, window_bounds = array<i64: 1, 8, 32, 64>}]} {
    %c0 = arith.constant 0 : index
    %c0_0 = arith.constant 0 : index
    %c0_1 = arith.constant 0 : index
    %c0_2 = arith.constant 0 : index
    %0 = vector.load %arg2[%c0, %c0_0, %c0_1, %c0_2] : memref<1x8x32x512xbf16, #tpu.memory_space<vmem>>, vector<1x8x32x512xbf16>
    %1 = vector.shape_cast %0 : vector<1x8x32x512xbf16> to vector<8x32x512xbf16>
    %2 = vector.shape_cast %1 : vector<8x32x512xbf16> to vector<256x512xbf16>
    %c0_3 = arith.constant 0 : index
    %c0_4 = arith.constant 0 : index
    %c0_5 = arith.constant 0 : index
    %3 = vector.load %arg3[%c0_3, %c0_4, %c0_5] : memref<4x512x64xbf16, #tpu.memory_space<vmem>>, vector<1x512x64xbf16>
    %4 = vector.shape_cast %3 : vector<1x512x64xbf16> to vector<512x64xbf16>
    %cst = arith.constant dense<0.000000e+00> : vector<256x64xf32>
    %5 = tpu.matmul %2, %4, %cst {dimension_numbers = #tpu.dot_dimension_numbers<[1], [0], [0], [1], [0, 0, 1, 1], [], []>} : vector<256x512xbf16>, vector<512x64xbf16>, vector<256x64xf32> -> vector<256x64xf32>
    %c1 = arith.constant 1 : index
    %c0_6 = arith.constant 0 : index
    %c0_7 = arith.constant 0 : index
    %6 = vector.load %arg3[%c1, %c0_6, %c0_7] : memref<4x512x64xbf16, #tpu.memory_space<vmem>>, vector<1x512x64xbf16>
    %7 = vector.shape_cast %6 : vector<1x512x64xbf16> to vector<512x64xbf16>
    %cst_8 = arith.constant dense<0.000000e+00> : vector<256x64xf32>
    %8 = tpu.matmul %2, %7, %cst_8 {dimension_numbers = #tpu.dot_dimension_numbers<[1], [0], [0], [1], [0, 0, 1, 1], [], []>} : vector<256x512xbf16>, vector<512x64xbf16>, vector<256x64xf32> -> vector<256x64xf32>
    %9 = arith.maximumf %5, %8 : vector<256x64xf32>
    %c2 = arith.constant 2 : index
    %c0_9 = arith.constant 0 : index
    %c0_10 = arith.constant 0 : index
    %10 = vector.load %arg3[%c2, %c0_9, %c0_10] : memref<4x512x64xbf16, #tpu.memory_space<vmem>>, vector<1x512x64xbf16>
    %11 = vector.shape_cast %10 : vector<1x512x64xbf16> to vector<512x64xbf16>
    %cst_11 = arith.constant dense<0.000000e+00> : vector<256x64xf32>
    %12 = tpu.matmul %2, %11, %cst_11 {dimension_numbers = #tpu.dot_dimension_numbers<[1], [0], [0], [1], [0, 0, 1, 1], [], []>} : vector<256x512xbf16>, vector<512x64xbf16>, vector<256x64xf32> -> vector<256x64xf32>
    %13 = arith.maximumf %9, %12 : vector<256x64xf32>
    %c3 = arith.constant 3 : index
    %c0_12 = arith.constant 0 : index
    %c0_13 = arith.constant 0 : index
    %14 = vector.load %arg3[%c3, %c0_12, %c0_13] : memref<4x512x64xbf16, #tpu.memory_space<vmem>>, vector<1x512x64xbf16>
    %15 = vector.shape_cast %14 : vector<1x512x64xbf16> to vector<512x64xbf16>
    %cst_14 = arith.constant dense<0.000000e+00> : vector<256x64xf32>
    %16 = tpu.matmul %2, %15, %cst_14 {dimension_numbers = #tpu.dot_dimension_numbers<[1], [0], [0], [1], [0, 0, 1, 1], [], []>} : vector<256x512xbf16>, vector<512x64xbf16>, vector<256x64xf32> -> vector<256x64xf32>
    %17 = arith.maximumf %13, %16 : vector<256x64xf32>
    %c0_15 = arith.constant 0 : index
    %c0_16 = arith.constant 0 : index
    %18 = vector.load %arg4[%c0_15, %c0_16] : memref<1x64xf32, #tpu.memory_space<vmem>>, vector<1x64xf32>
    %19 = vector.broadcast %18 : vector<1x64xf32> to vector<256x64xf32>
    %20 = arith.addf %17, %19 : vector<256x64xf32>
    %cst_17 = arith.constant 0.000000e+00 : f32
    %21 = vector.broadcast %cst_17 : f32 to vector<256x64xf32>
    %22 = arith.maximumf %20, %21 : vector<256x64xf32>
    %23 = vector.shape_cast %22 : vector<256x64xf32> to vector<8x32x64xf32>
    %24 = arith.truncf %23 : vector<8x32x64xf32> to vector<8x32x64xbf16>
    %c0_18 = arith.constant 0 : index
    %c0_19 = arith.constant 0 : index
    %c0_20 = arith.constant 0 : index
    %c0_21 = arith.constant 0 : index
    %25 = vector.load %arg5[%c0_18, %c0_19, %c0_20, %c0_21] : memref<1x8x32x64xbf16, #tpu.memory_space<vmem>>, vector<1x8x32x64xbf16>
    %26 = vector.shape_cast %25 : vector<1x8x32x64xbf16> to vector<8x32x64xbf16>
    %27 = vector.shape_cast %24 : vector<8x32x64xbf16> to vector<1x8x32x64xbf16>
    tpu.vector_store %arg5[%c0_18, %c0_19, %c0_20, %c0_21], %27 {strides = array<i32>} : memref<1x8x32x64xbf16, #tpu.memory_space<vmem>>, vector<1x8x32x64xbf16>,
    return
  }
  func.func @transform_0(%arg0: i32, %arg1: i32) -> (i32, i32, i32, i32) {
    %c0_i32 = arith.constant 0 : i32
    %c0_i32_0 = arith.constant 0 : i32
    %c0_i32_1 = arith.constant 0 : i32
    return %arg0, %arg1, %c0_i32, %c0_i32_0 : i32, i32, i32, i32
  }
  func.func @transform_1(%arg0: i32, %arg1: i32) -> (i32, i32, i32) {
    %c0_i32 = arith.constant 0 : i32
    %c0_i32_0 = arith.constant 0 : i32
    %c0_i32_1 = arith.constant 0 : i32
    %c0_i32_2 = arith.constant 0 : i32
    return %c0_i32, %c0_i32_0, %c0_i32_1 : i32, i32, i32
  }
  func.func @transform_2(%arg0: i32, %arg1: i32) -> (i32, i32) {
    %c0_i32 = arith.constant 0 : i32
    %c0_i32_0 = arith.constant 0 : i32
    %c0_i32_1 = arith.constant 0 : i32
    return %c0_i32, %c0_i32_0 : i32, i32
  }
  func.func @transform_3(%arg0: i32, %arg1: i32) -> (i32, i32, i32, i32) {
    %c0_i32 = arith.constant 0 : i32
    %c0_i32_0 = arith.constant 0 : i32
    %c0_i32_1 = arith.constant 0 : i32
    return %arg0, %arg1, %c0_i32, %c0_i32_0 : i32, i32, i32, i32
  }
}

module attributes {stable_mosaic.version = 11 : i64} {
  func.func @_linear_kernel(%arg0: i32, %arg1: i32, %arg2: memref<2x8192xbf16, #tpu.memory_space<vmem>>, %arg3: memref<8192x128xbf16, #tpu.memory_space<vmem>>, %arg4: memref<1x128xf32, #tpu.memory_space<vmem>>, %arg5: memref<2x128xf32, #tpu.memory_space<vmem>>, %arg6: memref<2x128xf32, #tpu.memory_space<vmem>>) attributes {dimension_semantics = [#tpu.dimension_semantics<parallel>, #tpu.dimension_semantics<arbitrary>], iteration_bounds = array<i64: 1, 8>, scalar_prefetch = 0 : i64, scratch_operands = 1 : i64, tpu.core_type = #tpu.core_type<tc>, window_params = [{transform_indices = @transform_0, window_bounds = array<i64: 2, 8192>}, {transform_indices = @transform_1, window_bounds = array<i64: 8192, 128>}, {pipeline_mode = #tpu.pipeline_mode<synchronous>, transform_indices = @transform_2, window_bounds = array<i64: 1, 128>}, {transform_indices = @transform_3, window_bounds = array<i64: 2, 128>}]} {
    %c0_i32 = arith.constant 0 : i32
    %0 = arith.cmpi eq, %arg1, %c0_i32 : i32
    %1 = arith.extui %0 : i1 to i32
    %c0_i32_0 = arith.constant 0 : i32
    %2 = arith.cmpi ne, %1, %c0_i32_0 : i32
    scf.if %2 {
      %cst_9 = arith.constant 0.000000e+00 : f32
      %12 = vector.broadcast %cst_9 : f32 to vector<2x128xf32>
      %c0_10 = arith.constant 0 : index
      %c0_11 = arith.constant 0 : index
      %13 = vector.load %arg6[%c0_10, %c0_11] : memref<2x128xf32, #tpu.memory_space<vmem>>, vector<2x128xf32>
      tpu.vector_store %arg6[%c0_10, %c0_11], %12 {strides = array<i32>} : memref<2x128xf32, #tpu.memory_space<vmem>>, vector<2x128xf32>,
    } else {
    }
    %c0 = arith.constant 0 : index
    %c0_1 = arith.constant 0 : index
    %3 = vector.load %arg6[%c0, %c0_1] : memref<2x128xf32, #tpu.memory_space<vmem>>, vector<2x128xf32>
    %c0_2 = arith.constant 0 : index
    %c0_3 = arith.constant 0 : index
    %4 = vector.load %arg2[%c0_2, %c0_3] : memref<2x8192xbf16, #tpu.memory_space<vmem>>, vector<2x8192xbf16>
    %c0_4 = arith.constant 0 : index
    %c0_5 = arith.constant 0 : index
    %5 = vector.load %arg3[%c0_4, %c0_5] : memref<8192x128xbf16, #tpu.memory_space<vmem>>, vector<8192x128xbf16>
    %cst = arith.constant dense<0.000000e+00> : vector<2x128xf32>
    %6 = tpu.matmul %4, %5, %cst {dimension_numbers = #tpu.dot_dimension_numbers<[1], [0], [0], [1], [0, 0, 1, 1], [], []>} : vector<2x8192xbf16>, vector<8192x128xbf16>, vector<2x128xf32> -> vector<2x128xf32>
    %7 = arith.addf %3, %6 : vector<2x128xf32>
    %c0_6 = arith.constant 0 : index
    %c0_7 = arith.constant 0 : index
    %8 = vector.load %arg6[%c0_6, %c0_7] : memref<2x128xf32, #tpu.memory_space<vmem>>, vector<2x128xf32>
    tpu.vector_store %arg6[%c0_6, %c0_7], %7 {strides = array<i32>} : memref<2x128xf32, #tpu.memory_space<vmem>>, vector<2x128xf32>,
    %c7_i32 = arith.constant 7 : i32
    %9 = arith.cmpi eq, %arg1, %c7_i32 : i32
    %10 = arith.extui %9 : i1 to i32
    %c0_i32_8 = arith.constant 0 : i32
    %11 = arith.cmpi ne, %10, %c0_i32_8 : i32
    scf.if %11 {
      %c0_9 = arith.constant 0 : index
      %c0_10 = arith.constant 0 : index
      %12 = vector.load %arg6[%c0_9, %c0_10] : memref<2x128xf32, #tpu.memory_space<vmem>>, vector<2x128xf32>
      %c0_11 = arith.constant 0 : index
      %c0_12 = arith.constant 0 : index
      %13 = vector.load %arg4[%c0_11, %c0_12] : memref<1x128xf32, #tpu.memory_space<vmem>>, vector<1x128xf32>
      %14 = vector.broadcast %13 : vector<1x128xf32> to vector<2x128xf32>
      %15 = arith.addf %12, %14 : vector<2x128xf32>
      %c0_13 = arith.constant 0 : index
      %c0_14 = arith.constant 0 : index
      %16 = vector.load %arg5[%c0_13, %c0_14] : memref<2x128xf32, #tpu.memory_space<vmem>>, vector<2x128xf32>
      tpu.vector_store %arg5[%c0_13, %c0_14], %15 {strides = array<i32>} : memref<2x128xf32, #tpu.memory_space<vmem>>, vector<2x128xf32>,
    } else {
    }
    return
  }
  func.func @transform_0(%arg0: i32, %arg1: i32) -> (i32, i32) {
    %c0_i32 = arith.constant 0 : i32
    return %arg0, %arg1 : i32, i32
  }
  func.func @transform_1(%arg0: i32, %arg1: i32) -> (i32, i32) {
    %c0_i32 = arith.constant 0 : i32
    %c0_i32_0 = arith.constant 0 : i32
    return %arg1, %c0_i32 : i32, i32
  }
  func.func @transform_2(%arg0: i32, %arg1: i32) -> (i32, i32) {
    %c0_i32 = arith.constant 0 : i32
    %c0_i32_0 = arith.constant 0 : i32
    %c0_i32_1 = arith.constant 0 : i32
    return %c0_i32, %c0_i32_0 : i32, i32
  }
  func.func @transform_3(%arg0: i32, %arg1: i32) -> (i32, i32) {
    %c0_i32 = arith.constant 0 : i32
    %c0_i32_0 = arith.constant 0 : i32
    return %arg0, %c0_i32 : i32, i32
  }
}

</mosaic_0001>

<bundles_post_ra>
// kernel: net_forward.3
= control target key start
LH: loop header
LB: loop body
LE: loop exit
PB: predicated region body
PF: predicated region fallthrough
CT: control target
= control target key end

     0   :  { %s3437_s12 = smov 0   ;;  %s3439_s13 = smov 0   ;;  %s4663_s0 = inlined_call_operand.vmem [shape: bf16[2,64,64,48], index: 0, kind: input, shape index: {}]   ;;  %s4664_s1 = inlined_call_operand.vmem [shape: bf16[4,48,32], index: 1, kind: input, shape index: {}]   ;;  %s4665_s2 = inlined_call_operand.vmem [shape: f32[1,32], index: 2, kind: input, shape index: {}]   ;;  %s4666_s3 = inlined_call_operand.vmem [shape: bf16[2,64,64,32], index: 3, kind: output, shape index: {}]  }
   0x1   :  { %s3441_s14 = smov 0   ;;  %s3443_s15 = smov 0  }
   0x2   :  { %s3445_s16 = smov 0  }
   0x3 LB: > { %s22_s17 = sadd.s32 1, %s3407_s14  ;;  %s25_s18 = sadd.s32 1, %s3411_s15  ;;  %s3415_s16 = sphi %s3445_s16, %s13_s16   ;;  %s3411_s15 = sphi %s3443_s15, %s4974_s15   ;;  %s3407_s14 = sphi %s3441_s14, %s4973_s14   ;;  %s3403_s13 = sphi %s3439_s13, %s4972_s13   ;;  %s3399_s12 = sphi %s3437_s12, %s4971_s12  }
   0x4   : > { %p23_p0 = scmp.ge.s32.totalorder %s22_s17, 8  ;;  %p2543_p1 = scmp.ge.s32.totalorder %s3415_s16, 1 }
   0x5   : > { %p159_p2 = scmp.lt.s32.totalorder %s3415_s16, 17 }
   0x6   : > { %s4976_s17 = smov (%p23_p0, %s22_s17), 0  ;;  %s4978_s18 = smov (!%p23_p0, %s25_s18), %s3411_s15 }
   0x7   : > { %p160_p3 = pnand %p2543_p1, %p159_p2  ;;  %p27_p4 = scmp.ge.s32.totalorder %s4978_s18, 2 }
   0x9   : > { %s4980_s18 = smov (%p27_p4, %s4978_s18), 0  ;;  %163 = sbr.rel (%p160_p3) target bundleno = 503 (0x1f7), region = 32 }
  0x10   : > { %v3333_v0 = vld [vmem:[%s4664_s1] sm:$0xff]   ;;  %s2544_s21 = sshll.u32 %s3399_s12, 3  ;;  %v3334_v1 = vld [vmem:[%s4664_s1 + $0x18] sm:$0xff]   ;;  %p194_p5 = scmp.lt.s32.totalorder %s3403_s13, 1  ;;  %v3335_v2 = vld [vmem:[%s4664_s1 + $0x8] sm:$0xff]   ;;  %vm464_vm0 = vcmask 392192  }
  0x11   : > { %3013 = vmatprep.subr.bf16.mxu0 %v3333_v0  ;;  %p196_p6 = scmp.lt.s32.totalorder %s2544_s21, 63  ;;  %3083 = vmatprep.subr.bf16.mxu1 %v3334_v1  ;;  %v3336_v3 = vld [vmem:[%s4664_s1 + $0x20] sm:$0xff]   ;;  %v3337_v4 = vld [vmem:[%s4664_s1 + $0x10] sm:$0xff]   ;;  %v3338_v5 = vld [vmem:[%s4664_s1 + $0x28] sm:$0xff]   ;;  %vm2375_vm1 = vcmask 257024  }
  0x12   : > { %3014 = vmatpush3.bf16.msra.mxu0 %v3333_v0  ;;  %s4982_s13 = smov (!%p194_p5, %s3403_s13), 1  ;;  %3084 = vmatpush3.bf16.msra.mxu1 %v3334_v1  ;;  %v3341_v6 = vld [vmem:[%s4664_s1 + $0x30] sm:$0xff]   ;;  %v3342_v7 = vld [vmem:[%s4664_s1 + $0x48] sm:$0xff]   ;;  %v3353_v11 = vld [vmem:[%s4664_s1 + $0x38] sm:$0xff]  }
  0x13   : > { %3015 = vmatprep.subr.bf16.mxu0 %v3335_v2  ;;  %s4984_s21 = smov (!%p196_p6, %s2544_s21), 63  ;;  %3085 = vmatprep.subr.bf16.mxu1 %v3336_v3  ;;  %s2546_s5 = sshll.u32 %s4982_s13, 9  ;;  %v3354_v14 = vld [vmem:[%s4664_s1 + $0x50] sm:$0xff]   ;;  %v3365_v17 = vld [vmem:[%s4664_s1 + $0x40] sm:$0xff]   ;;  %v3368_v20 = vld [vmem:[%s4664_s1 + $0x58] sm:$0xff]  }
  0x14   : > { %s2545_s6 = sshll.u32 %s4984_s21, 3 }
  0x15   : > { %s3488_s7 = sadd.s32 %s2546_s5, %s2545_s6 }
  0x16   : > { %3016 = vmatpush3.bf16.msra.mxu0 %v3335_v2  ;;  %3086 = vmatpush3.bf16.msra.mxu1 %v3336_v3  ;;  %s2547_s8 = sshll.u32 %s3488_s7, 2 }
  0x17   : > { %3017 = vmatprep.subr.bf16.mxu0 %v3337_v4  ;;  %3087 = vmatprep.subr.bf16.mxu1 %v3338_v5  ;;  %s3499_s19 = scalar_lea.vmem %s4663_s0, %s2547_s8  ;;  %s4277_s6 = scalar_lea.vmem %s4666_s3, %s2547_s8 }
  0x18   : > { %v3505_v8 = vld [vmem:[%s3499_s19] sm:$0xff]   ;;  %v3508_v9 = vld [vmem:[%s3499_s19 + $0x8] sm:$0xff]   ;;  %v3513_v10 = vld [vmem:[%s3499_s19 + $0x10] sm:$0xff]  }
  0x19   : > { %3019 = vmatprep.mubr.msk.bf16.mxu0 %vm464_vm0, %v3505_v8  ;;  %3089 = vmatprep.mubr.msk.bf16.mxu1 %vm464_vm0, %v3505_v8  ;;  %v3529_v12 = vld [vmem:[%s3499_s19 + $0x18] sm:$0xff]   ;;  %v3532_v13 = vld [vmem:[%s3499_s19 + $0x20] sm:$0xff]   ;;  %v3546_v15 = vld [vmem:[%s3499_s19 + $0x28] sm:$0xff]  }
  0x1a   : > { %3018 = vmatpush3.bf16.msra.mxu0 %v3337_v4  ;;  %3088 = vmatpush3.bf16.msra.mxu1 %v3338_v5  ;;  %v3549_v16 = vld [vmem:[%s3499_s19 + $0x30] sm:$0xff]   ;;  %v3563_v18 = vld [vmem:[%s3499_s19 + $0x38] sm:$0xff]   ;;  %v3566_v19 = vld [vmem:[%s3499_s19 + $0x40] sm:$0xff]  }
  0x1b   : > { %3153 = vmatprep.subr.bf16.mxu0 %v3341_v6  ;;  %3223 = vmatprep.subr.bf16.mxu1 %v3342_v7  ;;  %v3580_v21 = vld [vmem:[%s3499_s19 + $0x48] sm:$0xff]   ;;  %v3583_v22 = vld [vmem:[%s3499_s19 + $0x50] sm:$0xff]   ;;  %v3594_v23 = vld [vmem:[%s3499_s19 + $0x58] sm:$0xff]  }
  0x1c   : > { %v3597_v24 = vld [vmem:[%s3499_s19 + $0x60] sm:$0xff]   ;;  %v3608_v25 = vld [vmem:[%s3499_s19 + $0x68] sm:$0xff]   ;;  %v3611_v26 = vld [vmem:[%s3499_s19 + $0x70] sm:$0xff]  }
  0x1d   : > { %3020 = vmatmul.mubr.msk.bf16.vlgmr.msra.gmra.mrb[0].mxu0 %vm464_vm0, %v3508_v9  ;;  %3090 = vmatmul.mubr.msk.bf16.vlgmr.msra.gmra.mrb[0].mxu1 %vm464_vm0, %v3508_v9  ;;  %v3622_v27 = vld [vmem:[%s3499_s19 + $0x78] sm:$0xff]   ;;  %v3625_v28 = vld [vmem:[%s3499_s19 + $0x80] sm:$0xff]   ;;  %v3636_v29 = vld [vmem:[%s3499_s19 + $0x88] sm:$0xff]  }
  0x1e   : > { %3154 = vmatpush3.bf16.msra.mxu0 %v3341_v6  ;;  %3224 = vmatpush3.bf16.msra.mxu1 %v3342_v7  ;;  %v3639_v30 = vld [vmem:[%s3499_s19 + $0x90] sm:$0xff]   ;;  %v3650_v31 = vld [vmem:[%s3499_s19 + $0x98] sm:$0xff]   ;;  %v3653_v32 = vld [vmem:[%s3499_s19 + $0xa0] sm:$0xff]  }
  0x1f   : > { %3023 = vmatprep.mubr.msk.bf16.mxu0 %vm464_vm0, %v3513_v10  ;;  %3093 = vmatprep.mubr.msk.bf16.mxu1 %vm464_vm0, %v3513_v10  ;;  %v3664_v33 = vld [vmem:[%s3499_s19 + $0xa8] sm:$0xff]   ;;  %v3667_v34 = vld [vmem:[%s3499_s19 + $0xb0] sm:$0xff]   ;;  %v3678_v35 = vld [vmem:[%s3499_s19 + $0xb8] sm:$0xff]  }
  0x20   : > { %3155 = vmatprep.subr.bf16.mxu0 %v3353_v11  ;;  %3225 = vmatprep.subr.bf16.mxu1 %v3354_v14  ;;  %v3681_v36 = vld [vmem:[%s3499_s19 + $0xc0] sm:$0xff]   ;;  %v3692_v37 = vld [vmem:[%s3499_s19 + $0xc8] sm:$0xff]   ;;  %v3695_v38 = vld [vmem:[%s3499_s19 + $0xd0] sm:$0xff]  }
  0x21   : > { %v3706_v39 = vld [vmem:[%s3499_s19 + $0xd8] sm:$0xff]   ;;  %v3709_v40 = vld [vmem:[%s3499_s19 + $0xe0] sm:$0xff]   ;;  %v3720_v41 = vld [vmem:[%s3499_s19 + $0xe8] sm:$0xff]  }
  0x22   : > { %3156 = vmatpush3.bf16.msra.mxu0 %v3353_v11  ;;  %3226 = vmatpush3.bf16.msra.mxu1 %v3354_v14  ;;  %v3723_v42 = vld [vmem:[%s3499_s19 + $0xf0] sm:$0xff]   ;;  %v3734_v43 = vld [vmem:[%s3499_s19 + $0xf8] sm:$0xff]  }
  0x23   : > { %3157 = vmatprep.subr.bf16.mxu0 %v3365_v17  ;;  %3227 = vmatprep.subr.bf16.mxu1 %v3368_v20 }
  0x25   : > { %3024 = vmatmul.mubr.msk.bf16.gmra.mrb[4].mxu0 %vm464_vm0, %v3529_v12  ;;  %3094 = vmatmul.mubr.msk.bf16.gmra.mrb[4].mxu1 %vm464_vm0, %v3529_v12 }
  0x26   : > { %3027 = vmatprep.mubr.msk.bf16.mxu0 %vm464_vm0, %v3532_v13  ;;  %3097 = vmatprep.mubr.msk.bf16.mxu1 %vm464_vm0, %v3532_v13 }
  0x27   : > { %3158 = vmatpush3.bf16.msra.mxu0 %v3365_v17  ;;  %3228 = vmatpush3.bf16.msra.mxu1 %v3368_v20 }
  0x2d   : > { %3028 = vmatmul.mubr.msk.bf16.gmra.mrb[8].mxu0 %vm464_vm0, %v3546_v15  ;;  %3098 = vmatmul.mubr.msk.bf16.gmra.mrb[8].mxu1 %vm464_vm0, %v3546_v15 }
  0x2e   : > { %3031 = vmatprep.mubr.msk.bf16.mxu0 %vm464_vm0, %v3549_v16  ;;  %3101 = vmatprep.mubr.msk.bf16.mxu1 %vm464_vm0, %v3549_v16 }
  0x35   : > { %3032 = vmatmul.mubr.msk.bf16.gmra.mrb[12].mxu0 %vm464_vm0, %v3563_v18  ;;  %3102 = vmatmul.mubr.msk.bf16.gmra.mrb[12].mxu1 %vm464_vm0, %v3563_v18 }
  0x36   : > { %3035 = vmatprep.mubr.msk.bf16.mxu0 %vm464_vm0, %v3566_v19  ;;  %3105 = vmatprep.mubr.msk.bf16.mxu1 %vm464_vm0, %v3566_v19 }
  0x3d   : > { %3036 = vmatmul.mubr.msk.bf16.gmra.mrb[16].mxu0 %vm464_vm0, %v3580_v21  ;;  %3106 = vmatmul.mubr.msk.bf16.gmra.mrb[16].mxu1 %vm464_vm0, %v3580_v21 }
  0x3e   : > { %3039 = vmatprep.mubr.msk.bf16.mxu0 %vm464_vm0, %v3583_v22  ;;  %3109 = vmatprep.mubr.msk.bf16.mxu1 %vm464_vm0, %v3583_v22 }
  0x45   : > { %3040 = vmatmul.mubr.msk.bf16.gmra.mrb[20].mxu0 %vm464_vm0, %v3594_v23  ;;  %3110 = vmatmul.mubr.msk.bf16.gmra.mrb[20].mxu1 %vm464_vm0, %v3594_v23 }
  0x46   : > { %3043 = vmatprep.mubr.msk.bf16.mxu0 %vm464_vm0, %v3597_v24  ;;  %3113 = vmatprep.mubr.msk.bf16.mxu1 %vm464_vm0, %v3597_v24 }
  0x4d   : > { %3044 = vmatmul.mubr.msk.bf16.gmra.mrb[24].mxu0 %vm464_vm0, %v3608_v25  ;;  %3114 = vmatmul.mubr.msk.bf16.gmra.mrb[24].mxu1 %vm464_vm0, %v3608_v25 }
  0x4e   : > { %3047 = vmatprep.mubr.msk.bf16.mxu0 %vm464_vm0, %v3611_v26  ;;  %3117 = vmatprep.mubr.msk.bf16.mxu1 %vm464_vm0, %v3611_v26 }
  0x55   : > { %3048 = vmatmul.mubr.msk.bf16.gmra.mrb[28].mxu0 %vm464_vm0, %v3622_v27  ;;  %3118 = vmatmul.mubr.msk.bf16.gmra.mrb[28].mxu1 %vm464_vm0, %v3622_v27 }
  0x56   : > { %3051 = vmatprep.mubr.msk.bf16.mxu0 %vm464_vm0, %v3625_v28  ;;  %3121 = vmatprep.mubr.msk.bf16.mxu1 %vm464_vm0, %v3625_v28 }
  0x5d   : > { %3052 = vmatmul.mubr.msk.bf16.gmra.mrb[32].mxu0 %vm464_vm0, %v3636_v29  ;;  %3122 = vmatmul.mubr.msk.bf16.gmra.mrb[32].mxu1 %vm464_vm0, %v3636_v29 }
  0x5e   : > { %3055 = vmatprep.mubr.msk.bf16.mxu0 %vm464_vm0, %v3639_v30  ;;  %3125 = vmatprep.mubr.msk.bf16.mxu1 %vm464_vm0, %v3639_v30 }
  0x65   : > { %3056 = vmatmul.mubr.msk.bf16.gmra.mrb[36].mxu0 %vm464_vm0, %v3650_v31  ;;  %3126 = vmatmul.mubr.msk.bf16.gmra.mrb[36].mxu1 %vm464_vm0, %v3650_v31 }
  0x66   : > { %3059 = vmatprep.mubr.msk.bf16.mxu0 %vm464_vm0, %v3653_v32  ;;  %3129 = vmatprep.mubr.msk.bf16.mxu1 %vm464_vm0, %v3653_v32 }
  0x6d   : > { %3060 = vmatmul.mubr.msk.bf16.gmra.mrb[40].mxu0 %vm464_vm0, %v3664_v33  ;;  %3130 = vmatmul.mubr.msk.bf16.gmra.mrb[40].mxu1 %vm464_vm0, %v3664_v33 }
  0x6e   : > { %3063 = vmatprep.mubr.msk.bf16.mxu0 %vm464_vm0, %v3667_v34  ;;  %3133 = vmatprep.mubr.msk.bf16.mxu1 %vm464_vm0, %v3667_v34 }
  0x75   : > { %3064 = vmatmul.mubr.msk.bf16.gmra.mrb[44].mxu0 %vm464_vm0, %v3678_v35  ;;  %3134 = vmatmul.mubr.msk.bf16.gmra.mrb[44].mxu1 %vm464_vm0, %v3678_v35 }
  0x76   : > { %3067 = vmatprep.mubr.msk.bf16.mxu0 %vm464_vm0, %v3681_v36  ;;  %3137 = vmatprep.mubr.msk.bf16.mxu1 %vm464_vm0, %v3681_v36 }
  0x7d   : > { %3068 = vmatmul.mubr.msk.bf16.gmra.mrb[48].mxu0 %vm464_vm0, %v3692_v37  ;;  %3138 = vmatmul.mubr.msk.bf16.gmra.mrb[48].mxu1 %vm464_vm0, %v3692_v37 }
  0x7e   : > { %3071 = vmatprep.mubr.msk.bf16.mxu0 %vm464_vm0, %v3695_v38  ;;  %3141 = vmatprep.mubr.msk.bf16.mxu1 %vm464_vm0, %v3695_v38 }
  0x85   : > { %3072 = vmatmul.mubr.msk.bf16.gmra.mrb[52].mxu0 %vm464_vm0, %v3706_v39  ;;  %3142 = vmatmul.mubr.msk.bf16.gmra.mrb[52].mxu1 %vm464_vm0, %v3706_v39 }
  0x86   : > { %3075 = vmatprep.mubr.msk.bf16.mxu0 %vm464_vm0, %v3709_v40  ;;  %3145 = vmatprep.mubr.msk.bf16.mxu1 %vm464_vm0, %v3709_v40 }
  0x8d   : > { %3076 = vmatmul.mubr.msk.bf16.gmra.mrb[56].mxu0 %vm464_vm0, %v3720_v41  ;;  %3146 = vmatmul.mubr.msk.bf16.gmra.mrb[56].mxu1 %vm464_vm0, %v3720_v41 }
  0x8e   : > { %3079 = vmatprep.mubr.msk.bf16.mxu0 %vm464_vm0, %v3723_v42  ;;  %3149 = vmatprep.mubr.msk.bf16.mxu1 %vm464_vm0, %v3723_v42 }
  0x95   : > { %3080 = vmatmul.mubr.msk.bf16.gmra.mrb[60].mxu0 %vm464_vm0, %v3734_v43  ;;  %3150 = vmatmul.mubr.msk.bf16.gmra.mrb[60].mxu1 %vm464_vm0, %v3734_v43 }
  0x96   : > { %3159 = vmatprep.mubr.msk.bf16.mxu0 %vm464_vm0, %v3505_v8  ;;  %3229 = vmatprep.mubr.msk.bf16.mxu1 %vm464_vm0, %v3505_v8 }
  0x9d   : > { %3160 = vmatmul.mubr.msk.bf16.vlgmr.msra.gmra.mrb[64].mxu0 %vm464_vm0, %v3508_v9  ;;  %3230 = vmatmul.mubr.msk.bf16.vlgmr.msra.gmra.mrb[64].mxu1 %vm464_vm0, %v3508_v9 }
  0x9e   : > { %3163 = vmatprep.mubr.msk.bf16.mxu0 %vm464_vm0, %v3513_v10  ;;  %3233 = vmatprep.mubr.msk.bf16.mxu1 %vm464_vm0, %v3513_v10 }
  0xa5   : > { %3164 = vmatmul.mubr.msk.bf16.gmra.mrb[68].mxu0 %vm464_vm0, %v3529_v12  ;;  %3234 = vmatmul.mubr.msk.bf16.gmra.mrb[68].mxu1 %vm464_vm0, %v3529_v12 }
  0xa6   : > { %3167 = vmatprep.mubr.msk.bf16.mxu0 %vm464_vm0, %v3532_v13  ;;  %3237 = vmatprep.mubr.msk.bf16.mxu1 %vm464_vm0, %v3532_v13 }
  0xad   : > { %3168 = vmatmul.mubr.msk.bf16.gmra.mrb[72].mxu0 %vm464_vm0, %v3546_v15  ;;  %3238 = vmatmul.mubr.msk.bf16.gmra.mrb[72].mxu1 %vm464_vm0, %v3546_v15 }
  0xae   : > { %3171 = vmatprep.mubr.msk.bf16.mxu0 %vm464_vm0, %v3549_v16  ;;  %3241 = vmatprep.mubr.msk.bf16.mxu1 %vm464_vm0, %v3549_v16 }
  0xb5   : > { %3172 = vmatmul.mubr.msk.bf16.gmra.mrb[76].mxu0 %vm464_vm0, %v3563_v18  ;;  %3242 = vmatmul.mubr.msk.bf16.gmra.mrb[76].mxu1 %vm464_vm0, %v3563_v18 }
  0xb6   : > { %3175 = vmatprep.mubr.msk.bf16.mxu0 %vm464_vm0, %v3566_v19  ;;  %3245 = vmatprep.mubr.msk.bf16.mxu1 %vm464_vm0, %v3566_v19 }
  0xbd   : > { %3176 = vmatmul.mubr.msk.bf16.gmra.mrb[80].mxu0 %vm464_vm0, %v3580_v21  ;;  %3246 = vmatmul.mubr.msk.bf16.gmra.mrb[80].mxu1 %vm464_vm0, %v3580_v21 }
  0xbe   : > { %3179 = vmatprep.mubr.msk.bf16.mxu0 %vm464_vm0, %v3583_v22  ;;  %3249 = vmatprep.mubr.msk.bf16.mxu1 %vm464_vm0, %v3583_v22 }
  0xc5   : > { %3180 = vmatmul.mubr.msk.bf16.gmra.mrb[84].mxu0 %vm464_vm0, %v3594_v23  ;;  %3250 = vmatmul.mubr.msk.bf16.gmra.mrb[84].mxu1 %vm464_vm0, %v3594_v23 }
  0xc6   : > { %3183 = vmatprep.mubr.msk.bf16.mxu0 %vm464_vm0, %v3597_v24  ;;  %3253 = vmatprep.mubr.msk.bf16.mxu1 %vm464_vm0, %v3597_v24 }
  0xcd   : > { %3184 = vmatmul.mubr.msk.bf16.gmra.mrb[88].mxu0 %vm464_vm0, %v3608_v25  ;;  %3254 = vmatmul.mubr.msk.bf16.gmra.mrb[88].mxu1 %vm464_vm0, %v3608_v25 }
  0xce   : > { %3187 = vmatprep.mubr.msk.bf16.mxu0 %vm464_vm0, %v3611_v26  ;;  %3257 = vmatprep.mubr.msk.bf16.mxu1 %vm464_vm0, %v3611_v26 }
  0xd5   : > { %3188 = vmatmul.mubr.msk.bf16.gmra.mrb[92].mxu0 %vm464_vm0, %v3622_v27  ;;  %3258 = vmatmul.mubr.msk.bf16.gmra.mrb[92].mxu1 %vm464_vm0, %v3622_v27 }
  0xd6   : > { %3191 = vmatprep.mubr.msk.bf16.mxu0 %vm464_vm0, %v3625_v28  ;;  %3261 = vmatprep.mubr.msk.bf16.mxu1 %vm464_vm0, %v3625_v28 }
  0xdd   : > { %3192 = vmatmul.mubr.msk.bf16.gmra.mrb[96].mxu0 %vm464_vm0, %v3636_v29  ;;  %3262 = vmatmul.mubr.msk.bf16.gmra.mrb[96].mxu1 %vm464_vm0, %v3636_v29 }
  0xde   : > { %3195 = vmatprep.mubr.msk.bf16.mxu0 %vm464_vm0, %v3639_v30  ;;  %3265 = vmatprep.mubr.msk.bf16.mxu1 %vm464_vm0, %v3639_v30 }
  0xe5   : > { %3196 = vmatmul.mubr.msk.bf16.gmra.mrb[100].mxu0 %vm464_vm0, %v3650_v31  ;;  %3266 = vmatmul.mubr.msk.bf16.gmra.mrb[100].mxu1 %vm464_vm0, %v3650_v31 }
  0xe6   : > { %3199 = vmatprep.mubr.msk.bf16.mxu0 %vm464_vm0, %v3653_v32  ;;  %3269 = vmatprep.mubr.msk.bf16.mxu1 %vm464_vm0, %v3653_v32 }
  0xed   : > { %3200 = vmatmul.mubr.msk.bf16.gmra.mrb[104].mxu0 %vm464_vm0, %v3664_v33  ;;  %3270 = vmatmul.mubr.msk.bf16.gmra.mrb[104].mxu1 %vm464_vm0, %v3664_v33 }
  0xee   : > { %3203 = vmatprep.mubr.msk.bf16.mxu0 %vm464_vm0, %v3667_v34  ;;  %3273 = vmatprep.mubr.msk.bf16.mxu1 %vm464_vm0, %v3667_v34 }
  0xf0   : > { %v3832_v44 = vpop.f32.mrb[0].mxu0  ;;  %v3834_v45 = vpop.f32.mrb[0].mxu1 }
  0xf1   : > { %v3836_v46 = vpop.f32.mrb[1].mxu0  ;;  %v3840_v48 = vpop.f32.mrb[1].mxu1 }
  0xf2   : > { %v3842_v49 = vpop.f32.mrb[2].mxu0  ;;  %v3846_v51 = vpop.f32.mrb[2].mxu1 }
  0xf3   : > { %v3848_v52 = vpop.f32.mrb[3].mxu0  ;;  %v3852_v54 = vpop.f32.mrb[3].mxu1 }
  0xf5   : > { %3204 = vmatmul.mubr.msk.bf16.gmra.mrb[108].mxu0 %vm464_vm0, %v3678_v35  ;;  %3274 = vmatmul.mubr.msk.bf16.gmra.mrb[108].mxu1 %vm464_vm0, %v3678_v35 }
  0xf6   : > { %3207 = vmatprep.mubr.msk.bf16.mxu0 %vm464_vm0, %v3681_v36  ;;  %3277 = vmatprep.mubr.msk.bf16.mxu1 %vm464_vm0, %v3681_v36 }
  0xf8   : > { %v3864_v56 = vpop.f32.mrb[4].mxu0  ;;  %v3866_v57 = vpop.f32.mrb[4].mxu1 }
  0xf9   : > { %v3868_v58 = vpop.f32.mrb[5].mxu0  ;;  %v3872_v60 = vpop.f32.mrb[5].mxu1 }
  0xfa   : > { %v3874_v61 = vpop.f32.mrb[6].mxu0  ;;  %v3878_v63 = vpop.f32.mrb[6].mxu1 }
  0xfb   : > { %v3880_v0 = vpop.f32.mrb[7].mxu0  ;;  %v3884_v2 = vpop.f32.mrb[7].mxu1 }
  0xfd   : > { %3208 = vmatmul.mubr.msk.bf16.gmra.mrb[112].mxu0 %vm464_vm0, %v3692_v37  ;;  %3278 = vmatmul.mubr.msk.bf16.gmra.mrb[112].mxu1 %vm464_vm0, %v3692_v37 }
  0xfe   : > { %3211 = vmatprep.mubr.msk.bf16.mxu0 %vm464_vm0, %v3695_v38  ;;  %3281 = vmatprep.mubr.msk.bf16.mxu1 %vm464_vm0, %v3695_v38 }
 0x100   : > { %v3896_v4 = vpop.f32.mrb[8].mxu0  ;;  %v3898_v5 = vpop.f32.mrb[8].mxu1 }
 0x101   : > { %v3900_v6 = vpop.f32.mrb[9].mxu0  ;;  %v3904_v8 = vpop.f32.mrb[9].mxu1 }
 0x102   : > { %v3906_v9 = vpop.f32.mrb[10].mxu0  ;;  %v3910_v11 = vpop.f32.mrb[10].mxu1 }
 0x103   : > { %v3912_v12 = vpop.f32.mrb[11].mxu0  ;;  %v3916_v14 = vpop.f32.mrb[11].mxu1 }
 0x105   : > { %3212 = vmatmul.mubr.msk.bf16.gmra.mrb[116].mxu0 %vm464_vm0, %v3706_v39  ;;  %3282 = vmatmul.mubr.msk.bf16.gmra.mrb[116].mxu1 %vm464_vm0, %v3706_v39 }
 0x106   : > { %3215 = vmatprep.mubr.msk.bf16.mxu0 %vm464_vm0, %v3709_v40  ;;  %3285 = vmatprep.mubr.msk.bf16.mxu1 %vm464_vm0, %v3709_v40 }
 0x108   : > { %v3928_v16 = vpop.f32.mrb[12].mxu0  ;;  %v3930_v17 = vpop.f32.mrb[12].mxu1 }
 0x109   : > { %v3932_v18 = vpop.f32.mrb[13].mxu0  ;;  %v3936_v20 = vpop.f32.mrb[13].mxu1 }
 0x10a   : > { %v3938_v21 = vpop.f32.mrb[14].mxu0  ;;  %v3942_v23 = vpop.f32.mrb[14].mxu1 }
 0x10b   : > { %v3944_v24 = vpop.f32.mrb[15].mxu0  ;;  %v3948_v26 = vpop.f32.mrb[15].mxu1 }
 0x10d   : > { %3216 = vmatmul.mubr.msk.bf16.gmra.mrb[120].mxu0 %vm464_vm0, %v3720_v41  ;;  %3286 = vmatmul.mubr.msk.bf16.gmra.mrb[120].mxu1 %vm464_vm0, %v3720_v41 }
 0x10e   : > { %3219 = vmatprep.mubr.msk.bf16.mxu0 %vm464_vm0, %v3723_v42  ;;  %3289 = vmatprep.mubr.msk.bf16.mxu1 %vm464_vm0, %v3723_v42 }
 0x110   : > { %v3960_v28 = vpop.f32.mrb[16].mxu0  ;;  %v3962_v29 = vpop.f32.mrb[16].mxu1 }
 0x111   : > { %v3964_v30 = vpop.f32.mrb[17].mxu0  ;;  %v3968_v32 = vpop.f32.mrb[17].mxu1 }
 0x112   : > { %v3970_v33 = vpop.f32.mrb[18].mxu0  ;;  %v3974_v35 = vpop.f32.mrb[18].mxu1 }
 0x113   : > { %v3976_v36 = vpop.f32.mrb[19].mxu0  ;;  %v3980_v38 = vpop.f32.mrb[19].mxu1 }
 0x115   : > { %3220 = vmatmul.mubr.msk.bf16.gmra.mrb[124].mxu0 %vm464_vm0, %v3734_v43  ;;  %3290 = vmatmul.mubr.msk.bf16.gmra.mrb[124].mxu1 %vm464_vm0, %v3734_v43 }
 0x118   : > { %v3988_v40 = vpop.f32.mrb[20].mxu0  ;;  %v3990_v41 = vpop.f32.mrb[20].mxu1 }
 0x119   : > { %v3992_v42 = vpop.f32.mrb[21].mxu0  ;;  %v3996_v34 = vpop.f32.mrb[21].mxu1 }
 0x11a   : > { %v3998_v31 = vpop.f32.mrb[22].mxu0  ;;  %v4002_v27 = vpop.f32.mrb[22].mxu1 }
 0x11b   : > { %v4004_v25 = vpop.f32.mrb[23].mxu0  ;;  %v4008_v22 = vpop.f32.mrb[23].mxu1 }
 0x120   : > { %v4012_v37 = vpop.f32.mrb[24].mxu0  ;;  %v4014_v15 = vpop.f32.mrb[24].mxu1 }
 0x121   : > { %4747 = vst [vmem:[#allocation2_spill] sm:$0xff] %v4012_v37  ;;  %4748 = vst [vmem:[#allocation3_spill] sm:$0xff] %v4014_v15  ;;  %v4016_v13 = vpop.f32.mrb[25].mxu0  ;;  %v4020_v10 = vpop.f32.mrb[25].mxu1 }
 0x122   : > { %4749 = vst [vmem:[#allocation4_spill] sm:$0xff] %v4016_v13  ;;  %4750 = vst [vmem:[#allocation5_spill] sm:$0xff] %v4020_v10  ;;  %v4022_v7 = vpop.f32.mrb[26].mxu0  ;;  %v4026_v3 = vpop.f32.mrb[26].mxu1 }
 0x123   : > { %4751 = vst [vmem:[#allocation6_spill] sm:$0xff] %v4022_v7  ;;  %4752 = vst [vmem:[#allocation7_spill] sm:$0xff] %v4026_v3  ;;  %v4028_v1 = vpop.f32.mrb[27].mxu0  ;;  %v4032_v62 = vpop.f32.mrb[27].mxu1 }
 0x124   : > { %4753 = vst [vmem:[#allocation8_spill] sm:$0xff] %v4028_v1  ;;  %4754 = vst [vmem:[#allocation9_spill] sm:$0xff] %v4032_v62 }
 0x128   : > { %v4036_v39 = vpop.f32.mrb[28].mxu0  ;;  %v4038_v55 = vpop.f32.mrb[28].mxu1 }
 0x129   : > { %4755 = vst [vmem:[#allocation10_spill] sm:$0xff] %v4036_v39  ;;  %4756 = vst [vmem:[#allocation11_spill] sm:$0xff] %v4038_v55  ;;  %v4040_v53 = vpop.f32.mrb[29].mxu0  ;;  %v4044_v50 = vpop.f32.mrb[29].mxu1 }
 0x12a   : > { %4757 = vst [vmem:[#allocation12_spill] sm:$0xff] %v4040_v53  ;;  %4758 = vst [vmem:[#allocation13_spill] sm:$0xff] %v4044_v50  ;;  %v4046_v47 = vpop.f32.mrb[30].mxu0  ;;  %v4050_v3 = vpop.f32.mrb[30].mxu1 }
 0x12b   : > { %4759 = vst [vmem:[#allocation14_spill] sm:$0xff] %v4046_v47  ;;  %4760 = vst [vmem:[#allocation15_spill] sm:$0xff] %v4050_v3  ;;  %v4052_v7 = vpop.f32.mrb[31].mxu0  ;;  %v4056_v62 = vpop.f32.mrb[31].mxu1 }
 0x12c   : > { %4761 = vst [vmem:[#allocation16_spill] sm:$0xff] %v4052_v7  ;;  %4762 = vst [vmem:[#allocation17_spill] sm:$0xff] %v4056_v62 }
 0x130   : > { %v4060_v43 = vpop.f32.mrb[32].mxu0  ;;  %v4062_v55 = vpop.f32.mrb[32].mxu1 }
 0x131   : > { %4763 = vst [vmem:[#allocation18_spill] sm:$0xff] %v4060_v43  ;;  %4764 = vst [vmem:[#allocation19_spill] sm:$0xff] %v4062_v55  ;;  %v4064_v39 = vpop.f32.mrb[33].mxu0  ;;  %v4068_v50 = vpop.f32.mrb[33].mxu1 }
 0x132   : > { %4765 = vst [vmem:[#allocation20_spill] sm:$0xff] %v4064_v39  ;;  %4766 = vst [vmem:[#allocation21_spill] sm:$0xff] %v4068_v50  ;;  %v4070_v53 = vpop.f32.mrb[34].mxu0  ;;  %v4074_v3 = vpop.f32.mrb[34].mxu1 }
 0x133   : > { %4767 = vst [vmem:[#allocation22_spill] sm:$0xff] %v4070_v53  ;;  %4768 = vst [vmem:[#allocation23_spill] sm:$0xff] %v4074_v3  ;;  %v4076_v47 = vpop.f32.mrb[35].mxu0  ;;  %v4080_v62 = vpop.f32.mrb[35].mxu1 }
 0x134   : > { %4769 = vst [vmem:[#allocation24_spill] sm:$0xff] %v4076_v47  ;;  %4770 = vst [vmem:[#allocation25_spill] sm:$0xff] %v4080_v62 }
 0x138   : > { %v4084_v19 = vpop.f32.mrb[36].mxu0  ;;  %v4086_v55 = vpop.f32.mrb[36].mxu1 }
 0x139   : > { %4771 = vst [vmem:[#allocation26_spill] sm:$0xff] %v4084_v19  ;;  %4772 = vst [vmem:[#allocation27_spill] sm:$0xff] %v4086_v55  ;;  %v4088_v43 = vpop.f32.mrb[37].mxu0  ;;  %v4092_v50 = vpop.f32.mrb[37].mxu1 }
 0x13a   : > { %4773 = vst [vmem:[#allocation28_spill] sm:$0xff] %v4088_v43  ;;  %4774 = vst [vmem:[#allocation29_spill] sm:$0xff] %v4092_v50  ;;  %v4094_v39 = vpop.f32.mrb[38].mxu0  ;;  %v4098_v3 = vpop.f32.mrb[38].mxu1 }
 0x13b   : > { %4775 = vst [vmem:[#allocation30_spill] sm:$0xff] %v4094_v39  ;;  %4776 = vst [vmem:[#allocation31_spill] sm:$0xff] %v4098_v3  ;;  %v4100_v53 = vpop.f32.mrb[39].mxu0  ;;  %v4104_v62 = vpop.f32.mrb[39].mxu1 }
 0x13c   : > { %4777 = vst [vmem:[#allocation32_spill] sm:$0xff] %v4100_v53  ;;  %4778 = vst [vmem:[#allocation33_spill] sm:$0xff] %v4104_v62 }
 0x140   : > { %v4108_v59 = vpop.f32.mrb[40].mxu0  ;;  %v4110_v55 = vpop.f32.mrb[40].mxu1 }
 0x141   : > { %4779 = vst [vmem:[#allocation34_spill] sm:$0xff] %v4108_v59  ;;  %4780 = vst [vmem:[#allocation35_spill] sm:$0xff] %v4110_v55  ;;  %v4112_v19 = vpop.f32.mrb[41].mxu0  ;;  %v4116_v50 = vpop.f32.mrb[41].mxu1 }
 0x142   : > { %4781 = vst [vmem:[#allocation36_spill] sm:$0xff] %v4112_v19  ;;  %4782 = vst [vmem:[#allocation37_spill] sm:$0xff] %v4116_v50  ;;  %v4118_v43 = vpop.f32.mrb[42].mxu0  ;;  %v4122_v3 = vpop.f32.mrb[42].mxu1 }
 0x143   : > { %4783 = vst [vmem:[#allocation38_spill] sm:$0xff] %v4118_v43  ;;  %4784 = vst [vmem:[#allocation39_spill] sm:$0xff] %v4122_v3  ;;  %v4124_v39 = vpop.f32.mrb[43].mxu0  ;;  %v4128_v62 = vpop.f32.mrb[43].mxu1 }
 0x144   : > { %4785 = vst [vmem:[#allocation40_spill] sm:$0xff] %v4124_v39  ;;  %4786 = vst [vmem:[#allocation41_spill] sm:$0xff] %v4128_v62 }
 0x148   : > { %v4132_v1 = vpop.f32.mrb[44].mxu0  ;;  %v4134_v55 = vpop.f32.mrb[44].mxu1 }
 0x149   : > { %4787 = vst [vmem:[#allocation42_spill] sm:$0xff] %v4132_v1  ;;  %4788 = vst [vmem:[#allocation43_spill] sm:$0xff] %v4134_v55  ;;  %v4136_v59 = vpop.f32.mrb[45].mxu0  ;;  %v4140_v50 = vpop.f32.mrb[45].mxu1 }
 0x14a   : > { %4789 = vst [vmem:[#allocation44_spill] sm:$0xff] %v4136_v59  ;;  %4790 = vst [vmem:[#allocation45_spill] sm:$0xff] %v4140_v50  ;;  %v4142_v19 = vpop.f32.mrb[46].mxu0  ;;  %v4146_v3 = vpop.f32.mrb[46].mxu1 }
 0x14b   : > { %4791 = vst [vmem:[#allocation46_spill] sm:$0xff] %v4142_v19  ;;  %4792 = vst [vmem:[#allocation47_spill] sm:$0xff] %v4146_v3  ;;  %v4148_v43 = vpop.f32.mrb[47].mxu0  ;;  %v4152_v62 = vpop.f32.mrb[47].mxu1 }
 0x14c   : > { %4793 = vst [vmem:[#allocation48_spill] sm:$0xff] %v4148_v43  ;;  %4794 = vst [vmem:[#allocation49_spill] sm:$0xff] %v4152_v62 }
 0x150   : > { %v4156_v7 = vpop.f32.mrb[48].mxu0  ;;  %v4158_v55 = vpop.f32.mrb[48].mxu1 }
 0x151   : > { %4795 = vst [vmem:[#allocation50_spill] sm:$0xff] %v4156_v7  ;;  %4796 = vst [vmem:[#allocation51_spill] sm:$0xff] %v4158_v55  ;;  %v4160_v1 = vpop.f32.mrb[49].mxu0  ;;  %v4164_v50 = vpop.f32.mrb[49].mxu1 }
 0x152   : > { %4797 = vst [vmem:[#allocation52_spill] sm:$0xff] %v4160_v1  ;;  %4798 = vst [vmem:[#allocation53_spill] sm:$0xff] %v4164_v50  ;;  %v4166_v59 = vpop.f32.mrb[50].mxu0  ;;  %v4170_v3 = vpop.f32.mrb[50].mxu1 }
 0x153   : > { %4799 = vst [vmem:[#allocation54_spill] sm:$0xff] %v4166_v59  ;;  %4800 = vst [vmem:[#allocation55_spill] sm:$0xff] %v4170_v3  ;;  %v4172_v19 = vpop.f32.mrb[51].mxu0  ;;  %v4176_v62 = vpop.f32.mrb[51].mxu1 }
 0x154   : > { %4801 = vst [vmem:[#allocation56_spill] sm:$0xff] %v4172_v19  ;;  %4802 = vst [vmem:[#allocation57_spill] sm:$0xff] %v4176_v62  ;;  %v4258_v19 = vld [vmem:[%s4665_s2] ss:$0 sm:$0xff] }
 0x158   : > { %v4180_v47 = vpop.f32.mrb[52].mxu0  ;;  %v4182_v55 = vpop.f32.mrb[52].mxu1 }
 0x159   : > { %4803 = vst [vmem:[#allocation58_spill] sm:$0xff] %v4180_v47  ;;  %4804 = vst [vmem:[#allocation59_spill] sm:$0xff] %v4182_v55  ;;  %v4184_v7 = vpop.f32.mrb[53].mxu0  ;;  %v4188_v50 = vpop.f32.mrb[53].mxu1 }
 0x15a   : > { %4805 = vst [vmem:[#allocation60_spill] sm:$0xff] %v4184_v7  ;;  %4806 = vst [vmem:[#allocation61_spill] sm:$0xff] %v4188_v50  ;;  %v4190_v1 = vpop.f32.mrb[54].mxu0  ;;  %v4194_v3 = vpop.f32.mrb[54].mxu1 }
 0x15b   : > { %4807 = vst [vmem:[#allocation62_spill] sm:$0xff] %v4190_v1  ;;  %4808 = vst [vmem:[#allocation63_spill] sm:$0xff] %v4194_v3  ;;  %v4196_v59 = vpop.f32.mrb[55].mxu0  ;;  %v4200_v62 = vpop.f32.mrb[55].mxu1 }
 0x15c   : > { %4809 = vst [vmem:[#allocation64_spill] sm:$0xff] %v4196_v59  ;;  %4810 = vst [vmem:[#allocation65_spill] sm:$0xff] %v4200_v62  ;;  %v4828_v59 = vmax.f32 %v3836_v46, %v3840_v48 }
 0x160   : > { %v4204_v53 = vpop.f32.mrb[56].mxu0  ;;  %v4206_v55 = vpop.f32.mrb[56].mxu1 }
 0x161   : > { %4811 = vst [vmem:[#allocation66_spill] sm:$0xff] %v4204_v53  ;;  %4812 = vst [vmem:[#allocation67_spill] sm:$0xff] %v4206_v55  ;;  %v4208_v47 = vpop.f32.mrb[57].mxu0  ;;  %v4212_v50 = vpop.f32.mrb[57].mxu1 }
 0x162   : > { %4813 = vst [vmem:[#allocation68_spill] sm:$0xff] %v4208_v47  ;;  %4814 = vst [vmem:[#allocation69_spill] sm:$0xff] %v4212_v50  ;;  %v4214_v7 = vpop.f32.mrb[58].mxu0  ;;  %v4218_v3 = vpop.f32.mrb[58].mxu1 }
 0x163   : > { %4815 = vst [vmem:[#allocation70_spill] sm:$0xff] %v4214_v7  ;;  %4816 = vst [vmem:[#allocation71_spill] sm:$0xff] %v4218_v3  ;;  %v4220_v1 = vpop.f32.mrb[59].mxu0  ;;  %v4224_v62 = vpop.f32.mrb[59].mxu1 }
 0x164   : > { %4817 = vst [vmem:[#allocation72_spill] sm:$0xff] %v4220_v1  ;;  %4818 = vst [vmem:[#allocation73_spill] sm:$0xff] %v4224_v62 }
 0x168   : > { %v4228_v39 = vpop.f32.mrb[60].mxu0  ;;  %v4230_v55 = vpop.f32.mrb[60].mxu1 }
 0x169   : > { %4819 = vst [vmem:[#allocation74_spill] sm:$0xff] %v4228_v39  ;;  %4820 = vst [vmem:[#allocation75_spill] sm:$0xff] %v4230_v55  ;;  %v4232_v53 = vpop.f32.mrb[61].mxu0  ;;  %v4236_v50 = vpop.f32.mrb[61].mxu1  ;;  %v4827_v55 = vmax.f32 %v3832_v44, %v3834_v45 }
 0x16a   : > { %4821 = vst [vmem:[#allocation76_spill] sm:$0xff] %v4232_v53  ;;  %4822 = vst [vmem:[#allocation77_spill] sm:$0xff] %v4236_v50  ;;  %v4238_v47 = vpop.f32.mrb[62].mxu0  ;;  %v4242_v3 = vpop.f32.mrb[62].mxu1 }
 0x16b   : > { %4823 = vst [vmem:[#allocation78_spill] sm:$0xff] %v4238_v47  ;;  %4824 = vst [vmem:[#allocation79_spill] sm:$0xff] %v4242_v3  ;;  %v4244_v7 = vpop.f32.mrb[63].mxu0  ;;  %v4248_v62 = vpop.f32.mrb[63].mxu1 }
 0x16c   : > { %4825 = vst [vmem:[#allocation80_spill] sm:$0xff] %v4244_v7  ;;  %4826 = vst [vmem:[#allocation81_spill] sm:$0xff] %v4248_v62  ;;  %v4829_v62 = vmax.f32 %v3842_v49, %v3846_v51  ;;  %v4830_v7 = vmax.f32 %v3848_v52, %v3852_v54 }
 0x170   : > { %v3161_v43 = vpop.f32.mrb[64].mxu0  ;;  %v3231_v10 = vpop.f32.mrb[64].mxu1 }
 0x171   : > { %v1544_v39 = vmax.f32 %v4827_v55, %v3161_v43  ;;  %v1287_v13 = vpop.f32.mrb[65].mxu0  ;;  %v1665_v47 = vpop.f32.mrb[65].mxu1 }
 0x172   : > { %v1542_v3 = vmax.f32 %v4828_v59, %v1287_v13  ;;  %v3162_v50 = vpop.f32.mrb[66].mxu0  ;;  %v3232_v45 = vpop.f32.mrb[66].mxu1 }
 0x173   : > { %v1922_v1 = vmax.f32 %v1544_v39, %v3231_v10  ;;  %v1545_v44 = vmax.f32 %v4829_v62, %v3162_v50  ;;  %v1290_v55 = vpop.f32.mrb[67].mxu0  ;;  %v1668_v15 = vpop.f32.mrb[67].mxu1 }
 0x174   : > { %v1920_v43 = vmax.f32 %v1542_v3, %v1665_v47  ;;  %v1543_v53 = vmax.f32 %v4830_v7, %v1290_v55 }
 0x175   : > { %v1993_v37 = vadd.f32 %v4258_v19, %v1922_v1  ;;  %v1923_v46 = vmax.f32 %v1545_v44, %v3232_v45 }
 0x176   : > { %v1991_v48 = vadd.f32 %v4258_v19, %v1920_v43  ;;  %v1921_v59 = vmax.f32 %v1543_v53, %v1668_v15  ;;  %v4831_v53 = vmax.f32 %v3864_v56, %v3866_v57  ;;  %v4832_v15 = vmax.f32 %v3868_v58, %v3872_v60 }
 0x177   : > { %v2057_v13 = vmax.f32 %v1993_v37, 0.0  ;;  %v1994_v10 = vadd.f32 %v4258_v19, %v1923_v46  ;;  %v4833_v56 = vmax.f32 %v3874_v61, %v3878_v63  ;;  %v4834_v58 = vmax.f32 %v3880_v0, %v3884_v2 }
 0x178   : > { %v2055_v47 = vmax.f32 %v1991_v48, 0.0  ;;  %v1992_v49 = vadd.f32 %v4258_v19, %v1921_v59  ;;  %v3165_v50 = vpop.f32.mrb[68].mxu0  ;;  %v3235_v62 = vpop.f32.mrb[68].mxu1 }
 0x179   : > { %v2811_v51 = vpack.c.bf16 %v2057_v13, %v2057_v13  ;;  %v2058_v52 = vmax.f32 %v1994_v10, 0.0  ;;  %v1548_v54 = vmax.f32 %v4831_v53, %v3165_v50  ;;  %v1303_v1 = vpop.f32.mrb[69].mxu0  ;;  %v1681_v39 = vpop.f32.mrb[69].mxu1 }
 0x17a   : > { %v2809_v3 = vpack.c.bf16 %v2055_v47, %v2055_v47  ;;  %v2056_v7 = vmax.f32 %v1992_v49, 0.0  ;;  %v1546_v37 = vmax.f32 %v4832_v15, %v1303_v1  ;;  %v3166_v44 = vpop.f32.mrb[70].mxu0  ;;  %v3236_v43 = vpop.f32.mrb[70].mxu1 }
 0x17b   : > { %2378 = vst.msk [vmem:[%s4277_s6 + $0x8] sm:$0xf] %vm2375_vm1, %v2811_v51  ;;  %v2812_v45 = vpack.c.bf16 %v2058_v52, %v2058_v52  ;;  %v1926_v55 = vmax.f32 %v1548_v54, %v3235_v62  ;;  %v1549_v57 = vmax.f32 %v4833_v56, %v3166_v44  ;;  %v1306_v46 = vpop.f32.mrb[71].mxu0  ;;  %v1684_v13 = vpop.f32.mrb[71].mxu1  ;;  %v4835_v54 = vmax.f32 %v3896_v4, %v3898_v5 }
 0x17c   : > { %2376 = vst.msk [vmem:[%s4277_s6] sm:$0xf] %vm2375_vm1, %v2809_v3  ;;  %v2810_v48 = vpack.c.bf16 %v2056_v7, %v2056_v7  ;;  %v1924_v59 = vmax.f32 %v1546_v37, %v1681_v39  ;;  %v1547_v60 = vmax.f32 %v4834_v58, %v1306_v46  ;;  %v4836_v37 = vmax.f32 %v3900_v6, %v3904_v8 }
 0x17d   : > { %2379 = vst.msk [vmem:[%s4277_s6 + $0xc] sm:$0xf] %vm2375_vm1, %v2812_v45  ;;  %v1997_v10 = vadd.f32 %v4258_v19, %v1926_v55  ;;  %v1927_v47 = vmax.f32 %v1549_v57, %v3236_v43  ;;  %v4837_v4 = vmax.f32 %v3906_v9, %v3910_v11  ;;  %v4838_v6 = vmax.f32 %v3912_v12, %v3916_v14 }
 0x17e   : > { %2377 = vst.msk [vmem:[%s4277_s6 + $0x4] sm:$0xf] %vm2375_vm1, %v2810_v48  ;;  %v1995_v61 = vadd.f32 %v4258_v19, %v1924_v59  ;;  %v1925_v63 = vmax.f32 %v1547_v60, %v1684_v13 }
 0x17f   : > { %v2061_v49 = vmax.f32 %v1997_v10, 0.0  ;;  %v1998_v50 = vadd.f32 %v4258_v19, %v1927_v47 }
 0x180   : > { %v2059_v51 = vmax.f32 %v1995_v61, 0.0  ;;  %v1996_v52 = vadd.f32 %v4258_v19, %v1925_v63  ;;  %v3169_v0 = vpop.f32.mrb[72].mxu0  ;;  %v3239_v1 = vpop.f32.mrb[72].mxu1 }
 0x181   : > { %v2815_v2 = vpack.c.bf16 %v2061_v49, %v2061_v49  ;;  %v2062_v53 = vmax.f32 %v1998_v50, 0.0  ;;  %v1552_v62 = vmax.f32 %v4835_v54, %v3169_v0  ;;  %v1319_v3 = vpop.f32.mrb[73].mxu0  ;;  %v1697_v44 = vpop.f32.mrb[73].mxu1  ;;  %v4839_v49 = vmax.f32 %v3928_v16, %v3930_v17 }
 0x182   : > { %v2813_v7 = vpack.c.bf16 %v2059_v51, %v2059_v51  ;;  %v2060_v15 = vmax.f32 %v1996_v52, 0.0  ;;  %v1550_v39 = vmax.f32 %v4836_v37, %v1319_v3  ;;  %v3170_v45 = vpop.f32.mrb[74].mxu0  ;;  %v3240_v57 = vpop.f32.mrb[74].mxu1  ;;  %v4841_v16 = vmax.f32 %v3938_v21, %v3942_v23 }
 0x183   : > { %2382 = vst.msk [vmem:[%s4277_s6 + $0x18] sm:$0xf] %vm2375_vm1, %v2815_v2  ;;  %v2816_v55 = vpack.c.bf16 %v2062_v53, %v2062_v53  ;;  %v1930_v56 = vmax.f32 %v1552_v62, %v3239_v1  ;;  %v1553_v5 = vmax.f32 %v4837_v4, %v3170_v45  ;;  %v1322_v43 = vpop.f32.mrb[75].mxu0  ;;  %v1700_v59 = vpop.f32.mrb[75].mxu1  ;;  %v4840_v53 = vmax.f32 %v3932_v18, %v3936_v20 }
 0x184   : > { %2380 = vst.msk [vmem:[%s4277_s6 + $0x10] sm:$0xf] %vm2375_vm1, %v2813_v7  ;;  %v2814_v46 = vpack.c.bf16 %v2060_v15, %v2060_v15  ;;  %v1928_v48 = vmax.f32 %v1550_v39, %v1697_v44  ;;  %v1551_v8 = vmax.f32 %v4838_v6, %v1322_v43  ;;  %v4842_v18 = vmax.f32 %v3944_v24, %v3948_v26 }
 0x185   : > { %2383 = vst.msk [vmem:[%s4277_s6 + $0x1c] sm:$0xf] %vm2375_vm1, %v2816_v55  ;;  %v2001_v58 = vadd.f32 %v4258_v19, %v1930_v56  ;;  %v1931_v60 = vmax.f32 %v1553_v5, %v3240_v57 }
 0x186   : > { %2381 = vst.msk [vmem:[%s4277_s6 + $0x14] sm:$0xf] %vm2375_vm1, %v2814_v46  ;;  %v1999_v9 = vadd.f32 %v4258_v19, %v1928_v48  ;;  %v1929_v11 = vmax.f32 %v1551_v8, %v1700_v59  ;;  %v4843_v48 = vmax.f32 %v3960_v28, %v3962_v29  ;;  %v4845_v28 = vmax.f32 %v3970_v33, %v3974_v35 }
 0x187   : > { %v2065_v13 = vmax.f32 %v2001_v58, 0.0  ;;  %v2002_v10 = vadd.f32 %v4258_v19, %v1931_v60 }
 0x188   : > { %v2063_v47 = vmax.f32 %v1999_v9, 0.0  ;;  %v2000_v61 = vadd.f32 %v4258_v19, %v1929_v11  ;;  %v3173_v12 = vpop.f32.mrb[76].mxu0  ;;  %v3243_v51 = vpop.f32.mrb[76].mxu1  ;;  %v4844_v9 = vmax.f32 %v3964_v30, %v3968_v32  ;;  %v4846_v30 = vmax.f32 %v3976_v36, %v3980_v38 }
 0x189   : > { %v2819_v14 = vpack.c.bf16 %v2065_v13, %v2065_v13  ;;  %v2066_v63 = vmax.f32 %v2002_v10, 0.0  ;;  %v1556_v50 = vmax.f32 %v4839_v49, %v3173_v12  ;;  %v1335_v52 = vpop.f32.mrb[77].mxu0  ;;  %v1713_v62 = vpop.f32.mrb[77].mxu1 }
 0x18a   : > { %v2817_v0 = vpack.c.bf16 %v2063_v47, %v2063_v47  ;;  %v2064_v2 = vmax.f32 %v2000_v61, 0.0  ;;  %v1554_v54 = vmax.f32 %v4840_v53, %v1335_v52  ;;  %v3174_v1 = vpop.f32.mrb[78].mxu0  ;;  %v3244_v15 = vpop.f32.mrb[78].mxu1 }
 0x18b   : > { %2386 = vst.msk [vmem:[%s4277_s6 + $0x28] sm:$0xf] %vm2375_vm1, %v2819_v14  ;;  %v2820_v3 = vpack.c.bf16 %v2066_v63, %v2066_v63  ;;  %v1934_v7 = vmax.f32 %v1556_v50, %v3243_v51  ;;  %v1557_v17 = vmax.f32 %v4841_v16, %v3174_v1  ;;  %v1338_v37 = vpop.f32.mrb[79].mxu0  ;;  %v1716_v45 = vpop.f32.mrb[79].mxu1  ;;  %v4847_v1 = vmax.f32 %v3988_v40, %v3990_v41 }
 0x18c   : > { %2384 = vst.msk [vmem:[%s4277_s6 + $0x20] sm:$0xf] %vm2375_vm1, %v2817_v0  ;;  %v2818_v39 = vpack.c.bf16 %v2064_v2, %v2064_v2  ;;  %v1932_v44 = vmax.f32 %v1554_v54, %v1713_v62  ;;  %v1555_v20 = vmax.f32 %v4842_v18, %v1338_v37  ;;  %v4848_v37 = vmax.f32 %v3992_v42, %v3996_v34 }
 0x18d   : > { %2387 = vst.msk [vmem:[%s4277_s6 + $0x2c] sm:$0xf] %vm2375_vm1, %v2820_v3  ;;  %v2005_v55 = vadd.f32 %v4258_v19, %v1934_v7  ;;  %v1935_v56 = vmax.f32 %v1557_v17, %v3244_v15  ;;  %v4849_v40 = vmax.f32 %v3998_v31, %v4002_v27  ;;  %v4850_v34 = vmax.f32 %v4004_v25, %v4008_v22 }
 0x18e   : > { %2385 = vst.msk [vmem:[%s4277_s6 + $0x24] sm:$0xf] %vm2375_vm1, %v2818_v39  ;;  %v2003_v21 = vadd.f32 %v4258_v19, %v1932_v44  ;;  %v1933_v23 = vmax.f32 %v1555_v20, %v1716_v45 }
 0x18f   : > { %v2069_v4 = vmax.f32 %v2005_v55, 0.0  ;;  %v2006_v5 = vadd.f32 %v4258_v19, %v1935_v56 }
 0x190   : > { %v2067_v57 = vmax.f32 %v2003_v21, 0.0  ;;  %v2004_v43 = vadd.f32 %v4258_v19, %v1933_v23  ;;  %v3177_v24 = vpop.f32.mrb[80].mxu0  ;;  %v3247_v8 = vpop.f32.mrb[80].mxu1 }
 0x191   : > { %v2823_v26 = vpack.c.bf16 %v2069_v4, %v2069_v4  ;;  %v2070_v46 = vmax.f32 %v2006_v5, 0.0  ;;  %v1560_v6 = vmax.f32 %v4843_v48, %v3177_v24  ;;  %v1351_v59 = vpop.f32.mrb[81].mxu0  ;;  %v1729_v13 = vpop.f32.mrb[81].mxu1 }
 0x192   : > { %v2821_v58 = vpack.c.bf16 %v2067_v57, %v2067_v57  ;;  %v2068_v60 = vmax.f32 %v2004_v43, 0.0  ;;  %v1558_v11 = vmax.f32 %v4844_v9, %v1351_v59  ;;  %v3178_v10 = vpop.f32.mrb[82].mxu0  ;;  %v3248_v12 = vpop.f32.mrb[82].mxu1 }
 0x193   : > { %2390 = vst.msk [vmem:[%s4277_s6 + $0x38] sm:$0xf] %vm2375_vm1, %v2823_v26  ;;  %v2824_v47 = vpack.c.bf16 %v2070_v46, %v2070_v46  ;;  %v1938_v61 = vmax.f32 %v1560_v6, %v3247_v8  ;;  %v1561_v29 = vmax.f32 %v4845_v28, %v3178_v10  ;;  %v1354_v14 = vpop.f32.mrb[83].mxu0  ;;  %v1732_v50 = vpop.f32.mrb[83].mxu1  ;;  %v4851_v6 = vld [vmem:[#allocation2_spill] sm:$0xff]  ;;  %v4852_v8 = vld [vmem:[#allocation3_spill] sm:$0xff] }
 0x194   : > { %2388 = vst.msk [vmem:[%s4277_s6 + $0x30] sm:$0xf] %vm2375_vm1, %v2821_v58  ;;  %v2822_v63 = vpack.c.bf16 %v2068_v60, %v2068_v60  ;;  %v1936_v49 = vmax.f32 %v1558_v11, %v1729_v13  ;;  %v1559_v32 = vmax.f32 %v4846_v30, %v1354_v14  ;;  %v4853_v59 = vmax.f32 %v4851_v6, %v4852_v8  ;;  %v4854_v10 = vld [vmem:[#allocation4_spill] sm:$0xff]  ;;  %v4858_v30 = vld [vmem:[#allocation7_spill] sm:$0xff] }
 0x195   : > { %2391 = vst.msk [vmem:[%s4277_s6 + $0x3c] sm:$0xf] %vm2375_vm1, %v2824_v47  ;;  %v2009_v51 = vadd.f32 %v4258_v19, %v1938_v61  ;;  %v1939_v52 = vmax.f32 %v1561_v29, %v3248_v12  ;;  %v4855_v47 = vld [vmem:[#allocation5_spill] sm:$0xff]  ;;  %v4872_v8 = vld [vmem:[#allocation16_spill] sm:$0xff] }
 0x196   : > { %2389 = vst.msk [vmem:[%s4277_s6 + $0x34] sm:$0xf] %vm2375_vm1, %v2822_v63  ;;  %v2007_v33 = vadd.f32 %v4258_v19, %v1936_v49  ;;  %v1937_v35 = vmax.f32 %v1559_v32, %v1732_v50  ;;  %v4856_v61 = vmax.f32 %v4854_v10, %v4855_v47  ;;  %v4857_v49 = vld [vmem:[#allocation6_spill] sm:$0xff] }
 0x197   : > { %v2073_v0 = vmax.f32 %v2009_v51, 0.0  ;;  %v2010_v2 = vadd.f32 %v4258_v19, %v1939_v52  ;;  %v4859_v32 = vmax.f32 %v4857_v49, %v4858_v30  ;;  %v4875_v30 = vld [vmem:[#allocation18_spill] sm:$0xff] }
 0x198   : > { %v2071_v53 = vmax.f32 %v2007_v33, 0.0  ;;  %v2008_v54 = vadd.f32 %v4258_v19, %v1937_v35  ;;  %v3181_v36 = vpop.f32.mrb[84].mxu0  ;;  %v3251_v7 = vpop.f32.mrb[84].mxu1 }
 0x199   : > { %v2827_v38 = vpack.c.bf16 %v2073_v0, %v2073_v0  ;;  %v2074_v62 = vmax.f32 %v2010_v2, 0.0  ;;  %v1564_v3 = vmax.f32 %v4847_v1, %v3181_v36  ;;  %v1367_v16 = vpop.f32.mrb[85].mxu0  ;;  %v1745_v44 = vpop.f32.mrb[85].mxu1  ;;  %v4860_v0 = vld [vmem:[#allocation8_spill] sm:$0xff]  ;;  %v4861_v2 = vld [vmem:[#allocation9_spill] sm:$0xff] }
 0x19a   : > { %v2825_v17 = vpack.c.bf16 %v2071_v53, %v2071_v53  ;;  %v2072_v15 = vmax.f32 %v2008_v54, 0.0  ;;  %v1562_v39 = vmax.f32 %v4848_v37, %v1367_v16  ;;  %v3182_v18 = vpop.f32.mrb[86].mxu0  ;;  %v3252_v55 = vpop.f32.mrb[86].mxu1  ;;  %v4862_v53 = vmax.f32 %v4860_v0, %v4861_v2  ;;  %v4878_v2 = vld [vmem:[#allocation20_spill] sm:$0xff] }
 0x19b   : > { %2394 = vst.msk [vmem:[%s4277_s6 + $0x48] sm:$0xf] %vm2375_vm1, %v2827_v38  ;;  %v2828_v20 = vpack.c.bf16 %v2074_v62, %v2074_v62  ;;  %v1942_v45 = vmax.f32 %v1564_v3, %v3251_v7  ;;  %v1565_v41 = vmax.f32 %v4849_v40, %v3182_v18  ;;  %v1370_v56 = vpop.f32.mrb[87].mxu0  ;;  %v1748_v4 = vpop.f32.mrb[87].mxu1  ;;  %v4863_v18 = vld [vmem:[#allocation10_spill] sm:$0xff] }
 0x19c   : > { %2392 = vst.msk [vmem:[%s4277_s6 + $0x40] sm:$0xf] %vm2375_vm1, %v2825_v17  ;;  %v2826_v21 = vpack.c.bf16 %v2072_v15, %v2072_v15  ;;  %v1940_v23 = vmax.f32 %v1562_v39, %v1745_v44  ;;  %v1563_v42 = vmax.f32 %v4850_v34, %v1370_v56  ;;  %v4867_v34 = vld [vmem:[#allocation13_spill] sm:$0xff] }
 0x19d   : > { %2395 = vst.msk [vmem:[%s4277_s6 + $0x4c] sm:$0xf] %vm2375_vm1, %v2828_v20  ;;  %v2013_v5 = vadd.f32 %v4258_v19, %v1942_v45  ;;  %v1943_v57 = vmax.f32 %v1565_v41, %v3252_v55  ;;  %v4864_v20 = vld [vmem:[#allocation11_spill] sm:$0xff] }
 0x19e   : > { %2393 = vst.msk [vmem:[%s4277_s6 + $0x44] sm:$0xf] %vm2375_vm1, %v2826_v21  ;;  %v2011_v27 = vadd.f32 %v4258_v19, %v1940_v23  ;;  %v1941_v31 = vmax.f32 %v1563_v42, %v1748_v4  ;;  %v4865_v45 = vmax.f32 %v4863_v18, %v4864_v20  ;;  %v4866_v23 = vld [vmem:[#allocation12_spill] sm:$0xff] }
 0x19f   : > { %v2077_v43 = vmax.f32 %v2013_v5, 0.0  ;;  %v2014_v24 = vadd.f32 %v4258_v19, %v1943_v57  ;;  %v4868_v42 = vmax.f32 %v4866_v23, %v4867_v34  ;;  %v4884_v20 = vld [vmem:[#allocation24_spill] sm:$0xff] }
 0x1a0   : > { %v2075_v26 = vmax.f32 %v2011_v27, 0.0  ;;  %v2012_v46 = vadd.f32 %v4258_v19, %v1941_v31  ;;  %v3185_v22 = vpop.f32.mrb[88].mxu0  ;;  %v3255_v60 = vpop.f32.mrb[88].mxu1 }
 0x1a1   : > { %v2831_v25 = vpack.c.bf16 %v2077_v43, %v2077_v43  ;;  %v2078_v48 = vmax.f32 %v2014_v24, 0.0  ;;  %v1568_v58 = vmax.f32 %v4853_v59, %v3185_v22  ;;  %v1383_v9 = vpop.f32.mrb[89].mxu0  ;;  %v1761_v29 = vpop.f32.mrb[89].mxu1  ;;  %v4869_v43 = vld [vmem:[#allocation14_spill] sm:$0xff]  ;;  %v4870_v24 = vld [vmem:[#allocation15_spill] sm:$0xff]  ;;  %v4873_v59 = vld [vmem:[#allocation17_spill] sm:$0xff] }
 0x1a2   : > { %v2829_v11 = vpack.c.bf16 %v2075_v26, %v2075_v26  ;;  %v2076_v13 = vmax.f32 %v2012_v46, 0.0  ;;  %v1566_v28 = vmax.f32 %v4856_v61, %v1383_v9  ;;  %v3186_v12 = vpop.f32.mrb[90].mxu0  ;;  %v3256_v51 = vpop.f32.mrb[90].mxu1  ;;  %v4871_v26 = vmax.f32 %v4869_v43, %v4870_v24  ;;  %v4887_v24 = vld [vmem:[#allocation26_spill] sm:$0xff] }
 0x1a3   : > { %2398 = vst.msk [vmem:[%s4277_s6 + $0x58] sm:$0xf] %vm2375_vm1, %v2831_v25  ;;  %v2832_v14 = vpack.c.bf16 %v2078_v48, %v2078_v48  ;;  %v1946_v63 = vmax.f32 %v1568_v58, %v3255_v60  ;;  %v1569_v50 = vmax.f32 %v4859_v32, %v3186_v12  ;;  %v1386_v52 = vpop.f32.mrb[91].mxu0  ;;  %v1764_v36 = vpop.f32.mrb[91].mxu1  ;;  %v4874_v58 = vmax.f32 %v4872_v8, %v4873_v59  ;;  %v4876_v32 = vld [vmem:[#allocation19_spill] sm:$0xff]  ;;  %v4890_v59 = vld [vmem:[#allocation28_spill] sm:$0xff] }
 0x1a4   : > { %2396 = vst.msk [vmem:[%s4277_s6 + $0x50] sm:$0xf] %vm2375_vm1, %v2829_v11  ;;  %v2830_v33 = vpack.c.bf16 %v2076_v13, %v2076_v13  ;;  %v1944_v35 = vmax.f32 %v1566_v28, %v1761_v29  ;;  %v1567_v54 = vmax.f32 %v4862_v53, %v1386_v52  ;;  %v4879_v53 = vld [vmem:[#allocation21_spill] sm:$0xff] }
 0x1a5   : > { %2399 = vst.msk [vmem:[%s4277_s6 + $0x5c] sm:$0xf] %vm2375_vm1, %v2832_v14  ;;  %v2017_v38 = vadd.f32 %v4258_v19, %v1946_v63  ;;  %v1947_v62 = vmax.f32 %v1569_v50, %v3256_v51  ;;  %v4877_v50 = vmax.f32 %v4875_v30, %v4876_v32  ;;  %v4896_v32 = vld [vmem:[#allocation32_spill] sm:$0xff] }
 0x1a6   : > { %2397 = vst.msk [vmem:[%s4277_s6 + $0x54] sm:$0xf] %vm2375_vm1, %v2830_v33  ;;  %v2015_v1 = vadd.f32 %v4258_v19, %v1944_v35  ;;  %v1945_v3 = vmax.f32 %v1567_v54, %v1764_v36  ;;  %v4880_v54 = vmax.f32 %v4878_v2, %v4879_v53 }
 0x1a7   : > { %v2081_v7 = vmax.f32 %v2017_v38, 0.0  ;;  %v2018_v16 = vadd.f32 %v4258_v19, %v1947_v62 }
 0x1a8   : > { %v2079_v17 = vmax.f32 %v2015_v1, 0.0  ;;  %v2016_v15 = vadd.f32 %v4258_v19, %v1945_v3  ;;  %v3189_v37 = vpop.f32.mrb[92].mxu0  ;;  %v3259_v41 = vpop.f32.mrb[92].mxu1 }
 0x1a9   : > { %v2835_v39 = vpack.c.bf16 %v2081_v7, %v2081_v7  ;;  %v2082_v44 = vmax.f32 %v2018_v16, 0.0  ;;  %v1572_v40 = vmax.f32 %v4865_v45, %v3189_v37  ;;  %v1399_v55 = vpop.f32.mrb[93].mxu0  ;;  %v1777_v5 = vpop.f32.mrb[93].mxu1  ;;  %v4881_v7 = vld [vmem:[#allocation22_spill] sm:$0xff]  ;;  %v4882_v16 = vld [vmem:[#allocation23_spill] sm:$0xff]  ;;  %v4885_v45 = vld [vmem:[#allocation25_spill] sm:$0xff] }
 0x1aa   : > { %v2833_v56 = vpack.c.bf16 %v2079_v17, %v2079_v17  ;;  %v2080_v21 = vmax.f32 %v2016_v15, 0.0  ;;  %v1570_v4 = vmax.f32 %v4868_v42, %v1399_v55  ;;  %v3190_v57 = vpop.f32.mrb[94].mxu0  ;;  %v3260_v22 = vpop.f32.mrb[94].mxu1  ;;  %v4883_v17 = vmax.f32 %v4881_v7, %v4882_v16  ;;  %v4899_v16 = vld [vmem:[#allocation34_spill] sm:$0xff] }
 0x1ab   : > { %2402 = vst.msk [vmem:[%s4277_s6 + $0x68] sm:$0xf] %vm2375_vm1, %v2835_v39  ;;  %v2836_v27 = vpack.c.bf16 %v2082_v44, %v2082_v44  ;;  %v1950_v31 = vmax.f32 %v1572_v40, %v3259_v41  ;;  %v1573_v46 = vmax.f32 %v4871_v26, %v3190_v57  ;;  %v1402_v25 = vpop.f32.mrb[95].mxu0  ;;  %v1780_v9 = vpop.f32.mrb[95].mxu1  ;;  %v4886_v40 = vmax.f32 %v4884_v20, %v4885_v45  ;;  %v4888_v26 = vld [vmem:[#allocation27_spill] sm:$0xff]  ;;  %v4902_v45 = vld [vmem:[#allocation36_spill] sm:$0xff] }
 0x1ac   : > { %2400 = vst.msk [vmem:[%s4277_s6 + $0x60] sm:$0xf] %vm2375_vm1, %v2833_v56  ;;  %v2834_v48 = vpack.c.bf16 %v2080_v21, %v2080_v21  ;;  %v1948_v6 = vmax.f32 %v1570_v4, %v1777_v5  ;;  %v1571_v60 = vmax.f32 %v4874_v58, %v1402_v25  ;;  %v4891_v58 = vld [vmem:[#allocation29_spill] sm:$0xff] }
 0x1ad   : > { %2403 = vst.msk [vmem:[%s4277_s6 + $0x6c] sm:$0xf] %vm2375_vm1, %v2836_v27  ;;  %v2021_v11 = vadd.f32 %v4258_v19, %v1950_v31  ;;  %v1951_v13 = vmax.f32 %v1573_v46, %v3260_v22  ;;  %v4889_v46 = vmax.f32 %v4887_v24, %v4888_v26  ;;  %v4908_v26 = vld [vmem:[#allocation40_spill] sm:$0xff] }
 0x1ae   : > { %2401 = vst.msk [vmem:[%s4277_s6 + $0x64] sm:$0xf] %vm2375_vm1, %v2834_v48  ;;  %v2019_v10 = vadd.f32 %v4258_v19, %v1948_v6  ;;  %v1949_v47 = vmax.f32 %v1571_v60, %v1780_v9  ;;  %v4892_v60 = vmax.f32 %v4890_v59, %v4891_v58 }
 0x1af   : > { %v2085_v61 = vmax.f32 %v2021_v11, 0.0  ;;  %v2022_v28 = vadd.f32 %v4258_v19, %v1951_v13 }
 0x1b0   : > { %v2083_v29 = vmax.f32 %v2019_v10, 0.0  ;;  %v2020_v12 = vadd.f32 %v4258_v19, %v1949_v47  ;;  %v3193_v14 = vpop.f32.mrb[96].mxu0  ;;  %v3263_v52 = vpop.f32.mrb[96].mxu1 }
 0x1b1   : > { %v2839_v63 = vpack.c.bf16 %v2085_v61, %v2085_v61  ;;  %v2086_v49 = vmax.f32 %v2022_v28, 0.0  ;;  %v1576_v51 = vmax.f32 %v4877_v50, %v3193_v14  ;;  %v1415_v33 = vpop.f32.mrb[97].mxu0  ;;  %v1793_v38 = vpop.f32.mrb[97].mxu1  ;;  %v4893_v61 = vld [vmem:[#allocation30_spill] sm:$0xff]  ;;  %v4894_v28 = vld [vmem:[#allocation31_spill] sm:$0xff]  ;;  %v4897_v50 = vld [vmem:[#allocation33_spill] sm:$0xff] }
 0x1b2   : > { %v2837_v35 = vpack.c.bf16 %v2083_v29, %v2083_v29  ;;  %v2084_v0 = vmax.f32 %v2020_v12, 0.0  ;;  %v1574_v36 = vmax.f32 %v4880_v54, %v1415_v33  ;;  %v3194_v62 = vpop.f32.mrb[98].mxu0  ;;  %v3264_v37 = vpop.f32.mrb[98].mxu1  ;;  %v4895_v29 = vmax.f32 %v4893_v61, %v4894_v28  ;;  %v4911_v28 = vld [vmem:[#allocation42_spill] sm:$0xff] }
 0x1b3   : > { %2406 = vst.msk [vmem:[%s4277_s6 + $0x78] sm:$0xf] %vm2375_vm1, %v2839_v63  ;;  %v2840_v1 = vpack.c.bf16 %v2086_v49, %v2086_v49  ;;  %v1954_v3 = vmax.f32 %v1576_v51, %v3263_v52  ;;  %v1577_v15 = vmax.f32 %v4883_v17, %v3194_v62  ;;  %v1418_v39 = vpop.f32.mrb[99].mxu0  ;;  %v1796_v55 = vpop.f32.mrb[99].mxu1  ;;  %v4898_v51 = vmax.f32 %v4896_v32, %v4897_v50  ;;  %v4900_v17 = vld [vmem:[#allocation35_spill] sm:$0xff]  ;;  %v4914_v50 = vld [vmem:[#allocation44_spill] sm:$0xff] }
 0x1b4   : > { %2404 = vst.msk [vmem:[%s4277_s6 + $0x70] sm:$0xf] %vm2375_vm1, %v2837_v35  ;;  %v2838_v44 = vpack.c.bf16 %v2084_v0, %v2084_v0  ;;  %v1952_v18 = vmax.f32 %v1574_v36, %v1793_v38  ;;  %v1575_v41 = vmax.f32 %v4886_v40, %v1418_v39  ;;  %v4903_v40 = vld [vmem:[#allocation37_spill] sm:$0xff] }
 0x1b5   : > { %2407 = vst.msk [vmem:[%s4277_s6 + $0x7c] sm:$0xf] %vm2375_vm1, %v2840_v1  ;;  %v2025_v56 = vadd.f32 %v4258_v19, %v1954_v3  ;;  %v1955_v21 = vmax.f32 %v1577_v15, %v3264_v37  ;;  %v4901_v15 = vmax.f32 %v4899_v16, %v4900_v17  ;;  %v4920_v17 = vld [vmem:[#allocation48_spill] sm:$0xff] }
 0x1b6   : > { %2405 = vst.msk [vmem:[%s4277_s6 + $0x74] sm:$0xf] %vm2375_vm1, %v2838_v44  ;;  %v2023_v23 = vadd.f32 %v4258_v19, %v1952_v18  ;;  %v1953_v34 = vmax.f32 %v1575_v41, %v1796_v55  ;;  %v4904_v41 = vmax.f32 %v4902_v45, %v4903_v40 }
 0x1b7   : > { %v2089_v42 = vmax.f32 %v2025_v56, 0.0  ;;  %v2026_v4 = vadd.f32 %v4258_v19, %v1955_v21 }
 0x1b8   : > { %v2087_v5 = vmax.f32 %v2023_v23, 0.0  ;;  %v2024_v57 = vadd.f32 %v4258_v19, %v1953_v34  ;;  %v3197_v27 = vpop.f32.mrb[100].mxu0  ;;  %v3267_v25 = vpop.f32.mrb[100].mxu1 }
 0x1b9   : > { %v2843_v31 = vpack.c.bf16 %v2089_v42, %v2089_v42  ;;  %v2090_v43 = vmax.f32 %v2026_v4, 0.0  ;;  %v1580_v22 = vmax.f32 %v4889_v46, %v3197_v27  ;;  %v1431_v48 = vpop.f32.mrb[101].mxu0  ;;  %v1809_v11 = vpop.f32.mrb[101].mxu1  ;;  %v4905_v42 = vld [vmem:[#allocation38_spill] sm:$0xff]  ;;  %v4906_v4 = vld [vmem:[#allocation39_spill] sm:$0xff]  ;;  %v4909_v46 = vld [vmem:[#allocation41_spill] sm:$0xff] }
 0x1ba   : > { %v2841_v6 = vpack.c.bf16 %v2087_v5, %v2087_v5  ;;  %v2088_v8 = vmax.f32 %v2024_v57, 0.0  ;;  %v1578_v9 = vmax.f32 %v4892_v60, %v1431_v48  ;;  %v3198_v13 = vpop.f32.mrb[102].mxu0  ;;  %v3268_v14 = vpop.f32.mrb[102].mxu1  ;;  %v4907_v5 = vmax.f32 %v4905_v42, %v4906_v4  ;;  %v4923_v4 = vld [vmem:[#allocation50_spill] sm:$0xff] }
 0x1bb   : > { %2410 = vst.msk [vmem:[%s4277_s6 + $0x88] sm:$0xf] %vm2375_vm1, %v2843_v31  ;;  %v2844_v10 = vpack.c.bf16 %v2090_v43, %v2090_v43  ;;  %v1958_v47 = vmax.f32 %v1580_v22, %v3267_v25  ;;  %v1581_v12 = vmax.f32 %v4895_v29, %v3198_v13  ;;  %v1434_v63 = vpop.f32.mrb[103].mxu0  ;;  %v1812_v33 = vpop.f32.mrb[103].mxu1  ;;  %v4910_v22 = vmax.f32 %v4908_v26, %v4909_v46  ;;  %v4912_v29 = vld [vmem:[#allocation43_spill] sm:$0xff]  ;;  %v4926_v46 = vld [vmem:[#allocation52_spill] sm:$0xff] }
 0x1bc   : > { %2408 = vst.msk [vmem:[%s4277_s6 + $0x80] sm:$0xf] %vm2375_vm1, %v2841_v6  ;;  %v2842_v49 = vpack.c.bf16 %v2088_v8, %v2088_v8  ;;  %v1956_v30 = vmax.f32 %v1578_v9, %v1809_v11  ;;  %v1579_v52 = vmax.f32 %v4898_v51, %v1434_v63  ;;  %v4915_v51 = vld [vmem:[#allocation45_spill] sm:$0xff] }
 0x1bd   : > { %2411 = vst.msk [vmem:[%s4277_s6 + $0x8c] sm:$0xf] %vm2375_vm1, %v2844_v10  ;;  %v2029_v35 = vadd.f32 %v4258_v19, %v1958_v47  ;;  %v1959_v0 = vmax.f32 %v1581_v12, %v3268_v14  ;;  %v4913_v12 = vmax.f32 %v4911_v28, %v4912_v29  ;;  %v4932_v29 = vld [vmem:[#allocation56_spill] sm:$0xff] }
 0x1be   : > { %2409 = vst.msk [vmem:[%s4277_s6 + $0x84] sm:$0xf] %vm2375_vm1, %v2842_v49  ;;  %v2027_v2 = vadd.f32 %v4258_v19, %v1956_v30  ;;  %v1957_v53 = vmax.f32 %v1579_v52, %v1812_v33  ;;  %v4916_v52 = vmax.f32 %v4914_v50, %v4915_v51 }
 0x1bf   : > { %v2093_v54 = vmax.f32 %v2029_v35, 0.0  ;;  %v2030_v36 = vadd.f32 %v4258_v19, %v1959_v0 }
 0x1c0   : > { %v2091_v38 = vmax.f32 %v2027_v2, 0.0  ;;  %v2028_v62 = vadd.f32 %v4258_v19, %v1957_v53  ;;  %v3201_v1 = vpop.f32.mrb[104].mxu0  ;;  %v3271_v39 = vpop.f32.mrb[104].mxu1 }
 0x1c1   : > { %v2847_v3 = vpack.c.bf16 %v2093_v54, %v2093_v54  ;;  %v2094_v7 = vmax.f32 %v2030_v36, 0.0  ;;  %v1584_v37 = vmax.f32 %v4901_v15, %v3201_v1  ;;  %v1447_v44 = vpop.f32.mrb[105].mxu0  ;;  %v1825_v56 = vpop.f32.mrb[105].mxu1  ;;  %v4917_v54 = vld [vmem:[#allocation46_spill] sm:$0xff]  ;;  %v4918_v36 = vld [vmem:[#allocation47_spill] sm:$0xff]  ;;  %v4921_v15 = vld [vmem:[#allocation49_spill] sm:$0xff] }
 0x1c2   : > { %v2845_v18 = vpack.c.bf16 %v2091_v38, %v2091_v38  ;;  %v2092_v20 = vmax.f32 %v2028_v62, 0.0  ;;  %v1582_v55 = vmax.f32 %v4904_v41, %v1447_v44  ;;  %v3202_v21 = vpop.f32.mrb[106].mxu0  ;;  %v3272_v27 = vpop.f32.mrb[106].mxu1  ;;  %v4919_v38 = vmax.f32 %v4917_v54, %v4918_v36  ;;  %v4935_v36 = vld [vmem:[#allocation58_spill] sm:$0xff] }
 0x1c3   : > { %2414 = vst.msk [vmem:[%s4277_s6 + $0x98] sm:$0xf] %vm2375_vm1, %v2847_v3  ;;  %v2848_v23 = vpack.c.bf16 %v2094_v7, %v2094_v7  ;;  %v1962_v34 = vmax.f32 %v1584_v37, %v3271_v39  ;;  %v1585_v57 = vmax.f32 %v4907_v5, %v3202_v21  ;;  %v1450_v31 = vpop.f32.mrb[107].mxu0  ;;  %v1828_v48 = vpop.f32.mrb[107].mxu1  ;;  %v4922_v37 = vmax.f32 %v4920_v17, %v4921_v15  ;;  %v4924_v5 = vld [vmem:[#allocation51_spill] sm:$0xff]  ;;  %v4938_v15 = vld [vmem:[#allocation60_spill] sm:$0xff] }
 0x1c4   : > { %2412 = vst.msk [vmem:[%s4277_s6 + $0x90] sm:$0xf] %vm2375_vm1, %v2845_v18  ;;  %v2846_v43 = vpack.c.bf16 %v2092_v20, %v2092_v20  ;;  %v1960_v24 = vmax.f32 %v1582_v55, %v1825_v56  ;;  %v1583_v25 = vmax.f32 %v4910_v22, %v1450_v31  ;;  %v4927_v22 = vld [vmem:[#allocation53_spill] sm:$0xff] }
 0x1c5   : > { %2415 = vst.msk [vmem:[%s4277_s6 + $0x9c] sm:$0xf] %vm2375_vm1, %v2848_v23  ;;  %v2033_v6 = vadd.f32 %v4258_v19, %v1962_v34  ;;  %v1963_v8 = vmax.f32 %v1585_v57, %v3272_v27  ;;  %v4925_v57 = vmax.f32 %v4923_v4, %v4924_v5  ;;  %v4944_v5 = vld [vmem:[#allocation64_spill] sm:$0xff] }
 0x1c6   : > { %2413 = vst.msk [vmem:[%s4277_s6 + $0x94] sm:$0xf] %vm2375_vm1, %v2846_v43  ;;  %v2031_v59 = vadd.f32 %v4258_v19, %v1960_v24  ;;  %v1961_v58 = vmax.f32 %v1583_v25, %v1828_v48  ;;  %v4928_v25 = vmax.f32 %v4926_v46, %v4927_v22 }
 0x1c7   : > { %v2097_v60 = vmax.f32 %v2033_v6, 0.0  ;;  %v2034_v9 = vadd.f32 %v4258_v19, %v1963_v8 }
 0x1c8   : > { %v2095_v11 = vmax.f32 %v2031_v59, 0.0  ;;  %v2032_v13 = vadd.f32 %v4258_v19, %v1961_v58  ;;  %v3205_v10 = vpop.f32.mrb[108].mxu0  ;;  %v3275_v63 = vpop.f32.mrb[108].mxu1 }
 0x1c9   : > { %v2851_v47 = vpack.c.bf16 %v2097_v60, %v2097_v60  ;;  %v2098_v61 = vmax.f32 %v2034_v9, 0.0  ;;  %v1588_v14 = vmax.f32 %v4913_v12, %v3205_v10  ;;  %v1463_v49 = vpop.f32.mrb[109].mxu0  ;;  %v1841_v35 = vpop.f32.mrb[109].mxu1  ;;  %v4929_v60 = vld [vmem:[#allocation54_spill] sm:$0xff]  ;;  %v4930_v9 = vld [vmem:[#allocation55_spill] sm:$0xff]  ;;  %v4933_v12 = vld [vmem:[#allocation57_spill] sm:$0xff] }
 0x1ca   : > { %v2849_v30 = vpack.c.bf16 %v2095_v11, %v2095_v11  ;;  %v2096_v32 = vmax.f32 %v2032_v13, 0.0  ;;  %v1586_v33 = vmax.f32 %v4916_v52, %v1463_v49  ;;  %v3206_v0 = vpop.f32.mrb[110].mxu0  ;;  %v3276_v1 = vpop.f32.mrb[110].mxu1  ;;  %v4931_v11 = vmax.f32 %v4929_v60, %v4930_v9  ;;  %v4947_v9 = vld [vmem:[#allocation66_spill] sm:$0xff] }
 0x1cb   : > { %2418 = vst.msk [vmem:[%s4277_s6 + $0xa8] sm:$0xf] %vm2375_vm1, %v2851_v47  ;;  %v2852_v2 = vpack.c.bf16 %v2098_v61, %v2098_v61  ;;  %v1966_v53 = vmax.f32 %v1588_v14, %v3275_v63  ;;  %v1589_v62 = vmax.f32 %v4919_v38, %v3206_v0  ;;  %v1466_v3 = vpop.f32.mrb[111].mxu0  ;;  %v1844_v44 = vpop.f32.mrb[111].mxu1  ;;  %v4934_v14 = vmax.f32 %v4932_v29, %v4933_v12  ;;  %v4936_v38 = vld [vmem:[#allocation59_spill] sm:$0xff]  ;;  %v4950_v12 = vld [vmem:[#allocation68_spill] sm:$0xff] }
 0x1cc   : > { %2416 = vst.msk [vmem:[%s4277_s6 + $0xa0] sm:$0xf] %vm2375_vm1, %v2849_v30  ;;  %v2850_v7 = vpack.c.bf16 %v2096_v32, %v2096_v32  ;;  %v1964_v16 = vmax.f32 %v1586_v33, %v1841_v35  ;;  %v1587_v39 = vmax.f32 %v4922_v37, %v1466_v3  ;;  %v4939_v37 = vld [vmem:[#allocation61_spill] sm:$0xff] }
 0x1cd   : > { %2419 = vst.msk [vmem:[%s4277_s6 + $0xac] sm:$0xf] %vm2375_vm1, %v2852_v2  ;;  %v2037_v18 = vadd.f32 %v4258_v19, %v1966_v53  ;;  %v1967_v20 = vmax.f32 %v1589_v62, %v3276_v1  ;;  %v4937_v62 = vmax.f32 %v4935_v36, %v4936_v38  ;;  %v4956_v38 = vld [vmem:[#allocation72_spill] sm:$0xff] }
 0x1ce   : > { %2417 = vst.msk [vmem:[%s4277_s6 + $0xa4] sm:$0xf] %vm2375_vm1, %v2850_v7  ;;  %v2035_v45 = vadd.f32 %v4258_v19, %v1964_v16  ;;  %v1965_v40 = vmax.f32 %v1587_v39, %v1844_v44  ;;  %v4940_v39 = vmax.f32 %v4938_v15, %v4939_v37 }
 0x1cf   : > { %v2101_v41 = vmax.f32 %v2037_v18, 0.0  ;;  %v2038_v55 = vadd.f32 %v4258_v19, %v1967_v20 }
 0x1d0   : > { %v2099_v56 = vmax.f32 %v2035_v45, 0.0  ;;  %v2036_v21 = vadd.f32 %v4258_v19, %v1965_v40  ;;  %v3209_v23 = vpop.f32.mrb[112].mxu0  ;;  %v3279_v31 = vpop.f32.mrb[112].mxu1 }
 0x1d1   : > { %v2855_v34 = vpack.c.bf16 %v2101_v41, %v2101_v41  ;;  %v2102_v42 = vmax.f32 %v2038_v55, 0.0  ;;  %v1592_v27 = vmax.f32 %v4925_v57, %v3209_v23  ;;  %v1479_v43 = vpop.f32.mrb[113].mxu0  ;;  %v1857_v6 = vpop.f32.mrb[113].mxu1  ;;  %v4941_v41 = vld [vmem:[#allocation62_spill] sm:$0xff]  ;;  %v4942_v55 = vld [vmem:[#allocation63_spill] sm:$0xff]  ;;  %v4945_v57 = vld [vmem:[#allocation65_spill] sm:$0xff] }
 0x1d2   : > { %v2853_v24 = vpack.c.bf16 %v2099_v56, %v2099_v56  ;;  %v2100_v26 = vmax.f32 %v2036_v21, 0.0  ;;  %v1590_v48 = vmax.f32 %v4928_v25, %v1479_v43  ;;  %v3210_v8 = vpop.f32.mrb[114].mxu0  ;;  %v3280_v10 = vpop.f32.mrb[114].mxu1  ;;  %v4943_v56 = vmax.f32 %v4941_v41, %v4942_v55  ;;  %v4959_v55 = vld [vmem:[#allocation74_spill] sm:$0xff] }
 0x1d3   : > { %2422 = vst.msk [vmem:[%s4277_s6 + $0xb8] sm:$0xf] %vm2375_vm1, %v2855_v34  ;;  %v2856_v59 = vpack.c.bf16 %v2102_v42, %v2102_v42  ;;  %v1970_v58 = vmax.f32 %v1592_v27, %v3279_v31  ;;  %v1593_v13 = vmax.f32 %v4931_v11, %v3210_v8  ;;  %v1482_v47 = vpop.f32.mrb[115].mxu0  ;;  %v1860_v49 = vpop.f32.mrb[115].mxu1  ;;  %v4946_v27 = vmax.f32 %v4944_v5, %v4945_v57  ;;  %v4948_v11 = vld [vmem:[#allocation67_spill] sm:$0xff]  ;;  %v4962_v57 = vld [vmem:[#allocation76_spill] sm:$0xff] }
 0x1d4   : > { %2420 = vst.msk [vmem:[%s4277_s6 + $0xb0] sm:$0xf] %vm2375_vm1, %v2853_v24  ;;  %v2854_v61 = vpack.c.bf16 %v2100_v26, %v2100_v26  ;;  %v1968_v28 = vmax.f32 %v1590_v48, %v1857_v6  ;;  %v1591_v63 = vmax.f32 %v4934_v14, %v1482_v47  ;;  %v4951_v14 = vld [vmem:[#allocation69_spill] sm:$0xff] }
 0x1d5   : > { %2423 = vst.msk [vmem:[%s4277_s6 + $0xbc] sm:$0xf] %vm2375_vm1, %v2856_v59  ;;  %v2041_v30 = vadd.f32 %v4258_v19, %v1970_v58  ;;  %v1971_v32 = vmax.f32 %v1593_v13, %v3280_v10  ;;  %v4949_v13 = vmax.f32 %v4947_v9, %v4948_v11  ;;  %v4968_v11 = vld [vmem:[#allocation80_spill] sm:$0xff] }
 0x1d6   : > { %2421 = vst.msk [vmem:[%s4277_s6 + $0xb4] sm:$0xf] %vm2375_vm1, %v2854_v61  ;;  %v2039_v50 = vadd.f32 %v4258_v19, %v1968_v28  ;;  %v1969_v51 = vmax.f32 %v1591_v63, %v1860_v49  ;;  %v4952_v63 = vmax.f32 %v4950_v12, %v4951_v14 }
 0x1d7   : > { %v2105_v52 = vmax.f32 %v2041_v30, 0.0  ;;  %v2042_v33 = vadd.f32 %v4258_v19, %v1971_v32 }
 0x1d8   : > { %v2103_v35 = vmax.f32 %v2039_v50, 0.0  ;;  %v2040_v0 = vadd.f32 %v4258_v19, %v1969_v51  ;;  %v3213_v2 = vpop.f32.mrb[116].mxu0  ;;  %v3283_v3 = vpop.f32.mrb[116].mxu1 }
 0x1d9   : > { %v2859_v53 = vpack.c.bf16 %v2105_v52, %v2105_v52  ;;  %v2106_v54 = vmax.f32 %v2042_v33, 0.0  ;;  %v1596_v1 = vmax.f32 %v4937_v62, %v3213_v2  ;;  %v1495_v7 = vpop.f32.mrb[117].mxu0  ;;  %v1873_v18 = vpop.f32.mrb[117].mxu1  ;;  %v4953_v52 = vld [vmem:[#allocation70_spill] sm:$0xff]  ;;  %v4954_v33 = vld [vmem:[#allocation71_spill] sm:$0xff]  ;;  %v4957_v62 = vld [vmem:[#allocation73_spill] sm:$0xff] }
 0x1da   : > { %v2857_v16 = vpack.c.bf16 %v2103_v35, %v2103_v35  ;;  %v2104_v17 = vmax.f32 %v2040_v0, 0.0  ;;  %v1594_v44 = vmax.f32 %v4940_v39, %v1495_v7  ;;  %v3214_v20 = vpop.f32.mrb[118].mxu0  ;;  %v3284_v23 = vpop.f32.mrb[118].mxu1  ;;  %v4955_v35 = vmax.f32 %v4953_v52, %v4954_v33 }
 0x1db   : > { %2426 = vst.msk [vmem:[%s4277_s6 + $0xc8] sm:$0xf] %vm2375_vm1, %v2859_v53  ;;  %v2860_v45 = vpack.c.bf16 %v2106_v54, %v2106_v54  ;;  %v1974_v40 = vmax.f32 %v1596_v1, %v3283_v3  ;;  %v1597_v21 = vmax.f32 %v4943_v56, %v3214_v20  ;;  %v1498_v34 = vpop.f32.mrb[119].mxu0  ;;  %v1876_v43 = vpop.f32.mrb[119].mxu1  ;;  %v4958_v1 = vmax.f32 %v4956_v38, %v4957_v62  ;;  %v4960_v56 = vld [vmem:[#allocation75_spill] sm:$0xff] }
 0x1dc   : > { %2424 = vst.msk [vmem:[%s4277_s6 + $0xc0] sm:$0xf] %vm2375_vm1, %v2857_v16  ;;  %v2858_v42 = vpack.c.bf16 %v2104_v17, %v2104_v17  ;;  %v1972_v4 = vmax.f32 %v1594_v44, %v1873_v18  ;;  %v1595_v31 = vmax.f32 %v4946_v27, %v1498_v34  ;;  %v4963_v27 = vld [vmem:[#allocation77_spill] sm:$0xff] }
 0x1dd   : > { %2427 = vst.msk [vmem:[%s4277_s6 + $0xcc] sm:$0xf] %vm2375_vm1, %v2860_v45  ;;  %v2045_v24 = vadd.f32 %v4258_v19, %v1974_v40  ;;  %v1975_v26 = vmax.f32 %v1597_v21, %v3284_v23  ;;  %v4961_v21 = vmax.f32 %v4959_v55, %v4960_v56 }
 0x1de   : > { %2425 = vst.msk [vmem:[%s4277_s6 + $0xc4] sm:$0xf] %vm2375_vm1, %v2858_v42  ;;  %v2043_v46 = vadd.f32 %v4258_v19, %v1972_v4  ;;  %v1973_v22 = vmax.f32 %v1595_v31, %v1876_v43  ;;  %v4964_v31 = vmax.f32 %v4962_v57, %v4963_v27 }
 0x1df   : > { %v2109_v25 = vmax.f32 %v2045_v24, 0.0  ;;  %v2046_v48 = vadd.f32 %v4258_v19, %v1975_v26 }
 0x1e0   : > { %v2107_v6 = vmax.f32 %v2043_v46, 0.0  ;;  %v2044_v8 = vadd.f32 %v4258_v19, %v1973_v22  ;;  %v3217_v59 = vpop.f32.mrb[120].mxu0  ;;  %v3287_v47 = vpop.f32.mrb[120].mxu1 }
 0x1e1   : > { %v2863_v58 = vpack.c.bf16 %v2109_v25, %v2109_v25  ;;  %v2110_v60 = vmax.f32 %v2046_v48, 0.0  ;;  %v1600_v10 = vmax.f32 %v4949_v13, %v3217_v59  ;;  %v1511_v61 = vpop.f32.mrb[121].mxu0  ;;  %v1889_v30 = vpop.f32.mrb[121].mxu1  ;;  %v4965_v25 = vld [vmem:[#allocation78_spill] sm:$0xff]  ;;  %v4966_v48 = vld [vmem:[#allocation79_spill] sm:$0xff]  ;;  %v4969_v13 = vld [vmem:[#allocation81_spill] sm:$0xff] }
 0x1e2   : > { %v2861_v28 = vpack.c.bf16 %v2107_v6, %v2107_v6  ;;  %v2108_v29 = vmax.f32 %v2044_v8, 0.0  ;;  %v1598_v49 = vmax.f32 %v4952_v63, %v1511_v61  ;;  %v3218_v32 = vpop.f32.mrb[122].mxu0  ;;  %v3288_v2 = vpop.f32.mrb[122].mxu1  ;;  %v4967_v6 = vmax.f32 %v4965_v25, %v4966_v48 }
 0x1e3   : > { %2430 = vst.msk [vmem:[%s4277_s6 + $0xd8] sm:$0xf] %vm2375_vm1, %v2863_v58  ;;  %v2864_v50 = vpack.c.bf16 %v2110_v60, %v2110_v60  ;;  %v1978_v51 = vmax.f32 %v1600_v10, %v3287_v47  ;;  %v1601_v0 = vmax.f32 %v4955_v35, %v3218_v32  ;;  %v1514_v53 = vpop.f32.mrb[123].mxu0  ;;  %v1892_v7 = vpop.f32.mrb[123].mxu1  ;;  %v4970_v10 = vmax.f32 %v4968_v11, %v4969_v13 }
 0x1e4   : > { %2428 = vst.msk [vmem:[%s4277_s6 + $0xd0] sm:$0xf] %vm2375_vm1, %v2861_v28  ;;  %v2862_v54 = vpack.c.bf16 %v2108_v29, %v2108_v29  ;;  %v1976_v36 = vmax.f32 %v1598_v49, %v1889_v30  ;;  %v1599_v3 = vmax.f32 %v4958_v1, %v1514_v53 }
 0x1e5   : > { %2431 = vst.msk [vmem:[%s4277_s6 + $0xdc] sm:$0xf] %vm2375_vm1, %v2864_v50  ;;  %v2049_v16 = vadd.f32 %v4258_v19, %v1978_v51  ;;  %v1979_v17 = vmax.f32 %v1601_v0, %v3288_v2 }
 0x1e6   : > { %2429 = vst.msk [vmem:[%s4277_s6 + $0xd4] sm:$0xf] %vm2375_vm1, %v2862_v54  ;;  %v2047_v15 = vadd.f32 %v4258_v19, %v1976_v36  ;;  %v1977_v37 = vmax.f32 %v1599_v3, %v1892_v7 }
 0x1e7   : > { %v2113_v39 = vmax.f32 %v2049_v16, 0.0  ;;  %v2050_v44 = vadd.f32 %v4258_v19, %v1979_v17 }
 0x1e8   : > { %v2111_v18 = vmax.f32 %v2047_v15, 0.0  ;;  %v2048_v20 = vadd.f32 %v4258_v19, %v1977_v37  ;;  %v3221_v45 = vpop.f32.mrb[124].mxu0  ;;  %v3291_v34 = vpop.f32.mrb[124].mxu1 }
 0x1e9   : > { %v2867_v40 = vpack.c.bf16 %v2113_v39, %v2113_v39  ;;  %v2114_v41 = vmax.f32 %v2050_v44, 0.0  ;;  %v1604_v23 = vmax.f32 %v4961_v21, %v3221_v45  ;;  %v1527_v42 = vpop.f32.mrb[125].mxu0  ;;  %v1905_v24 = vpop.f32.mrb[125].mxu1 }
 0x1ea   : > { %v2865_v4 = vpack.c.bf16 %v2111_v18, %v2111_v18  ;;  %v2112_v5 = vmax.f32 %v2048_v20, 0.0  ;;  %v1602_v43 = vmax.f32 %v4964_v31, %v1527_v42  ;;  %v3222_v26 = vpop.f32.mrb[126].mxu0  ;;  %v3292_v59 = vpop.f32.mrb[126].mxu1 }
 0x1eb   : > { %2434 = vst.msk [vmem:[%s4277_s6 + $0xe8] sm:$0xf] %vm2375_vm1, %v2867_v40  ;;  %v2868_v46 = vpack.c.bf16 %v2114_v41, %v2114_v41  ;;  %v1982_v22 = vmax.f32 %v1604_v23, %v3291_v34  ;;  %v1605_v8 = vmax.f32 %v4967_v6, %v3222_v26  ;;  %v1530_v58 = vpop.f32.mrb[127].mxu0  ;;  %v1908_v61 = vpop.f32.mrb[127].mxu1 }
 0x1ec   : > { %2432 = vst.msk [vmem:[%s4277_s6 + $0xe0] sm:$0xf] %vm2375_vm1, %v2865_v4  ;;  %v2866_v60 = vpack.c.bf16 %v2112_v5, %v2112_v5  ;;  %v1980_v9 = vmax.f32 %v1602_v43, %v1905_v24  ;;  %v1603_v47 = vmax.f32 %v4970_v10, %v1530_v58 }
 0x1ed   : > { %2435 = vst.msk [vmem:[%s4277_s6 + $0xec] sm:$0xf] %vm2375_vm1, %v2868_v46  ;;  %v2053_v28 = vadd.f32 %v4258_v19, %v1982_v22  ;;  %v1983_v29 = vmax.f32 %v1605_v8, %v3292_v59 }
 0x1ee   : > { %2433 = vst.msk [vmem:[%s4277_s6 + $0xe4] sm:$0xf] %vm2375_vm1, %v2866_v60  ;;  %v2051_v12 = vadd.f32 %v4258_v19, %v1980_v9  ;;  %v1981_v14 = vmax.f32 %v1603_v47, %v1908_v61 }
 0x1ef   : > { %v2117_v63 = vmax.f32 %v2053_v28, 0.0  ;;  %v2054_v49 = vadd.f32 %v4258_v19, %v1983_v29 }
 0x1f0   : > { %v2115_v30 = vmax.f32 %v2051_v12, 0.0  ;;  %v2052_v32 = vadd.f32 %v4258_v19, %v1981_v14 }
 0x1f1   : > { %v2871_v50 = vpack.c.bf16 %v2117_v63, %v2117_v63  ;;  %v2118_v51 = vmax.f32 %v2054_v49, 0.0 }
 0x1f2   : > { %v2869_v52 = vpack.c.bf16 %v2115_v30, %v2115_v30  ;;  %v2116_v33 = vmax.f32 %v2052_v32, 0.0 }
 0x1f3   : > { %2438 = vst.msk [vmem:[%s4277_s6 + $0xf8] sm:$0xf] %vm2375_vm1, %v2871_v50  ;;  %v2872_v35 = vpack.c.bf16 %v2118_v51, %v2118_v51 }
 0x1f4   : > { %2436 = vst.msk [vmem:[%s4277_s6 + $0xf0] sm:$0xf] %vm2375_vm1, %v2869_v52  ;;  %v2870_v0 = vpack.c.bf16 %v2116_v33, %v2116_v33 }
 0x1f5   : > { %2439 = vst.msk [vmem:[%s4277_s6 + $0xfc] sm:$0xf] %vm2375_vm1, %v2872_v35 }
 0x1f6   : > { %2437 = vst.msk [vmem:[%s4277_s6 + $0xf4] sm:$0xf] %vm2375_vm1, %v2870_v0 }
 0x1f7 PF: > { %s13_s16 = sadd.s32 1, %s3415_s16   ;;  %s4971_s12 = smov %s3407_s14 }
 0x1f8   : > { %p10_p7 = scmp.ge.s32.totalorder %s13_s16, 18   ;;  %s4972_s13 = smov %s3411_s15 }
 0x1f9   : > { %s4973_s14 = smov %s4976_s17  ;;  %s4974_s15 = smov %s4980_s18 }
 0x1fa   :  { %12 = sbr.rel (!%p10_p7) target bundleno = 3 (0x3), region = 65 }

// kernel: net_forward.4
= control target key start
LH: loop header
LB: loop body
LE: loop exit
PB: predicated region body
PF: predicated region fallthrough
CT: control target
= control target key end

     0   :  { %s5090_s12 = smov 0   ;;  %s5092_s13 = smov 0   ;;  %s6669_s0 = inlined_call_operand.vmem [shape: bf16[2,32,32,512], index: 0, kind: input, shape index: {}]   ;;  %s6670_s1 = inlined_call_operand.vmem [shape: bf16[4,512,64], index: 1, kind: input, shape index: {}]   ;;  %s6671_s2 = inlined_call_operand.vmem [shape: f32[1,64], index: 2, kind: input, shape index: {}]   ;;  %s6672_s3 = inlined_call_operand.vmem [shape: bf16[2,32,32,64], index: 3, kind: output, shape index: {}]  }
   0x1   :  { %s5094_s14 = smov 0   ;;  %s5096_s15 = smov 0  }
   0x2   :  { %s5098_s16 = smov 0  }
   0x3 LB: > { %s22_s17 = sadd.s32 1, %s5060_s14  ;;  %s25_s18 = sadd.s32 1, %s5064_s15  ;;  %s5068_s16 = sphi %s5098_s16, %s13_s16   ;;  %s5064_s15 = sphi %s5096_s15, %s6914_s15   ;;  %s5060_s14 = sphi %s5094_s14, %s6913_s14   ;;  %s5056_s13 = sphi %s5092_s13, %s6912_s13   ;;  %s5052_s12 = sphi %s5090_s12, %s6911_s12  }
   0x4   : > { %p23_p0 = scmp.ge.s32.totalorder %s22_s17, 4  ;;  %p3346_p1 = scmp.ge.s32.totalorder %s5068_s16, 1 }
   0x5   : > { %p159_p2 = scmp.lt.s32.totalorder %s5068_s16, 9 }
   0x6   : > { %s6916_s17 = smov (%p23_p0, %s22_s17), 0  ;;  %s6918_s18 = smov (!%p23_p0, %s25_s18), %s5064_s15 }
   0x7   : > { %p160_p3 = pnand %p3346_p1, %p159_p2  ;;  %p27_p4 = scmp.ge.s32.totalorder %s6918_s18, 2 }
   0x9   : > { %s6920_s18 = smov (%p27_p4, %s6918_s18), 0  ;;  %163 = sbr.rel (%p160_p3) target bundleno = 783 (0x30f), region = 32 }
  0x10   : > { %v4742_v0 = vld [vmem:[%s6670_s1 + $0x40] sm:$0xff]   ;;  %v4746_v4 = vld [vmem:[%s6670_s1 + $0x48] sm:$0xff]   ;;  %v4750_v8 = vld [vmem:[%s6670_s1 + $0x50] sm:$0xff]   ;;  %s3347_s19 = sshll.u32 %s5052_s12, 3  ;;  %p194_p5 = scmp.lt.s32.totalorder %s5056_s13, 1  ;;  %vm3210_vm0 = vcmask 519168  }
  0x11   : > { %v4743_v1 = vld [vmem:[%s6670_s1 + $0xc0] sm:$0xff]   ;;  %3806 = vmatprep.subr.bf16.mxu0 %v4742_v0  ;;  %v4747_v5 = vld [vmem:[%s6670_s1 + $0xc8] sm:$0xff]   ;;  %v4751_v9 = vld [vmem:[%s6670_s1 + $0xd0] sm:$0xff]   ;;  %p196_p6 = scmp.lt.s32.totalorder %s3347_s19, 31 }
  0x12   : > { %v4744_v2 = vld [vmem:[%s6670_s1] sm:$0xff]   ;;  %3918 = vmatprep.subr.bf16.mxu1 %v4743_v1  ;;  %v4748_v6 = vld [vmem:[%s6670_s1 + $0x8] sm:$0xff]   ;;  %v4752_v10 = vld [vmem:[%s6670_s1 + $0x10] sm:$0xff]   ;;  %s6922_s13 = smov (!%p194_p5, %s5056_s13), 1 }
  0x13   : > { %v4745_v3 = vld [vmem:[%s6670_s1 + $0x80] sm:$0xff]   ;;  %3807 = vmatpush3.bf16.msra.mxu0 %v4744_v2  ;;  %v4749_v7 = vld [vmem:[%s6670_s1 + $0x88] sm:$0xff]   ;;  %v4753_v11 = vld [vmem:[%s6670_s1 + $0x90] sm:$0xff]   ;;  %s6924_s19 = smov (!%p196_p6, %s3347_s19), 31  ;;  %s3349_s20 = sshll.u32 %s6922_s13, 9 }
  0x14   : > { %3919 = vmatpush3.bf16.msra.mxu1 %v4745_v3  ;;  %3808 = vmatprep.subr.bf16.mxu0 %v4746_v4  ;;  %v4754_v12 = vld [vmem:[%s6670_s1 + $0x58] sm:$0xff]   ;;  %v4758_v16 = vld [vmem:[%s6670_s1 + $0x60] sm:$0xff]   ;;  %v4762_v20 = vld [vmem:[%s6670_s1 + $0x68] sm:$0xff]   ;;  %s3348_s23 = sshll.u32 %s6924_s19, 4  ;;  %s3353_s5 = sshll.u32 %s6922_s13, 7 }
  0x15   : > { %3920 = vmatprep.subr.bf16.mxu1 %v4747_v5  ;;  %v4755_v13 = vld [vmem:[%s6670_s1 + $0xd8] sm:$0xff]   ;;  %v4759_v17 = vld [vmem:[%s6670_s1 + $0xe0] sm:$0xff]   ;;  %v4763_v21 = vld [vmem:[%s6670_s1 + $0xe8] sm:$0xff]   ;;  %s200_s29 = sadd.s32 %s3349_s20, %s3348_s23 }
  0x16   : > { %v4756_v14 = vld [vmem:[%s6670_s1 + $0x18] sm:$0xff]   ;;  %v4760_v18 = vld [vmem:[%s6670_s1 + $0x20] sm:$0xff]   ;;  %v4764_v22 = vld [vmem:[%s6670_s1 + $0x28] sm:$0xff]   ;;  %s3350_s9 = sshll.u32 %s200_s29, 2 }
  0x17   : > { %3809 = vmatpush3.bf16.msra.mxu0 %v4748_v6  ;;  %v4757_v15 = vld [vmem:[%s6670_s1 + $0x98] sm:$0xff]   ;;  %v4761_v19 = vld [vmem:[%s6670_s1 + $0xa0] sm:$0xff]   ;;  %v4765_v23 = vld [vmem:[%s6670_s1 + $0xa8] sm:$0xff]   ;;  %s5226_s26 = scalar_lea.vmem %s6669_s0, %s3350_s9 }
  0x18   : > { %3921 = vmatpush3.bf16.msra.mxu1 %v4749_v7  ;;  %3810 = vmatprep.subr.bf16.mxu0 %v4750_v8  ;;  %v4766_v24 = vld [vmem:[%s6670_s1 + $0x70] sm:$0xff]   ;;  %v4770_v28 = vld [vmem:[%s6670_s1 + $0x78] sm:$0xff]   ;;  %v4780_v36 = vld [vmem:[%s6670_s1 + $0x140] sm:$0xff]  }
  0x19   : > { %3922 = vmatprep.subr.bf16.mxu1 %v4751_v9  ;;  %v4767_v25 = vld [vmem:[%s6670_s1 + $0xf0] sm:$0xff]   ;;  %v4771_v29 = vld [vmem:[%s6670_s1 + $0xf8] sm:$0xff]   ;;  %v4781_v37 = vld [vmem:[%s6670_s1 + $0x1c0] sm:$0xff]  }
  0x1a   : > { %v4768_v26 = vld [vmem:[%s6670_s1 + $0x30] sm:$0xff]   ;;  %v4772_v30 = vld [vmem:[%s6670_s1 + $0x38] sm:$0xff]   ;;  %v4782_v38 = vld [vmem:[%s6670_s1 + $0x100] sm:$0xff]  }
  0x1b   : > { %3811 = vmatpush3.bf16.msra.mxu0 %v4752_v10  ;;  %v4769_v27 = vld [vmem:[%s6670_s1 + $0xb0] sm:$0xff]   ;;  %v4773_v31 = vld [vmem:[%s6670_s1 + $0xb8] sm:$0xff]   ;;  %v4783_v39 = vld [vmem:[%s6670_s1 + $0x180] sm:$0xff]  }
  0x1c   : > { %3923 = vmatpush3.bf16.msra.mxu1 %v4753_v11  ;;  %3812 = vmatprep.subr.bf16.mxu0 %v4754_v12  ;;  %v5235_v32 = vld [vmem:[%s5226_s26 + $0x4] ss:$16 sps:$4 sm:$0xff]   ;;  %v5238_v33 = vld [vmem:[%s5226_s26 + $0xc] ss:$16 sps:$4 sm:$0xff]   ;;  %v5242_v34 = vld [vmem:[%s5226_s26] ss:$16 sps:$4 sm:$0xff]  }
  0x1d   : > { %3924 = vmatprep.subr.bf16.mxu1 %v4755_v13  ;;  %888 = vmatprep.mubr.bf16.mxu0 %v5235_v32  ;;  %v5245_v35 = vld [vmem:[%s5226_s26 + $0x8] ss:$16 sps:$4 sm:$0xff]   ;;  %v5263_v40 = vld [vmem:[%s5226_s26 + $0x24] ss:$16 sps:$4 sm:$0xff]   ;;  %v5266_v41 = vld [vmem:[%s5226_s26 + $0x2c] ss:$16 sps:$4 sm:$0xff]  }
  0x1e   : > { %1049 = vmatprep.mubr.bf16.mxu1 %v5238_v33  ;;  %v5269_v42 = vld [vmem:[%s5226_s26 + $0x20] ss:$16 sps:$4 sm:$0xff]   ;;  %v5273_v43 = vld [vmem:[%s5226_s26 + $0x28] ss:$16 sps:$4 sm:$0xff]   ;;  %v5277_v44 = vld [vmem:[%s5226_s26 + $0x44] ss:$16 sps:$4 sm:$0xff]  }
  0x1f   : > { %3813 = vmatpush3.bf16.msra.mxu0 %v4756_v14  ;;  %v5280_v45 = vld [vmem:[%s5226_s26 + $0x4c] ss:$16 sps:$4 sm:$0xff]   ;;  %v5293_v48 = vld [vmem:[%s5226_s26 + $0x40] ss:$16 sps:$4 sm:$0xff]   ;;  %v5296_v49 = vld [vmem:[%s5226_s26 + $0x48] ss:$16 sps:$4 sm:$0xff]  }
  0x20   : > { %3925 = vmatpush3.bf16.msra.mxu1 %v4757_v15  ;;  %3814 = vmatprep.subr.bf16.mxu0 %v4758_v16  ;;  %v4796_v46 = vld [vmem:[%s6670_s1 + $0x148] sm:$0xff]   ;;  %v5305_v52 = vld [vmem:[%s5226_s26 + $0x64] ss:$16 sps:$4 sm:$0xff]   ;;  %v5315_v54 = vld [vmem:[%s5226_s26 + $0x60] ss:$16 sps:$4 sm:$0xff]  }
  0x21   : > { %3926 = vmatprep.subr.bf16.mxu1 %v4759_v17  ;;  %v4797_v47 = vld [vmem:[%s6670_s1 + $0x1c8] sm:$0xff]   ;;  %v4812_v56 = vld [vmem:[%s6670_s1 + $0x150] sm:$0xff]   ;;  %v4828_v2 = vld [vmem:[%s6670_s1 + $0x158] sm:$0xff]  }
  0x22   : > { %v4798_v50 = vld [vmem:[%s6670_s1 + $0x108] sm:$0xff]   ;;  %v5324_v57 = vld [vmem:[%s5226_s26 + $0x84] ss:$16 sps:$4 sm:$0xff]   ;;  %v5343_v62 = vld [vmem:[%s5226_s26 + $0x80] ss:$16 sps:$4 sm:$0xff]  }
  0x23   : > { %3815 = vmatpush3.bf16.msra.mxu0 %v4760_v18  ;;  %v4799_v51 = vld [vmem:[%s6670_s1 + $0x188] sm:$0xff]   ;;  %v4813_v59 = vld [vmem:[%s6670_s1 + $0x1d0] sm:$0xff]   ;;  %v4829_v3 = vld [vmem:[%s6670_s1 + $0x1d8] sm:$0xff]  }
  0x24   : > { %3927 = vmatpush3.bf16.msra.mxu1 %v4761_v19  ;;  %3816 = vmatprep.subr.bf16.mxu0 %v4762_v20  ;;  %v5308_v53 = vld [vmem:[%s5226_s26 + $0x6c] ss:$16 sps:$4 sm:$0xff]   ;;  %v5318_v55 = vld [vmem:[%s5226_s26 + $0x68] ss:$16 sps:$4 sm:$0xff]   ;;  %v4814_v60 = vld [vmem:[%s6670_s1 + $0x110] sm:$0xff]  }
  0x25   : > { %3928 = vmatprep.subr.bf16.mxu1 %v4763_v21  ;;  %v5327_v58 = vld [vmem:[%s5226_s26 + $0x8c] ss:$16 sps:$4 sm:$0xff]   ;;  %v4815_v61 = vld [vmem:[%s6670_s1 + $0x190] sm:$0xff]   ;;  %v5346_v63 = vld [vmem:[%s5226_s26 + $0x88] ss:$16 sps:$4 sm:$0xff]  }
  0x26   : > { %v5349_v0 = vld [vmem:[%s5226_s26 + $0xa4] ss:$16 sps:$4 sm:$0xff]   ;;  %v5352_v1 = vld [vmem:[%s5226_s26 + $0xac] ss:$16 sps:$4 sm:$0xff]   ;;  %v5371_v6 = vld [vmem:[%s5226_s26 + $0xa0] ss:$16 sps:$4 sm:$0xff]  }
  0x27   : > { %3817 = vmatpush3.bf16.msra.mxu0 %v4764_v22  ;;  %v4830_v4 = vld [vmem:[%s6670_s1 + $0x118] sm:$0xff]   ;;  %v5377_v8 = vld [vmem:[%s5226_s26 + $0xc4] ss:$16 sps:$4 sm:$0xff]   ;;  %v5399_v14 = vld [vmem:[%s5226_s26 + $0xc0] ss:$16 sps:$4 sm:$0xff]  }
  0x28   : > { %3929 = vmatpush3.bf16.msra.mxu1 %v4765_v23  ;;  %3818 = vmatprep.subr.bf16.mxu0 %v4766_v24  ;;  %v4831_v5 = vld [vmem:[%s6670_s1 + $0x198] sm:$0xff]   ;;  %v4844_v10 = vld [vmem:[%s6670_s1 + $0x160] sm:$0xff]   ;;  %v4860_v18 = vld [vmem:[%s6670_s1 + $0x168] sm:$0xff]  }
  0x29   : > { %3930 = vmatprep.subr.bf16.mxu1 %v4767_v25  ;;  %v5374_v7 = vld [vmem:[%s5226_s26 + $0xa8] ss:$16 sps:$4 sm:$0xff]   ;;  %v5380_v9 = vld [vmem:[%s5226_s26 + $0xcc] ss:$16 sps:$4 sm:$0xff]   ;;  %v4845_v11 = vld [vmem:[%s6670_s1 + $0x1e0] sm:$0xff]  }
  0x2a   : > { %v4846_v12 = vld [vmem:[%s6670_s1 + $0x120] sm:$0xff]   ;;  %v5402_v15 = vld [vmem:[%s5226_s26 + $0xc8] ss:$16 sps:$4 sm:$0xff]   ;;  %v5408_v17 = vld [vmem:[%s5226_s26 + $0xec] ss:$16 sps:$4 sm:$0xff]  }
  0x2b   : > { %3819 = vmatpush3.bf16.msra.mxu0 %v4768_v26  ;;  %v4847_v13 = vld [vmem:[%s6670_s1 + $0x1a0] sm:$0xff]   ;;  %v4861_v19 = vld [vmem:[%s6670_s1 + $0x1e8] sm:$0xff]   ;;  %v4876_v26 = vld [vmem:[%s6670_s1 + $0x170] sm:$0xff]  }
  0x2c   : > { %3931 = vmatpush3.bf16.msra.mxu1 %v4769_v27  ;;  %3820 = vmatprep.subr.bf16.mxu0 %v4770_v28  ;;  %v5405_v16 = vld [vmem:[%s5226_s26 + $0xe4] ss:$16 sps:$4 sm:$0xff]   ;;  %v4862_v20 = vld [vmem:[%s6670_s1 + $0x128] sm:$0xff]   ;;  %v5427_v22 = vld [vmem:[%s5226_s26 + $0xe0] ss:$16 sps:$4 sm:$0xff]  }
  0x2d   : > { %3932 = vmatprep.subr.bf16.mxu1 %v4771_v29  ;;  %v4863_v21 = vld [vmem:[%s6670_s1 + $0x1a8] sm:$0xff]   ;;  %v5433_v24 = vld [vmem:[%s5226_s26 + $0x104] ss:$16 sps:$4 sm:$0xff]  }
  0x2e   : > { %v5430_v23 = vld [vmem:[%s5226_s26 + $0xe8] ss:$16 sps:$4 sm:$0xff]   ;;  %v5436_v25 = vld [vmem:[%s5226_s26 + $0x10c] ss:$16 sps:$4 sm:$0xff]   ;;  %v4877_v27 = vld [vmem:[%s6670_s1 + $0x1f0] sm:$0xff]  }
  0x2f   : > { %3821 = vmatpush3.bf16.msra.mxu0 %v4772_v30  ;;  %v4878_v28 = vld [vmem:[%s6670_s1 + $0x130] sm:$0xff]  }
  0x30   : > { %3933 = vmatpush3.bf16.msra.mxu1 %v4773_v31  ;;  %4030 = vmatprep.subr.bf16.mxu0 %v4780_v36  ;;  %v4879_v29 = vld [vmem:[%s6670_s1 + $0x1b0] sm:$0xff]   ;;  %v5458_v31 = vld [vmem:[%s5226_s26 + $0x108] ss:$16 sps:$4 sm:$0xff]  }
  0x31   : > { %4142 = vmatprep.subr.bf16.mxu1 %v4781_v37  ;;  %v5455_v30 = vld [vmem:[%s5226_s26 + $0x100] ss:$16 sps:$4 sm:$0xff]   ;;  %v5461_v36 = vld [vmem:[%s5226_s26 + $0x124] ss:$16 sps:$4 sm:$0xff]   ;;  %v5464_v37 = vld [vmem:[%s5226_s26 + $0x12c] ss:$16 sps:$4 sm:$0xff]  }
  0x32   : > { %889 = vmatmul.mubr.bf16.vlgmr.msra.gmra.mrb[0].mxu0 %v5242_v34 }
  0x33   : > { %1050 = vmatmul.mubr.bf16.vlgmr.msra.gmra.mrb[0].mxu1 %v5245_v35  ;;  %4031 = vmatpush3.bf16.msra.mxu0 %v4782_v38  ;;  %v4892_v38 = vld [vmem:[%s6670_s1 + $0x178] sm:$0xff]  }
  0x34   : > { %4143 = vmatpush3.bf16.msra.mxu1 %v4783_v39  ;;  %896 = vmatprep.mubr.bf16.mxu0 %v5263_v40  ;;  %v4893_v39 = vld [vmem:[%s6670_s1 + $0x1f8] sm:$0xff]  }
  0x35   : > { %1057 = vmatprep.mubr.bf16.mxu1 %v5266_v41  ;;  %4032 = vmatprep.subr.bf16.mxu0 %v4796_v46  ;;  %v5477_v46 = vld [vmem:[%s5226_s26 + $0x120] ss:$16 sps:$4 sm:$0xff]  }
  0x36   : > { %4144 = vmatprep.subr.bf16.mxu1 %v4797_v47  ;;  %v5480_v47 = vld [vmem:[%s5226_s26 + $0x128] ss:$16 sps:$4 sm:$0xff]  }
  0x37   : > { %4033 = vmatpush3.bf16.msra.mxu0 %v4798_v50  ;;  %v4894_v50 = vld [vmem:[%s6670_s1 + $0x138] sm:$0xff]  }
  0x38   : > { %4145 = vmatpush3.bf16.msra.mxu1 %v4799_v51  ;;  %4034 = vmatprep.subr.bf16.mxu0 %v4812_v56  ;;  %v4895_v51 = vld [vmem:[%s6670_s1 + $0x1b8] sm:$0xff]   ;;  %v5489_v56 = vld [vmem:[%s5226_s26 + $0x144] ss:$16 sps:$4 sm:$0xff]  }
  0x39   : > { %4146 = vmatprep.subr.bf16.mxu1 %v4813_v59  ;;  %v5492_v59 = vld [vmem:[%s5226_s26 + $0x14c] ss:$16 sps:$4 sm:$0xff]  }
  0x3a   : > { %897 = vmatmul.mubr.bf16.gmra.mrb[4].mxu0 %v5269_v42 }
  0x3b   : > { %1058 = vmatmul.mubr.bf16.gmra.mrb[4].mxu1 %v5273_v43  ;;  %904 = vmatprep.mubr.bf16.mxu0 %v5277_v44 }
  0x3c   : > { %1065 = vmatprep.mubr.bf16.mxu1 %v5280_v45  ;;  %4035 = vmatpush3.bf16.msra.mxu0 %v4814_v60  ;;  %v4902_v60 = vld [vmem:[%s6670_s1 + $0x240] sm:$0xff]  }
  0x3d   : > { %4147 = vmatpush3.bf16.msra.mxu1 %v4815_v61  ;;  %4036 = vmatprep.subr.bf16.mxu0 %v4828_v2  ;;  %v4903_v61 = vld [vmem:[%s6670_s1 + $0x2c0] sm:$0xff]  }
  0x3e   : > { %4148 = vmatprep.subr.bf16.mxu1 %v4829_v3  ;;  %v5505_v2 = vld [vmem:[%s5226_s26 + $0x140] ss:$16 sps:$4 sm:$0xff]   ;;  %v5508_v3 = vld [vmem:[%s5226_s26 + $0x148] ss:$16 sps:$4 sm:$0xff]  }
  0x40   : > { %4037 = vmatpush3.bf16.msra.mxu0 %v4830_v4  ;;  %v5511_v4 = vld [vmem:[%s5226_s26 + $0x164] ss:$16 sps:$4 sm:$0xff]  }
  0x41   : > { %4149 = vmatpush3.bf16.msra.mxu1 %v4831_v5  ;;  %4038 = vmatprep.subr.bf16.mxu0 %v4844_v10  ;;  %v5514_v5 = vld [vmem:[%s5226_s26 + $0x16c] ss:$16 sps:$4 sm:$0xff]   ;;  %v5521_v10 = vld [vmem:[%s5226_s26 + $0x160] ss:$16 sps:$4 sm:$0xff]  }
  0x42   : > { %905 = vmatmul.mubr.bf16.gmra.mrb[8].mxu0 %v5293_v48  ;;  %4150 = vmatprep.subr.bf16.mxu1 %v4845_v11  ;;  %v5524_v11 = vld [vmem:[%s5226_s26 + $0x168] ss:$16 sps:$4 sm:$0xff]  }
  0x43   : > { %1066 = vmatmul.mubr.bf16.gmra.mrb[8].mxu1 %v5296_v49  ;;  %912 = vmatprep.mubr.bf16.mxu0 %v5305_v52 }
  0x44   : > { %1073 = vmatprep.mubr.bf16.mxu1 %v5308_v53  ;;  %4039 = vmatpush3.bf16.msra.mxu0 %v4846_v12  ;;  %v5527_v12 = vld [vmem:[%s5226_s26 + $0x184] ss:$16 sps:$4 sm:$0xff]  }
  0x45   : > { %4151 = vmatpush3.bf16.msra.mxu1 %v4847_v13  ;;  %4040 = vmatprep.subr.bf16.mxu0 %v4860_v18  ;;  %v5530_v13 = vld [vmem:[%s5226_s26 + $0x18c] ss:$16 sps:$4 sm:$0xff]   ;;  %v5537_v18 = vld [vmem:[%s5226_s26 + $0x180] ss:$16 sps:$4 sm:$0xff]  }
  0x46   : > { %4152 = vmatprep.subr.bf16.mxu1 %v4861_v19  ;;  %v5540_v19 = vld [vmem:[%s5226_s26 + $0x188] ss:$16 sps:$4 sm:$0xff]  }
  0x48   : > { %4041 = vmatpush3.bf16.msra.mxu0 %v4862_v20  ;;  %v5543_v20 = vld [vmem:[%s5226_s26 + $0x1a4] ss:$16 sps:$4 sm:$0xff]  }
  0x49   : > { %4153 = vmatpush3.bf16.msra.mxu1 %v4863_v21  ;;  %4042 = vmatprep.subr.bf16.mxu0 %v4876_v26  ;;  %v5546_v21 = vld [vmem:[%s5226_s26 + $0x1ac] ss:$16 sps:$4 sm:$0xff]   ;;  %v5553_v26 = vld [vmem:[%s5226_s26 + $0x1a0] ss:$16 sps:$4 sm:$0xff]  }
  0x4a   : > { %913 = vmatmul.mubr.bf16.gmra.mrb[12].mxu0 %v5315_v54  ;;  %4154 = vmatprep.subr.bf16.mxu1 %v4877_v27  ;;  %v5556_v27 = vld [vmem:[%s5226_s26 + $0x1a8] ss:$16 sps:$4 sm:$0xff]  }
  0x4b   : > { %1074 = vmatmul.mubr.bf16.gmra.mrb[12].mxu1 %v5318_v55  ;;  %920 = vmatprep.mubr.bf16.mxu0 %v5324_v57 }
  0x4c   : > { %1081 = vmatprep.mubr.bf16.mxu1 %v5327_v58  ;;  %4043 = vmatpush3.bf16.msra.mxu0 %v4878_v28  ;;  %v5559_v28 = vld [vmem:[%s5226_s26 + $0x1c4] ss:$16 sps:$4 sm:$0xff]  }
  0x4d   : > { %4155 = vmatpush3.bf16.msra.mxu1 %v4879_v29  ;;  %4044 = vmatprep.subr.bf16.mxu0 %v4892_v38  ;;  %v5562_v29 = vld [vmem:[%s5226_s26 + $0x1cc] ss:$16 sps:$4 sm:$0xff]   ;;  %v5569_v38 = vld [vmem:[%s5226_s26 + $0x1c0] ss:$16 sps:$4 sm:$0xff]  }
  0x4e   : > { %4156 = vmatprep.subr.bf16.mxu1 %v4893_v39  ;;  %v5572_v39 = vld [vmem:[%s5226_s26 + $0x1c8] ss:$16 sps:$4 sm:$0xff]  }
  0x4f   : > { %6739 = vst [vmem:[#allocation2_spill] sm:$0xff] %v5572_v39 }
  0x50   : > { %4045 = vmatpush3.bf16.msra.mxu0 %v4894_v50  ;;  %v5575_v50 = vld [vmem:[%s5226_s26 + $0x1e4] ss:$16 sps:$4 sm:$0xff]  }
  0x51   : > { %4157 = vmatpush3.bf16.msra.mxu1 %v4895_v51  ;;  %4254 = vmatprep.subr.bf16.mxu0 %v4902_v60  ;;  %6740 = vst [vmem:[#allocation3_spill] sm:$0xff] %v5575_v50  ;;  %v5578_v51 = vld [vmem:[%s5226_s26 + $0x1ec] ss:$16 sps:$4 sm:$0xff]   ;;  %v5585_v60 = vld [vmem:[%s5226_s26 + $0x1e0] ss:$16 sps:$4 sm:$0xff]  }
  0x52   : > { %921 = vmatmul.mubr.bf16.gmra.mrb[16].mxu0 %v5343_v62  ;;  %4366 = vmatprep.subr.bf16.mxu1 %v4903_v61  ;;  %6741 = vst [vmem:[#allocation4_spill] sm:$0xff] %v5578_v51  ;;  %v5588_v61 = vld [vmem:[%s5226_s26 + $0x1e8] ss:$16 sps:$4 sm:$0xff]  }
  0x53   : > { %1082 = vmatmul.mubr.bf16.gmra.mrb[16].mxu1 %v5346_v63  ;;  %928 = vmatprep.mubr.bf16.mxu0 %v5349_v0  ;;  %6742 = vst [vmem:[#allocation5_spill] sm:$0xff] %v5588_v61 }
  0x54   : > { %1089 = vmatprep.mubr.bf16.mxu1 %v5352_v1 }
  0x5a   : > { %929 = vmatmul.mubr.bf16.gmra.mrb[20].mxu0 %v5371_v6 }
  0x5b   : > { %1090 = vmatmul.mubr.bf16.gmra.mrb[20].mxu1 %v5374_v7  ;;  %936 = vmatprep.mubr.bf16.mxu0 %v5377_v8 }
  0x5c   : > { %1097 = vmatprep.mubr.bf16.mxu1 %v5380_v9 }
  0x62   : > { %937 = vmatmul.mubr.bf16.gmra.mrb[24].mxu0 %v5399_v14 }
  0x63   : > { %1098 = vmatmul.mubr.bf16.gmra.mrb[24].mxu1 %v5402_v15  ;;  %944 = vmatprep.mubr.bf16.mxu0 %v5405_v16 }
  0x64   : > { %1105 = vmatprep.mubr.bf16.mxu1 %v5408_v17 }
  0x6a   : > { %945 = vmatmul.mubr.bf16.gmra.mrb[28].mxu0 %v5427_v22 }
  0x6b   : > { %1106 = vmatmul.mubr.bf16.gmra.mrb[28].mxu1 %v5430_v23  ;;  %952 = vmatprep.mubr.bf16.mxu0 %v5433_v24 }
  0x6c   : > { %1113 = vmatprep.mubr.bf16.mxu1 %v5436_v25 }
  0x72   : > { %953 = vmatmul.mubr.bf16.gmra.mrb[32].mxu0 %v5455_v30 }
  0x73   : > { %1114 = vmatmul.mubr.bf16.gmra.mrb[32].mxu1 %v5458_v31  ;;  %960 = vmatprep.mubr.bf16.mxu0 %v5461_v36 }
  0x74   : > { %1121 = vmatprep.mubr.bf16.mxu1 %v5464_v37 }
  0x7a   : > { %961 = vmatmul.mubr.bf16.gmra.mrb[36].mxu0 %v5477_v46 }
  0x7b   : > { %1122 = vmatmul.mubr.bf16.gmra.mrb[36].mxu1 %v5480_v47  ;;  %968 = vmatprep.mubr.bf16.mxu0 %v5489_v56 }
  0x7c   : > { %1129 = vmatprep.mubr.bf16.mxu1 %v5492_v59 }
  0x82   : > { %969 = vmatmul.mubr.bf16.gmra.mrb[40].mxu0 %v5505_v2 }
  0x83   : > { %1130 = vmatmul.mubr.bf16.gmra.mrb[40].mxu1 %v5508_v3  ;;  %976 = vmatprep.mubr.bf16.mxu0 %v5511_v4 }
  0x84   : > { %1137 = vmatprep.mubr.bf16.mxu1 %v5514_v5 }
  0x8a   : > { %977 = vmatmul.mubr.bf16.gmra.mrb[44].mxu0 %v5521_v10 }
  0x8b   : > { %1138 = vmatmul.mubr.bf16.gmra.mrb[44].mxu1 %v5524_v11  ;;  %984 = vmatprep.mubr.bf16.mxu0 %v5527_v12 }
  0x8c   : > { %1145 = vmatprep.mubr.bf16.mxu1 %v5530_v13 }
  0x92   : > { %985 = vmatmul.mubr.bf16.gmra.mrb[48].mxu0 %v5537_v18 }
  0x93   : > { %1146 = vmatmul.mubr.bf16.gmra.mrb[48].mxu1 %v5540_v19  ;;  %992 = vmatprep.mubr.bf16.mxu0 %v5543_v20 }
  0x94   : > { %1153 = vmatprep.mubr.bf16.mxu1 %v5546_v21 }
  0x9a   : > { %993 = vmatmul.mubr.bf16.gmra.mrb[52].mxu0 %v5553_v26 }
  0x9b   : > { %1154 = vmatmul.mubr.bf16.gmra.mrb[52].mxu1 %v5556_v27  ;;  %1000 = vmatprep.mubr.bf16.mxu0 %v5559_v28 }
  0x9c   : > { %1161 = vmatprep.mubr.bf16.mxu1 %v5562_v29 }
  0xa2   : > { %1001 = vmatmul.mubr.bf16.gmra.mrb[56].mxu0 %v5569_v38 }
  0xa3   : > { %1162 = vmatmul.mubr.bf16.gmra.mrb[56].mxu1 %v5572_v39  ;;  %1008 = vmatprep.mubr.bf16.mxu0 %v5575_v50  ;;  %v4904_v39 = vld [vmem:[%s6670_s1 + $0x200] sm:$0xff]   ;;  %v4906_v50 = vld [vmem:[%s6670_s1 + $0x248] sm:$0xff]  }
  0xa4   : > { %1169 = vmatprep.mubr.bf16.mxu1 %v5578_v51  ;;  %v4905_v51 = vld [vmem:[%s6670_s1 + $0x280] sm:$0xff]  }
  0xaa   : > { %1009 = vmatmul.mubr.bf16.gmra.mrb[60].mxu0 %v5585_v60 }
  0xab   : > { %1170 = vmatmul.mubr.bf16.gmra.mrb[60].mxu1 %v5588_v61  ;;  %1467 = vmatprep.mubr.bf16.mxu0 %v5235_v32  ;;  %v4907_v61 = vld [vmem:[%s6670_s1 + $0x2c8] sm:$0xff]  }
  0xac   : > { %1628 = vmatprep.mubr.bf16.mxu1 %v5238_v33  ;;  %v4908_v32 = vld [vmem:[%s6670_s1 + $0x208] sm:$0xff]  }
  0xad   : > { %v4909_v33 = vld [vmem:[%s6670_s1 + $0x288] sm:$0xff]  }
  0xb2   : > { %1468 = vmatmul.mubr.bf16.vlgmr.msra.gmra.mrb[64].mxu0 %v5242_v34  ;;  %v4910_v34 = vld [vmem:[%s6670_s1 + $0x250] sm:$0xff]  }
  0xb3   : > { %1629 = vmatmul.mubr.bf16.vlgmr.msra.gmra.mrb[64].mxu1 %v5245_v35  ;;  %4255 = vmatpush3.bf16.msra.mxu0 %v4904_v39  ;;  %v4911_v35 = vld [vmem:[%s6670_s1 + $0x2d0] sm:$0xff]   ;;  %v4914_v39 = vld [vmem:[%s6670_s1 + $0x258] sm:$0xff]  }
  0xb4   : > { %4367 = vmatpush3.bf16.msra.mxu1 %v4905_v51  ;;  %1475 = vmatprep.mubr.bf16.mxu0 %v5263_v40  ;;  %v4912_v40 = vld [vmem:[%s6670_s1 + $0x210] sm:$0xff]   ;;  %v4916_v51 = vld [vmem:[%s6670_s1 + $0x218] sm:$0xff]  }
  0xb5   : > { %1636 = vmatprep.mubr.bf16.mxu1 %v5266_v41  ;;  %4256 = vmatprep.subr.bf16.mxu0 %v4906_v50  ;;  %v4913_v41 = vld [vmem:[%s6670_s1 + $0x290] sm:$0xff]   ;;  %v4915_v50 = vld [vmem:[%s6670_s1 + $0x2d8] sm:$0xff]  }
  0xb6   : > { %4368 = vmatprep.subr.bf16.mxu1 %v4907_v61  ;;  %v4917_v61 = vld [vmem:[%s6670_s1 + $0x298] sm:$0xff]  }
  0xb7   : > { %4257 = vmatpush3.bf16.msra.mxu0 %v4908_v32  ;;  %v4922_v32 = vld [vmem:[%s6670_s1 + $0x268] sm:$0xff]  }
  0xb8   : > { %4369 = vmatpush3.bf16.msra.mxu1 %v4909_v33  ;;  %4258 = vmatprep.subr.bf16.mxu0 %v4910_v34  ;;  %v4923_v33 = vld [vmem:[%s6670_s1 + $0x2e8] sm:$0xff]  }
  0xb9   : > { %4370 = vmatprep.subr.bf16.mxu1 %v4911_v35  ;;  %v4924_v34 = vld [vmem:[%s6670_s1 + $0x228] sm:$0xff]  }
  0xba   : > { %1476 = vmatmul.mubr.bf16.gmra.mrb[68].mxu0 %v5269_v42  ;;  %v4918_v42 = vld [vmem:[%s6670_s1 + $0x260] sm:$0xff]   ;;  %v4925_v35 = vld [vmem:[%s6670_s1 + $0x2a8] sm:$0xff]  }
  0xbb   : > { %1637 = vmatmul.mubr.bf16.gmra.mrb[68].mxu1 %v5273_v43  ;;  %1483 = vmatprep.mubr.bf16.mxu0 %v5277_v44  ;;  %v4919_v43 = vld [vmem:[%s6670_s1 + $0x2e0] sm:$0xff]  }
  0xbc   : > { %1644 = vmatprep.mubr.bf16.mxu1 %v5280_v45  ;;  %4259 = vmatpush3.bf16.msra.mxu0 %v4912_v40  ;;  %v4920_v44 = vld [vmem:[%s6670_s1 + $0x220] sm:$0xff]   ;;  %v4930_v40 = vld [vmem:[%s6670_s1 + $0x278] sm:$0xff]  }
  0xbd   : > { %4371 = vmatpush3.bf16.msra.mxu1 %v4913_v41  ;;  %4260 = vmatprep.subr.bf16.mxu0 %v4914_v39  ;;  %v4921_v45 = vld [vmem:[%s6670_s1 + $0x2a0] sm:$0xff]   ;;  %v4931_v41 = vld [vmem:[%s6670_s1 + $0x2f8] sm:$0xff]  }
  0xbe   : > { %4372 = vmatprep.subr.bf16.mxu1 %v4915_v50  ;;  %v4932_v39 = vld [vmem:[%s6670_s1 + $0x238] sm:$0xff]  }
  0xbf   : > { %v4933_v50 = vld [vmem:[%s6670_s1 + $0x2b8] sm:$0xff]  }
  0xc0   : > { %4261 = vmatpush3.bf16.msra.mxu0 %v4916_v51 }
  0xc1   : > { %4373 = vmatpush3.bf16.msra.mxu1 %v4917_v61  ;;  %4262 = vmatprep.subr.bf16.mxu0 %v4918_v42 }
  0xc2   : > { %4374 = vmatprep.subr.bf16.mxu1 %v4919_v43  ;;  %1484 = vmatmul.mubr.bf16.gmra.mrb[72].mxu0 %v5293_v48  ;;  %v4926_v48 = vld [vmem:[%s6670_s1 + $0x270] sm:$0xff]  }
  0xc3   : > { %1645 = vmatmul.mubr.bf16.gmra.mrb[72].mxu1 %v5296_v49  ;;  %1491 = vmatprep.mubr.bf16.mxu0 %v5305_v52  ;;  %v4927_v49 = vld [vmem:[%s6670_s1 + $0x2f0] sm:$0xff]  }
  0xc4   : > { %1652 = vmatprep.mubr.bf16.mxu1 %v5308_v53  ;;  %4263 = vmatpush3.bf16.msra.mxu0 %v4920_v44  ;;  %v4928_v52 = vld [vmem:[%s6670_s1 + $0x230] sm:$0xff]  }
  0xc5   : > { %4375 = vmatpush3.bf16.msra.mxu1 %v4921_v45  ;;  %4264 = vmatprep.subr.bf16.mxu0 %v4922_v32  ;;  %v4929_v53 = vld [vmem:[%s6670_s1 + $0x2b0] sm:$0xff]  }
  0xc6   : > { %4376 = vmatprep.subr.bf16.mxu1 %v4923_v33 }
  0xc8   : > { %4265 = vmatpush3.bf16.msra.mxu0 %v4924_v34 }
  0xc9   : > { %4377 = vmatpush3.bf16.msra.mxu1 %v4925_v35  ;;  %4266 = vmatprep.subr.bf16.mxu0 %v4926_v48 }
  0xca   : > { %4378 = vmatprep.subr.bf16.mxu1 %v4927_v49  ;;  %1492 = vmatmul.mubr.bf16.gmra.mrb[76].mxu0 %v5315_v54  ;;  %v4934_v54 = vld [vmem:[%s6670_s1 + $0x340] sm:$0xff]  }
  0xcb   : > { %1653 = vmatmul.mubr.bf16.gmra.mrb[76].mxu1 %v5318_v55  ;;  %1499 = vmatprep.mubr.bf16.mxu0 %v5324_v57  ;;  %v4935_v55 = vld [vmem:[%s6670_s1 + $0x3c0] sm:$0xff]  }
  0xcc   : > { %1660 = vmatprep.mubr.bf16.mxu1 %v5327_v58  ;;  %4267 = vmatpush3.bf16.msra.mxu0 %v4928_v52 }
  0xcd   : > { %4379 = vmatpush3.bf16.msra.mxu1 %v4929_v53  ;;  %4268 = vmatprep.subr.bf16.mxu0 %v4930_v40 }
  0xce   : > { %4380 = vmatprep.subr.bf16.mxu1 %v4931_v41  ;;  %v6747_v41 = vld [vmem:[#allocation2_spill] sm:$0xff] }
  0xd0   : > { %4269 = vmatpush3.bf16.msra.mxu0 %v4932_v39  ;;  %v6749_v39 = vld [vmem:[#allocation4_spill] sm:$0xff] }
  0xd1   : > { %4381 = vmatpush3.bf16.msra.mxu1 %v4933_v50  ;;  %4478 = vmatprep.subr.bf16.mxu0 %v4934_v54 }
  0xd2   : > { %4590 = vmatprep.subr.bf16.mxu1 %v4935_v55  ;;  %1500 = vmatmul.mubr.bf16.gmra.mrb[80].mxu0 %v5343_v62 }
  0xd3   : > { %1661 = vmatmul.mubr.bf16.gmra.mrb[80].mxu1 %v5346_v63  ;;  %1507 = vmatprep.mubr.bf16.mxu0 %v5349_v0 }
  0xd4   : > { %1668 = vmatprep.mubr.bf16.mxu1 %v5352_v1 }
  0xda   : > { %1508 = vmatmul.mubr.bf16.gmra.mrb[84].mxu0 %v5371_v6 }
  0xdb   : > { %1669 = vmatmul.mubr.bf16.gmra.mrb[84].mxu1 %v5374_v7  ;;  %1515 = vmatprep.mubr.bf16.mxu0 %v5377_v8 }
  0xdc   : > { %1676 = vmatprep.mubr.bf16.mxu1 %v5380_v9 }
  0xe2   : > { %1516 = vmatmul.mubr.bf16.gmra.mrb[88].mxu0 %v5399_v14 }
  0xe3   : > { %1677 = vmatmul.mubr.bf16.gmra.mrb[88].mxu1 %v5402_v15  ;;  %1523 = vmatprep.mubr.bf16.mxu0 %v5405_v16 }
  0xe4   : > { %1684 = vmatprep.mubr.bf16.mxu1 %v5408_v17 }
  0xea   : > { %1524 = vmatmul.mubr.bf16.gmra.mrb[92].mxu0 %v5427_v22 }
  0xeb   : > { %1685 = vmatmul.mubr.bf16.gmra.mrb[92].mxu1 %v5430_v23  ;;  %1531 = vmatprep.mubr.bf16.mxu0 %v5433_v24 }
  0xec   : > { %1692 = vmatprep.mubr.bf16.mxu1 %v5436_v25 }
  0xf2   : > { %1532 = vmatmul.mubr.bf16.gmra.mrb[96].mxu0 %v5455_v30 }
  0xf3   : > { %1693 = vmatmul.mubr.bf16.gmra.mrb[96].mxu1 %v5458_v31  ;;  %1539 = vmatprep.mubr.bf16.mxu0 %v5461_v36 }
  0xf4   : > { %1700 = vmatprep.mubr.bf16.mxu1 %v5464_v37 }
  0xfa   : > { %1540 = vmatmul.mubr.bf16.gmra.mrb[100].mxu0 %v5477_v46 }
  0xfb   : > { %1701 = vmatmul.mubr.bf16.gmra.mrb[100].mxu1 %v5480_v47  ;;  %1547 = vmatprep.mubr.bf16.mxu0 %v5489_v56 }
  0xfc   : > { %1708 = vmatprep.mubr.bf16.mxu1 %v5492_v59 }
 0x102   : > { %1548 = vmatmul.mubr.bf16.gmra.mrb[104].mxu0 %v5505_v2 }
 0x103   : > { %1709 = vmatmul.mubr.bf16.gmra.mrb[104].mxu1 %v5508_v3  ;;  %1555 = vmatprep.mubr.bf16.mxu0 %v5511_v4 }
 0x104   : > { %1716 = vmatprep.mubr.bf16.mxu1 %v5514_v5 }
 0x105   : > { %v3822_v57 = vpop.f32.mrb[0].mxu0 }
 0x106   : > { %v3934_v58 = vpop.f32.mrb[0].mxu1  ;;  %v3823_v62 = vpop.f32.mrb[1].mxu0 }
 0x107   : > { %v3935_v63 = vpop.f32.mrb[1].mxu1  ;;  %v3824_v0 = vadd.f32 %v3823_v62, %v3822_v57  ;;  %v3825_v6 = vpop.f32.mrb[2].mxu0 }
 0x108   : > { %v3936_v1 = vadd.f32 %v3935_v63, %v3934_v58  ;;  %v3937_v7 = vpop.f32.mrb[2].mxu1  ;;  %v3826_v8 = vpop.f32.mrb[3].mxu0 }
 0x109   : > { %v3938_v9 = vpop.f32.mrb[3].mxu1  ;;  %v3827_v15 = vadd.f32 %v3826_v8, %v3825_v6 }
 0x10a   : > { %v5734_v14 = vadd.f32 %v3936_v1, %v3824_v0  ;;  %v3939_v16 = vadd.f32 %v3938_v9, %v3937_v7  ;;  %1556 = vmatmul.mubr.bf16.gmra.mrb[108].mxu0 %v5521_v10  ;;  %v6750_v9 = vld [vmem:[#allocation5_spill] sm:$0xff] }
 0x10b   : > { %1717 = vmatmul.mubr.bf16.gmra.mrb[108].mxu1 %v5524_v11  ;;  %1563 = vmatprep.mubr.bf16.mxu0 %v5527_v12 }
 0x10c   : > { %6743 = vst [vmem:[#allocation6_spill] sm:$0xff] %v5734_v14  ;;  %v5738_v17 = vadd.f32 %v3939_v16, %v3827_v15  ;;  %1724 = vmatprep.mubr.bf16.mxu1 %v5530_v13  ;;  %v5773_v16 = vld [vmem:[%s5226_s26 + $0x4] ss:$16 sps:$4 sm:$0xff]  }
 0x10d   : > { %v3828_v22 = vpop.f32.mrb[4].mxu0 }
 0x10e   : > { %v3940_v23 = vpop.f32.mrb[4].mxu1  ;;  %v3829_v24 = vpop.f32.mrb[5].mxu0 }
 0x10f   : > { %v3941_v25 = vpop.f32.mrb[5].mxu1  ;;  %v3830_v30 = vadd.f32 %v3829_v24, %v3828_v22  ;;  %v3831_v36 = vpop.f32.mrb[6].mxu0  ;;  %v5777_v22 = vld [vmem:[%s5226_s26 + $0xc] ss:$16 sps:$4 sm:$0xff]  }
 0x110   : > { %v3942_v31 = vadd.f32 %v3941_v25, %v3940_v23  ;;  %v3943_v37 = vpop.f32.mrb[6].mxu1  ;;  %v3832_v46 = vpop.f32.mrb[7].mxu0 }
 0x111   : > { %v3944_v47 = vpop.f32.mrb[7].mxu1  ;;  %v3833_v59 = vadd.f32 %v3832_v46, %v3831_v36  ;;  %v4936_v46 = vld [vmem:[%s6670_s1 + $0x300] sm:$0xff]  }
 0x112   : > { %v5742_v56 = vadd.f32 %v3942_v31, %v3830_v30  ;;  %v3945_v2 = vadd.f32 %v3944_v47, %v3943_v37  ;;  %1564 = vmatmul.mubr.bf16.gmra.mrb[112].mxu0 %v5537_v18  ;;  %v4937_v47 = vld [vmem:[%s6670_s1 + $0x380] sm:$0xff]  }
 0x113   : > { %1725 = vmatmul.mubr.bf16.gmra.mrb[112].mxu1 %v5540_v19  ;;  %1571 = vmatprep.mubr.bf16.mxu0 %v5543_v20 }
 0x114   : > { %6744 = vst [vmem:[#allocation7_spill] sm:$0xff] %v5742_v56  ;;  %v5746_v3 = vadd.f32 %v3945_v2, %v3833_v59  ;;  %1732 = vmatprep.mubr.bf16.mxu1 %v5546_v21 }
 0x115   : > { %v3834_v4 = vpop.f32.mrb[8].mxu0 }
 0x116   : > { %v3946_v5 = vpop.f32.mrb[8].mxu1  ;;  %v3835_v10 = vpop.f32.mrb[9].mxu0 }
 0x117   : > { %v3947_v11 = vpop.f32.mrb[9].mxu1  ;;  %v3836_v12 = vadd.f32 %v3835_v10, %v3834_v4  ;;  %v3837_v51 = vpop.f32.mrb[10].mxu0 }
 0x118   : > { %v3948_v13 = vadd.f32 %v3947_v11, %v3946_v5  ;;  %v3949_v61 = vpop.f32.mrb[10].mxu1  ;;  %v3838_v42 = vpop.f32.mrb[11].mxu0  ;;  %v4938_v11 = vld [vmem:[%s6670_s1 + $0x348] sm:$0xff]  }
 0x119   : > { %v3950_v43 = vpop.f32.mrb[11].mxu1  ;;  %v3839_v18 = vadd.f32 %v3838_v42, %v3837_v51  ;;  %v5799_v51 = vld [vmem:[%s5226_s26 + $0x8] ss:$16 sps:$4 sm:$0xff]  }
 0x11a   : > { %v5750_v44 = vadd.f32 %v3948_v13, %v3836_v12  ;;  %v3951_v19 = vadd.f32 %v3950_v43, %v3949_v61  ;;  %1572 = vmatmul.mubr.bf16.gmra.mrb[116].mxu0 %v5553_v26  ;;  %v4939_v12 = vld [vmem:[%s6670_s1 + $0x3c8] sm:$0xff]   ;;  %v5795_v13 = vld [vmem:[%s5226_s26] ss:$16 sps:$4 sm:$0xff]  }
 0x11b   : > { %1733 = vmatmul.mubr.bf16.gmra.mrb[116].mxu1 %v5556_v27  ;;  %1579 = vmatprep.mubr.bf16.mxu0 %v5559_v28  ;;  %v4940_v42 = vld [vmem:[%s6670_s1 + $0x308] sm:$0xff]  }
 0x11c   : > { %6745 = vst [vmem:[#allocation8_spill] sm:$0xff] %v5750_v44  ;;  %v5754_v20 = vadd.f32 %v3951_v19, %v3839_v18  ;;  %1740 = vmatprep.mubr.bf16.mxu1 %v5562_v29  ;;  %v6748_v29 = vld [vmem:[#allocation3_spill] sm:$0xff]  ;;  %v5811_v18 = vld [vmem:[%s5226_s26 + $0x24] ss:$16 sps:$4 sm:$0xff]  }
 0x11d   : > { %v3840_v21 = vpop.f32.mrb[12].mxu0  ;;  %v4941_v43 = vld [vmem:[%s6670_s1 + $0x388] sm:$0xff]  }
 0x11e   : > { %v3952_v45 = vpop.f32.mrb[12].mxu1  ;;  %v3841_v32 = vpop.f32.mrb[13].mxu0  ;;  %v5815_v19 = vld [vmem:[%s5226_s26 + $0x2c] ss:$16 sps:$4 sm:$0xff]  }
 0x11f   : > { %v3953_v33 = vpop.f32.mrb[13].mxu1  ;;  %v3842_v34 = vadd.f32 %v3841_v32, %v3840_v21  ;;  %v3843_v48 = vpop.f32.mrb[14].mxu0  ;;  %v4942_v21 = vld [vmem:[%s6670_s1 + $0x350] sm:$0xff]  }
 0x120   : > { %v3954_v35 = vadd.f32 %v3953_v33, %v3952_v45  ;;  %v3955_v49 = vpop.f32.mrb[14].mxu1  ;;  %v3844_v52 = vpop.f32.mrb[15].mxu0  ;;  %v4943_v45 = vld [vmem:[%s6670_s1 + $0x3d0] sm:$0xff]  }
 0x121   : > { %v3956_v53 = vpop.f32.mrb[15].mxu1  ;;  %v3845_v26 = vadd.f32 %v3844_v52, %v3843_v48 }
 0x122   : > { %v5758_v40 = vadd.f32 %v3954_v35, %v3842_v34  ;;  %v3957_v27 = vadd.f32 %v3956_v53, %v3955_v49  ;;  %1580 = vmatmul.mubr.bf16.gmra.mrb[120].mxu0 %v5569_v38 }
 0x123   : > { %1741 = vmatmul.mubr.bf16.gmra.mrb[120].mxu1 %v6747_v41  ;;  %1587 = vmatprep.mubr.bf16.mxu0 %v6748_v29  ;;  %v4944_v41 = vld [vmem:[%s6670_s1 + $0x310] sm:$0xff]  }
 0x124   : > { %6746 = vst [vmem:[#allocation9_spill] sm:$0xff] %v5758_v40  ;;  %v5762_v28 = vadd.f32 %v3957_v27, %v3845_v26  ;;  %1748 = vmatprep.mubr.bf16.mxu1 %v6749_v39  ;;  %v4945_v29 = vld [vmem:[%s6670_s1 + $0x390] sm:$0xff]  }
 0x125   : > { %v3846_v50 = vpop.f32.mrb[16].mxu0 }
 0x126   : > { %v3958_v54 = vpop.f32.mrb[16].mxu1  ;;  %v3847_v55 = vpop.f32.mrb[17].mxu0 }
 0x127   : > { %v3959_v57 = vpop.f32.mrb[17].mxu1  ;;  %v3848_v58 = vadd.f32 %v3847_v55, %v3846_v50  ;;  %v3849_v63 = vpop.f32.mrb[18].mxu0  ;;  %v4946_v55 = vld [vmem:[%s6670_s1 + $0x358] sm:$0xff]  }
 0x128   : > { %v3960_v62 = vadd.f32 %v3959_v57, %v3958_v54  ;;  %v3961_v0 = vpop.f32.mrb[18].mxu1  ;;  %v3850_v1 = vpop.f32.mrb[19].mxu0  ;;  %v4947_v57 = vld [vmem:[%s6670_s1 + $0x3d8] sm:$0xff]  }
 0x129   : > { %v3962_v38 = vpop.f32.mrb[19].mxu1  ;;  %v3851_v7 = vadd.f32 %v3850_v1, %v3849_v63  ;;  %v5853_v1 = vld [vmem:[%s5226_s26 + $0x4c] ss:$16 sps:$4 sm:$0xff]  }
 0x12a   : > { %v5766_v6 = vadd.f32 %v3960_v62, %v3848_v58  ;;  %v3963_v8 = vadd.f32 %v3962_v38, %v3961_v0  ;;  %1588 = vmatmul.mubr.bf16.gmra.mrb[124].mxu0 %v5585_v60  ;;  %v5839_v58 = vld [vmem:[%s5226_s26 + $0x20] ss:$16 sps:$4 sm:$0xff]   ;;  %v5843_v62 = vld [vmem:[%s5226_s26 + $0x28] ss:$16 sps:$4 sm:$0xff]   ;;  %v5849_v0 = vld [vmem:[%s5226_s26 + $0x44] ss:$16 sps:$4 sm:$0xff]  }
 0x12b   : > { %1749 = vmatmul.mubr.bf16.gmra.mrb[124].mxu1 %v6750_v9  ;;  %2078 = vmatprep.mubr.bf16.mxu0 %v5773_v16  ;;  %v4948_v38 = vld [vmem:[%s6670_s1 + $0x318] sm:$0xff]  }
 0x12c   : > { %v5770_v15 = vadd.f32 %v3963_v8, %v3851_v7  ;;  %2239 = vmatprep.mubr.bf16.mxu1 %v5777_v22  ;;  %v4949_v7 = vld [vmem:[%s6670_s1 + $0x398] sm:$0xff]  }
 0x12d   : > { %v3852_v23 = vpop.f32.mrb[20].mxu0 }
 0x12e   : > { %v3964_v24 = vpop.f32.mrb[20].mxu1  ;;  %v3853_v25 = vpop.f32.mrb[21].mxu0 }
 0x12f   : > { %v3965_v30 = vpop.f32.mrb[21].mxu1  ;;  %v3854_v31 = vadd.f32 %v3853_v25, %v3852_v23  ;;  %v3855_v36 = vpop.f32.mrb[22].mxu0  ;;  %v4950_v23 = vld [vmem:[%s6670_s1 + $0x360] sm:$0xff]  }
 0x130   : > { %v3966_v60 = vadd.f32 %v3965_v30, %v3964_v24  ;;  %v3967_v37 = vpop.f32.mrb[22].mxu1  ;;  %v3856_v59 = vpop.f32.mrb[23].mxu0  ;;  %v4951_v24 = vld [vmem:[%s6670_s1 + $0x3e0] sm:$0xff]  }
 0x131   : > { %v3968_v2 = vpop.f32.mrb[23].mxu1  ;;  %v3857_v5 = vadd.f32 %v3856_v59, %v3855_v36  ;;  %v4952_v59 = vld [vmem:[%s6670_s1 + $0x320] sm:$0xff]  }
 0x132   : > { %v5786_v4 = vadd.f32 %v3966_v60, %v3854_v31  ;;  %v3969_v10 = vadd.f32 %v3968_v2, %v3967_v37  ;;  %2079 = vmatmul.mubr.bf16.vlgmr.msra.gmra.mrb[128].mxu0 %v5795_v13  ;;  %v4953_v2 = vld [vmem:[%s6670_s1 + $0x3a0] sm:$0xff]  }
 0x133   : > { %2240 = vmatmul.mubr.bf16.vlgmr.msra.gmra.mrb[128].mxu1 %v5799_v51  ;;  %4479 = vmatpush3.bf16.msra.mxu0 %v4936_v46 }
 0x134   : > { %v5802_v61 = vadd.f32 %v3969_v10, %v3857_v5  ;;  %4591 = vmatpush3.bf16.msra.mxu1 %v4937_v47  ;;  %2086 = vmatprep.mubr.bf16.mxu0 %v5811_v18 }
 0x135   : > { %2247 = vmatprep.mubr.bf16.mxu1 %v5815_v19  ;;  %v3858_v32 = vpop.f32.mrb[24].mxu0  ;;  %4480 = vmatprep.subr.bf16.mxu0 %v4938_v11 }
 0x136   : > { %v3970_v33 = vpop.f32.mrb[24].mxu1  ;;  %4592 = vmatprep.subr.bf16.mxu1 %v4939_v12  ;;  %v3859_v34 = vpop.f32.mrb[25].mxu0  ;;  %v4954_v12 = vld [vmem:[%s6670_s1 + $0x368] sm:$0xff]  }
 0x137   : > { %v3971_v35 = vpop.f32.mrb[25].mxu1  ;;  %v3860_v48 = vadd.f32 %v3859_v34, %v3858_v32  ;;  %v3861_v52 = vpop.f32.mrb[26].mxu0  ;;  %4481 = vmatpush3.bf16.msra.mxu0 %v4940_v42  ;;  %v4955_v42 = vld [vmem:[%s6670_s1 + $0x3e8] sm:$0xff]   ;;  %v5893_v32 = vld [vmem:[%s5226_s26 + $0x64] ss:$16 sps:$4 sm:$0xff]  }
 0x138   : > { %v3972_v49 = vadd.f32 %v3971_v35, %v3970_v33  ;;  %v3973_v53 = vpop.f32.mrb[26].mxu1  ;;  %4593 = vmatpush3.bf16.msra.mxu1 %v4941_v43  ;;  %v3862_v26 = vpop.f32.mrb[27].mxu0  ;;  %4482 = vmatprep.subr.bf16.mxu0 %v4942_v21  ;;  %v5883_v43 = vld [vmem:[%s5226_s26 + $0x40] ss:$16 sps:$4 sm:$0xff]   ;;  %v5887_v21 = vld [vmem:[%s5226_s26 + $0x48] ss:$16 sps:$4 sm:$0xff]  }
 0x139   : > { %v3974_v27 = vpop.f32.mrb[27].mxu1  ;;  %4594 = vmatprep.subr.bf16.mxu1 %v4943_v45  ;;  %v3863_v50 = vadd.f32 %v3862_v26, %v3861_v52  ;;  %v5897_v33 = vld [vmem:[%s5226_s26 + $0x6c] ss:$16 sps:$4 sm:$0xff]   ;;  %v4958_v52 = vld [vmem:[%s6670_s1 + $0x370] sm:$0xff]  }
 0x13a   : > { %v5830_v39 = vadd.f32 %v3972_v49, %v3860_v48  ;;  %v3975_v54 = vadd.f32 %v3974_v27, %v3973_v53  ;;  %2087 = vmatmul.mubr.bf16.gmra.mrb[132].mxu0 %v5839_v58  ;;  %v4956_v34 = vld [vmem:[%s6670_s1 + $0x328] sm:$0xff]   ;;  %v4959_v53 = vld [vmem:[%s6670_s1 + $0x3f0] sm:$0xff]  }
 0x13b   : > { %2248 = vmatmul.mubr.bf16.gmra.mrb[132].mxu1 %v5843_v62  ;;  %2094 = vmatprep.mubr.bf16.mxu0 %v5849_v0  ;;  %v4957_v35 = vld [vmem:[%s6670_s1 + $0x3a8] sm:$0xff]  }
 0x13c   : > { %v5846_v63 = vadd.f32 %v3975_v54, %v3863_v50  ;;  %2255 = vmatprep.mubr.bf16.mxu1 %v5853_v1  ;;  %4483 = vmatpush3.bf16.msra.mxu0 %v4944_v41 }
 0x13d   : > { %4595 = vmatpush3.bf16.msra.mxu1 %v4945_v29  ;;  %v3864_v8 = vpop.f32.mrb[28].mxu0  ;;  %4484 = vmatprep.subr.bf16.mxu0 %v4946_v55 }
 0x13e   : > { %v3976_v9 = vpop.f32.mrb[28].mxu1  ;;  %4596 = vmatprep.subr.bf16.mxu1 %v4947_v57  ;;  %v3865_v25 = vpop.f32.mrb[29].mxu0 }
 0x13f   : > { %v3977_v30 = vpop.f32.mrb[29].mxu1  ;;  %v3866_v31 = vadd.f32 %v3865_v25, %v3864_v8  ;;  %v3867_v36 = vpop.f32.mrb[30].mxu0  ;;  %v4963_v25 = vld [vmem:[%s6670_s1 + $0x3f8] sm:$0xff]  }
 0x140   : > { %v3978_v60 = vadd.f32 %v3977_v30, %v3976_v9  ;;  %v3979_v37 = vpop.f32.mrb[30].mxu1  ;;  %v3868_v46 = vpop.f32.mrb[31].mxu0  ;;  %4485 = vmatpush3.bf16.msra.mxu0 %v4948_v38  ;;  %v4960_v38 = vld [vmem:[%s6670_s1 + $0x330] sm:$0xff]  }
 0x141   : > { %v3980_v47 = vpop.f32.mrb[31].mxu1  ;;  %4597 = vmatpush3.bf16.msra.mxu1 %v4949_v7  ;;  %v3869_v10 = vadd.f32 %v3868_v46, %v3867_v36  ;;  %4486 = vmatprep.subr.bf16.mxu0 %v4950_v23  ;;  %v4961_v7 = vld [vmem:[%s6670_s1 + $0x3b0] sm:$0xff]   ;;  %v4964_v46 = vld [vmem:[%s6670_s1 + $0x338] sm:$0xff]  }
 0x142   : > { %v5874_v5 = vadd.f32 %v3978_v60, %v3866_v31  ;;  %v3981_v11 = vadd.f32 %v3980_v47, %v3979_v37  ;;  %4598 = vmatprep.subr.bf16.mxu1 %v4951_v24  ;;  %2095 = vmatmul.mubr.bf16.gmra.mrb[136].mxu0 %v5883_v43  ;;  %v4962_v24 = vld [vmem:[%s6670_s1 + $0x378] sm:$0xff]   ;;  %v5927_v30 = vld [vmem:[%s5226_s26 + $0x60] ss:$16 sps:$4 sm:$0xff]   ;;  %v5937_v36 = vld [vmem:[%s5226_s26 + $0x84] ss:$16 sps:$4 sm:$0xff]  }
 0x143   : > { %2256 = vmatmul.mubr.bf16.gmra.mrb[136].mxu1 %v5887_v21  ;;  %2102 = vmatprep.mubr.bf16.mxu0 %v5893_v32  ;;  %v5931_v31 = vld [vmem:[%s5226_s26 + $0x68] ss:$16 sps:$4 sm:$0xff]   ;;  %v5941_v37 = vld [vmem:[%s5226_s26 + $0x8c] ss:$16 sps:$4 sm:$0xff]  }
 0x144   : > { %v5890_v45 = vadd.f32 %v3981_v11, %v3869_v10  ;;  %2263 = vmatprep.mubr.bf16.mxu1 %v5897_v33  ;;  %4487 = vmatpush3.bf16.msra.mxu0 %v4952_v59  ;;  %v4965_v47 = vld [vmem:[%s6670_s1 + $0x3b8] sm:$0xff]  }
 0x145   : > { %4599 = vmatpush3.bf16.msra.mxu1 %v4953_v2  ;;  %v3870_v48 = vpop.f32.mrb[32].mxu0  ;;  %4488 = vmatprep.subr.bf16.mxu0 %v4954_v12 }
 0x146   : > { %v3982_v49 = vpop.f32.mrb[32].mxu1  ;;  %4600 = vmatprep.subr.bf16.mxu1 %v4955_v42  ;;  %v3871_v26 = vpop.f32.mrb[33].mxu0 }
 0x147   : > { %v3983_v27 = vpop.f32.mrb[33].mxu1  ;;  %v3872_v41 = vadd.f32 %v3871_v26, %v3870_v48  ;;  %v3873_v50 = vpop.f32.mrb[34].mxu0 }
 0x148   : > { %v3984_v29 = vadd.f32 %v3983_v27, %v3982_v49  ;;  %v3985_v54 = vpop.f32.mrb[34].mxu1  ;;  %v3874_v55 = vpop.f32.mrb[35].mxu0  ;;  %4489 = vmatpush3.bf16.msra.mxu0 %v4956_v34  ;;  %v5953_v27 = vld [vmem:[%s5226_s26 + $0x80] ss:$16 sps:$4 sm:$0xff]  }
 0x149   : > { %v3986_v57 = vpop.f32.mrb[35].mxu1  ;;  %4601 = vmatpush3.bf16.msra.mxu1 %v4957_v35  ;;  %v3875_v9 = vadd.f32 %v3874_v55, %v3873_v50  ;;  %4490 = vmatprep.subr.bf16.mxu0 %v4958_v52  ;;  %v5963_v50 = vld [vmem:[%s5226_s26 + $0xa4] ss:$16 sps:$4 sm:$0xff]  }
 0x14a   : > { %v5918_v8 = vadd.f32 %v3984_v29, %v3872_v41  ;;  %v3987_v23 = vadd.f32 %v3986_v57, %v3985_v54  ;;  %4602 = vmatprep.subr.bf16.mxu1 %v4959_v53  ;;  %2103 = vmatmul.mubr.bf16.gmra.mrb[140].mxu0 %v5927_v30  ;;  %v5957_v41 = vld [vmem:[%s5226_s26 + $0x88] ss:$16 sps:$4 sm:$0xff]   ;;  %v5967_v54 = vld [vmem:[%s5226_s26 + $0xac] ss:$16 sps:$4 sm:$0xff]  }
 0x14b   : > { %2264 = vmatmul.mubr.bf16.gmra.mrb[140].mxu1 %v5931_v31  ;;  %2110 = vmatprep.mubr.bf16.mxu0 %v5937_v36 }
 0x14c   : > { %v5934_v60 = vadd.f32 %v3987_v23, %v3875_v9  ;;  %2271 = vmatprep.mubr.bf16.mxu1 %v5941_v37  ;;  %4491 = vmatpush3.bf16.msra.mxu0 %v4960_v38 }
 0x14d   : > { %4603 = vmatpush3.bf16.msra.mxu1 %v4961_v7  ;;  %v3876_v59 = vpop.f32.mrb[36].mxu0  ;;  %4492 = vmatprep.subr.bf16.mxu0 %v4962_v24 }
 0x14e   : > { %v3988_v2 = vpop.f32.mrb[36].mxu1  ;;  %4604 = vmatprep.subr.bf16.mxu1 %v4963_v25  ;;  %v3877_v10 = vpop.f32.mrb[37].mxu0 }
 0x14f   : > { %v3989_v11 = vpop.f32.mrb[37].mxu1  ;;  %v3878_v12 = vadd.f32 %v3877_v10, %v3876_v59  ;;  %v3879_v34 = vpop.f32.mrb[38].mxu0 }
 0x150   : > { %v3990_v42 = vadd.f32 %v3989_v11, %v3988_v2  ;;  %v3991_v35 = vpop.f32.mrb[38].mxu1  ;;  %v3880_v48 = vpop.f32.mrb[39].mxu0  ;;  %4493 = vmatpush3.bf16.msra.mxu0 %v4964_v46  ;;  %v5973_v11 = vld [vmem:[%s5226_s26 + $0xa0] ss:$16 sps:$4 sm:$0xff]  }
 0x151   : > { %v3992_v49 = vpop.f32.mrb[39].mxu1  ;;  %4605 = vmatpush3.bf16.msra.mxu1 %v4965_v47  ;;  %v3881_v53 = vadd.f32 %v3880_v48, %v3879_v34  ;;  %v5983_v34 = vld [vmem:[%s5226_s26 + $0xc4] ss:$16 sps:$4 sm:$0xff]  }
 0x152   : > { %v5950_v52 = vadd.f32 %v3990_v42, %v3878_v12  ;;  %v3993_v26 = vadd.f32 %v3992_v49, %v3991_v35  ;;  %2111 = vmatmul.mubr.bf16.gmra.mrb[144].mxu0 %v5953_v27  ;;  %v5977_v12 = vld [vmem:[%s5226_s26 + $0xa8] ss:$16 sps:$4 sm:$0xff]   ;;  %v5987_v35 = vld [vmem:[%s5226_s26 + $0xcc] ss:$16 sps:$4 sm:$0xff]  }
 0x153   : > { %2272 = vmatmul.mubr.bf16.gmra.mrb[144].mxu1 %v5957_v41  ;;  %2118 = vmatprep.mubr.bf16.mxu0 %v5963_v50 }
 0x154   : > { %v5960_v29 = vadd.f32 %v3993_v26, %v3881_v53  ;;  %2279 = vmatprep.mubr.bf16.mxu1 %v5967_v54 }
 0x155   : > { %v3882_v55 = vpop.f32.mrb[40].mxu0 }
 0x156   : > { %v3994_v57 = vpop.f32.mrb[40].mxu1  ;;  %v3883_v38 = vpop.f32.mrb[41].mxu0 }
 0x157   : > { %v3995_v7 = vpop.f32.mrb[41].mxu1  ;;  %v3884_v9 = vadd.f32 %v3883_v38, %v3882_v55  ;;  %v3885_v24 = vpop.f32.mrb[42].mxu0 }
 0x158   : > { %v3996_v23 = vadd.f32 %v3995_v7, %v3994_v57  ;;  %v3997_v25 = vpop.f32.mrb[42].mxu1  ;;  %v3886_v46 = vpop.f32.mrb[43].mxu0 }
 0x159   : > { %v3998_v47 = vpop.f32.mrb[43].mxu1  ;;  %v3887_v2 = vadd.f32 %v3886_v46, %v3885_v24 }
 0x15a   : > { %v5970_v59 = vadd.f32 %v3996_v23, %v3884_v9  ;;  %v3999_v10 = vadd.f32 %v3998_v47, %v3997_v25  ;;  %2119 = vmatmul.mubr.bf16.gmra.mrb[148].mxu0 %v5973_v11  ;;  %v5993_v47 = vld [vmem:[%s5226_s26 + $0xc0] ss:$16 sps:$4 sm:$0xff]  }
 0x15b   : > { %2280 = vmatmul.mubr.bf16.gmra.mrb[148].mxu1 %v5977_v12  ;;  %2126 = vmatprep.mubr.bf16.mxu0 %v5983_v34  ;;  %6752 = vst [vmem:[#allocation3_spill] sm:$0xff] %v5993_v47 }
 0x15c   : > { %v5980_v42 = vadd.f32 %v3999_v10, %v3887_v2  ;;  %2287 = vmatprep.mubr.bf16.mxu1 %v5987_v35  ;;  %v5997_v2 = vld [vmem:[%s5226_s26 + $0xc8] ss:$16 sps:$4 sm:$0xff]  }
 0x15d   : > { %v3888_v48 = vpop.f32.mrb[44].mxu0  ;;  %6753 = vst [vmem:[#allocation4_spill] sm:$0xff] %v5997_v2 }
 0x15e   : > { %v4000_v49 = vpop.f32.mrb[44].mxu1  ;;  %v3889_v53 = vpop.f32.mrb[45].mxu0 }
 0x15f   : > { %v4001_v26 = vpop.f32.mrb[45].mxu1  ;;  %v3890_v55 = vadd.f32 %v3889_v53, %v3888_v48  ;;  %v3891_v38 = vpop.f32.mrb[46].mxu0  ;;  %v6003_v48 = vld [vmem:[%s5226_s26 + $0xe4] ss:$16 sps:$4 sm:$0xff]  }
 0x160   : > { %v4002_v57 = vadd.f32 %v4001_v26, %v4000_v49  ;;  %v4003_v7 = vpop.f32.mrb[46].mxu1  ;;  %v3892_v9 = vpop.f32.mrb[47].mxu0  ;;  %6755 = vst [vmem:[#allocation10_spill] sm:$0xff] %v6003_v48  ;;  %v6007_v49 = vld [vmem:[%s5226_s26 + $0xec] ss:$16 sps:$4 sm:$0xff]  }
 0x161   : > { %v4004_v23 = vpop.f32.mrb[47].mxu1  ;;  %v3893_v25 = vadd.f32 %v3892_v9, %v3891_v38  ;;  %6756 = vst [vmem:[#allocation11_spill] sm:$0xff] %v6007_v49 }
 0x162   : > { %v5990_v24 = vadd.f32 %v4002_v57, %v3890_v55  ;;  %v4005_v46 = vadd.f32 %v4004_v23, %v4003_v7  ;;  %2127 = vmatmul.mubr.bf16.gmra.mrb[152].mxu0 %v5993_v47 }
 0x163   : > { %2288 = vmatmul.mubr.bf16.gmra.mrb[152].mxu1 %v5997_v2  ;;  %2134 = vmatprep.mubr.bf16.mxu0 %v6003_v48  ;;  %v6013_v2 = vld [vmem:[%s5226_s26 + $0xe0] ss:$16 sps:$4 sm:$0xff]  }
 0x164   : > { %6751 = vst [vmem:[#allocation2_spill] sm:$0xff] %v5990_v24  ;;  %v6000_v10 = vadd.f32 %v4005_v46, %v3893_v25  ;;  %2295 = vmatprep.mubr.bf16.mxu1 %v6007_v49  ;;  %6758 = vst [vmem:[#allocation13_spill] sm:$0xff] %v6013_v2  ;;  %v6017_v49 = vld [vmem:[%s5226_s26 + $0xe8] ss:$16 sps:$4 sm:$0xff]  }
 0x165   : > { %v3894_v53 = vpop.f32.mrb[48].mxu0  ;;  %6759 = vst [vmem:[#allocation14_spill] sm:$0xff] %v6017_v49 }
 0x166   : > { %6754 = vst [vmem:[#allocation5_spill] sm:$0xff] %v6000_v10  ;;  %v4006_v26 = vpop.f32.mrb[48].mxu1  ;;  %v3895_v55 = vpop.f32.mrb[49].mxu0 }
 0x167   : > { %v4007_v57 = vpop.f32.mrb[49].mxu1  ;;  %v3896_v38 = vadd.f32 %v3895_v55, %v3894_v53  ;;  %v3897_v9 = vpop.f32.mrb[50].mxu0  ;;  %v6023_v53 = vld [vmem:[%s5226_s26 + $0x104] ss:$16 sps:$4 sm:$0xff]  }
 0x168   : > { %v4008_v7 = vadd.f32 %v4007_v57, %v4006_v26  ;;  %v4009_v23 = vpop.f32.mrb[50].mxu1  ;;  %v3898_v25 = vpop.f32.mrb[51].mxu0  ;;  %6761 = vst [vmem:[#allocation16_spill] sm:$0xff] %v6023_v53  ;;  %v6027_v26 = vld [vmem:[%s5226_s26 + $0x10c] ss:$16 sps:$4 sm:$0xff]  }
 0x169   : > { %v4010_v46 = vpop.f32.mrb[51].mxu1  ;;  %v3899_v48 = vadd.f32 %v3898_v25, %v3897_v9  ;;  %6762 = vst [vmem:[#allocation17_spill] sm:$0xff] %v6027_v26 }
 0x16a   : > { %v6010_v10 = vadd.f32 %v4008_v7, %v3896_v38  ;;  %v4011_v24 = vadd.f32 %v4010_v46, %v4009_v23  ;;  %2135 = vmatmul.mubr.bf16.gmra.mrb[156].mxu0 %v6013_v2 }
 0x16b   : > { %2296 = vmatmul.mubr.bf16.gmra.mrb[156].mxu1 %v6017_v49  ;;  %2142 = vmatprep.mubr.bf16.mxu0 %v6023_v53  ;;  %v6033_v49 = vld [vmem:[%s5226_s26 + $0x100] ss:$16 sps:$4 sm:$0xff]  }
 0x16c   : > { %6757 = vst [vmem:[#allocation12_spill] sm:$0xff] %v6010_v10  ;;  %v6020_v47 = vadd.f32 %v4011_v24, %v3899_v48  ;;  %2303 = vmatprep.mubr.bf16.mxu1 %v6027_v26  ;;  %6764 = vst [vmem:[#allocation19_spill] sm:$0xff] %v6033_v49  ;;  %v6037_v26 = vld [vmem:[%s5226_s26 + $0x108] ss:$16 sps:$4 sm:$0xff]  }
 0x16d   : > { %v3900_v55 = vpop.f32.mrb[52].mxu0  ;;  %6765 = vst [vmem:[#allocation20_spill] sm:$0xff] %v6037_v26 }
 0x16e   : > { %6760 = vst [vmem:[#allocation15_spill] sm:$0xff] %v6020_v47  ;;  %v4012_v57 = vpop.f32.mrb[52].mxu1  ;;  %v3901_v38 = vpop.f32.mrb[53].mxu0 }
 0x16f   : > { %v4013_v7 = vpop.f32.mrb[53].mxu1  ;;  %v3902_v9 = vadd.f32 %v3901_v38, %v3900_v55  ;;  %v3903_v24 = vpop.f32.mrb[54].mxu0  ;;  %v6043_v55 = vld [vmem:[%s5226_s26 + $0x124] ss:$16 sps:$4 sm:$0xff]  }
 0x170   : > { %v4014_v23 = vadd.f32 %v4013_v7, %v4012_v57  ;;  %v4015_v48 = vpop.f32.mrb[54].mxu1  ;;  %v3904_v25 = vpop.f32.mrb[55].mxu0  ;;  %6767 = vst [vmem:[#allocation22_spill] sm:$0xff] %v6043_v55  ;;  %v6047_v57 = vld [vmem:[%s5226_s26 + $0x12c] ss:$16 sps:$4 sm:$0xff]  }
 0x171   : > { %v4016_v46 = vpop.f32.mrb[55].mxu1  ;;  %v3905_v53 = vadd.f32 %v3904_v25, %v3903_v24  ;;  %6768 = vst [vmem:[#allocation23_spill] sm:$0xff] %v6047_v57 }
 0x172   : > { %v6030_v47 = vadd.f32 %v4014_v23, %v3902_v9  ;;  %v4017_v10 = vadd.f32 %v4016_v46, %v4015_v48  ;;  %2143 = vmatmul.mubr.bf16.gmra.mrb[160].mxu0 %v6033_v49 }
 0x173   : > { %2304 = vmatmul.mubr.bf16.gmra.mrb[160].mxu1 %v6037_v26  ;;  %2150 = vmatprep.mubr.bf16.mxu0 %v6043_v55  ;;  %v6053_v26 = vld [vmem:[%s5226_s26 + $0x120] ss:$16 sps:$4 sm:$0xff]  }
 0x174   : > { %6763 = vst [vmem:[#allocation18_spill] sm:$0xff] %v6030_v47  ;;  %v6040_v2 = vadd.f32 %v4017_v10, %v3905_v53  ;;  %2311 = vmatprep.mubr.bf16.mxu1 %v6047_v57  ;;  %6770 = vst [vmem:[#allocation25_spill] sm:$0xff] %v6053_v26  ;;  %v6057_v57 = vld [vmem:[%s5226_s26 + $0x128] ss:$16 sps:$4 sm:$0xff]  }
 0x175   : > { %v3906_v38 = vpop.f32.mrb[56].mxu0  ;;  %6771 = vst [vmem:[#allocation26_spill] sm:$0xff] %v6057_v57 }
 0x176   : > { %6766 = vst [vmem:[#allocation21_spill] sm:$0xff] %v6040_v2  ;;  %v4018_v7 = vpop.f32.mrb[56].mxu1  ;;  %v3907_v9 = vpop.f32.mrb[57].mxu0 }
 0x177   : > { %v4019_v23 = vpop.f32.mrb[57].mxu1  ;;  %v3908_v24 = vadd.f32 %v3907_v9, %v3906_v38  ;;  %v3909_v10 = vpop.f32.mrb[58].mxu0  ;;  %v6063_v38 = vld [vmem:[%s5226_s26 + $0x144] ss:$16 sps:$4 sm:$0xff]  }
 0x178   : > { %v4020_v48 = vadd.f32 %v4019_v23, %v4018_v7  ;;  %v4021_v53 = vpop.f32.mrb[58].mxu1  ;;  %v3910_v25 = vpop.f32.mrb[59].mxu0  ;;  %6773 = vst [vmem:[#allocation28_spill] sm:$0xff] %v6063_v38  ;;  %v6067_v7 = vld [vmem:[%s5226_s26 + $0x14c] ss:$16 sps:$4 sm:$0xff]  }
 0x179   : > { %v4022_v46 = vpop.f32.mrb[59].mxu1  ;;  %v3911_v55 = vadd.f32 %v3910_v25, %v3909_v10  ;;  %6774 = vst [vmem:[#allocation29_spill] sm:$0xff] %v6067_v7 }
 0x17a   : > { %v6050_v2 = vadd.f32 %v4020_v48, %v3908_v24  ;;  %v4023_v47 = vadd.f32 %v4022_v46, %v4021_v53  ;;  %2151 = vmatmul.mubr.bf16.gmra.mrb[164].mxu0 %v6053_v26 }
 0x17b   : > { %2312 = vmatmul.mubr.bf16.gmra.mrb[164].mxu1 %v6057_v57  ;;  %2158 = vmatprep.mubr.bf16.mxu0 %v6063_v38  ;;  %v6073_v57 = vld [vmem:[%s5226_s26 + $0x140] ss:$16 sps:$4 sm:$0xff]  }
 0x17c   : > { %6769 = vst [vmem:[#allocation24_spill] sm:$0xff] %v6050_v2  ;;  %v6060_v49 = vadd.f32 %v4023_v47, %v3911_v55  ;;  %2319 = vmatprep.mubr.bf16.mxu1 %v6067_v7  ;;  %v6077_v7 = vld [vmem:[%s5226_s26 + $0x148] ss:$16 sps:$4 sm:$0xff]  }
 0x17d   : > { %v3912_v9 = vpop.f32.mrb[60].mxu0  ;;  %6776 = vst [vmem:[#allocation31_spill] sm:$0xff] %v6077_v7 }
 0x17e   : > { %6772 = vst [vmem:[#allocation27_spill] sm:$0xff] %v6060_v49  ;;  %v4024_v23 = vpop.f32.mrb[60].mxu1  ;;  %v3913_v24 = vpop.f32.mrb[61].mxu0 }
 0x17f   : > { %v4025_v48 = vpop.f32.mrb[61].mxu1  ;;  %v3914_v10 = vadd.f32 %v3913_v24, %v3912_v9  ;;  %v3915_v47 = vpop.f32.mrb[62].mxu0  ;;  %v6083_v9 = vld [vmem:[%s5226_s26 + $0x164] ss:$16 sps:$4 sm:$0xff]  }
 0x180   : > { %v4026_v53 = vadd.f32 %v4025_v48, %v4024_v23  ;;  %v4027_v55 = vpop.f32.mrb[62].mxu1  ;;  %v3916_v25 = vpop.f32.mrb[63].mxu0  ;;  %6778 = vst [vmem:[#allocation33_spill] sm:$0xff] %v6083_v9  ;;  %v6087_v23 = vld [vmem:[%s5226_s26 + $0x16c] ss:$16 sps:$4 sm:$0xff]  }
 0x181   : > { %v4028_v46 = vpop.f32.mrb[63].mxu1  ;;  %v3917_v38 = vadd.f32 %v3916_v25, %v3915_v47  ;;  %6779 = vst [vmem:[#allocation34_spill] sm:$0xff] %v6087_v23 }
 0x182   : > { %v6070_v49 = vadd.f32 %v4026_v53, %v3914_v10  ;;  %v4029_v2 = vadd.f32 %v4028_v46, %v4027_v55  ;;  %2159 = vmatmul.mubr.bf16.gmra.mrb[168].mxu0 %v6073_v57 }
 0x183   : > { %2320 = vmatmul.mubr.bf16.gmra.mrb[168].mxu1 %v6077_v7  ;;  %2166 = vmatprep.mubr.bf16.mxu0 %v6083_v9  ;;  %v6093_v7 = vld [vmem:[%s5226_s26 + $0x160] ss:$16 sps:$4 sm:$0xff]  }
 0x184   : > { %6775 = vst [vmem:[#allocation30_spill] sm:$0xff] %v6070_v49  ;;  %v6080_v26 = vadd.f32 %v4029_v2, %v3917_v38  ;;  %2327 = vmatprep.mubr.bf16.mxu1 %v6087_v23  ;;  %6781 = vst [vmem:[#allocation36_spill] sm:$0xff] %v6093_v7  ;;  %v6097_v23 = vld [vmem:[%s5226_s26 + $0x168] ss:$16 sps:$4 sm:$0xff]  }
 0x185   : > { %v4046_v24 = vpop.f32.mrb[64].mxu0  ;;  %6782 = vst [vmem:[#allocation37_spill] sm:$0xff] %v6097_v23 }
 0x186   : > { %6777 = vst [vmem:[#allocation32_spill] sm:$0xff] %v6080_v26  ;;  %v4158_v48 = vpop.f32.mrb[64].mxu1  ;;  %v4047_v10 = vpop.f32.mrb[65].mxu0 }
 0x187   : > { %v4159_v53 = vpop.f32.mrb[65].mxu1  ;;  %v4048_v47 = vadd.f32 %v4047_v10, %v4046_v24  ;;  %v4049_v2 = vpop.f32.mrb[66].mxu0  ;;  %v6105_v10 = vld [vmem:[%s5226_s26 + $0x184] ss:$16 sps:$4 sm:$0xff]  }
 0x188   : > { %v4160_v55 = vadd.f32 %v4159_v53, %v4158_v48  ;;  %v4161_v38 = vpop.f32.mrb[66].mxu1  ;;  %v4050_v25 = vpop.f32.mrb[67].mxu0  ;;  %6783 = vst [vmem:[#allocation38_spill] sm:$0xff] %v6105_v10  ;;  %v6109_v53 = vld [vmem:[%s5226_s26 + $0x18c] ss:$16 sps:$4 sm:$0xff]  }
 0x189   : > { %v4162_v46 = vpop.f32.mrb[67].mxu1  ;;  %v4051_v9 = vadd.f32 %v4050_v25, %v4049_v2  ;;  %6784 = vst [vmem:[#allocation39_spill] sm:$0xff] %v6109_v53 }
 0x18a   : > { %v6090_v26 = vadd.f32 %v4160_v55, %v4048_v47  ;;  %v4163_v49 = vadd.f32 %v4162_v46, %v4161_v38  ;;  %2167 = vmatmul.mubr.bf16.gmra.mrb[172].mxu0 %v6093_v7  ;;  %v6117_v7 = vld [vmem:[%s5226_s26 + $0x180] ss:$16 sps:$4 sm:$0xff]   ;;  %v6121_v47 = vld [vmem:[%s5226_s26 + $0x188] ss:$16 sps:$4 sm:$0xff]  }
 0x18b   : > { %2328 = vmatmul.mubr.bf16.gmra.mrb[172].mxu1 %v6097_v23  ;;  %2174 = vmatprep.mubr.bf16.mxu0 %v6105_v10  ;;  %6786 = vst [vmem:[#allocation41_spill] sm:$0xff] %v6117_v7  ;;  %6787 = vst [vmem:[#allocation42_spill] sm:$0xff] %v6121_v47 }
 0x18c   : > { %6780 = vst [vmem:[#allocation35_spill] sm:$0xff] %v6090_v26  ;;  %v6102_v48 = vadd.f32 %v4163_v49, %v4051_v9  ;;  %2335 = vmatprep.mubr.bf16.mxu1 %v6109_v53 }
 0x18d   : > { %v4052_v55 = vpop.f32.mrb[68].mxu0 }
 0x18e   : > { %v4164_v2 = vpop.f32.mrb[68].mxu1  ;;  %v4053_v38 = vpop.f32.mrb[69].mxu0 }
 0x18f   : > { %v4165_v25 = vpop.f32.mrb[69].mxu1  ;;  %v4054_v49 = vadd.f32 %v4053_v38, %v4052_v55  ;;  %v4055_v46 = vpop.f32.mrb[70].mxu0  ;;  %v6129_v38 = vld [vmem:[%s5226_s26 + $0x1a4] ss:$16 sps:$4 sm:$0xff]  }
 0x190   : > { %v4166_v9 = vadd.f32 %v4165_v25, %v4164_v2  ;;  %v4167_v24 = vpop.f32.mrb[70].mxu1  ;;  %v4056_v10 = vpop.f32.mrb[71].mxu0  ;;  %6788 = vst [vmem:[#allocation43_spill] sm:$0xff] %v6129_v38  ;;  %v6133_v25 = vld [vmem:[%s5226_s26 + $0x1ac] ss:$16 sps:$4 sm:$0xff]  }
 0x191   : > { %v4168_v26 = vpop.f32.mrb[71].mxu1  ;;  %v4057_v23 = vadd.f32 %v4056_v10, %v4055_v46  ;;  %6789 = vst [vmem:[#allocation44_spill] sm:$0xff] %v6133_v25 }
 0x192   : > { %v6114_v14 = vadd.f32 %v4166_v9, %v4054_v49  ;;  %v4169_v53 = vadd.f32 %v4168_v26, %v4167_v24  ;;  %2175 = vmatmul.mubr.bf16.gmra.mrb[176].mxu0 %v6117_v7  ;;  %v6141_v7 = vld [vmem:[%s5226_s26 + $0x1a0] ss:$16 sps:$4 sm:$0xff]   ;;  %v6145_v26 = vld [vmem:[%s5226_s26 + $0x1a8] ss:$16 sps:$4 sm:$0xff]  }
 0x193   : > { %2336 = vmatmul.mubr.bf16.gmra.mrb[176].mxu1 %v6121_v47  ;;  %2182 = vmatprep.mubr.bf16.mxu0 %v6129_v38  ;;  %6791 = vst [vmem:[#allocation46_spill] sm:$0xff] %v6141_v7  ;;  %6792 = vst [vmem:[#allocation47_spill] sm:$0xff] %v6145_v26 }
 0x194   : > { %6785 = vst [vmem:[#allocation40_spill] sm:$0xff] %v6114_v14  ;;  %v6126_v2 = vadd.f32 %v4169_v53, %v4057_v23  ;;  %2343 = vmatprep.mubr.bf16.mxu1 %v6133_v25 }
 0x195   : > { %v4058_v24 = vpop.f32.mrb[72].mxu0 }
 0x196   : > { %v4170_v10 = vpop.f32.mrb[72].mxu1  ;;  %v4059_v49 = vpop.f32.mrb[73].mxu0 }
 0x197   : > { %v4171_v9 = vpop.f32.mrb[73].mxu1  ;;  %v4060_v23 = vadd.f32 %v4059_v49, %v4058_v24  ;;  %v4061_v46 = vpop.f32.mrb[74].mxu0  ;;  %v6153_v49 = vld [vmem:[%s5226_s26 + $0x1c4] ss:$16 sps:$4 sm:$0xff]  }
 0x198   : > { %v4172_v53 = vadd.f32 %v4171_v9, %v4170_v10  ;;  %v4173_v55 = vpop.f32.mrb[74].mxu1  ;;  %v4062_v38 = vpop.f32.mrb[75].mxu0  ;;  %6794 = vst [vmem:[#allocation49_spill] sm:$0xff] %v6153_v49  ;;  %v6157_v9 = vld [vmem:[%s5226_s26 + $0x1cc] ss:$16 sps:$4 sm:$0xff]  }
 0x199   : > { %v4174_v14 = vpop.f32.mrb[75].mxu1  ;;  %v4063_v47 = vadd.f32 %v4062_v38, %v4061_v46  ;;  %6795 = vst [vmem:[#allocation50_spill] sm:$0xff] %v6157_v9 }
 0x19a   : > { %v6138_v56 = vadd.f32 %v4172_v53, %v4060_v23  ;;  %v4175_v25 = vadd.f32 %v4174_v14, %v4173_v55  ;;  %2183 = vmatmul.mubr.bf16.gmra.mrb[180].mxu0 %v6141_v7  ;;  %v6165_v7 = vld [vmem:[%s5226_s26 + $0x1c0] ss:$16 sps:$4 sm:$0xff]   ;;  %v6169_v14 = vld [vmem:[%s5226_s26 + $0x1c8] ss:$16 sps:$4 sm:$0xff]  }
 0x19b   : > { %2344 = vmatmul.mubr.bf16.gmra.mrb[180].mxu1 %v6145_v26  ;;  %2190 = vmatprep.mubr.bf16.mxu0 %v6153_v49  ;;  %6797 = vst [vmem:[#allocation52_spill] sm:$0xff] %v6165_v7  ;;  %6798 = vst [vmem:[#allocation53_spill] sm:$0xff] %v6169_v14 }
 0x19c   : > { %6790 = vst [vmem:[#allocation45_spill] sm:$0xff] %v6138_v56  ;;  %v6150_v10 = vadd.f32 %v4175_v25, %v4063_v47  ;;  %2351 = vmatprep.mubr.bf16.mxu1 %v6157_v9 }
 0x19d   : > { %v4064_v55 = vpop.f32.mrb[76].mxu0 }
 0x19e   : > { %6793 = vst [vmem:[#allocation48_spill] sm:$0xff] %v6150_v10  ;;  %v4176_v38 = vpop.f32.mrb[76].mxu1  ;;  %v4065_v23 = vpop.f32.mrb[77].mxu0  ;;  %v6189_v10 = vld [vmem:[%s5226_s26 + $0x1e0] ss:$16 sps:$4 sm:$0xff]  }
 0x19f   : > { %v4177_v53 = vpop.f32.mrb[77].mxu1  ;;  %v4066_v47 = vadd.f32 %v4065_v23, %v4064_v55  ;;  %v4067_v46 = vpop.f32.mrb[78].mxu0  ;;  %v6177_v23 = vld [vmem:[%s5226_s26 + $0x1e4] ss:$16 sps:$4 sm:$0xff]   ;;  %6801 = vst [vmem:[#allocation56_spill] sm:$0xff] %v6189_v10 }
 0x1a0   : > { %v4178_v25 = vadd.f32 %v4177_v53, %v4176_v38  ;;  %v4179_v24 = vpop.f32.mrb[78].mxu1  ;;  %v4068_v49 = vpop.f32.mrb[79].mxu0  ;;  %6800 = vst [vmem:[#allocation55_spill] sm:$0xff] %v6177_v23  ;;  %v6181_v53 = vld [vmem:[%s5226_s26 + $0x1ec] ss:$16 sps:$4 sm:$0xff]  }
 0x1a1   : > { %v4180_v56 = vpop.f32.mrb[79].mxu1  ;;  %v4069_v26 = vadd.f32 %v4068_v49, %v4067_v46 }
 0x1a2   : > { %v6162_v44 = vadd.f32 %v4178_v25, %v4066_v47  ;;  %v4181_v9 = vadd.f32 %v4180_v56, %v4179_v24  ;;  %2191 = vmatmul.mubr.bf16.gmra.mrb[184].mxu0 %v6165_v7  ;;  %v6193_v56 = vld [vmem:[%s5226_s26 + $0x1e8] ss:$16 sps:$4 sm:$0xff]   ;;  %s3352_s26 = sshll.u32 %s6924_s19, 2 }
 0x1a3   : > { %2352 = vmatmul.mubr.bf16.gmra.mrb[184].mxu1 %v6169_v14  ;;  %2198 = vmatprep.mubr.bf16.mxu0 %v6177_v23  ;;  %6802 = vst [vmem:[#allocation57_spill] sm:$0xff] %v6193_v56  ;;  %s211_s6 = sadd.s32 %s3353_s5, %s3352_s26 }
 0x1a4   : > { %6796 = vst [vmem:[#allocation51_spill] sm:$0xff] %v6162_v44  ;;  %v6174_v38 = vadd.f32 %v4181_v9, %v4069_v26  ;;  %2359 = vmatprep.mubr.bf16.mxu1 %v6181_v53  ;;  %s3354_s9 = sshll.u32 %s211_s6, 2 }
 0x1a5   : > { %v4070_v24 = vpop.f32.mrb[80].mxu0  ;;  %s6528_s10 = scalar_lea.vmem %s6672_s3, %s3354_s9 }
 0x1a6   : > { %6799 = vst [vmem:[#allocation54_spill] sm:$0xff] %v6174_v38  ;;  %v4182_v49 = vpop.f32.mrb[80].mxu1  ;;  %v4071_v47 = vpop.f32.mrb[81].mxu0 }
 0x1a7   : > { %v4183_v25 = vpop.f32.mrb[81].mxu1  ;;  %v4072_v46 = vadd.f32 %v4071_v47, %v4070_v24  ;;  %v4073_v9 = vpop.f32.mrb[82].mxu0 }
 0x1a8   : > { %v4184_v26 = vadd.f32 %v4183_v25, %v4182_v49  ;;  %v4185_v55 = vpop.f32.mrb[82].mxu1  ;;  %v4074_v44 = vpop.f32.mrb[83].mxu0 }
 0x1a9   : > { %v4186_v40 = vpop.f32.mrb[83].mxu1  ;;  %v4075_v14 = vadd.f32 %v4074_v44, %v4073_v9 }
 0x1aa   : > { %v6186_v23 = vadd.f32 %v4184_v26, %v4072_v46  ;;  %v4187_v7 = vadd.f32 %v4186_v40, %v4185_v55  ;;  %2199 = vmatmul.mubr.bf16.gmra.mrb[188].mxu0 %v6189_v10 }
 0x1ab   : > { %2360 = vmatmul.mubr.bf16.gmra.mrb[188].mxu1 %v6193_v56  ;;  %2689 = vmatprep.mubr.bf16.mxu0 %v5773_v16  ;;  %v6820_v16 = vld [vmem:[#allocation22_spill] sm:$0xff] }
 0x1ac   : > { %v6198_v49 = vadd.f32 %v4187_v7, %v4075_v14  ;;  %2850 = vmatprep.mubr.bf16.mxu1 %v5777_v22 }
 0x1ad   : > { %v4076_v40 = vpop.f32.mrb[84].mxu0 }
 0x1ae   : > { %v4188_v55 = vpop.f32.mrb[84].mxu1  ;;  %v4077_v47 = vpop.f32.mrb[85].mxu0 }
 0x1af   : > { %v4189_v25 = vpop.f32.mrb[85].mxu1  ;;  %v4078_v46 = vadd.f32 %v4077_v47, %v4076_v40  ;;  %v4079_v9 = vpop.f32.mrb[86].mxu0 }
 0x1b0   : > { %v4190_v26 = vadd.f32 %v4189_v25, %v4188_v55  ;;  %v4191_v56 = vpop.f32.mrb[86].mxu1  ;;  %v4080_v10 = vpop.f32.mrb[87].mxu0 }
 0x1b1   : > { %v4192_v38 = vpop.f32.mrb[87].mxu1  ;;  %v4081_v7 = vadd.f32 %v4080_v10, %v4079_v9 }
 0x1b2   : > { %v6204_v24 = vadd.f32 %v4190_v26, %v4078_v46  ;;  %v4193_v14 = vadd.f32 %v4192_v38, %v4191_v56  ;;  %2690 = vmatmul.mubr.bf16.vlgmr.msra.gmra.mrb[192].mxu0 %v5795_v13 }
 0x1b3   : > { %2851 = vmatmul.mubr.bf16.vlgmr.msra.gmra.mrb[192].mxu1 %v5799_v51  ;;  %2697 = vmatprep.mubr.bf16.mxu0 %v5811_v18 }
 0x1b4   : > { %v6210_v22 = vadd.f32 %v4193_v14, %v4081_v7  ;;  %2858 = vmatprep.mubr.bf16.mxu1 %v5815_v19 }
 0x1b5   : > { %v4082_v55 = vpop.f32.mrb[88].mxu0 }
 0x1b6   : > { %v4194_v47 = vpop.f32.mrb[88].mxu1  ;;  %v4083_v10 = vpop.f32.mrb[89].mxu0 }
 0x1b7   : > { %v4195_v38 = vpop.f32.mrb[89].mxu1  ;;  %v4084_v56 = vadd.f32 %v4083_v10, %v4082_v55  ;;  %v4085_v25 = vpop.f32.mrb[90].mxu0 }
 0x1b8   : > { %v4196_v13 = vadd.f32 %v4195_v38, %v4194_v47  ;;  %v4197_v51 = vpop.f32.mrb[90].mxu1  ;;  %v4086_v46 = vpop.f32.mrb[91].mxu0 }
 0x1b9   : > { %v4198_v26 = vpop.f32.mrb[91].mxu1  ;;  %v4087_v7 = vadd.f32 %v4086_v46, %v4085_v25 }
 0x1ba   : > { %v6216_v9 = vadd.f32 %v4196_v13, %v4084_v56  ;;  %v4199_v14 = vadd.f32 %v4198_v26, %v4197_v51  ;;  %2698 = vmatmul.mubr.bf16.gmra.mrb[196].mxu0 %v5839_v58 }
 0x1bb   : > { %2859 = vmatmul.mubr.bf16.gmra.mrb[196].mxu1 %v5843_v62  ;;  %2705 = vmatprep.mubr.bf16.mxu0 %v5849_v0  ;;  %v6812_v0 = vld [vmem:[#allocation16_spill] sm:$0xff] }
 0x1bc   : > { %v6222_v19 = vadd.f32 %v4199_v14, %v4087_v7  ;;  %2866 = vmatprep.mubr.bf16.mxu1 %v5853_v1 }
 0x1bd   : > { %v4088_v47 = vpop.f32.mrb[92].mxu0 }
 0x1be   : > { %v4200_v10 = vpop.f32.mrb[92].mxu1  ;;  %v4089_v38 = vpop.f32.mrb[93].mxu0 }
 0x1bf   : > { %v4201_v56 = vpop.f32.mrb[93].mxu1  ;;  %v4090_v13 = vadd.f32 %v4089_v38, %v4088_v47  ;;  %v4091_v25 = vpop.f32.mrb[94].mxu0 }
 0x1c0   : > { %v4202_v58 = vadd.f32 %v4201_v56, %v4200_v10  ;;  %v4203_v62 = vpop.f32.mrb[94].mxu1  ;;  %v4092_v51 = vpop.f32.mrb[95].mxu0 }
 0x1c1   : > { %v4204_v46 = vpop.f32.mrb[95].mxu1  ;;  %v4093_v7 = vadd.f32 %v4092_v51, %v4091_v25 }
 0x1c2   : > { %v6228_v26 = vadd.f32 %v4202_v58, %v4090_v13  ;;  %v4205_v14 = vadd.f32 %v4204_v46, %v4203_v62  ;;  %2706 = vmatmul.mubr.bf16.gmra.mrb[200].mxu0 %v5883_v43 }
 0x1c3   : > { %2867 = vmatmul.mubr.bf16.gmra.mrb[200].mxu1 %v5887_v21  ;;  %2713 = vmatprep.mubr.bf16.mxu0 %v5893_v32 }
 0x1c4   : > { %v6234_v1 = vadd.f32 %v4205_v14, %v4093_v7  ;;  %2874 = vmatprep.mubr.bf16.mxu1 %v5897_v33 }
 0x1c5   : > { %v4094_v10 = vpop.f32.mrb[96].mxu0 }
 0x1c6   : > { %v4206_v38 = vpop.f32.mrb[96].mxu1  ;;  %v4095_v56 = vpop.f32.mrb[97].mxu0 }
 0x1c7   : > { %v4207_v13 = vpop.f32.mrb[97].mxu1  ;;  %v4096_v58 = vadd.f32 %v4095_v56, %v4094_v10  ;;  %v4097_v25 = vpop.f32.mrb[98].mxu0 }
 0x1c8   : > { %v4208_v43 = vadd.f32 %v4207_v13, %v4206_v38  ;;  %v4209_v21 = vpop.f32.mrb[98].mxu1  ;;  %v4098_v62 = vpop.f32.mrb[99].mxu0 }
 0x1c9   : > { %v4210_v51 = vpop.f32.mrb[99].mxu1  ;;  %v4099_v7 = vadd.f32 %v4098_v62, %v4097_v25 }
 0x1ca   : > { %v6240_v46 = vadd.f32 %v4208_v43, %v4096_v58  ;;  %v4211_v14 = vadd.f32 %v4210_v51, %v4209_v21  ;;  %2714 = vmatmul.mubr.bf16.gmra.mrb[204].mxu0 %v5927_v30 }
 0x1cb   : > { %2875 = vmatmul.mubr.bf16.gmra.mrb[204].mxu1 %v5931_v31  ;;  %2721 = vmatprep.mubr.bf16.mxu0 %v5937_v36  ;;  %v6806_v36 = vld [vmem:[#allocation10_spill] sm:$0xff] }
 0x1cc   : > { %v6246_v33 = vadd.f32 %v4211_v14, %v4099_v7  ;;  %2882 = vmatprep.mubr.bf16.mxu1 %v5941_v37 }
 0x1cd   : > { %v4100_v38 = vpop.f32.mrb[100].mxu0 }
 0x1ce   : > { %v4212_v56 = vpop.f32.mrb[100].mxu1  ;;  %v4101_v13 = vpop.f32.mrb[101].mxu0 }
 0x1cf   : > { %v4213_v58 = vpop.f32.mrb[101].mxu1  ;;  %v4102_v43 = vadd.f32 %v4101_v13, %v4100_v38  ;;  %v4103_v25 = vpop.f32.mrb[102].mxu0 }
 0x1d0   : > { %v4214_v30 = vadd.f32 %v4213_v58, %v4212_v56  ;;  %v4215_v31 = vpop.f32.mrb[102].mxu1  ;;  %v4104_v21 = vpop.f32.mrb[103].mxu0 }
 0x1d1   : > { %v4216_v62 = vpop.f32.mrb[103].mxu1  ;;  %v4105_v7 = vadd.f32 %v4104_v21, %v4103_v25 }
 0x1d2   : > { %v6252_v51 = vadd.f32 %v4214_v30, %v4102_v43  ;;  %v4217_v14 = vadd.f32 %v4216_v62, %v4215_v31  ;;  %2722 = vmatmul.mubr.bf16.gmra.mrb[208].mxu0 %v5953_v27 }
 0x1d3   : > { %2883 = vmatmul.mubr.bf16.gmra.mrb[208].mxu1 %v5957_v41  ;;  %2729 = vmatprep.mubr.bf16.mxu0 %v5963_v50 }
 0x1d4   : > { %v6258_v37 = vadd.f32 %v4217_v14, %v4105_v7  ;;  %2890 = vmatprep.mubr.bf16.mxu1 %v5967_v54 }
 0x1d5   : > { %v4106_v56 = vpop.f32.mrb[104].mxu0 }
 0x1d6   : > { %v4218_v13 = vpop.f32.mrb[104].mxu1  ;;  %v4107_v58 = vpop.f32.mrb[105].mxu0 }
 0x1d7   : > { %v4219_v43 = vpop.f32.mrb[105].mxu1  ;;  %v4108_v30 = vadd.f32 %v4107_v58, %v4106_v56  ;;  %v4109_v25 = vpop.f32.mrb[106].mxu0  ;;  %v6805_v56 = vld [vmem:[#allocation2_spill] sm:$0xff] }
 0x1d8   : > { %v4220_v27 = vadd.f32 %v4219_v43, %v4218_v13  ;;  %v4221_v41 = vpop.f32.mrb[106].mxu1  ;;  %v4110_v31 = vpop.f32.mrb[107].mxu0 }
 0x1d9   : > { %v4222_v21 = vpop.f32.mrb[107].mxu1  ;;  %v4111_v7 = vadd.f32 %v4110_v31, %v4109_v25 }
 0x1da   : > { %v6264_v62 = vadd.f32 %v4220_v27, %v4108_v30  ;;  %v4223_v14 = vadd.f32 %v4222_v21, %v4221_v41  ;;  %2730 = vmatmul.mubr.bf16.gmra.mrb[212].mxu0 %v5973_v11 }
 0x1db   : > { %2891 = vmatmul.mubr.bf16.gmra.mrb[212].mxu1 %v5977_v12  ;;  %2737 = vmatprep.mubr.bf16.mxu0 %v5983_v34  ;;  %v6803_v34 = vld [vmem:[#allocation3_spill] sm:$0xff] }
 0x1dc   : > { %v6270_v54 = vadd.f32 %v4223_v14, %v4111_v7  ;;  %2898 = vmatprep.mubr.bf16.mxu1 %v5987_v35  ;;  %v6804_v35 = vld [vmem:[#allocation4_spill] sm:$0xff] }
 0x1dd   : > { %v4112_v13 = vpop.f32.mrb[108].mxu0 }
 0x1de   : > { %v4224_v58 = vpop.f32.mrb[108].mxu1  ;;  %v4113_v43 = vpop.f32.mrb[109].mxu0 }
 0x1df   : > { %v4225_v30 = vpop.f32.mrb[109].mxu1  ;;  %v4114_v27 = vadd.f32 %v4113_v43, %v4112_v13  ;;  %v4115_v25 = vpop.f32.mrb[110].mxu0  ;;  %v6807_v13 = vld [vmem:[#allocation11_spill] sm:$0xff]  ;;  %v6811_v43 = vld [vmem:[#allocation12_spill] sm:$0xff] }
 0x1e0   : > { %v4226_v11 = vadd.f32 %v4225_v30, %v4224_v58  ;;  %v4227_v12 = vpop.f32.mrb[110].mxu1  ;;  %v4116_v41 = vpop.f32.mrb[111].mxu0  ;;  %v6808_v58 = vld [vmem:[#allocation5_spill] sm:$0xff] }
 0x1e1   : > { %v4228_v31 = vpop.f32.mrb[111].mxu1  ;;  %v4117_v7 = vadd.f32 %v4116_v41, %v4115_v25 }
 0x1e2   : > { %v6276_v21 = vadd.f32 %v4226_v11, %v4114_v27  ;;  %v4229_v14 = vadd.f32 %v4228_v31, %v4227_v12  ;;  %2738 = vmatmul.mubr.bf16.gmra.mrb[216].mxu0 %v6803_v34 }
 0x1e3   : > { %2899 = vmatmul.mubr.bf16.gmra.mrb[216].mxu1 %v6804_v35  ;;  %2745 = vmatprep.mubr.bf16.mxu0 %v6806_v36  ;;  %v6809_v36 = vld [vmem:[#allocation13_spill] sm:$0xff] }
 0x1e4   : > { %v6282_v38 = vadd.f32 %v4229_v14, %v4117_v7  ;;  %2906 = vmatprep.mubr.bf16.mxu1 %v6807_v13  ;;  %v6810_v13 = vld [vmem:[#allocation14_spill] sm:$0xff] }
 0x1e5   : > { %v4118_v30 = vpop.f32.mrb[112].mxu0 }
 0x1e6   : > { %v4230_v27 = vpop.f32.mrb[112].mxu1  ;;  %v4119_v11 = vpop.f32.mrb[113].mxu0 }
 0x1e7   : > { %v4231_v25 = vpop.f32.mrb[113].mxu1  ;;  %v4120_v12 = vadd.f32 %v4119_v11, %v4118_v30  ;;  %v4121_v31 = vpop.f32.mrb[114].mxu0  ;;  %v6813_v30 = vld [vmem:[#allocation17_spill] sm:$0xff] }
 0x1e8   : > { %v4232_v41 = vadd.f32 %v4231_v25, %v4230_v27  ;;  %v4233_v34 = vpop.f32.mrb[114].mxu1  ;;  %v4122_v35 = vpop.f32.mrb[115].mxu0  ;;  %v6814_v27 = vld [vmem:[#allocation15_spill] sm:$0xff] }
 0x1e9   : > { %v4234_v10 = vpop.f32.mrb[115].mxu1  ;;  %v4123_v7 = vadd.f32 %v4122_v35, %v4121_v31 }
 0x1ea   : > { %v6288_v50 = vadd.f32 %v4232_v41, %v4120_v12  ;;  %v4235_v14 = vadd.f32 %v4234_v10, %v4233_v34  ;;  %2746 = vmatmul.mubr.bf16.gmra.mrb[220].mxu0 %v6809_v36 }
 0x1eb   : > { %2907 = vmatmul.mubr.bf16.gmra.mrb[220].mxu1 %v6810_v13  ;;  %2753 = vmatprep.mubr.bf16.mxu0 %v6812_v0  ;;  %v6816_v0 = vld [vmem:[#allocation19_spill] sm:$0xff] }
 0x1ec   : > { %v6294_v47 = vadd.f32 %v4235_v14, %v4123_v7  ;;  %2914 = vmatprep.mubr.bf16.mxu1 %v6813_v30  ;;  %v6817_v30 = vld [vmem:[#allocation20_spill] sm:$0xff] }
 0x1ed   : > { %v4124_v25 = vpop.f32.mrb[116].mxu0 }
 0x1ee   : > { %v4236_v12 = vpop.f32.mrb[116].mxu1  ;;  %v4125_v41 = vpop.f32.mrb[117].mxu0 }
 0x1ef   : > { %v4237_v10 = vpop.f32.mrb[117].mxu1  ;;  %v4126_v31 = vadd.f32 %v4125_v41, %v4124_v25  ;;  %v4127_v35 = vpop.f32.mrb[118].mxu0  ;;  %v6821_v25 = vld [vmem:[#allocation23_spill] sm:$0xff]  ;;  %v6843_v41 = vld [vmem:[#allocation38_spill] sm:$0xff] }
 0x1f0   : > { %v4238_v34 = vadd.f32 %v4237_v10, %v4236_v12  ;;  %v4239_v36 = vpop.f32.mrb[118].mxu1  ;;  %v4128_v13 = vpop.f32.mrb[119].mxu0 }
 0x1f1   : > { %v4240_v55 = vpop.f32.mrb[119].mxu1  ;;  %v4129_v7 = vadd.f32 %v4128_v13, %v4127_v35 }
 0x1f2   : > { %v6300_v32 = vadd.f32 %v4238_v34, %v4126_v31  ;;  %v4241_v14 = vadd.f32 %v4240_v55, %v4239_v36  ;;  %2754 = vmatmul.mubr.bf16.gmra.mrb[224].mxu0 %v6816_v0 }
 0x1f3   : > { %2915 = vmatmul.mubr.bf16.gmra.mrb[224].mxu1 %v6817_v30  ;;  %2761 = vmatprep.mubr.bf16.mxu0 %v6820_v16  ;;  %v6824_v16 = vld [vmem:[#allocation25_spill] sm:$0xff] }
 0x1f4   : > { %6815 = vst [vmem:[#allocation3_spill] sm:$0xff] %v6300_v32  ;;  %v6306_v40 = vadd.f32 %v4241_v14, %v4129_v7  ;;  %2922 = vmatprep.mubr.bf16.mxu1 %v6821_v25  ;;  %v6825_v25 = vld [vmem:[#allocation26_spill] sm:$0xff]  ;;  %v6828_v32 = vld [vmem:[#allocation28_spill] sm:$0xff] }
 0x1f5   : > { %v4130_v10 = vpop.f32.mrb[120].mxu0 }
 0x1f6   : > { %6819 = vst [vmem:[#allocation4_spill] sm:$0xff] %v6306_v40  ;;  %v4242_v31 = vpop.f32.mrb[120].mxu1  ;;  %v4131_v34 = vpop.f32.mrb[121].mxu0 }
 0x1f7   : > { %v4243_v55 = vpop.f32.mrb[121].mxu1  ;;  %v4132_v35 = vadd.f32 %v4131_v34, %v4130_v10  ;;  %v4133_v13 = vpop.f32.mrb[122].mxu0  ;;  %v6829_v10 = vld [vmem:[#allocation29_spill] sm:$0xff] }
 0x1f8   : > { %v4244_v36 = vadd.f32 %v4243_v55, %v4242_v31  ;;  %v4245_v0 = vpop.f32.mrb[122].mxu1  ;;  %v4134_v30 = vpop.f32.mrb[123].mxu0  ;;  %v6835_v31 = vld [vmem:[#allocation33_spill] sm:$0xff] }
 0x1f9   : > { %v4246_v44 = vpop.f32.mrb[123].mxu1  ;;  %v4135_v7 = vadd.f32 %v4134_v30, %v4133_v13 }
 0x1fa   : > { %v6312_v18 = vadd.f32 %v4244_v36, %v4132_v35  ;;  %v4247_v14 = vadd.f32 %v4246_v44, %v4245_v0  ;;  %2762 = vmatmul.mubr.bf16.gmra.mrb[228].mxu0 %v6824_v16 }
 0x1fb   : > { %2923 = vmatmul.mubr.bf16.gmra.mrb[228].mxu1 %v6825_v25  ;;  %2769 = vmatprep.mubr.bf16.mxu0 %v6828_v32  ;;  %v6832_v32 = vld [vmem:[#allocation31_spill] sm:$0xff] }
 0x1fc   : > { %6823 = vst [vmem:[#allocation2_spill] sm:$0xff] %v6312_v18  ;;  %v6318_v12 = vadd.f32 %v4247_v14, %v4135_v7  ;;  %2930 = vmatprep.mubr.bf16.mxu1 %v6829_v10  ;;  %v6841_v10 = vld [vmem:[#allocation35_spill] sm:$0xff] }
 0x1fd   : > { %v4136_v55 = vpop.f32.mrb[124].mxu0 }
 0x1fe   : > { %6827 = vst [vmem:[#allocation10_spill] sm:$0xff] %v6318_v12  ;;  %v4248_v35 = vpop.f32.mrb[124].mxu1  ;;  %v4137_v36 = vpop.f32.mrb[125].mxu0 }
 0x1ff   : > { %v4249_v44 = vpop.f32.mrb[125].mxu1  ;;  %v4138_v13 = vadd.f32 %v4137_v36, %v4136_v55  ;;  %v4139_v30 = vpop.f32.mrb[126].mxu0  ;;  %v6836_v55 = vld [vmem:[#allocation34_spill] sm:$0xff] }
 0x200   : > { %v4250_v0 = vadd.f32 %v4249_v44, %v4248_v35  ;;  %v4251_v16 = vpop.f32.mrb[126].mxu1  ;;  %v4140_v25 = vpop.f32.mrb[127].mxu0 }
 0x201   : > { %v4252_v11 = vpop.f32.mrb[127].mxu1  ;;  %v4141_v7 = vadd.f32 %v4140_v25, %v4139_v30 }
 0x202   : > { %v6324_v40 = vadd.f32 %v4250_v0, %v4138_v13  ;;  %v4253_v14 = vadd.f32 %v4252_v11, %v4251_v16  ;;  %2770 = vmatmul.mubr.bf16.gmra.mrb[232].mxu0 %v6073_v57 }
 0x203   : > { %2931 = vmatmul.mubr.bf16.gmra.mrb[232].mxu1 %v6832_v32  ;;  %2777 = vmatprep.mubr.bf16.mxu0 %v6835_v31  ;;  %v6839_v31 = vld [vmem:[#allocation37_spill] sm:$0xff] }
 0x204   : > { %6831 = vst [vmem:[#allocation11_spill] sm:$0xff] %v6324_v40  ;;  %v6330_v12 = vadd.f32 %v4253_v14, %v4141_v7  ;;  %2938 = vmatprep.mubr.bf16.mxu1 %v6836_v55  ;;  %v6838_v40 = vld [vmem:[#allocation36_spill] sm:$0xff]  ;;  %v6840_v55 = vld [vmem:[#allocation6_spill] sm:$0xff] }
 0x205   : > { %v4270_v44 = vpop.f32.mrb[128].mxu0  ;;  %v6842_v36 = vmax.f32 %v6840_v55, %v6841_v10 }
 0x206   : > { %6834 = vst [vmem:[#allocation5_spill] sm:$0xff] %v6330_v12  ;;  %v4382_v13 = vpop.f32.mrb[128].mxu1  ;;  %v4271_v0 = vpop.f32.mrb[129].mxu0 }
 0x207   : > { %v4383_v11 = vpop.f32.mrb[129].mxu1  ;;  %v4272_v30 = vadd.f32 %v4271_v0, %v4270_v44  ;;  %v4273_v16 = vpop.f32.mrb[130].mxu0  ;;  %v6844_v44 = vld [vmem:[#allocation39_spill] sm:$0xff] }
 0x208   : > { %v4384_v57 = vadd.f32 %v4383_v11, %v4382_v13  ;;  %v4385_v25 = vpop.f32.mrb[130].mxu1  ;;  %v4274_v32 = vpop.f32.mrb[131].mxu0  ;;  %v6845_v13 = vmax.f32 %v5738_v17, %v6102_v48  ;;  %v6848_v17 = vld [vmem:[#allocation7_spill] sm:$0xff]  ;;  %v6849_v48 = vld [vmem:[#allocation40_spill] sm:$0xff] }
 0x209   : > { %v4386_v18 = vpop.f32.mrb[131].mxu1  ;;  %v4275_v7 = vadd.f32 %v4274_v32, %v4273_v16 }
 0x20a   : > { %v2242_v34 = vadd.f32 %v4384_v57, %v4272_v30  ;;  %v4387_v14 = vadd.f32 %v4386_v18, %v4385_v25  ;;  %2778 = vmatmul.mubr.bf16.gmra.mrb[236].mxu0 %v6838_v40 }
 0x20b   : > { %2939 = vmatmul.mubr.bf16.gmra.mrb[236].mxu1 %v6839_v31  ;;  %2785 = vmatprep.mubr.bf16.mxu0 %v6843_v41  ;;  %v6847_v31 = vld [vmem:[#allocation42_spill] sm:$0xff] }
 0x20c   : > { %v6341_v12 = vmax.f32 %v6842_v36, %v2242_v34  ;;  %v2245_v35 = vadd.f32 %v4387_v14, %v4275_v7  ;;  %2946 = vmatprep.mubr.bf16.mxu1 %v6844_v44  ;;  %v6846_v14 = vld [vmem:[#allocation41_spill] sm:$0xff] }
 0x20d   : > { %v4276_v18 = vpop.f32.mrb[132].mxu0 }
 0x20e   : > { %v6348_v0 = vmax.f32 %v6845_v13, %v2245_v35  ;;  %v4388_v11 = vpop.f32.mrb[132].mxu1  ;;  %v4277_v40 = vpop.f32.mrb[133].mxu0  ;;  %v6850_v35 = vmax.f32 %v6848_v17, %v6849_v48  ;;  %v6851_v13 = vld [vmem:[#allocation43_spill] sm:$0xff]  ;;  %v6854_v48 = vld [vmem:[#allocation46_spill] sm:$0xff] }
 0x20f   : > { %v4389_v30 = vpop.f32.mrb[133].mxu1  ;;  %v4278_v57 = vadd.f32 %v4277_v40, %v4276_v18  ;;  %v4279_v25 = vpop.f32.mrb[134].mxu0  ;;  %v6852_v18 = vld [vmem:[#allocation44_spill] sm:$0xff] }
 0x210   : > { %v4390_v16 = vadd.f32 %v4389_v30, %v4388_v11  ;;  %v4391_v10 = vpop.f32.mrb[134].mxu1  ;;  %v4280_v34 = vpop.f32.mrb[135].mxu0  ;;  %v6853_v11 = vmax.f32 %v5746_v3, %v6126_v2  ;;  %v6856_v3 = vld [vmem:[#allocation8_spill] sm:$0xff]  ;;  %v6857_v2 = vld [vmem:[#allocation45_spill] sm:$0xff] }
 0x211   : > { %v4392_v36 = vpop.f32.mrb[135].mxu1  ;;  %v4281_v7 = vadd.f32 %v4280_v34, %v4279_v25 }
 0x212   : > { %v2250_v32 = vadd.f32 %v4390_v16, %v4278_v57  ;;  %v4393_v41 = vadd.f32 %v4392_v36, %v4391_v10  ;;  %2786 = vmatmul.mubr.bf16.gmra.mrb[240].mxu0 %v6846_v14 }
 0x213   : > { %2947 = vmatmul.mubr.bf16.gmra.mrb[240].mxu1 %v6847_v31  ;;  %2793 = vmatprep.mubr.bf16.mxu0 %v6851_v13 }
 0x214   : > { %v6355_v55 = vmax.f32 %v6850_v35, %v2250_v32  ;;  %v2253_v44 = vadd.f32 %v4393_v41, %v4281_v7  ;;  %2954 = vmatprep.mubr.bf16.mxu1 %v6852_v18  ;;  %v6855_v35 = vld [vmem:[#allocation47_spill] sm:$0xff] }
 0x215   : > { %v4282_v30 = vpop.f32.mrb[136].mxu0 }
 0x216   : > { %v6362_v40 = vmax.f32 %v6853_v11, %v2253_v44  ;;  %v4394_v57 = vpop.f32.mrb[136].mxu1  ;;  %v4283_v16 = vpop.f32.mrb[137].mxu0  ;;  %v6858_v44 = vmax.f32 %v6856_v3, %v6857_v2  ;;  %v6859_v11 = vld [vmem:[#allocation49_spill] sm:$0xff] }
 0x217   : > { %v4395_v25 = vpop.f32.mrb[137].mxu1  ;;  %v4284_v10 = vadd.f32 %v4283_v16, %v4282_v30  ;;  %v4285_v36 = vpop.f32.mrb[138].mxu0  ;;  %v6860_v30 = vld [vmem:[#allocation50_spill] sm:$0xff] }
 0x218   : > { %v4396_v34 = vadd.f32 %v4395_v25, %v4394_v57  ;;  %v4397_v14 = vpop.f32.mrb[138].mxu1  ;;  %v4286_v32 = vpop.f32.mrb[139].mxu0  ;;  %v6861_v57 = vld [vmem:[#allocation48_spill] sm:$0xff] }
 0x219   : > { %v4398_v31 = vpop.f32.mrb[139].mxu1  ;;  %v4287_v41 = vadd.f32 %v4286_v32, %v4285_v36  ;;  %v6862_v16 = vmax.f32 %v5754_v20, %v6861_v57  ;;  %v6866_v20 = vld [vmem:[#allocation9_spill] sm:$0xff] }
 0x21a   : > { %v2258_v7 = vadd.f32 %v4396_v34, %v4284_v10  ;;  %v4399_v17 = vadd.f32 %v4398_v31, %v4397_v14  ;;  %2794 = vmatmul.mubr.bf16.gmra.mrb[244].mxu0 %v6854_v48 }
 0x21b   : > { %2955 = vmatmul.mubr.bf16.gmra.mrb[244].mxu1 %v6855_v35  ;;  %2801 = vmatprep.mubr.bf16.mxu0 %v6859_v11  ;;  %v6865_v11 = vld [vmem:[#allocation53_spill] sm:$0xff] }
 0x21c   : > { %v6369_v13 = vmax.f32 %v6858_v44, %v2258_v7  ;;  %v2261_v18 = vadd.f32 %v4399_v17, %v4287_v41  ;;  %2962 = vmatprep.mubr.bf16.mxu1 %v6860_v30  ;;  %v6864_v44 = vld [vmem:[#allocation52_spill] sm:$0xff] }
 0x21d   : > { %v4288_v10 = vpop.f32.mrb[140].mxu0 }
 0x21e   : > { %v6376_v25 = vmax.f32 %v6862_v16, %v2261_v18  ;;  %v4400_v34 = vpop.f32.mrb[140].mxu1  ;;  %v4289_v36 = vpop.f32.mrb[141].mxu0  ;;  %v6867_v18 = vld [vmem:[#allocation51_spill] sm:$0xff] }
 0x21f   : > { %v4401_v14 = vpop.f32.mrb[141].mxu1  ;;  %v4290_v32 = vadd.f32 %v4289_v36, %v4288_v10  ;;  %v4291_v48 = vpop.f32.mrb[142].mxu0  ;;  %v6868_v30 = vmax.f32 %v6866_v20, %v6867_v18  ;;  %v6870_v10 = vld [vmem:[#allocation54_spill] sm:$0xff]  ;;  %v6872_v20 = vld [vmem:[#allocation56_spill] sm:$0xff] }
 0x220   : > { %6863 = vst [vmem:[#allocation13_spill] sm:$0xff] %v6376_v25  ;;  %v4402_v31 = vadd.f32 %v4401_v14, %v4400_v34  ;;  %v4403_v35 = vpop.f32.mrb[142].mxu1  ;;  %v4292_v7 = vpop.f32.mrb[143].mxu0  ;;  %v6869_v25 = vld [vmem:[#allocation55_spill] sm:$0xff]  ;;  %v6871_v34 = vmax.f32 %v5762_v28, %v6870_v10  ;;  %v6874_v28 = vmax.f32 %v5766_v6, %v6186_v23 }
 0x221   : > { %v4404_v3 = vpop.f32.mrb[143].mxu1  ;;  %v4293_v17 = vadd.f32 %v4292_v7, %v4291_v48 }
 0x222   : > { %v2266_v41 = vadd.f32 %v4402_v31, %v4290_v32  ;;  %v4405_v2 = vadd.f32 %v4404_v3, %v4403_v35  ;;  %2802 = vmatmul.mubr.bf16.gmra.mrb[248].mxu0 %v6864_v44 }
 0x223   : > { %2963 = vmatmul.mubr.bf16.gmra.mrb[248].mxu1 %v6865_v11  ;;  %2809 = vmatprep.mubr.bf16.mxu0 %v6869_v25 }
 0x224   : > { %v6383_v57 = vmax.f32 %v6868_v30, %v2266_v41  ;;  %v2269_v16 = vadd.f32 %v4405_v2, %v4293_v17  ;;  %2970 = vmatprep.mubr.bf16.mxu1 %v6181_v53  ;;  %v6873_v53 = vld [vmem:[#allocation57_spill] sm:$0xff] }
 0x225   : > { %v4294_v14 = vpop.f32.mrb[144].mxu0 }
 0x226   : > { %v6390_v36 = vmax.f32 %v6871_v34, %v2269_v16  ;;  %v4406_v32 = vpop.f32.mrb[144].mxu1  ;;  %v4295_v31 = vpop.f32.mrb[145].mxu0  ;;  %v6875_v16 = vmax.f32 %v5770_v15, %v6198_v49  ;;  %v6877_v49 = vmax.f32 %v5802_v61, %v6210_v22  ;;  %v6879_v22 = vmax.f32 %v5846_v63, %v6222_v19 }
 0x227   : > { %v4407_v48 = vpop.f32.mrb[145].mxu1  ;;  %v4296_v35 = vadd.f32 %v4295_v31, %v4294_v14  ;;  %v4297_v3 = vpop.f32.mrb[146].mxu0  ;;  %v6881_v19 = vmax.f32 %v5890_v45, %v6234_v1  ;;  %v6883_v1 = vmax.f32 %v5934_v60, %v6246_v33  ;;  %v6885_v33 = vmax.f32 %v5960_v29, %v6258_v37 }
 0x228   : > { %v4408_v7 = vadd.f32 %v4407_v48, %v4406_v32  ;;  %v4409_v44 = vpop.f32.mrb[146].mxu1  ;;  %v4298_v41 = vpop.f32.mrb[147].mxu0  ;;  %v6887_v37 = vmax.f32 %v5980_v42, %v6270_v54  ;;  %v6889_v54 = vmax.f32 %v6808_v58, %v6282_v38  ;;  %v6891_v58 = vmax.f32 %v6814_v27, %v6294_v47  ;;  %v6895_v27 = vld [vmem:[#allocation21_spill] sm:$0xff] }
 0x229   : > { %v4410_v11 = vpop.f32.mrb[147].mxu1  ;;  %v4299_v2 = vadd.f32 %v4298_v41, %v4297_v3 }
 0x22a   : > { %v2274_v17 = vadd.f32 %v4408_v7, %v4296_v35  ;;  %v4411_v25 = vadd.f32 %v4410_v11, %v4409_v44  ;;  %2810 = vmatmul.mubr.bf16.gmra.mrb[252].mxu0 %v6872_v20 }
 0x22b   : > { %2971 = vmatmul.mubr.bf16.gmra.mrb[252].mxu1 %v6873_v53 }
 0x22c   : > { %v6397_v18 = vmax.f32 %v6874_v28, %v2274_v17  ;;  %v2277_v30 = vadd.f32 %v4411_v25, %v4299_v2  ;;  %v6876_v17 = vmax.f32 %v5786_v4, %v6204_v24 }
 0x22d   : > { %v4300_v34 = vpop.f32.mrb[148].mxu0 }
 0x22e   : > { %v6402_v10 = vmax.f32 %v6875_v16, %v2277_v30  ;;  %v4412_v14 = vpop.f32.mrb[148].mxu1  ;;  %v4301_v32 = vpop.f32.mrb[149].mxu0 }
 0x22f   : > { %v4413_v31 = vpop.f32.mrb[149].mxu1  ;;  %v4302_v48 = vadd.f32 %v4301_v32, %v4300_v34  ;;  %v4303_v7 = vpop.f32.mrb[150].mxu0 }
 0x230   : > { %v4414_v35 = vadd.f32 %v4413_v31, %v4412_v14  ;;  %v4415_v3 = vpop.f32.mrb[150].mxu1  ;;  %v4304_v44 = vpop.f32.mrb[151].mxu0 }
 0x231   : > { %v4416_v41 = vpop.f32.mrb[151].mxu1  ;;  %v4305_v6 = vadd.f32 %v4304_v44, %v4303_v7  ;;  %v6878_v7 = vmax.f32 %v5830_v39, %v6216_v9 }
 0x232   : > { %v2282_v11 = vadd.f32 %v4414_v35, %v4302_v48  ;;  %v4417_v23 = vadd.f32 %v4416_v41, %v4415_v3 }
 0x234   : > { %v6407_v2 = vmax.f32 %v6876_v17, %v2282_v11  ;;  %v2285_v15 = vadd.f32 %v4417_v23, %v4305_v6 }
 0x235   : > { %v4306_v20 = vpop.f32.mrb[152].mxu0 }
 0x236   : > { %v6412_v25 = vmax.f32 %v6877_v49, %v2285_v15  ;;  %v4418_v53 = vpop.f32.mrb[152].mxu1  ;;  %v4307_v28 = vpop.f32.mrb[153].mxu0 }
 0x237   : > { %v4419_v30 = vpop.f32.mrb[153].mxu1  ;;  %v4308_v16 = vadd.f32 %v4307_v28, %v4306_v20  ;;  %v4309_v14 = vpop.f32.mrb[154].mxu0 }
 0x238   : > { %v4420_v34 = vadd.f32 %v4419_v30, %v4418_v53  ;;  %v4421_v32 = vpop.f32.mrb[154].mxu1  ;;  %v4310_v31 = vpop.f32.mrb[155].mxu0 }
 0x239   : > { %v4422_v48 = vpop.f32.mrb[155].mxu1  ;;  %v4311_v4 = vadd.f32 %v4310_v31, %v4309_v14 }
 0x23a   : > { %v2290_v35 = vadd.f32 %v4420_v34, %v4308_v16  ;;  %v4423_v24 = vadd.f32 %v4422_v48, %v4421_v32  ;;  %v6880_v16 = vmax.f32 %v5874_v5, %v6228_v26 }
 0x23c   : > { %v6417_v3 = vmax.f32 %v6878_v7, %v2290_v35  ;;  %v2293_v61 = vadd.f32 %v4423_v24, %v4311_v4 }
 0x23d   : > { %v4312_v41 = vpop.f32.mrb[156].mxu0 }
 0x23e   : > { %v6422_v44 = vmax.f32 %v6879_v22, %v2293_v61  ;;  %v4424_v11 = vpop.f32.mrb[156].mxu1  ;;  %v4313_v6 = vpop.f32.mrb[157].mxu0 }
 0x23f   : > { %v4425_v23 = vpop.f32.mrb[157].mxu1  ;;  %v4314_v17 = vadd.f32 %v4313_v6, %v4312_v41  ;;  %v4315_v49 = vpop.f32.mrb[158].mxu0  ;;  %v6882_v6 = vmax.f32 %v5918_v8, %v6240_v46 }
 0x240   : > { %v4426_v15 = vadd.f32 %v4425_v23, %v4424_v11  ;;  %v4427_v20 = vpop.f32.mrb[158].mxu1  ;;  %v4316_v53 = vpop.f32.mrb[159].mxu0 }
 0x241   : > { %v4428_v28 = vpop.f32.mrb[159].mxu1  ;;  %v4317_v39 = vadd.f32 %v4316_v53, %v4315_v49 }
 0x242   : > { %v2298_v30 = vadd.f32 %v4426_v15, %v4314_v17  ;;  %v4429_v9 = vadd.f32 %v4428_v28, %v4427_v20 }
 0x244   : > { %v6427_v34 = vmax.f32 %v6880_v16, %v2298_v30  ;;  %v2301_v63 = vadd.f32 %v4429_v9, %v4317_v39 }
 0x245   : > { %v4318_v32 = vpop.f32.mrb[160].mxu0 }
 0x246   : > { %v6432_v14 = vmax.f32 %v6881_v19, %v2301_v63  ;;  %v4430_v31 = vpop.f32.mrb[160].mxu1  ;;  %v4319_v48 = vpop.f32.mrb[161].mxu0 }
 0x247   : > { %v4431_v35 = vpop.f32.mrb[161].mxu1  ;;  %v4320_v4 = vadd.f32 %v4319_v48, %v4318_v32  ;;  %v4321_v7 = vpop.f32.mrb[162].mxu0  ;;  %v6884_v32 = vmax.f32 %v5950_v52, %v6252_v51 }
 0x248   : > { %v4432_v24 = vadd.f32 %v4431_v35, %v4430_v31  ;;  %v4433_v61 = vpop.f32.mrb[162].mxu1  ;;  %v4322_v22 = vpop.f32.mrb[163].mxu0 }
 0x249   : > { %v4434_v41 = vpop.f32.mrb[163].mxu1  ;;  %v4323_v5 = vadd.f32 %v4322_v22, %v4321_v7 }
 0x24a   : > { %v2306_v11 = vadd.f32 %v4432_v24, %v4320_v4  ;;  %v4435_v26 = vadd.f32 %v4434_v41, %v4433_v61 }
 0x24c   : > { %v6437_v23 = vmax.f32 %v6882_v6, %v2306_v11  ;;  %v2309_v45 = vadd.f32 %v4435_v26, %v4323_v5 }
 0x24d   : > { %v4324_v15 = vpop.f32.mrb[164].mxu0 }
 0x24e   : > { %v6442_v17 = vmax.f32 %v6883_v1, %v2309_v45  ;;  %v4436_v49 = vpop.f32.mrb[164].mxu1  ;;  %v4325_v20 = vpop.f32.mrb[165].mxu0  ;;  %v6886_v45 = vmax.f32 %v5970_v59, %v6264_v62 }
 0x24f   : > { %v4437_v53 = vpop.f32.mrb[165].mxu1  ;;  %v4326_v28 = vadd.f32 %v4325_v20, %v4324_v15  ;;  %v4327_v39 = vpop.f32.mrb[166].mxu0 }
 0x250   : > { %v4438_v30 = vadd.f32 %v4437_v53, %v4436_v49  ;;  %v4439_v9 = vpop.f32.mrb[166].mxu1  ;;  %v4328_v16 = vpop.f32.mrb[167].mxu0 }
 0x251   : > { %v4440_v63 = vpop.f32.mrb[167].mxu1  ;;  %v4329_v8 = vadd.f32 %v4328_v16, %v4327_v39 }
 0x252   : > { %v2314_v19 = vadd.f32 %v4438_v30, %v4326_v28  ;;  %v4441_v46 = vadd.f32 %v4440_v63, %v4439_v9 }
 0x254   : > { %v6447_v31 = vmax.f32 %v6884_v32, %v2314_v19  ;;  %v2317_v60 = vadd.f32 %v4441_v46, %v4329_v8  ;;  %v6888_v46 = vmax.f32 %v6805_v56, %v6276_v21 }
 0x255   : > { %v4330_v35 = vpop.f32.mrb[168].mxu0 }
 0x256   : > { %v6452_v48 = vmax.f32 %v6885_v33, %v2317_v60  ;;  %v4442_v4 = vpop.f32.mrb[168].mxu1  ;;  %v4331_v24 = vpop.f32.mrb[169].mxu0 }
 0x257   : > { %v4443_v7 = vpop.f32.mrb[169].mxu1  ;;  %v4332_v61 = vadd.f32 %v4331_v24, %v4330_v35  ;;  %v4333_v41 = vpop.f32.mrb[170].mxu0 }
 0x258   : > { %v4444_v22 = vadd.f32 %v4443_v7, %v4442_v4  ;;  %v4445_v11 = vpop.f32.mrb[170].mxu1  ;;  %v4334_v5 = vpop.f32.mrb[171].mxu0 }
 0x259   : > { %v4446_v26 = vpop.f32.mrb[171].mxu1  ;;  %v4335_v52 = vadd.f32 %v4334_v5, %v4333_v41 }
 0x25a   : > { %v2322_v6 = vadd.f32 %v4444_v22, %v4332_v61  ;;  %v4447_v51 = vadd.f32 %v4446_v26, %v4445_v11 }
 0x25c   : > { %v6457_v1 = vmax.f32 %v6886_v45, %v2322_v6  ;;  %v2325_v29 = vadd.f32 %v4447_v51, %v4335_v52  ;;  %v6890_v6 = vmax.f32 %v6811_v43, %v6288_v50 }
 0x25d   : > { %v4336_v49 = vpop.f32.mrb[172].mxu0 }
 0x25e   : > { %v6462_v15 = vmax.f32 %v6887_v37, %v2325_v29  ;;  %v4448_v20 = vpop.f32.mrb[172].mxu1  ;;  %v4337_v53 = vpop.f32.mrb[173].mxu0 }
 0x25f   : > { %v4449_v28 = vpop.f32.mrb[173].mxu1  ;;  %v4338_v30 = vadd.f32 %v4337_v53, %v4336_v49  ;;  %v4339_v9 = vpop.f32.mrb[174].mxu0 }
 0x260   : > { %v4450_v39 = vadd.f32 %v4449_v28, %v4448_v20  ;;  %v4451_v16 = vpop.f32.mrb[174].mxu1  ;;  %v4340_v63 = vpop.f32.mrb[175].mxu0 }
 0x261   : > { %v4452_v19 = vpop.f32.mrb[175].mxu1  ;;  %v4341_v59 = vadd.f32 %v4340_v63, %v4339_v9  ;;  %v6892_v63 = vld [vmem:[#allocation18_spill] sm:$0xff] }
 0x262   : > { %v2330_v8 = vadd.f32 %v4450_v39, %v4338_v30  ;;  %v4453_v62 = vadd.f32 %v4452_v19, %v4451_v16  ;;  %v6893_v19 = vld [vmem:[#allocation3_spill] sm:$0xff] }
 0x264   : > { %v6467_v32 = vmax.f32 %v6888_v46, %v2330_v8  ;;  %v2333_v42 = vadd.f32 %v4453_v62, %v4341_v59  ;;  %v6894_v8 = vmax.f32 %v6892_v63, %v6893_v19  ;;  %v6896_v62 = vld [vmem:[#allocation4_spill] sm:$0xff] }
 0x265   : > { %v4342_v33 = vpop.f32.mrb[176].mxu0  ;;  %v6897_v46 = vmax.f32 %v6895_v27, %v6896_v62  ;;  %v6904_v62 = vld [vmem:[#allocation30_spill] sm:$0xff] }
 0x266   : > { %v6472_v60 = vmax.f32 %v6889_v54, %v2333_v42  ;;  %v4454_v35 = vpop.f32.mrb[176].mxu1  ;;  %v4343_v4 = vpop.f32.mrb[177].mxu0 }
 0x267   : > { %v4455_v24 = vpop.f32.mrb[177].mxu1  ;;  %v4344_v7 = vadd.f32 %v4343_v4, %v4342_v33  ;;  %v4345_v22 = vpop.f32.mrb[178].mxu0 }
 0x268   : > { %v4456_v61 = vadd.f32 %v4455_v24, %v4454_v35  ;;  %v4457_v41 = vpop.f32.mrb[178].mxu1  ;;  %v4346_v11 = vpop.f32.mrb[179].mxu0 }
 0x269   : > { %v4458_v5 = vpop.f32.mrb[179].mxu1  ;;  %v4347_v56 = vadd.f32 %v4346_v11, %v4345_v22 }
 0x26a   : > { %v2338_v26 = vadd.f32 %v4456_v61, %v4344_v7  ;;  %v4459_v21 = vadd.f32 %v4458_v5, %v4457_v41 }
 0x26c   : > { %v6477_v52 = vmax.f32 %v6890_v6, %v2338_v26  ;;  %v2341_v38 = vadd.f32 %v4459_v21, %v4347_v56  ;;  %v6898_v21 = vld [vmem:[#allocation24_spill] sm:$0xff]  ;;  %v6899_v6 = vld [vmem:[#allocation2_spill] sm:$0xff] }
 0x26d   : > { %v4348_v45 = vpop.f32.mrb[180].mxu0 }
 0x26e   : > { %v6482_v51 = vmax.f32 %v6891_v58, %v2341_v38  ;;  %v4460_v29 = vpop.f32.mrb[180].mxu1  ;;  %v4349_v37 = vpop.f32.mrb[181].mxu0  ;;  %v6900_v38 = vmax.f32 %v6898_v21, %v6899_v6 }
 0x26f   : > { %v4461_v49 = vpop.f32.mrb[181].mxu1  ;;  %v4350_v20 = vadd.f32 %v4349_v37, %v4348_v45  ;;  %v4351_v28 = vpop.f32.mrb[182].mxu0  ;;  %v6902_v37 = vld [vmem:[#allocation10_spill] sm:$0xff] }
 0x270   : > { %v4462_v53 = vadd.f32 %v4461_v49, %v4460_v29  ;;  %v4463_v30 = vpop.f32.mrb[182].mxu1  ;;  %v4352_v39 = vpop.f32.mrb[183].mxu0  ;;  %v6901_v29 = vld [vmem:[#allocation27_spill] sm:$0xff] }
 0x271   : > { %v4464_v9 = vpop.f32.mrb[183].mxu1  ;;  %v4353_v50 = vadd.f32 %v4352_v39, %v4351_v28  ;;  %v6903_v49 = vmax.f32 %v6901_v29, %v6902_v37 }
 0x272   : > { %v2346_v16 = vadd.f32 %v4462_v53, %v4350_v20  ;;  %v4465_v43 = vadd.f32 %v4464_v9, %v4463_v30 }
 0x274   : > { %v6487_v59 = vmax.f32 %v6894_v8, %v2346_v16  ;;  %v2349_v47 = vadd.f32 %v4465_v43, %v4353_v50 }
 0x275   : > { %v4354_v54 = vpop.f32.mrb[184].mxu0 }
 0x276   : > { %v6492_v42 = vmax.f32 %v6897_v46, %v2349_v47  ;;  %v4466_v33 = vpop.f32.mrb[184].mxu1  ;;  %v4355_v35 = vpop.f32.mrb[185].mxu0  ;;  %v6905_v46 = vld [vmem:[#allocation11_spill] sm:$0xff] }
 0x277   : > { %v4467_v4 = vpop.f32.mrb[185].mxu1  ;;  %v4356_v24 = vadd.f32 %v4355_v35, %v4354_v54  ;;  %v4357_v61 = vpop.f32.mrb[186].mxu0  ;;  %v6906_v54 = vmax.f32 %v6904_v62, %v6905_v46 }
 0x278   : > { %v4468_v7 = vadd.f32 %v4467_v4, %v4466_v33  ;;  %v4469_v22 = vpop.f32.mrb[186].mxu1  ;;  %v4358_v41 = vpop.f32.mrb[187].mxu0  ;;  %v6907_v4 = vld [vmem:[#allocation32_spill] sm:$0xff] }
 0x279   : > { %v4470_v11 = vpop.f32.mrb[187].mxu1  ;;  %v4359_v26 = vadd.f32 %v4358_v41, %v4357_v61 }
 0x27a   : > { %v2354_v5 = vadd.f32 %v4468_v7, %v4356_v24  ;;  %v4471_v56 = vadd.f32 %v4470_v11, %v4469_v22  ;;  %v6908_v24 = vld [vmem:[#allocation5_spill] sm:$0xff] }
 0x27b   : > { %v6909_v7 = vmax.f32 %v6907_v4, %v6908_v24 }
 0x27c   : > { %v6497_v58 = vmax.f32 %v6900_v38, %v2354_v5  ;;  %v2357_v45 = vadd.f32 %v4471_v56, %v4359_v26 }
 0x27d   : > { %v4360_v53 = vpop.f32.mrb[188].mxu0 }
 0x27e   : > { %v6502_v20 = vmax.f32 %v6903_v49, %v2357_v45  ;;  %v4472_v28 = vpop.f32.mrb[188].mxu1  ;;  %v4361_v30 = vpop.f32.mrb[189].mxu0 }
 0x27f   : > { %v4473_v39 = vpop.f32.mrb[189].mxu1  ;;  %v4362_v9 = vadd.f32 %v4361_v30, %v4360_v53  ;;  %v4363_v50 = vpop.f32.mrb[190].mxu0  ;;  %v6519_v53 = vld [vmem:[%s6671_s2] ss:$0 sm:$0xff] }
 0x280   : > { %v4474_v16 = vadd.f32 %v4473_v39, %v4472_v28  ;;  %v4475_v43 = vpop.f32.mrb[190].mxu1  ;;  %v4364_v63 = vpop.f32.mrb[191].mxu0 }
 0x281   : > { %v4476_v19 = vpop.f32.mrb[191].mxu1  ;;  %v4365_v47 = vadd.f32 %v4364_v63, %v4363_v50 }
 0x282   : > { %v2362_v8 = vadd.f32 %v4474_v16, %v4362_v9  ;;  %v4477_v27 = vadd.f32 %v4476_v19, %v4475_v43 }
 0x284   : > { %v6507_v33 = vmax.f32 %v6906_v54, %v2362_v8  ;;  %v2365_v35 = vadd.f32 %v4477_v27, %v4365_v47 }
 0x285   : > { %v4494_v22 = vpop.f32.mrb[192].mxu0 }
 0x286   : > { %v6512_v61 = vmax.f32 %v6909_v7, %v2365_v35  ;;  %v4606_v41 = vpop.f32.mrb[192].mxu1  ;;  %v4495_v11 = vpop.f32.mrb[193].mxu0 }
 0x287   : > { %v4607_v5 = vpop.f32.mrb[193].mxu1  ;;  %v4496_v26 = vadd.f32 %v4495_v11, %v4494_v22  ;;  %v4497_v21 = vpop.f32.mrb[194].mxu0 }
 0x288   : > { %v4608_v56 = vadd.f32 %v4607_v5, %v4606_v41  ;;  %v4609_v6 = vpop.f32.mrb[194].mxu1  ;;  %v4498_v38 = vpop.f32.mrb[195].mxu0 }
 0x289   : > { %v4610_v45 = vpop.f32.mrb[195].mxu1  ;;  %v4499_v37 = vadd.f32 %v4498_v38, %v4497_v21 }
 0x28a   : > { %v2853_v29 = vadd.f32 %v4608_v56, %v4496_v26  ;;  %v4611_v49 = vadd.f32 %v4610_v45, %v4609_v6 }
 0x28c   : > { %v2979_v28 = vmax.f32 %v6341_v12, %v2853_v29  ;;  %v2856_v30 = vadd.f32 %v4611_v49, %v4499_v37 }
 0x28d   : > { %v4500_v16 = vpop.f32.mrb[196].mxu0 }
 0x28e   : > { %v3018_v39 = vadd.f32 %v6519_v53, %v2979_v28  ;;  %v2980_v9 = vmax.f32 %v6348_v0, %v2856_v30  ;;  %v4612_v50 = vpop.f32.mrb[196].mxu1  ;;  %v4501_v43 = vpop.f32.mrb[197].mxu0 }
 0x28f   : > { %v4613_v63 = vpop.f32.mrb[197].mxu1  ;;  %v4502_v47 = vadd.f32 %v4501_v43, %v4500_v16  ;;  %v4503_v62 = vpop.f32.mrb[198].mxu0 }
 0x290   : > { %v3050_v19 = vmax.f32 %v3018_v39, 0.0  ;;  %v3019_v8 = vadd.f32 %v6519_v53, %v2980_v9  ;;  %v4614_v27 = vadd.f32 %v4613_v63, %v4612_v50  ;;  %v4615_v46 = vpop.f32.mrb[198].mxu1  ;;  %v4504_v12 = vpop.f32.mrb[199].mxu0 }
 0x291   : > { %v4616_v0 = vpop.f32.mrb[199].mxu1  ;;  %v4505_v24 = vadd.f32 %v4504_v12, %v4503_v62 }
 0x292   : > { %v3774_v54 = vpack.c.bf16 %v3050_v19, %v3050_v19  ;;  %v3051_v35 = vmax.f32 %v3019_v8, 0.0  ;;  %v2861_v4 = vadd.f32 %v4614_v27, %v4502_v47  ;;  %v4617_v7 = vadd.f32 %v4616_v0, %v4615_v46  ;;  %v6910_v27 = vld [vmem:[#allocation13_spill] sm:$0xff] }
 0x294   : > { %3211 = vst.msk [vmem:[%s6528_s10] sm:$0xf] %vm3210_vm0, %v3774_v54  ;;  %v3775_v22 = vpack.c.bf16 %v3051_v35, %v3051_v35  ;;  %v2981_v41 = vmax.f32 %v6355_v55, %v2861_v4  ;;  %v2864_v11 = vadd.f32 %v4617_v7, %v4505_v24 }
 0x295   : > { %v4506_v26 = vpop.f32.mrb[200].mxu0 }
 0x296   : > { %3212 = vst.msk [vmem:[%s6528_s10 + $0x4] sm:$0xf] %vm3210_vm0, %v3775_v22  ;;  %v3020_v5 = vadd.f32 %v6519_v53, %v2981_v41  ;;  %v4618_v56 = vpop.f32.mrb[200].mxu1  ;;  %v2982_v21 = vmax.f32 %v6362_v40, %v2864_v11  ;;  %v4507_v6 = vpop.f32.mrb[201].mxu0 }
 0x297   : > { %v4619_v38 = vpop.f32.mrb[201].mxu1  ;;  %v4508_v29 = vadd.f32 %v4507_v6, %v4506_v26  ;;  %v4509_v49 = vpop.f32.mrb[202].mxu0 }
 0x298   : > { %v3052_v45 = vmax.f32 %v3020_v5, 0.0  ;;  %v4620_v37 = vadd.f32 %v4619_v38, %v4618_v56  ;;  %v4621_v28 = vpop.f32.mrb[202].mxu1  ;;  %v3021_v30 = vadd.f32 %v6519_v53, %v2982_v21  ;;  %v4510_v55 = vpop.f32.mrb[203].mxu0 }
 0x299   : > { %v4622_v39 = vpop.f32.mrb[203].mxu1  ;;  %v4511_v50 = vadd.f32 %v4510_v55, %v4509_v49 }
 0x29a   : > { %v3776_v9 = vpack.c.bf16 %v3052_v45, %v3052_v45  ;;  %v2869_v16 = vadd.f32 %v4620_v37, %v4508_v29  ;;  %v4623_v43 = vadd.f32 %v4622_v39, %v4621_v28  ;;  %v3053_v63 = vmax.f32 %v3021_v30, 0.0 }
 0x29c   : > { %3213 = vst.msk [vmem:[%s6528_s10 + $0x8] sm:$0xf] %vm3210_vm0, %v3776_v9  ;;  %v2983_v40 = vmax.f32 %v6369_v13, %v2869_v16  ;;  %v2872_v19 = vadd.f32 %v4623_v43, %v4511_v50  ;;  %v3777_v8 = vpack.c.bf16 %v3053_v63, %v3053_v63 }
 0x29d   : > { %v4512_v46 = vpop.f32.mrb[204].mxu0 }
 0x29e   : > { %v3022_v47 = vadd.f32 %v6519_v53, %v2983_v40  ;;  %v2984_v62 = vmax.f32 %v6910_v27, %v2872_v19  ;;  %v4624_v12 = vpop.f32.mrb[204].mxu1  ;;  %3214 = vst.msk [vmem:[%s6528_s10 + $0xc] sm:$0xf] %vm3210_vm0, %v3777_v8  ;;  %v4513_v0 = vpop.f32.mrb[205].mxu0 }
 0x29f   : > { %v4625_v54 = vpop.f32.mrb[205].mxu1  ;;  %v4514_v24 = vadd.f32 %v4513_v0, %v4512_v46  ;;  %v4515_v13 = vpop.f32.mrb[206].mxu0 }
 0x2a0   : > { %v3054_v35 = vmax.f32 %v3022_v47, 0.0  ;;  %v3023_v4 = vadd.f32 %v6519_v53, %v2984_v62  ;;  %v4626_v7 = vadd.f32 %v4625_v54, %v4624_v12  ;;  %v4627_v22 = vpop.f32.mrb[206].mxu1  ;;  %v4516_v41 = vpop.f32.mrb[207].mxu0 }
 0x2a1   : > { %v4628_v11 = vpop.f32.mrb[207].mxu1  ;;  %v4517_v21 = vadd.f32 %v4516_v41, %v4515_v13 }
 0x2a2   : > { %v3778_v5 = vpack.c.bf16 %v3054_v35, %v3054_v35  ;;  %v3055_v26 = vmax.f32 %v3023_v4, 0.0  ;;  %v2877_v56 = vadd.f32 %v4626_v7, %v4514_v24  ;;  %v4629_v6 = vadd.f32 %v4628_v11, %v4627_v22 }
 0x2a4   : > { %3215 = vst.msk [vmem:[%s6528_s10 + $0x10] sm:$0xf] %vm3210_vm0, %v3778_v5  ;;  %v3779_v38 = vpack.c.bf16 %v3055_v26, %v3055_v26  ;;  %v2985_v45 = vmax.f32 %v6383_v57, %v2877_v56  ;;  %v2880_v29 = vadd.f32 %v4629_v6, %v4517_v21 }
 0x2a5   : > { %v4518_v49 = vpop.f32.mrb[208].mxu0 }
 0x2a6   : > { %3216 = vst.msk [vmem:[%s6528_s10 + $0x14] sm:$0xf] %vm3210_vm0, %v3779_v38  ;;  %v3024_v37 = vadd.f32 %v6519_v53, %v2985_v45  ;;  %v4630_v28 = vpop.f32.mrb[208].mxu1  ;;  %v2986_v30 = vmax.f32 %v6390_v36, %v2880_v29  ;;  %v4519_v55 = vpop.f32.mrb[209].mxu0 }
 0x2a7   : > { %v4631_v39 = vpop.f32.mrb[209].mxu1  ;;  %v4520_v16 = vadd.f32 %v4519_v55, %v4518_v49  ;;  %v4521_v43 = vpop.f32.mrb[210].mxu0 }
 0x2a8   : > { %v3056_v9 = vmax.f32 %v3024_v37, 0.0  ;;  %v4632_v50 = vadd.f32 %v4631_v39, %v4630_v28  ;;  %v4633_v63 = vpop.f32.mrb[210].mxu1  ;;  %v3025_v40 = vadd.f32 %v6519_v53, %v2986_v30  ;;  %v4522_v57 = vpop.f32.mrb[211].mxu0 }
 0x2a9   : > { %v4634_v19 = vpop.f32.mrb[211].mxu1  ;;  %v4523_v27 = vadd.f32 %v4522_v57, %v4521_v43 }
 0x2aa   : > { %v3780_v8 = vpack.c.bf16 %v3056_v9, %v3056_v9  ;;  %v2885_v47 = vadd.f32 %v4632_v50, %v4520_v16  ;;  %v4635_v62 = vadd.f32 %v4634_v19, %v4633_v63  ;;  %v3057_v46 = vmax.f32 %v3025_v40, 0.0 }
 0x2ac   : > { %3217 = vst.msk [vmem:[%s6528_s10 + $0x18] sm:$0xf] %vm3210_vm0, %v3780_v8  ;;  %v2987_v36 = vmax.f32 %v6397_v18, %v2885_v47  ;;  %v2888_v12 = vadd.f32 %v4635_v62, %v4523_v27  ;;  %v3781_v0 = vpack.c.bf16 %v3057_v46, %v3057_v46 }
 0x2ad   : > { %v4524_v4 = vpop.f32.mrb[212].mxu0 }
 0x2ae   : > { %v3026_v54 = vadd.f32 %v6519_v53, %v2987_v36  ;;  %v2988_v35 = vmax.f32 %v6402_v10, %v2888_v12  ;;  %v4636_v24 = vpop.f32.mrb[212].mxu1  ;;  %3218 = vst.msk [vmem:[%s6528_s10 + $0x1c] sm:$0xf] %vm3210_vm0, %v3781_v0  ;;  %v4525_v7 = vpop.f32.mrb[213].mxu0 }
 0x2af   : > { %v4637_v13 = vpop.f32.mrb[213].mxu1  ;;  %v4526_v11 = vadd.f32 %v4525_v7, %v4524_v4  ;;  %v4527_v18 = vpop.f32.mrb[214].mxu0 }
 0x2b0   : > { %v3058_v22 = vmax.f32 %v3026_v54, 0.0  ;;  %v3027_v41 = vadd.f32 %v6519_v53, %v2988_v35  ;;  %v4638_v5 = vadd.f32 %v4637_v13, %v4636_v24  ;;  %v4639_v26 = vpop.f32.mrb[214].mxu1  ;;  %v4528_v56 = vpop.f32.mrb[215].mxu0 }
 0x2b1   : > { %v4640_v21 = vpop.f32.mrb[215].mxu1  ;;  %v4529_v45 = vadd.f32 %v4528_v56, %v4527_v18 }
 0x2b2   : > { %v3782_v6 = vpack.c.bf16 %v3058_v22, %v3058_v22  ;;  %v3059_v38 = vmax.f32 %v3027_v41, 0.0  ;;  %v2893_v10 = vadd.f32 %v4638_v5, %v4526_v11  ;;  %v4641_v29 = vadd.f32 %v4640_v21, %v4639_v26 }
 0x2b4   : > { %3219 = vst.msk [vmem:[%s6528_s10 + $0x20] sm:$0xf] %vm3210_vm0, %v3782_v6  ;;  %v3783_v37 = vpack.c.bf16 %v3059_v38, %v3059_v38  ;;  %v2989_v49 = vmax.f32 %v6407_v2, %v2893_v10  ;;  %v2896_v28 = vadd.f32 %v4641_v29, %v4529_v45 }
 0x2b5   : > { %v4530_v55 = vpop.f32.mrb[216].mxu0 }
 0x2b6   : > { %3220 = vst.msk [vmem:[%s6528_s10 + $0x24] sm:$0xf] %vm3210_vm0, %v3783_v37  ;;  %v3028_v30 = vadd.f32 %v6519_v53, %v2989_v49  ;;  %v4642_v39 = vpop.f32.mrb[216].mxu1  ;;  %v2990_v9 = vmax.f32 %v6412_v25, %v2896_v28  ;;  %v4531_v16 = vpop.f32.mrb[217].mxu0 }
 0x2b7   : > { %v4643_v50 = vpop.f32.mrb[217].mxu1  ;;  %v4532_v63 = vadd.f32 %v4531_v16, %v4530_v55  ;;  %v4533_v57 = vpop.f32.mrb[218].mxu0 }
 0x2b8   : > { %v3060_v43 = vmax.f32 %v3028_v30, 0.0  ;;  %v4644_v40 = vadd.f32 %v4643_v50, %v4642_v39  ;;  %v4645_v19 = vpop.f32.mrb[218].mxu1  ;;  %v3029_v8 = vadd.f32 %v6519_v53, %v2990_v9  ;;  %v4534_v2 = vpop.f32.mrb[219].mxu0 }
 0x2b9   : > { %v4646_v47 = vpop.f32.mrb[219].mxu1  ;;  %v4535_v46 = vadd.f32 %v4534_v2, %v4533_v57 }
 0x2ba   : > { %v3784_v27 = vpack.c.bf16 %v3060_v43, %v3060_v43  ;;  %v2901_v62 = vadd.f32 %v4644_v40, %v4532_v63  ;;  %v4647_v36 = vadd.f32 %v4646_v47, %v4645_v19  ;;  %v3061_v12 = vmax.f32 %v3029_v8, 0.0 }
 0x2bc   : > { %3221 = vst.msk [vmem:[%s6528_s10 + $0x28] sm:$0xf] %vm3210_vm0, %v3784_v27  ;;  %v2991_v25 = vmax.f32 %v6417_v3, %v2901_v62  ;;  %v2904_v0 = vadd.f32 %v4647_v36, %v4535_v46  ;;  %v3785_v54 = vpack.c.bf16 %v3061_v12, %v3061_v12 }
 0x2bd   : > { %v4536_v24 = vpop.f32.mrb[220].mxu0 }
 0x2be   : > { %v3030_v35 = vadd.f32 %v6519_v53, %v2991_v25  ;;  %v2992_v4 = vmax.f32 %v6422_v44, %v2904_v0  ;;  %v4648_v7 = vpop.f32.mrb[220].mxu1  ;;  %3222 = vst.msk [vmem:[%s6528_s10 + $0x2c] sm:$0xf] %vm3210_vm0, %v3785_v54  ;;  %v4537_v13 = vpop.f32.mrb[221].mxu0 }
 0x2bf   : > { %v4649_v22 = vpop.f32.mrb[221].mxu1  ;;  %v4538_v5 = vadd.f32 %v4537_v13, %v4536_v24  ;;  %v4539_v3 = vpop.f32.mrb[222].mxu0 }
 0x2c0   : > { %v3062_v41 = vmax.f32 %v3030_v35, 0.0  ;;  %v3031_v11 = vadd.f32 %v6519_v53, %v2992_v4  ;;  %v4650_v18 = vadd.f32 %v4649_v22, %v4648_v7  ;;  %v4651_v26 = vpop.f32.mrb[222].mxu1  ;;  %v4540_v56 = vpop.f32.mrb[223].mxu0 }
 0x2c1   : > { %v4652_v21 = vpop.f32.mrb[223].mxu1  ;;  %v4541_v10 = vadd.f32 %v4540_v56, %v4539_v3 }
 0x2c2   : > { %v3786_v6 = vpack.c.bf16 %v3062_v41, %v3062_v41  ;;  %v3063_v38 = vmax.f32 %v3031_v11, 0.0  ;;  %v2909_v44 = vadd.f32 %v4650_v18, %v4538_v5  ;;  %v4653_v45 = vadd.f32 %v4652_v21, %v4651_v26 }
 0x2c4   : > { %3223 = vst.msk [vmem:[%s6528_s10 + $0x30] sm:$0xf] %vm3210_vm0, %v3786_v6  ;;  %v3787_v29 = vpack.c.bf16 %v3063_v38, %v3063_v38  ;;  %v2993_v37 = vmax.f32 %v6427_v34, %v2909_v44  ;;  %v2912_v49 = vadd.f32 %v4653_v45, %v4541_v10 }
 0x2c5   : > { %v4542_v30 = vpop.f32.mrb[224].mxu0 }
 0x2c6   : > { %3224 = vst.msk [vmem:[%s6528_s10 + $0x34] sm:$0xf] %vm3210_vm0, %v3787_v29  ;;  %v3032_v28 = vadd.f32 %v6519_v53, %v2993_v37  ;;  %v4654_v55 = vpop.f32.mrb[224].mxu1  ;;  %v2994_v39 = vmax.f32 %v6432_v14, %v2912_v49  ;;  %v4543_v9 = vpop.f32.mrb[225].mxu0 }
 0x2c7   : > { %v4655_v16 = vpop.f32.mrb[225].mxu1  ;;  %v4544_v43 = vadd.f32 %v4543_v9, %v4542_v30  ;;  %v4545_v40 = vpop.f32.mrb[226].mxu0 }
 0x2c8   : > { %v3064_v50 = vmax.f32 %v3032_v28, 0.0  ;;  %v4656_v63 = vadd.f32 %v4655_v16, %v4654_v55  ;;  %v4657_v57 = vpop.f32.mrb[226].mxu1  ;;  %v3033_v19 = vadd.f32 %v6519_v53, %v2994_v39  ;;  %v4546_v34 = vpop.f32.mrb[227].mxu0 }
 0x2c9   : > { %v4658_v8 = vpop.f32.mrb[227].mxu1  ;;  %v4547_v27 = vadd.f32 %v4546_v34, %v4545_v40 }
 0x2ca   : > { %v3788_v2 = vpack.c.bf16 %v3064_v50, %v3064_v50  ;;  %v2917_v47 = vadd.f32 %v4656_v63, %v4544_v43  ;;  %v4659_v62 = vadd.f32 %v4658_v8, %v4657_v57  ;;  %v3065_v46 = vmax.f32 %v3033_v19, 0.0 }
 0x2cc   : > { %3225 = vst.msk [vmem:[%s6528_s10 + $0x38] sm:$0xf] %vm3210_vm0, %v3788_v2  ;;  %v2995_v14 = vmax.f32 %v6437_v23, %v2917_v47  ;;  %v2920_v36 = vadd.f32 %v4659_v62, %v4547_v27  ;;  %v3789_v12 = vpack.c.bf16 %v3065_v46, %v3065_v46 }
 0x2cd   : > { %v4548_v54 = vpop.f32.mrb[228].mxu0 }
 0x2ce   : > { %v3034_v25 = vadd.f32 %v6519_v53, %v2995_v14  ;;  %v2996_v0 = vmax.f32 %v6442_v17, %v2920_v36  ;;  %v4660_v35 = vpop.f32.mrb[228].mxu1  ;;  %3226 = vst.msk [vmem:[%s6528_s10 + $0x3c] sm:$0xf] %vm3210_vm0, %v3789_v12  ;;  %v4549_v4 = vpop.f32.mrb[229].mxu0 }
 0x2cf   : > { %v4661_v24 = vpop.f32.mrb[229].mxu1  ;;  %v4550_v22 = vadd.f32 %v4549_v4, %v4548_v54  ;;  %v4551_v23 = vpop.f32.mrb[230].mxu0 }
 0x2d0   : > { %v3066_v7 = vmax.f32 %v3034_v25, 0.0  ;;  %v3035_v13 = vadd.f32 %v6519_v53, %v2996_v0  ;;  %v4662_v41 = vadd.f32 %v4661_v24, %v4660_v35  ;;  %v4663_v11 = vpop.f32.mrb[230].mxu1  ;;  %v4552_v5 = vpop.f32.mrb[231].mxu0 }
 0x2d1   : > { %v4664_v18 = vpop.f32.mrb[231].mxu1  ;;  %v4553_v56 = vadd.f32 %v4552_v5, %v4551_v23 }
 0x2d2   : > { %v3790_v3 = vpack.c.bf16 %v3066_v7, %v3066_v7  ;;  %v3067_v26 = vmax.f32 %v3035_v13, 0.0  ;;  %v2925_v17 = vadd.f32 %v4662_v41, %v4550_v22  ;;  %v4665_v21 = vadd.f32 %v4664_v18, %v4663_v11 }
 0x2d4   : > { %3227 = vst.msk [vmem:[%s6528_s10 + $0x40] sm:$0xf] %vm3210_vm0, %v3790_v3  ;;  %v3791_v6 = vpack.c.bf16 %v3067_v26, %v3067_v26  ;;  %v2997_v38 = vmax.f32 %v6447_v31, %v2925_v17  ;;  %v2928_v44 = vadd.f32 %v4665_v21, %v4553_v56 }
 0x2d5   : > { %v4554_v45 = vpop.f32.mrb[232].mxu0 }
 0x2d6   : > { %3228 = vst.msk [vmem:[%s6528_s10 + $0x44] sm:$0xf] %vm3210_vm0, %v3791_v6  ;;  %v3036_v10 = vadd.f32 %v6519_v53, %v2997_v38  ;;  %v4666_v29 = vpop.f32.mrb[232].mxu1  ;;  %v2998_v37 = vmax.f32 %v6452_v48, %v2928_v44  ;;  %v4555_v49 = vpop.f32.mrb[233].mxu0 }
 0x2d7   : > { %v4667_v28 = vpop.f32.mrb[233].mxu1  ;;  %v4556_v55 = vadd.f32 %v4555_v49, %v4554_v45  ;;  %v4557_v9 = vpop.f32.mrb[234].mxu0 }
 0x2d8   : > { %v3068_v30 = vmax.f32 %v3036_v10, 0.0  ;;  %v4668_v39 = vadd.f32 %v4667_v28, %v4666_v29  ;;  %v4669_v16 = vpop.f32.mrb[234].mxu1  ;;  %v3037_v50 = vadd.f32 %v6519_v53, %v2998_v37  ;;  %v4558_v31 = vpop.f32.mrb[235].mxu0 }
 0x2d9   : > { %v4670_v43 = vpop.f32.mrb[235].mxu1  ;;  %v4559_v57 = vadd.f32 %v4558_v31, %v4557_v9 }
 0x2da   : > { %v3792_v63 = vpack.c.bf16 %v3068_v30, %v3068_v30  ;;  %v2933_v40 = vadd.f32 %v4668_v39, %v4556_v55  ;;  %v4671_v19 = vadd.f32 %v4670_v43, %v4669_v16  ;;  %v3069_v34 = vmax.f32 %v3037_v50, 0.0 }
 0x2dc   : > { %3229 = vst.msk [vmem:[%s6528_s10 + $0x48] sm:$0xf] %vm3210_vm0, %v3792_v63  ;;  %v2999_v48 = vmax.f32 %v6457_v1, %v2933_v40  ;;  %v2936_v8 = vadd.f32 %v4671_v19, %v4559_v57  ;;  %v3793_v2 = vpack.c.bf16 %v3069_v34, %v3069_v34 }
 0x2dd   : > { %v4560_v62 = vpop.f32.mrb[236].mxu0 }
 0x2de   : > { %v3038_v47 = vadd.f32 %v6519_v53, %v2999_v48  ;;  %v3000_v27 = vmax.f32 %v6462_v15, %v2936_v8  ;;  %v4672_v46 = vpop.f32.mrb[236].mxu1  ;;  %3230 = vst.msk [vmem:[%s6528_s10 + $0x4c] sm:$0xf] %vm3210_vm0, %v3793_v2  ;;  %v4561_v14 = vpop.f32.mrb[237].mxu0 }
 0x2df   : > { %v4673_v36 = vpop.f32.mrb[237].mxu1  ;;  %v4562_v0 = vadd.f32 %v4561_v14, %v4560_v62  ;;  %v4563_v1 = vpop.f32.mrb[238].mxu0 }
 0x2e0   : > { %v3070_v12 = vmax.f32 %v3038_v47, 0.0  ;;  %v3039_v25 = vadd.f32 %v6519_v53, %v3000_v27  ;;  %v4674_v54 = vadd.f32 %v4673_v36, %v4672_v46  ;;  %v4675_v35 = vpop.f32.mrb[238].mxu1  ;;  %v4564_v4 = vpop.f32.mrb[239].mxu0 }
 0x2e1   : > { %v4676_v24 = vpop.f32.mrb[239].mxu1  ;;  %v4565_v22 = vadd.f32 %v4564_v4, %v4563_v1 }
 0x2e2   : > { %v3794_v7 = vpack.c.bf16 %v3070_v12, %v3070_v12  ;;  %v3071_v13 = vmax.f32 %v3039_v25, 0.0  ;;  %v2941_v15 = vadd.f32 %v4674_v54, %v4562_v0  ;;  %v4677_v41 = vadd.f32 %v4676_v24, %v4675_v35 }
 0x2e4   : > { %3231 = vst.msk [vmem:[%s6528_s10 + $0x50] sm:$0xf] %vm3210_vm0, %v3794_v7  ;;  %v3795_v23 = vpack.c.bf16 %v3071_v13, %v3071_v13  ;;  %v3001_v11 = vmax.f32 %v6467_v32, %v2941_v15  ;;  %v2944_v5 = vadd.f32 %v4677_v41, %v4565_v22 }
 0x2e5   : > { %v4566_v3 = vpop.f32.mrb[240].mxu0 }
 0x2e6   : > { %3232 = vst.msk [vmem:[%s6528_s10 + $0x54] sm:$0xf] %vm3210_vm0, %v3795_v23  ;;  %v3040_v18 = vadd.f32 %v6519_v53, %v3001_v11  ;;  %v4678_v26 = vpop.f32.mrb[240].mxu1  ;;  %v3002_v17 = vmax.f32 %v6472_v60, %v2944_v5  ;;  %v4567_v56 = vpop.f32.mrb[241].mxu0 }
 0x2e7   : > { %v4679_v21 = vpop.f32.mrb[241].mxu1  ;;  %v4568_v38 = vadd.f32 %v4567_v56, %v4566_v3  ;;  %v4569_v10 = vpop.f32.mrb[242].mxu0 }
 0x2e8   : > { %v3072_v6 = vmax.f32 %v3040_v18, 0.0  ;;  %v4680_v44 = vadd.f32 %v4679_v21, %v4678_v26  ;;  %v4681_v45 = vpop.f32.mrb[242].mxu1  ;;  %v3041_v29 = vadd.f32 %v6519_v53, %v3002_v17  ;;  %v4570_v32 = vpop.f32.mrb[243].mxu0 }
 0x2e9   : > { %v4682_v37 = vpop.f32.mrb[243].mxu1  ;;  %v4571_v30 = vadd.f32 %v4570_v32, %v4569_v10 }
 0x2ea   : > { %v3796_v49 = vpack.c.bf16 %v3072_v6, %v3072_v6  ;;  %v2949_v28 = vadd.f32 %v4680_v44, %v4568_v38  ;;  %v4683_v55 = vadd.f32 %v4682_v37, %v4681_v45  ;;  %v3073_v39 = vmax.f32 %v3041_v29, 0.0 }
 0x2ec   : > { %3233 = vst.msk [vmem:[%s6528_s10 + $0x58] sm:$0xf] %vm3210_vm0, %v3796_v49  ;;  %v3003_v60 = vmax.f32 %v6477_v52, %v2949_v28  ;;  %v2952_v9 = vadd.f32 %v4683_v55, %v4571_v30  ;;  %v3797_v16 = vpack.c.bf16 %v3073_v39, %v3073_v39 }
 0x2ed   : > { %v4572_v43 = vpop.f32.mrb[244].mxu0 }
 0x2ee   : > { %v3042_v50 = vadd.f32 %v6519_v53, %v3003_v60  ;;  %v3004_v31 = vmax.f32 %v6482_v51, %v2952_v9  ;;  %v4684_v63 = vpop.f32.mrb[244].mxu1  ;;  %3234 = vst.msk [vmem:[%s6528_s10 + $0x5c] sm:$0xf] %vm3210_vm0, %v3797_v16  ;;  %v4573_v40 = vpop.f32.mrb[245].mxu0 }
 0x2ef   : > { %v4685_v57 = vpop.f32.mrb[245].mxu1  ;;  %v4574_v48 = vadd.f32 %v4573_v40, %v4572_v43  ;;  %v4575_v52 = vpop.f32.mrb[246].mxu0 }
 0x2f0   : > { %v3074_v19 = vmax.f32 %v3042_v50, 0.0  ;;  %v3043_v34 = vadd.f32 %v6519_v53, %v3004_v31  ;;  %v4686_v8 = vadd.f32 %v4685_v57, %v4684_v63  ;;  %v4687_v2 = vpop.f32.mrb[246].mxu1  ;;  %v4576_v47 = vpop.f32.mrb[247].mxu0 }
 0x2f1   : > { %v4688_v27 = vpop.f32.mrb[247].mxu1  ;;  %v4577_v14 = vadd.f32 %v4576_v47, %v4575_v52 }
 0x2f2   : > { %v3798_v62 = vpack.c.bf16 %v3074_v19, %v3074_v19  ;;  %v3075_v46 = vmax.f32 %v3043_v34, 0.0  ;;  %v2957_v51 = vadd.f32 %v4686_v8, %v4574_v48  ;;  %v4689_v36 = vadd.f32 %v4688_v27, %v4687_v2 }
 0x2f4   : > { %3235 = vst.msk [vmem:[%s6528_s10 + $0x60] sm:$0xf] %vm3210_vm0, %v3798_v62  ;;  %v3799_v12 = vpack.c.bf16 %v3075_v46, %v3075_v46  ;;  %v3005_v25 = vmax.f32 %v6487_v59, %v2957_v51  ;;  %v2960_v0 = vadd.f32 %v4689_v36, %v4577_v14 }
 0x2f5   : > { %v4578_v1 = vpop.f32.mrb[248].mxu0 }
 0x2f6   : > { %3236 = vst.msk [vmem:[%s6528_s10 + $0x64] sm:$0xf] %vm3210_vm0, %v3799_v12  ;;  %v3044_v54 = vadd.f32 %v6519_v53, %v3005_v25  ;;  %v4690_v35 = vpop.f32.mrb[248].mxu1  ;;  %v3006_v4 = vmax.f32 %v6492_v42, %v2960_v0  ;;  %v4579_v24 = vpop.f32.mrb[249].mxu0 }
 0x2f7   : > { %v4691_v7 = vpop.f32.mrb[249].mxu1  ;;  %v4580_v15 = vadd.f32 %v4579_v24, %v4578_v1  ;;  %v4581_v41 = vpop.f32.mrb[250].mxu0 }
 0x2f8   : > { %v3076_v13 = vmax.f32 %v3044_v54, 0.0  ;;  %v4692_v22 = vadd.f32 %v4691_v7, %v4690_v35  ;;  %v4693_v23 = vpop.f32.mrb[250].mxu1  ;;  %v3045_v11 = vadd.f32 %v6519_v53, %v3006_v4  ;;  %v4582_v59 = vpop.f32.mrb[251].mxu0 }
 0x2f9   : > { %v4694_v5 = vpop.f32.mrb[251].mxu1  ;;  %v4583_v26 = vadd.f32 %v4582_v59, %v4581_v41 }
 0x2fa   : > { %v3800_v18 = vpack.c.bf16 %v3076_v13, %v3076_v13  ;;  %v2965_v3 = vadd.f32 %v4692_v22, %v4580_v15  ;;  %v4695_v17 = vadd.f32 %v4694_v5, %v4693_v23  ;;  %v3077_v56 = vmax.f32 %v3045_v11, 0.0 }
 0x2fc   : > { %3237 = vst.msk [vmem:[%s6528_s10 + $0x68] sm:$0xf] %vm3210_vm0, %v3800_v18  ;;  %v3007_v42 = vmax.f32 %v6497_v58, %v2965_v3  ;;  %v2968_v21 = vadd.f32 %v4695_v17, %v4583_v26  ;;  %v3801_v6 = vpack.c.bf16 %v3077_v56, %v3077_v56 }
 0x2fd   : > { %v4584_v10 = vpop.f32.mrb[252].mxu0 }
 0x2fe   : > { %v3046_v38 = vadd.f32 %v6519_v53, %v3007_v42  ;;  %v3008_v44 = vmax.f32 %v6502_v20, %v2968_v21  ;;  %v4696_v45 = vpop.f32.mrb[252].mxu1  ;;  %3238 = vst.msk [vmem:[%s6528_s10 + $0x6c] sm:$0xf] %vm3210_vm0, %v3801_v6  ;;  %v4585_v29 = vpop.f32.mrb[253].mxu0 }
 0x2ff   : > { %v4697_v32 = vpop.f32.mrb[253].mxu1  ;;  %v4586_v28 = vadd.f32 %v4585_v29, %v4584_v10  ;;  %v4587_v58 = vpop.f32.mrb[254].mxu0 }
 0x300   : > { %v3078_v37 = vmax.f32 %v3046_v38, 0.0  ;;  %v3047_v49 = vadd.f32 %v6519_v53, %v3008_v44  ;;  %v4698_v30 = vadd.f32 %v4697_v32, %v4696_v45  ;;  %v4699_v55 = vpop.f32.mrb[254].mxu1  ;;  %v4588_v39 = vpop.f32.mrb[255].mxu0 }
 0x301   : > { %v4700_v60 = vpop.f32.mrb[255].mxu1  ;;  %v4589_v50 = vadd.f32 %v4588_v39, %v4587_v58 }
 0x302   : > { %v3802_v9 = vpack.c.bf16 %v3078_v37, %v3078_v37  ;;  %v3079_v20 = vmax.f32 %v3047_v49, 0.0  ;;  %v2973_v16 = vadd.f32 %v4698_v30, %v4586_v28  ;;  %v4701_v31 = vadd.f32 %v4700_v60, %v4699_v55 }
 0x304   : > { %3239 = vst.msk [vmem:[%s6528_s10 + $0x70] sm:$0xf] %vm3210_vm0, %v3802_v9  ;;  %v3803_v43 = vpack.c.bf16 %v3079_v20, %v3079_v20  ;;  %v3009_v63 = vmax.f32 %v6507_v33, %v2973_v16  ;;  %v2976_v40 = vadd.f32 %v4701_v31, %v4589_v50 }
 0x306   : > { %3240 = vst.msk [vmem:[%s6528_s10 + $0x74] sm:$0xf] %vm3210_vm0, %v3803_v43  ;;  %v3048_v57 = vadd.f32 %v6519_v53, %v3009_v63  ;;  %v3010_v19 = vmax.f32 %v6512_v61, %v2976_v40 }
 0x308   : > { %v3080_v34 = vmax.f32 %v3048_v57, 0.0  ;;  %v3049_v48 = vadd.f32 %v6519_v53, %v3010_v19 }
 0x30a   : > { %v3804_v8 = vpack.c.bf16 %v3080_v34, %v3080_v34  ;;  %v3081_v52 = vmax.f32 %v3049_v48, 0.0 }
 0x30c   : > { %3241 = vst.msk [vmem:[%s6528_s10 + $0x78] sm:$0xf] %vm3210_vm0, %v3804_v8  ;;  %v3805_v2 = vpack.c.bf16 %v3081_v52, %v3081_v52 }
 0x30e   : > { %3242 = vst.msk [vmem:[%s6528_s10 + $0x7c] sm:$0xf] %vm3210_vm0, %v3805_v2 }
 0x30f PF: > { %s13_s16 = sadd.s32 1, %s5068_s16   ;;  %s6911_s12 = smov %s5060_s14 }
 0x310   : > { %p10_p7 = scmp.ge.s32.totalorder %s13_s16, 10   ;;  %s6912_s13 = smov %s5064_s15 }
 0x311   : > { %s6913_s14 = smov %s6916_s17  ;;  %s6914_s15 = smov %s6920_s18 }
 0x312   :  { %12 = sbr.rel (!%p10_p7) target bundleno = 3 (0x3), region = 65 }

// kernel: net_forward.5
= control target key start
LH: loop header
LB: loop body
LE: loop exit
PB: predicated region body
PF: predicated region fallthrough
CT: control target
= control target key end

     0   :  { %8 = vsyncpa [#allocation4], 0  ;;  %s8014_s12 = smov 0   ;;  %s8016_s13 = smov 0   ;;  %s8723_s0 = inlined_call_operand.vmem [shape: bf16[2,65536], index: 0, kind: input, shape index: {}]   ;;  %s8724_s1 = inlined_call_operand.vmem [shape: bf16[65536,128], index: 1, kind: input, shape index: {}]   ;;  %s8725_s2 = inlined_call_operand.vmem [shape: f32[1,128], index: 2, kind: input, shape index: {}]   ;;  %s8726_s3 = inlined_call_operand.hbm [shape: f32[2,128], index: 3, kind: output, shape index: {}]  }
   0x1   :  { %s8018_s14 = smov 0  }
   0x2 LB: > { %s6154_s15 = sadd.s32 4294967295, %s7989_s14   ;;  %s23_s16 = sadd.s32 1, %s7985_s13  ;;  %s7989_s14 = sphi %s8018_s14, %s14_s14   ;;  %s7985_s13 = sphi %s8016_s13, %s8729_s13   ;;  %s7981_s12 = sphi %s8014_s12, %s8728_s12  }
   0x3   : > { %p24_p0 = scmp.ge.s32.totalorder %s23_s16, 8  ;;  %p6157_p1 = scmp.ge.s32.totalorder %s7989_s14, 1 }
   0x4   : > { %p167_p2 = scmp.lt.s32.totalorder %s7989_s14, 9 }
   0x5   : > { %s8731_s16 = smov (%p24_p0, %s23_s16), 0 }
   0x6   : > { %p168_p3 = pnand %p6157_p1, %p167_p2 }
   0x7   : > { %s6158_s17 = sshll.u32 (!%p168_p3), %s7981_s12, 6  ;;  %s6159_s18 = sshll.u32 (!%p168_p3), %s7981_s12, 10 }
   0x8   : > { %171 = sbr.rel (%p168_p3) target bundleno = 795 (0x31b), region = 32  ;;  %p197_p4 = scmp.lt.s32.totalorder (!%p168_p3), %s6158_s17, 511 }
   0x9   : > { %p204_p5 = scmp.lt.s32.totalorder (!%p168_p3), %s6159_s18, 8191  ;;  %p6161_p6 = scmp.ne.s32.totalorder (!%p168_p3), %s7981_s12, 0 }
   0xf   : > { %s8733_s17 = smov (!%p197_p4, %s6158_s17), 511  ;;  %s8735_s18 = smov (!%p204_p5, %s6159_s18), 8191 }
  0x10   : > { %s8040_s21 = scalar_lea.vmem %s8723_s0, %s8733_s17  ;;  %s6160_s22 = sshll.u32 %s8735_s18, 2  ;;  %v7991_v0 = vmov (!%p6161_p6), 0.0  }
  0x11   : > { %s8045_s25 = scalar_lea.vmem %s8724_s1, %s6160_s22  ;;  %213 = sbr.rel (%p6161_p6) target bundleno = 24 (0x18), region = 36  ;;  %214 = vst [vmem:[#allocation2] sm:$0x3] (!%p6161_p6), %v7991_v0 }
  0x18 PF: > { %v7417_v1 = vld [vmem:[%s8045_s25 + $0x40] sm:$0xff]   ;;  %v7421_v5 = vld [vmem:[%s8045_s25 + $0x48] sm:$0xff]   ;;  %v7425_v9 = vld [vmem:[%s8045_s25 + $0x50] sm:$0xff]   ;;  %v1260_v29 = vlaneseq  ;;  %v7992_v37 = vmov 1966171168   ;;  %p6674_p7 = scmp.ne.s32.totalorder %s7981_s12, 7 }
  0x19   : > { %v7418_v2 = vld [vmem:[%s8045_s25 + $0xc0] sm:$0xff]   ;;  %6680 = vmatprep.subr.bf16.mxu0 %v7417_v1  ;;  %v7422_v6 = vld [vmem:[%s8045_s25 + $0xc8] sm:$0xff]   ;;  %v7426_v10 = vld [vmem:[%s8045_s25 + $0xd0] sm:$0xff]   ;;  %v1258_v38 = vunpack.c.l.s4 %v7992_v37 }
  0x1a   : > { %v7419_v3 = vld [vmem:[%s8045_s25] sm:$0xff]   ;;  %6702 = vmatprep.subr.bf16.mxu1 %v7418_v2  ;;  %v7423_v7 = vld [vmem:[%s8045_s25 + $0x8] sm:$0xff]   ;;  %v7427_v11 = vld [vmem:[%s8045_s25 + $0x10] sm:$0xff]   ;;  %v1261_v34 = vshrl.u32 %v1260_v29, 7 }
  0x1b   : > { %v7420_v4 = vld [vmem:[%s8045_s25 + $0x80] sm:$0xff]   ;;  %6681 = vmatpush3.bf16.msra.mxu0 %v7419_v3  ;;  %v7424_v8 = vld [vmem:[%s8045_s25 + $0x88] sm:$0xff]   ;;  %v7428_v12 = vld [vmem:[%s8045_s25 + $0x90] sm:$0xff]   ;;  %v1259_v41 = vunpack.c.0.s8 %v1258_v38 }
  0x1c   : > { %6703 = vmatpush3.bf16.msra.mxu1 %v7420_v4  ;;  %6682 = vmatprep.subr.bf16.mxu0 %v7421_v5  ;;  %v7429_v13 = vld [vmem:[%s8045_s25 + $0x58] sm:$0xff]   ;;  %v7433_v17 = vld [vmem:[%s8045_s25 + $0x60] sm:$0xff]   ;;  %v7437_v21 = vld [vmem:[%s8045_s25 + $0x68] sm:$0xff]  }
  0x1d   : > { %6704 = vmatprep.subr.bf16.mxu1 %v7422_v6  ;;  %v7430_v14 = vld [vmem:[%s8045_s25 + $0xd8] sm:$0xff]   ;;  %v7434_v18 = vld [vmem:[%s8045_s25 + $0xe0] sm:$0xff]   ;;  %v7438_v22 = vld [vmem:[%s8045_s25 + $0xe8] sm:$0xff]   ;;  %v8083_v42 = vsub.s32 %v1259_v41, %v1261_v34 }
  0x1e   : > { %v7431_v15 = vld [vmem:[%s8045_s25 + $0x18] sm:$0xff]   ;;  %v7435_v19 = vld [vmem:[%s8045_s25 + $0x20] sm:$0xff]   ;;  %v7439_v23 = vld [vmem:[%s8045_s25 + $0x28] sm:$0xff]  }
  0x1f   : > { %6683 = vmatpush3.bf16.msra.mxu0 %v7423_v7  ;;  %v7432_v16 = vld [vmem:[%s8045_s25 + $0x98] sm:$0xff]   ;;  %v7436_v20 = vld [vmem:[%s8045_s25 + $0xa0] sm:$0xff]   ;;  %v7440_v24 = vld [vmem:[%s8045_s25 + $0xa8] sm:$0xff]  }
  0x20   : > { %6705 = vmatpush3.bf16.msra.mxu1 %v7424_v8  ;;  %6684 = vmatprep.subr.bf16.mxu0 %v7425_v9  ;;  %v7441_v25 = vld [vmem:[%s8045_s25 + $0x70] sm:$0xff]   ;;  %v7445_v30 = vld [vmem:[%s8045_s25 + $0x78] sm:$0xff]   ;;  %v216_v35 = vld [vmem:[%s8040_s21] sm:$0xff] }
  0x21   : > { %6706 = vmatprep.subr.bf16.mxu1 %v7426_v10  ;;  %v7442_v26 = vld [vmem:[%s8045_s25 + $0xf0] sm:$0xff]   ;;  %v7446_v31 = vld [vmem:[%s8045_s25 + $0xf8] sm:$0xff]   ;;  %v7450_v36 = vld [vmem:[%s8045_s25 + $0x140] sm:$0xff]   ;;  %v1256_v40 = vcombine.high %v216_v35, %v216_v35  ;;  %v1263_v43 = vrot.slane %v216_v35, %v8083_v42 }
  0x22   : > { %v7443_v27 = vld [vmem:[%s8045_s25 + $0x30] sm:$0xff]   ;;  %v7447_v32 = vld [vmem:[%s8045_s25 + $0x38] sm:$0xff]   ;;  %v7451_v39 = vld [vmem:[%s8045_s25 + $0x1c0] sm:$0xff]  }
  0x23   : > { %6685 = vmatpush3.bf16.msra.mxu0 %v7427_v11  ;;  %v7444_v28 = vld [vmem:[%s8045_s25 + $0xb0] sm:$0xff]   ;;  %v7448_v33 = vld [vmem:[%s8045_s25 + $0xb8] sm:$0xff]   ;;  %v8087_v44 = vrot.slane %v1256_v40, %v8083_v42  ;;  %v1271_v45 = vcombine.high %v1263_v43, %v1263_v43  ;;  %v1279_v46 = vrot.slane %v1263_v43, %v8083_v42  ;;  %v7452_v48 = vld [vmem:[%s8045_s25 + $0x100] sm:$0xff]  }
  0x24   : > { %6707 = vmatpush3.bf16.msra.mxu1 %v7428_v12  ;;  %6686 = vmatprep.subr.bf16.mxu0 %v7429_v13  ;;  %v7453_v50 = vld [vmem:[%s8045_s25 + $0x180] sm:$0xff]   ;;  %v7454_v53 = vld [vmem:[%s8045_s25 + $0x148] sm:$0xff]   ;;  %v7458_v59 = vld [vmem:[%s8045_s25 + $0x150] sm:$0xff]  }
  0x25   : > { %6708 = vmatprep.subr.bf16.mxu1 %v7430_v14  ;;  %v1272_v47 = vcombine.high %v8087_v44, %v8087_v44  ;;  %v1293_v49 = vrot.slane %v1271_v45, %v8083_v42  ;;  %v1301_v52 = vcombine.high %v1279_v46, %v1279_v46  ;;  %v7455_v55 = vld [vmem:[%s8045_s25 + $0x1c8] sm:$0xff]   ;;  %v7459_v60 = vld [vmem:[%s8045_s25 + $0x1d0] sm:$0xff]   ;;  %v7462_v63 = vld [vmem:[%s8045_s25 + $0x158] sm:$0xff]  }
  0x26   : > { %v7456_v56 = vld [vmem:[%s8045_s25 + $0x108] sm:$0xff]   ;;  %v7460_v61 = vld [vmem:[%s8045_s25 + $0x110] sm:$0xff]   ;;  %v7463_v0 = vld [vmem:[%s8045_s25 + $0x1d8] sm:$0xff]  }
  0x27   : > { %6687 = vmatpush3.bf16.msra.mxu0 %v7431_v15  ;;  %v1300_v51 = vrot.slane %v1272_v47, %v8083_v42  ;;  %4816 = vmatprep.mubr.bf16.mxu0 %v1293_v49  ;;  %v1303_v54 = vcombine.high %v1293_v49, %v1293_v49  ;;  %v7457_v58 = vld [vmem:[%s8045_s25 + $0x188] sm:$0xff]   ;;  %v7461_v62 = vld [vmem:[%s8045_s25 + $0x190] sm:$0xff]   ;;  %v7464_v1 = vld [vmem:[%s8045_s25 + $0x118] sm:$0xff]  }
  0x28   : > { %6709 = vmatpush3.bf16.msra.mxu1 %v7432_v16  ;;  %6688 = vmatprep.subr.bf16.mxu0 %v7433_v17  ;;  %v7465_v2 = vld [vmem:[%s8045_s25 + $0x198] sm:$0xff]   ;;  %v7466_v3 = vld [vmem:[%s8045_s25 + $0x160] sm:$0xff]   ;;  %v7470_v7 = vld [vmem:[%s8045_s25 + $0x168] sm:$0xff]  }
  0x29   : > { %6710 = vmatprep.subr.bf16.mxu1 %v7434_v18  ;;  %v1304_v57 = vcombine.high %v1300_v51, %v1300_v51  ;;  %4856 = vmatprep.mubr.bf16.mxu1 %v1303_v54  ;;  %v7467_v4 = vld [vmem:[%s8045_s25 + $0x1e0] sm:$0xff]   ;;  %v7471_v8 = vld [vmem:[%s8045_s25 + $0x1e8] sm:$0xff]   ;;  %v7474_v11 = vld [vmem:[%s8045_s25 + $0x170] sm:$0xff]  }
  0x2a   : > { %v7468_v5 = vld [vmem:[%s8045_s25 + $0x120] sm:$0xff]   ;;  %v7472_v9 = vld [vmem:[%s8045_s25 + $0x128] sm:$0xff]   ;;  %v7475_v12 = vld [vmem:[%s8045_s25 + $0x1f0] sm:$0xff]  }
  0x2b   : > { %6689 = vmatpush3.bf16.msra.mxu0 %v7435_v19  ;;  %v7469_v6 = vld [vmem:[%s8045_s25 + $0x1a0] sm:$0xff]   ;;  %v7473_v10 = vld [vmem:[%s8045_s25 + $0x1a8] sm:$0xff]   ;;  %v7476_v13 = vld [vmem:[%s8045_s25 + $0x130] sm:$0xff]   ;;  %v1286_v19 = vrot.slane %v8087_v44, %v8083_v42 }
  0x2c   : > { %6711 = vmatpush3.bf16.msra.mxu1 %v7436_v20  ;;  %6690 = vmatprep.subr.bf16.mxu0 %v7437_v21  ;;  %v7477_v14 = vld [vmem:[%s8045_s25 + $0x1b0] sm:$0xff]   ;;  %v7478_v15 = vld [vmem:[%s8045_s25 + $0x178] sm:$0xff]   ;;  %v7482_v20 = vld [vmem:[%s8045_s25 + $0x240] sm:$0xff]  }
  0x2d   : > { %6712 = vmatprep.subr.bf16.mxu1 %v7438_v22  ;;  %v7479_v16 = vld [vmem:[%s8045_s25 + $0x1f8] sm:$0xff]   ;;  %v7483_v21 = vld [vmem:[%s8045_s25 + $0x2c0] sm:$0xff]   ;;  %v7490_v29 = vld [vmem:[%s8045_s25 + $0x250] sm:$0xff]  }
  0x2e   : > { %v7480_v17 = vld [vmem:[%s8045_s25 + $0x138] sm:$0xff]   ;;  %v7484_v22 = vld [vmem:[%s8045_s25 + $0x200] sm:$0xff]   ;;  %v7502_v41 = vld [vmem:[%s8045_s25 + $0x268] sm:$0xff]  }
  0x2f   : > { %6691 = vmatpush3.bf16.msra.mxu0 %v7439_v23  ;;  %v7481_v18 = vld [vmem:[%s8045_s25 + $0x1b8] sm:$0xff]   ;;  %v7485_v23 = vld [vmem:[%s8045_s25 + $0x280] sm:$0xff]   ;;  %v7503_v43 = vld [vmem:[%s8045_s25 + $0x2e8] sm:$0xff]  }
  0x30   : > { %6713 = vmatpush3.bf16.msra.mxu1 %v7440_v24  ;;  %6692 = vmatprep.subr.bf16.mxu0 %v7441_v25  ;;  %v1302_v24 = vcombine.high %v1286_v19, %v1286_v19  ;;  %v7486_v25 = vld [vmem:[%s8045_s25 + $0x248] sm:$0xff]   ;;  %v7495_v34 = vld [vmem:[%s8045_s25 + $0x2d8] sm:$0xff]   ;;  %v7498_v37 = vld [vmem:[%s8045_s25 + $0x260] sm:$0xff]  }
  0x31   : > { %6714 = vmatprep.subr.bf16.mxu1 %v7442_v26  ;;  %v7487_v26 = vld [vmem:[%s8045_s25 + $0x2c8] sm:$0xff]   ;;  %v7496_v35 = vld [vmem:[%s8045_s25 + $0x218] sm:$0xff]   ;;  %v7499_v38 = vld [vmem:[%s8045_s25 + $0x2e0] sm:$0xff]  }
  0x32   : > { %v7501_v40 = vld [vmem:[%s8045_s25 + $0x2a0] sm:$0xff]   ;;  %v7504_v44 = vld [vmem:[%s8045_s25 + $0x228] sm:$0xff]  }
  0x33   : > { %6693 = vmatpush3.bf16.msra.mxu0 %v7443_v27  ;;  %v7488_v27 = vld [vmem:[%s8045_s25 + $0x208] sm:$0xff]  }
  0x34   : > { %6715 = vmatpush3.bf16.msra.mxu1 %v7444_v28  ;;  %6694 = vmatprep.subr.bf16.mxu0 %v7445_v30  ;;  %v7489_v28 = vld [vmem:[%s8045_s25 + $0x288] sm:$0xff]   ;;  %v7491_v30 = vld [vmem:[%s8045_s25 + $0x2d0] sm:$0xff]  }
  0x35   : > { %6716 = vmatprep.subr.bf16.mxu1 %v7446_v31  ;;  %v7492_v31 = vld [vmem:[%s8045_s25 + $0x210] sm:$0xff]   ;;  %v7505_v45 = vld [vmem:[%s8045_s25 + $0x2a8] sm:$0xff]  }
  0x36   : > { %v217_v47 = vld [vmem:[%s8040_s21 + $0x8] sm:$0xff] }
  0x37   : > { %6695 = vmatpush3.bf16.msra.mxu0 %v7447_v32  ;;  %v7493_v32 = vld [vmem:[%s8045_s25 + $0x290] sm:$0xff]   ;;  %v1312_v49 = vrot.slane %v217_v47, %v8083_v42 }
  0x38   : > { %6717 = vmatpush3.bf16.msra.mxu1 %v7448_v33  ;;  %6724 = vmatprep.subr.bf16.mxu0 %v7450_v36  ;;  %v7494_v33 = vld [vmem:[%s8045_s25 + $0x258] sm:$0xff]  }
  0x39   : > { %6746 = vmatprep.subr.bf16.mxu1 %v7451_v39  ;;  %v7497_v36 = vld [vmem:[%s8045_s25 + $0x298] sm:$0xff]   ;;  %v7500_v39 = vld [vmem:[%s8045_s25 + $0x220] sm:$0xff]  }
  0x3a   : > { %4817 = vmatmul.mubr.bf16.vlgmr.msra.gmra.mrb[0].mxu0 %v1279_v46  ;;  %v7506_v46 = vld [vmem:[%s8045_s25 + $0x270] sm:$0xff]  }
  0x3b   : > { %6725 = vmatpush3.bf16.msra.mxu0 %v7452_v48  ;;  %4857 = vmatmul.mubr.bf16.vlgmr.msra.gmra.mrb[0].mxu1 %v1301_v52  ;;  %v7507_v48 = vld [vmem:[%s8045_s25 + $0x2f0] sm:$0xff]  }
  0x3c   : > { %6726 = vmatprep.subr.bf16.mxu0 %v7454_v53  ;;  %6747 = vmatpush3.bf16.msra.mxu1 %v7453_v50  ;;  %v1305_v50 = vcombine.high %v217_v47, %v217_v47  ;;  %v7509_v52 = vld [vmem:[%s8045_s25 + $0x2b0] sm:$0xff]   ;;  %v1320_v53 = vcombine.high %v1312_v49, %v1312_v49 }
  0x3d   : > { %4896 = vmatprep.mubr.bf16.mxu0 %v1300_v51  ;;  %6748 = vmatprep.subr.bf16.mxu1 %v7455_v55  ;;  %v7508_v51 = vld [vmem:[%s8045_s25 + $0x230] sm:$0xff]   ;;  %v7510_v55 = vld [vmem:[%s8045_s25 + $0x278] sm:$0xff]  }
  0x3e   : > { %4936 = vmatprep.mubr.bf16.mxu1 %v1304_v57  ;;  %v8157_v54 = vrot.slane %v1305_v50, %v8083_v42  ;;  %v1342_v57 = vrot.slane %v1320_v53, %v8083_v42  ;;  %v7557_v47 = vld [vmem:[%s8045_s25 + $0x410] sm:$0xff]   ;;  %v7560_v50 = vld [vmem:[%s8045_s25 + $0x4d8] sm:$0xff]   ;;  %v7563_v53 = vld [vmem:[%s8045_s25 + $0x460] sm:$0xff]  }
  0x3f   : > { %6727 = vmatpush3.bf16.msra.mxu0 %v7456_v56  ;;  %v7511_v56 = vld [vmem:[%s8045_s25 + $0x2f8] sm:$0xff]  }
  0x40   : > { %6728 = vmatprep.subr.bf16.mxu0 %v7458_v59  ;;  %6749 = vmatpush3.bf16.msra.mxu1 %v7457_v58  ;;  %v1321_v58 = vcombine.high %v8157_v54, %v8157_v54  ;;  %v7512_v59 = vld [vmem:[%s8045_s25 + $0x238] sm:$0xff]  }
  0x41   : > { %6750 = vmatprep.subr.bf16.mxu1 %v7459_v60  ;;  %v7513_v60 = vld [vmem:[%s8045_s25 + $0x2b8] sm:$0xff]  }
  0x43   : > { %6729 = vmatpush3.bf16.msra.mxu0 %v7460_v61  ;;  %v1352_v61 = vcombine.high %v1342_v57, %v1342_v57 }
  0x44   : > { %6730 = vmatprep.subr.bf16.mxu0 %v7462_v63  ;;  %6751 = vmatpush3.bf16.msra.mxu1 %v7461_v62  ;;  %v1328_v62 = vrot.slane %v1312_v49, %v8083_v42  ;;  %v7514_v63 = vld [vmem:[%s8045_s25 + $0x340] sm:$0xff]   ;;  %v7559_v49 = vld [vmem:[%s8045_s25 + $0x458] sm:$0xff]  }
  0x45   : > { %6752 = vmatprep.subr.bf16.mxu1 %v7463_v0  ;;  %v7515_v0 = vld [vmem:[%s8045_s25 + $0x3c0] sm:$0xff]  }
  0x47   : > { %6731 = vmatpush3.bf16.msra.mxu0 %v7464_v1  ;;  %v1349_v1 = vrot.slane %v1321_v58, %v8083_v42  ;;  %v7568_v58 = vld [vmem:[%s8045_s25 + $0x4e8] sm:$0xff]  }
  0x48   : > { %6732 = vmatprep.subr.bf16.mxu0 %v7466_v3  ;;  %6753 = vmatpush3.bf16.msra.mxu1 %v7465_v2  ;;  %v7516_v2 = vld [vmem:[%s8045_s25 + $0x300] sm:$0xff]  }
  0x49   : > { %6754 = vmatprep.subr.bf16.mxu1 %v7467_v4  ;;  %v7517_v3 = vld [vmem:[%s8045_s25 + $0x380] sm:$0xff]   ;;  %v1350_v4 = vcombine.high %v1328_v62, %v1328_v62 }
  0x4b   : > { %6733 = vmatpush3.bf16.msra.mxu0 %v7468_v5  ;;  %v7518_v5 = vld [vmem:[%s8045_s25 + $0x348] sm:$0xff]  }
  0x4c   : > { %6734 = vmatprep.subr.bf16.mxu0 %v7470_v7  ;;  %6755 = vmatpush3.bf16.msra.mxu1 %v7469_v6  ;;  %v7519_v6 = vld [vmem:[%s8045_s25 + $0x3c8] sm:$0xff]   ;;  %v1353_v7 = vcombine.high %v1349_v1, %v1349_v1 }
  0x4d   : > { %6756 = vmatprep.subr.bf16.mxu1 %v7471_v8  ;;  %v7520_v8 = vld [vmem:[%s8045_s25 + $0x308] sm:$0xff]  }
  0x4f   : > { %6735 = vmatpush3.bf16.msra.mxu0 %v7472_v9  ;;  %v7521_v9 = vld [vmem:[%s8045_s25 + $0x388] sm:$0xff]  }
  0x50   : > { %6736 = vmatprep.subr.bf16.mxu0 %v7474_v11  ;;  %6757 = vmatpush3.bf16.msra.mxu1 %v7473_v10  ;;  %v7522_v10 = vld [vmem:[%s8045_s25 + $0x350] sm:$0xff]  }
  0x51   : > { %6758 = vmatprep.subr.bf16.mxu1 %v7475_v12  ;;  %v7523_v11 = vld [vmem:[%s8045_s25 + $0x3d0] sm:$0xff]  }
  0x52   : > { %v7524_v12 = vld [vmem:[%s8045_s25 + $0x310] sm:$0xff]  }
  0x53   : > { %6737 = vmatpush3.bf16.msra.mxu0 %v7476_v13  ;;  %v7525_v13 = vld [vmem:[%s8045_s25 + $0x390] sm:$0xff]  }
  0x54   : > { %6738 = vmatprep.subr.bf16.mxu0 %v7478_v15  ;;  %6759 = vmatpush3.bf16.msra.mxu1 %v7477_v14  ;;  %v7526_v14 = vld [vmem:[%s8045_s25 + $0x358] sm:$0xff]  }
  0x55   : > { %6760 = vmatprep.subr.bf16.mxu1 %v7479_v16  ;;  %v7527_v15 = vld [vmem:[%s8045_s25 + $0x3d8] sm:$0xff]  }
  0x56   : > { %v7528_v16 = vld [vmem:[%s8045_s25 + $0x318] sm:$0xff]  }
  0x57   : > { %6739 = vmatpush3.bf16.msra.mxu0 %v7480_v17  ;;  %v7529_v17 = vld [vmem:[%s8045_s25 + $0x398] sm:$0xff]  }
  0x58   : > { %6768 = vmatprep.subr.bf16.mxu0 %v7482_v20  ;;  %6761 = vmatpush3.bf16.msra.mxu1 %v7481_v18  ;;  %v7530_v18 = vld [vmem:[%s8045_s25 + $0x360] sm:$0xff]  }
  0x59   : > { %6790 = vmatprep.subr.bf16.mxu1 %v7483_v21  ;;  %v7532_v20 = vld [vmem:[%s8045_s25 + $0x320] sm:$0xff]  }
  0x5a   : > { %4897 = vmatmul.mubr.bf16.vlgmr.msra.gmra.mrb[4].mxu0 %v1286_v19  ;;  %v7531_v19 = vld [vmem:[%s8045_s25 + $0x3e0] sm:$0xff]  }
  0x5b   : > { %6769 = vmatpush3.bf16.msra.mxu0 %v7484_v22  ;;  %4937 = vmatmul.mubr.bf16.vlgmr.msra.gmra.mrb[4].mxu1 %v1302_v24  ;;  %v7533_v21 = vld [vmem:[%s8045_s25 + $0x3a0] sm:$0xff]   ;;  %v7534_v22 = vld [vmem:[%s8045_s25 + $0x368] sm:$0xff]  }
  0x5c   : > { %6770 = vmatprep.subr.bf16.mxu0 %v7486_v25  ;;  %6791 = vmatpush3.bf16.msra.mxu1 %v7485_v23  ;;  %v7535_v23 = vld [vmem:[%s8045_s25 + $0x3e8] sm:$0xff]  }
  0x5d   : > { %6792 = vmatprep.subr.bf16.mxu1 %v7487_v26  ;;  %4976 = vmatprep.mubr.bf16.mxu0 %v1342_v57  ;;  %v7536_v24 = vld [vmem:[%s8045_s25 + $0x328] sm:$0xff]   ;;  %v7538_v26 = vld [vmem:[%s8045_s25 + $0x370] sm:$0xff]  }
  0x5e   : > { %5016 = vmatprep.mubr.bf16.mxu1 %v1352_v61  ;;  %v7537_v25 = vld [vmem:[%s8045_s25 + $0x3a8] sm:$0xff]   ;;  %v7571_v61 = vld [vmem:[%s8045_s25 + $0x470] sm:$0xff]  }
  0x5f   : > { %6771 = vmatpush3.bf16.msra.mxu0 %v7488_v27  ;;  %v7539_v27 = vld [vmem:[%s8045_s25 + $0x3f0] sm:$0xff]   ;;  %v7567_v57 = vld [vmem:[%s8045_s25 + $0x468] sm:$0xff]  }
  0x60   : > { %6772 = vmatprep.subr.bf16.mxu0 %v7490_v29  ;;  %6793 = vmatpush3.bf16.msra.mxu1 %v7489_v28  ;;  %v7540_v28 = vld [vmem:[%s8045_s25 + $0x330] sm:$0xff]  }
  0x61   : > { %6794 = vmatprep.subr.bf16.mxu1 %v7491_v30  ;;  %v7541_v29 = vld [vmem:[%s8045_s25 + $0x3b0] sm:$0xff]   ;;  %v7542_v30 = vld [vmem:[%s8045_s25 + $0x378] sm:$0xff]  }
  0x63   : > { %6773 = vmatpush3.bf16.msra.mxu0 %v7492_v31  ;;  %v7543_v31 = vld [vmem:[%s8045_s25 + $0x3f8] sm:$0xff]  }
  0x64   : > { %6774 = vmatprep.subr.bf16.mxu0 %v7494_v33  ;;  %6795 = vmatpush3.bf16.msra.mxu1 %v7493_v32  ;;  %v7544_v32 = vld [vmem:[%s8045_s25 + $0x338] sm:$0xff]  }
  0x65   : > { %6796 = vmatprep.subr.bf16.mxu1 %v7495_v34  ;;  %v7545_v33 = vld [vmem:[%s8045_s25 + $0x3b8] sm:$0xff]   ;;  %v1335_v34 = vrot.slane %v8157_v54, %v8083_v42  ;;  %v7564_v54 = vld [vmem:[%s8045_s25 + $0x4e0] sm:$0xff]  }
  0x67   : > { %6775 = vmatpush3.bf16.msra.mxu0 %v7496_v35  ;;  %v7547_v35 = vld [vmem:[%s8045_s25 + $0x440] sm:$0xff]  }
  0x68   : > { %6776 = vmatprep.subr.bf16.mxu0 %v7498_v37  ;;  %6797 = vmatpush3.bf16.msra.mxu1 %v7497_v36  ;;  %v7548_v36 = vld [vmem:[%s8045_s25 + $0x4c0] sm:$0xff]  }
  0x69   : > { %6798 = vmatprep.subr.bf16.mxu1 %v7499_v38  ;;  %v7549_v37 = vld [vmem:[%s8045_s25 + $0x400] sm:$0xff]  }
  0x6a   : > { %v7550_v38 = vld [vmem:[%s8045_s25 + $0x480] sm:$0xff]  }
  0x6b   : > { %6777 = vmatpush3.bf16.msra.mxu0 %v7500_v39  ;;  %v1351_v39 = vcombine.high %v1335_v34, %v1335_v34 }
  0x6c   : > { %6778 = vmatprep.subr.bf16.mxu0 %v7502_v41  ;;  %6799 = vmatpush3.bf16.msra.mxu1 %v7501_v40  ;;  %v7551_v40 = vld [vmem:[%s8045_s25 + $0x448] sm:$0xff]  }
  0x6d   : > { %6800 = vmatprep.subr.bf16.mxu1 %v7503_v43  ;;  %v7552_v41 = vld [vmem:[%s8045_s25 + $0x4c8] sm:$0xff]  }
  0x6e   : > { %v7553_v43 = vld [vmem:[%s8045_s25 + $0x408] sm:$0xff]  }
  0x6f   : > { %6779 = vmatpush3.bf16.msra.mxu0 %v7504_v44  ;;  %v7554_v44 = vld [vmem:[%s8045_s25 + $0x488] sm:$0xff]  }
  0x70   : > { %6780 = vmatprep.subr.bf16.mxu0 %v7506_v46  ;;  %6801 = vmatpush3.bf16.msra.mxu1 %v7505_v45  ;;  %v7555_v45 = vld [vmem:[%s8045_s25 + $0x450] sm:$0xff]  }
  0x71   : > { %6802 = vmatprep.subr.bf16.mxu1 %v7507_v48  ;;  %v7556_v46 = vld [vmem:[%s8045_s25 + $0x4d0] sm:$0xff]  }
  0x72   : > { %v7558_v48 = vld [vmem:[%s8045_s25 + $0x490] sm:$0xff]  }
  0x73   : > { %6781 = vmatpush3.bf16.msra.mxu0 %v7508_v51  ;;  %v7561_v51 = vld [vmem:[%s8045_s25 + $0x418] sm:$0xff]  }
  0x74   : > { %6782 = vmatprep.subr.bf16.mxu0 %v7510_v55  ;;  %6803 = vmatpush3.bf16.msra.mxu1 %v7509_v52  ;;  %v7562_v52 = vld [vmem:[%s8045_s25 + $0x498] sm:$0xff]   ;;  %v7565_v55 = vld [vmem:[%s8045_s25 + $0x420] sm:$0xff]  }
  0x75   : > { %6804 = vmatprep.subr.bf16.mxu1 %v7511_v56  ;;  %v7566_v56 = vld [vmem:[%s8045_s25 + $0x4a0] sm:$0xff]  }
  0x77   : > { %6783 = vmatpush3.bf16.msra.mxu0 %v7512_v59  ;;  %v7569_v59 = vld [vmem:[%s8045_s25 + $0x428] sm:$0xff]  }
  0x78   : > { %6812 = vmatprep.subr.bf16.mxu0 %v7514_v63  ;;  %6805 = vmatpush3.bf16.msra.mxu1 %v7513_v60  ;;  %v7570_v60 = vld [vmem:[%s8045_s25 + $0x4a8] sm:$0xff]   ;;  %v7572_v63 = vld [vmem:[%s8045_s25 + $0x4f0] sm:$0xff]  }
  0x79   : > { %6834 = vmatprep.subr.bf16.mxu1 %v7515_v0 }
  0x7a   : > { %4977 = vmatmul.mubr.bf16.vlgmr.msra.gmra.mrb[8].mxu0 %v1328_v62  ;;  %v218_v62 = vld [vmem:[%s8040_s21 + $0x10] sm:$0xff] }
  0x7b   : > { %6813 = vmatpush3.bf16.msra.mxu0 %v7516_v2  ;;  %5056 = vmatprep.mubr.bf16.mxu0 %v1349_v1  ;;  %v1361_v0 = vrot.slane %v218_v62, %v8083_v42  ;;  %v1354_v1 = vcombine.high %v218_v62, %v218_v62  ;;  %v7573_v2 = vld [vmem:[%s8045_s25 + $0x430] sm:$0xff]  }
  0x7c   : > { %5017 = vmatmul.mubr.bf16.vlgmr.msra.gmra.mrb[8].mxu1 %v1350_v4  ;;  %6814 = vmatprep.subr.bf16.mxu0 %v7518_v5  ;;  %v7622_v62 = vld [vmem:[%s8045_s25 + $0x610] sm:$0xff]  }
  0x7d   : > { %6835 = vmatpush3.bf16.msra.mxu1 %v7517_v3  ;;  %5096 = vmatprep.mubr.bf16.mxu1 %v1353_v7  ;;  %v7574_v3 = vld [vmem:[%s8045_s25 + $0x4b0] sm:$0xff]   ;;  %v1369_v4 = vcombine.high %v1361_v0, %v1361_v0  ;;  %v8233_v5 = vrot.slane %v1354_v1, %v8083_v42  ;;  %v7576_v7 = vld [vmem:[%s8045_s25 + $0x4f8] sm:$0xff]  }
  0x7e   : > { %6836 = vmatprep.subr.bf16.mxu1 %v7519_v6  ;;  %v7575_v6 = vld [vmem:[%s8045_s25 + $0x478] sm:$0xff]  }
  0x7f   : > { %6815 = vmatpush3.bf16.msra.mxu0 %v7520_v8  ;;  %v1391_v8 = vrot.slane %v1369_v4, %v8083_v42  ;;  %v7625_v1 = vld [vmem:[%s8045_s25 + $0x6d8] sm:$0xff]   ;;  %v7628_v4 = vld [vmem:[%s8045_s25 + $0x660] sm:$0xff]  }
  0x80   : > { %6816 = vmatprep.subr.bf16.mxu0 %v7522_v10  ;;  %v7577_v10 = vld [vmem:[%s8045_s25 + $0x438] sm:$0xff]  }
  0x81   : > { %6837 = vmatpush3.bf16.msra.mxu1 %v7521_v9  ;;  %v1370_v9 = vcombine.high %v8233_v5, %v8233_v5 }
  0x82   : > { %6838 = vmatprep.subr.bf16.mxu1 %v7523_v11  ;;  %v7578_v11 = vld [vmem:[%s8045_s25 + $0x4b8] sm:$0xff]  }
  0x83   : > { %6817 = vmatpush3.bf16.msra.mxu0 %v7524_v12  ;;  %v1401_v12 = vcombine.high %v1391_v8, %v1391_v8 }
  0x84   : > { %6818 = vmatprep.subr.bf16.mxu0 %v7526_v14  ;;  %v7579_v14 = vld [vmem:[%s8045_s25 + $0x540] sm:$0xff]  }
  0x85   : > { %6839 = vmatpush3.bf16.msra.mxu1 %v7525_v13  ;;  %v1377_v13 = vrot.slane %v1361_v0, %v8083_v42  ;;  %v7624_v0 = vld [vmem:[%s8045_s25 + $0x658] sm:$0xff]  }
  0x86   : > { %6840 = vmatprep.subr.bf16.mxu1 %v7527_v15  ;;  %v7580_v15 = vld [vmem:[%s8045_s25 + $0x5c0] sm:$0xff]  }
  0x87   : > { %6819 = vmatpush3.bf16.msra.mxu0 %v7528_v16  ;;  %v1398_v16 = vrot.slane %v1370_v9, %v8083_v42  ;;  %v7633_v9 = vld [vmem:[%s8045_s25 + $0x6e8] sm:$0xff]  }
  0x88   : > { %6820 = vmatprep.subr.bf16.mxu0 %v7530_v18  ;;  %v7582_v18 = vld [vmem:[%s8045_s25 + $0x580] sm:$0xff]  }
  0x89   : > { %6841 = vmatpush3.bf16.msra.mxu1 %v7529_v17  ;;  %v7581_v17 = vld [vmem:[%s8045_s25 + $0x500] sm:$0xff]  }
  0x8a   : > { %6842 = vmatprep.subr.bf16.mxu1 %v7531_v19  ;;  %v1399_v19 = vcombine.high %v1377_v13, %v1377_v13 }
  0x8b   : > { %6821 = vmatpush3.bf16.msra.mxu0 %v7532_v20  ;;  %v7583_v20 = vld [vmem:[%s8045_s25 + $0x548] sm:$0xff]  }
  0x8c   : > { %6822 = vmatprep.subr.bf16.mxu0 %v7534_v22  ;;  %v1402_v22 = vcombine.high %v1398_v16, %v1398_v16 }
  0x8d   : > { %6843 = vmatpush3.bf16.msra.mxu1 %v7533_v21  ;;  %v7584_v21 = vld [vmem:[%s8045_s25 + $0x5c8] sm:$0xff]  }
  0x8e   : > { %6844 = vmatprep.subr.bf16.mxu1 %v7535_v23  ;;  %v7585_v23 = vld [vmem:[%s8045_s25 + $0x508] sm:$0xff]  }
  0x8f   : > { %6823 = vmatpush3.bf16.msra.mxu0 %v7536_v24  ;;  %v7586_v24 = vld [vmem:[%s8045_s25 + $0x588] sm:$0xff]  }
  0x90   : > { %6824 = vmatprep.subr.bf16.mxu0 %v7538_v26  ;;  %v7588_v26 = vld [vmem:[%s8045_s25 + $0x5d0] sm:$0xff]  }
  0x91   : > { %6845 = vmatpush3.bf16.msra.mxu1 %v7537_v25  ;;  %v7587_v25 = vld [vmem:[%s8045_s25 + $0x550] sm:$0xff]  }
  0x92   : > { %6846 = vmatprep.subr.bf16.mxu1 %v7539_v27  ;;  %v7589_v27 = vld [vmem:[%s8045_s25 + $0x510] sm:$0xff]  }
  0x93   : > { %6825 = vmatpush3.bf16.msra.mxu0 %v7540_v28  ;;  %v7590_v28 = vld [vmem:[%s8045_s25 + $0x590] sm:$0xff]  }
  0x94   : > { %6826 = vmatprep.subr.bf16.mxu0 %v7542_v30  ;;  %v7592_v30 = vld [vmem:[%s8045_s25 + $0x5d8] sm:$0xff]  }
  0x95   : > { %6847 = vmatpush3.bf16.msra.mxu1 %v7541_v29  ;;  %v7591_v29 = vld [vmem:[%s8045_s25 + $0x558] sm:$0xff]  }
  0x96   : > { %6848 = vmatprep.subr.bf16.mxu1 %v7543_v31  ;;  %v7593_v31 = vld [vmem:[%s8045_s25 + $0x518] sm:$0xff]  }
  0x97   : > { %6827 = vmatpush3.bf16.msra.mxu0 %v7544_v32  ;;  %v7594_v32 = vld [vmem:[%s8045_s25 + $0x598] sm:$0xff]  }
  0x98   : > { %6856 = vmatprep.subr.bf16.mxu0 %v7547_v35  ;;  %v7597_v35 = vld [vmem:[%s8045_s25 + $0x520] sm:$0xff]  }
  0x99   : > { %6849 = vmatpush3.bf16.msra.mxu1 %v7545_v33  ;;  %v7595_v33 = vld [vmem:[%s8045_s25 + $0x560] sm:$0xff]  }
  0x9a   : > { %5057 = vmatmul.mubr.bf16.vlgmr.msra.gmra.mrb[12].mxu0 %v1335_v34  ;;  %6878 = vmatprep.subr.bf16.mxu1 %v7548_v36  ;;  %v7596_v34 = vld [vmem:[%s8045_s25 + $0x5e0] sm:$0xff]  }
  0x9b   : > { %6857 = vmatpush3.bf16.msra.mxu0 %v7549_v37  ;;  %5136 = vmatprep.mubr.bf16.mxu0 %v1391_v8  ;;  %v7598_v36 = vld [vmem:[%s8045_s25 + $0x5a0] sm:$0xff]   ;;  %v7599_v37 = vld [vmem:[%s8045_s25 + $0x568] sm:$0xff]  }
  0x9c   : > { %5097 = vmatmul.mubr.bf16.vlgmr.msra.gmra.mrb[12].mxu1 %v1351_v39  ;;  %6858 = vmatprep.subr.bf16.mxu0 %v7551_v40  ;;  %v7601_v39 = vld [vmem:[%s8045_s25 + $0x528] sm:$0xff]  }
  0x9d   : > { %6879 = vmatpush3.bf16.msra.mxu1 %v7550_v38  ;;  %5176 = vmatprep.mubr.bf16.mxu1 %v1401_v12  ;;  %v7600_v38 = vld [vmem:[%s8045_s25 + $0x5e8] sm:$0xff]   ;;  %v7636_v12 = vld [vmem:[%s8045_s25 + $0x670] sm:$0xff]  }
  0x9e   : > { %6880 = vmatprep.subr.bf16.mxu1 %v7552_v41  ;;  %v7602_v40 = vld [vmem:[%s8045_s25 + $0x5a8] sm:$0xff]   ;;  %v7603_v41 = vld [vmem:[%s8045_s25 + $0x570] sm:$0xff]  }
  0x9f   : > { %6859 = vmatpush3.bf16.msra.mxu0 %v7553_v43  ;;  %v7604_v43 = vld [vmem:[%s8045_s25 + $0x5f0] sm:$0xff]   ;;  %v7632_v8 = vld [vmem:[%s8045_s25 + $0x668] sm:$0xff]  }
  0xa0   : > { %6860 = vmatprep.subr.bf16.mxu0 %v7555_v45  ;;  %v7606_v45 = vld [vmem:[%s8045_s25 + $0x5b0] sm:$0xff]  }
  0xa1   : > { %6881 = vmatpush3.bf16.msra.mxu1 %v7554_v44  ;;  %v7605_v44 = vld [vmem:[%s8045_s25 + $0x530] sm:$0xff]  }
  0xa2   : > { %6882 = vmatprep.subr.bf16.mxu1 %v7556_v46  ;;  %v7607_v46 = vld [vmem:[%s8045_s25 + $0x578] sm:$0xff]  }
  0xa3   : > { %6861 = vmatpush3.bf16.msra.mxu0 %v7557_v47  ;;  %v7608_v47 = vld [vmem:[%s8045_s25 + $0x5f8] sm:$0xff]  }
  0xa4   : > { %6862 = vmatprep.subr.bf16.mxu0 %v7559_v49  ;;  %v7610_v49 = vld [vmem:[%s8045_s25 + $0x5b8] sm:$0xff]  }
  0xa5   : > { %6883 = vmatpush3.bf16.msra.mxu1 %v7558_v48  ;;  %v7609_v48 = vld [vmem:[%s8045_s25 + $0x538] sm:$0xff]  }
  0xa6   : > { %6884 = vmatprep.subr.bf16.mxu1 %v7560_v50  ;;  %v1384_v50 = vrot.slane %v8233_v5, %v8083_v42  ;;  %v7629_v5 = vld [vmem:[%s8045_s25 + $0x6e0] sm:$0xff]  }
  0xa7   : > { %6863 = vmatpush3.bf16.msra.mxu0 %v7561_v51  ;;  %v7612_v51 = vld [vmem:[%s8045_s25 + $0x640] sm:$0xff]  }
  0xa8   : > { %6864 = vmatprep.subr.bf16.mxu0 %v7563_v53  ;;  %v7614_v53 = vld [vmem:[%s8045_s25 + $0x600] sm:$0xff]  }
  0xa9   : > { %6885 = vmatpush3.bf16.msra.mxu1 %v7562_v52  ;;  %v7613_v52 = vld [vmem:[%s8045_s25 + $0x6c0] sm:$0xff]  }
  0xaa   : > { %6886 = vmatprep.subr.bf16.mxu1 %v7564_v54  ;;  %v7615_v54 = vld [vmem:[%s8045_s25 + $0x680] sm:$0xff]  }
  0xab   : > { %6865 = vmatpush3.bf16.msra.mxu0 %v7565_v55  ;;  %v1400_v55 = vcombine.high %v1384_v50, %v1384_v50 }
  0xac   : > { %6866 = vmatprep.subr.bf16.mxu0 %v7567_v57  ;;  %v7617_v57 = vld [vmem:[%s8045_s25 + $0x6c8] sm:$0xff]  }
  0xad   : > { %6887 = vmatpush3.bf16.msra.mxu1 %v7566_v56  ;;  %v7616_v56 = vld [vmem:[%s8045_s25 + $0x648] sm:$0xff]  }
  0xae   : > { %6888 = vmatprep.subr.bf16.mxu1 %v7568_v58  ;;  %v7618_v58 = vld [vmem:[%s8045_s25 + $0x608] sm:$0xff]  }
  0xaf   : > { %6867 = vmatpush3.bf16.msra.mxu0 %v7569_v59  ;;  %v7619_v59 = vld [vmem:[%s8045_s25 + $0x688] sm:$0xff]  }
  0xb0   : > { %6868 = vmatprep.subr.bf16.mxu0 %v7571_v61  ;;  %v7621_v61 = vld [vmem:[%s8045_s25 + $0x6d0] sm:$0xff]  }
  0xb1   : > { %6889 = vmatpush3.bf16.msra.mxu1 %v7570_v60  ;;  %v7620_v60 = vld [vmem:[%s8045_s25 + $0x650] sm:$0xff]  }
  0xb2   : > { %6890 = vmatprep.subr.bf16.mxu1 %v7572_v63  ;;  %v7623_v63 = vld [vmem:[%s8045_s25 + $0x690] sm:$0xff]  }
  0xb3   : > { %6869 = vmatpush3.bf16.msra.mxu0 %v7573_v2  ;;  %v7626_v2 = vld [vmem:[%s8045_s25 + $0x618] sm:$0xff]  }
  0xb4   : > { %6870 = vmatprep.subr.bf16.mxu0 %v7575_v6  ;;  %v7630_v6 = vld [vmem:[%s8045_s25 + $0x620] sm:$0xff]  }
  0xb5   : > { %6891 = vmatpush3.bf16.msra.mxu1 %v7574_v3  ;;  %v7627_v3 = vld [vmem:[%s8045_s25 + $0x698] sm:$0xff]  }
  0xb6   : > { %6892 = vmatprep.subr.bf16.mxu1 %v7576_v7  ;;  %v7631_v7 = vld [vmem:[%s8045_s25 + $0x6a0] sm:$0xff]  }
  0xb7   : > { %6871 = vmatpush3.bf16.msra.mxu0 %v7577_v10  ;;  %v7634_v10 = vld [vmem:[%s8045_s25 + $0x628] sm:$0xff]  }
  0xb8   : > { %6900 = vmatprep.subr.bf16.mxu0 %v7579_v14  ;;  %v219_v14 = vld [vmem:[%s8040_s21 + $0x18] sm:$0xff] }
  0xb9   : > { %6893 = vmatpush3.bf16.msra.mxu1 %v7578_v11  ;;  %v7635_v11 = vld [vmem:[%s8045_s25 + $0x6a8] sm:$0xff]  }
  0xba   : > { %5137 = vmatmul.mubr.bf16.vlgmr.msra.gmra.mrb[16].mxu0 %v1377_v13  ;;  %6922 = vmatprep.subr.bf16.mxu1 %v7580_v15  ;;  %v7637_v13 = vld [vmem:[%s8045_s25 + $0x6f0] sm:$0xff]  }
  0xbb   : > { %6901 = vmatpush3.bf16.msra.mxu0 %v7581_v17  ;;  %5216 = vmatprep.mubr.bf16.mxu0 %v1398_v16  ;;  %v7638_v15 = vld [vmem:[%s8045_s25 + $0x630] sm:$0xff]   ;;  %v1410_v16 = vrot.slane %v219_v14, %v8083_v42  ;;  %v1403_v17 = vcombine.high %v219_v14, %v219_v14  ;;  %v7678_v14 = vld [vmem:[%s8045_s25 + $0x8c0] sm:$0xff]  }
  0xbc   : > { %5177 = vmatmul.mubr.bf16.vlgmr.msra.gmra.mrb[16].mxu1 %v1399_v19  ;;  %6902 = vmatprep.subr.bf16.mxu0 %v7583_v20  ;;  %v7640_v19 = vld [vmem:[%s8045_s25 + $0x678] sm:$0xff]  }
  0xbd   : > { %6923 = vmatpush3.bf16.msra.mxu1 %v7582_v18  ;;  %5256 = vmatprep.mubr.bf16.mxu1 %v1402_v22  ;;  %v7639_v18 = vld [vmem:[%s8045_s25 + $0x6b0] sm:$0xff]   ;;  %v1418_v20 = vcombine.high %v1410_v16, %v1410_v16  ;;  %v7641_v22 = vld [vmem:[%s8045_s25 + $0x6f8] sm:$0xff]  }
  0xbe   : > { %6924 = vmatprep.subr.bf16.mxu1 %v7584_v21  ;;  %v8310_v21 = vrot.slane %v1403_v17, %v8083_v42 }
  0xbf   : > { %6903 = vmatpush3.bf16.msra.mxu0 %v7585_v23  ;;  %v7642_v23 = vld [vmem:[%s8045_s25 + $0x638] sm:$0xff]  }
  0xc0   : > { %6904 = vmatprep.subr.bf16.mxu0 %v7587_v25  ;;  %v1419_v25 = vcombine.high %v8310_v21, %v8310_v21 }
  0xc1   : > { %6925 = vmatpush3.bf16.msra.mxu1 %v7586_v24  ;;  %v1440_v24 = vrot.slane %v1418_v20, %v8083_v42  ;;  %v7683_v20 = vld [vmem:[%s8045_s25 + $0x808] sm:$0xff]  }
  0xc2   : > { %6926 = vmatprep.subr.bf16.mxu1 %v7588_v26  ;;  %v7643_v26 = vld [vmem:[%s8045_s25 + $0x6b8] sm:$0xff]  }
  0xc3   : > { %6905 = vmatpush3.bf16.msra.mxu0 %v7589_v27  ;;  %v1450_v27 = vcombine.high %v1440_v24, %v1440_v24 }
  0xc4   : > { %6906 = vmatprep.subr.bf16.mxu0 %v7591_v29  ;;  %v7644_v29 = vld [vmem:[%s8045_s25 + $0x740] sm:$0xff]  }
  0xc5   : > { %6927 = vmatpush3.bf16.msra.mxu1 %v7590_v28  ;;  %v1426_v28 = vrot.slane %v1410_v16, %v8083_v42  ;;  %v7680_v16 = vld [vmem:[%s8045_s25 + $0x880] sm:$0xff]  }
  0xc6   : > { %6928 = vmatprep.subr.bf16.mxu1 %v7592_v30  ;;  %v7645_v30 = vld [vmem:[%s8045_s25 + $0x7c0] sm:$0xff]  }
  0xc7   : > { %6907 = vmatpush3.bf16.msra.mxu0 %v7593_v31  ;;  %v1447_v31 = vrot.slane %v1419_v25, %v8083_v42  ;;  %v7688_v25 = vld [vmem:[%s8045_s25 + $0x890] sm:$0xff]  }
  0xc8   : > { %6908 = vmatprep.subr.bf16.mxu0 %v7595_v33  ;;  %v7647_v33 = vld [vmem:[%s8045_s25 + $0x780] sm:$0xff]  }
  0xc9   : > { %6929 = vmatpush3.bf16.msra.mxu1 %v7594_v32  ;;  %v7646_v32 = vld [vmem:[%s8045_s25 + $0x700] sm:$0xff]  }
  0xca   : > { %6930 = vmatprep.subr.bf16.mxu1 %v7596_v34  ;;  %v1448_v34 = vcombine.high %v1426_v28, %v1426_v28 }
  0xcb   : > { %6909 = vmatpush3.bf16.msra.mxu0 %v7597_v35  ;;  %v7648_v35 = vld [vmem:[%s8045_s25 + $0x748] sm:$0xff]  }
  0xcc   : > { %6910 = vmatprep.subr.bf16.mxu0 %v7599_v37  ;;  %v1451_v37 = vcombine.high %v1447_v31, %v1447_v31 }
  0xcd   : > { %6931 = vmatpush3.bf16.msra.mxu1 %v7598_v36  ;;  %v7649_v36 = vld [vmem:[%s8045_s25 + $0x7c8] sm:$0xff]  }
  0xce   : > { %6932 = vmatprep.subr.bf16.mxu1 %v7600_v38  ;;  %v7650_v38 = vld [vmem:[%s8045_s25 + $0x708] sm:$0xff]  }
  0xcf   : > { %6911 = vmatpush3.bf16.msra.mxu0 %v7601_v39  ;;  %v7651_v39 = vld [vmem:[%s8045_s25 + $0x788] sm:$0xff]  }
  0xd0   : > { %6912 = vmatprep.subr.bf16.mxu0 %v7603_v41  ;;  %v7653_v41 = vld [vmem:[%s8045_s25 + $0x7d0] sm:$0xff]  }
  0xd1   : > { %6933 = vmatpush3.bf16.msra.mxu1 %v7602_v40  ;;  %v7652_v40 = vld [vmem:[%s8045_s25 + $0x750] sm:$0xff]  }
  0xd2   : > { %6934 = vmatprep.subr.bf16.mxu1 %v7604_v43  ;;  %v7654_v43 = vld [vmem:[%s8045_s25 + $0x710] sm:$0xff]  }
  0xd3   : > { %6913 = vmatpush3.bf16.msra.mxu0 %v7605_v44  ;;  %v7655_v44 = vld [vmem:[%s8045_s25 + $0x790] sm:$0xff]  }
  0xd4   : > { %6914 = vmatprep.subr.bf16.mxu0 %v7607_v46  ;;  %v7657_v46 = vld [vmem:[%s8045_s25 + $0x7d8] sm:$0xff]  }
  0xd5   : > { %6935 = vmatpush3.bf16.msra.mxu1 %v7606_v45  ;;  %v7656_v45 = vld [vmem:[%s8045_s25 + $0x758] sm:$0xff]  }
  0xd6   : > { %6936 = vmatprep.subr.bf16.mxu1 %v7608_v47  ;;  %v7658_v47 = vld [vmem:[%s8045_s25 + $0x718] sm:$0xff]  }
  0xd7   : > { %6915 = vmatpush3.bf16.msra.mxu0 %v7609_v48  ;;  %v7659_v48 = vld [vmem:[%s8045_s25 + $0x798] sm:$0xff]  }
  0xd8   : > { %6944 = vmatprep.subr.bf16.mxu0 %v7612_v51  ;;  %v7662_v51 = vld [vmem:[%s8045_s25 + $0x720] sm:$0xff]  }
  0xd9   : > { %6937 = vmatpush3.bf16.msra.mxu1 %v7610_v49  ;;  %v7660_v49 = vld [vmem:[%s8045_s25 + $0x760] sm:$0xff]  }
  0xda   : > { %5217 = vmatmul.mubr.bf16.vlgmr.msra.gmra.mrb[20].mxu0 %v1384_v50  ;;  %6966 = vmatprep.subr.bf16.mxu1 %v7613_v52  ;;  %v7661_v50 = vld [vmem:[%s8045_s25 + $0x7e0] sm:$0xff]  }
  0xdb   : > { %6945 = vmatpush3.bf16.msra.mxu0 %v7614_v53  ;;  %5296 = vmatprep.mubr.bf16.mxu0 %v1440_v24  ;;  %v7663_v52 = vld [vmem:[%s8045_s25 + $0x7a0] sm:$0xff]   ;;  %v7664_v53 = vld [vmem:[%s8045_s25 + $0x768] sm:$0xff]   ;;  %v7687_v24 = vld [vmem:[%s8045_s25 + $0x810] sm:$0xff]  }
  0xdc   : > { %5257 = vmatmul.mubr.bf16.vlgmr.msra.gmra.mrb[20].mxu1 %v1400_v55  ;;  %6946 = vmatprep.subr.bf16.mxu0 %v7616_v56  ;;  %v7666_v55 = vld [vmem:[%s8045_s25 + $0x728] sm:$0xff]  }
  0xdd   : > { %6967 = vmatpush3.bf16.msra.mxu1 %v7615_v54  ;;  %5336 = vmatprep.mubr.bf16.mxu1 %v1450_v27  ;;  %v7665_v54 = vld [vmem:[%s8045_s25 + $0x7e8] sm:$0xff]   ;;  %v7690_v27 = vld [vmem:[%s8045_s25 + $0x8d8] sm:$0xff]  }
  0xde   : > { %6968 = vmatprep.subr.bf16.mxu1 %v7617_v57  ;;  %v7667_v56 = vld [vmem:[%s8045_s25 + $0x7a8] sm:$0xff]   ;;  %v7668_v57 = vld [vmem:[%s8045_s25 + $0x770] sm:$0xff]  }
  0xdf   : > { %6947 = vmatpush3.bf16.msra.mxu0 %v7618_v58 }
  0xe0   : > { %6948 = vmatprep.subr.bf16.mxu0 %v7620_v60 }
  0xe1   : > { %6969 = vmatpush3.bf16.msra.mxu1 %v7619_v59  ;;  %v7669_v59 = vld [vmem:[%s8045_s25 + $0x7f0] sm:$0xff]  }
  0xe2   : > { %6970 = vmatprep.subr.bf16.mxu1 %v7621_v61  ;;  %v7670_v61 = vld [vmem:[%s8045_s25 + $0x730] sm:$0xff]  }
  0xe3   : > { %6949 = vmatpush3.bf16.msra.mxu0 %v7622_v62 }
  0xe4   : > { %6950 = vmatprep.subr.bf16.mxu0 %v7624_v0 }
  0xe5   : > { %6971 = vmatpush3.bf16.msra.mxu1 %v7623_v63 }
  0xe6   : > { %6972 = vmatprep.subr.bf16.mxu1 %v7625_v1  ;;  %v7671_v1 = vld [vmem:[%s8045_s25 + $0x7b0] sm:$0xff]  }
  0xe7   : > { %6951 = vmatpush3.bf16.msra.mxu0 %v7626_v2  ;;  %v7672_v2 = vld [vmem:[%s8045_s25 + $0x778] sm:$0xff]  }
  0xe8   : > { %6952 = vmatprep.subr.bf16.mxu0 %v7628_v4 }
  0xe9   : > { %6973 = vmatpush3.bf16.msra.mxu1 %v7627_v3 }
  0xea   : > { %6974 = vmatprep.subr.bf16.mxu1 %v7629_v5 }
  0xeb   : > { %6953 = vmatpush3.bf16.msra.mxu0 %v7630_v6 }
  0xec   : > { %6954 = vmatprep.subr.bf16.mxu0 %v7632_v8 }
  0xed   : > { %6975 = vmatpush3.bf16.msra.mxu1 %v7631_v7  ;;  %v7673_v7 = vld [vmem:[%s8045_s25 + $0x7f8] sm:$0xff]  }
  0xee   : > { %6976 = vmatprep.subr.bf16.mxu1 %v7633_v9  ;;  %v7674_v9 = vld [vmem:[%s8045_s25 + $0x738] sm:$0xff]  }
  0xef   : > { %6955 = vmatpush3.bf16.msra.mxu0 %v7634_v10 }
  0xf0   : > { %6956 = vmatprep.subr.bf16.mxu0 %v7636_v12  ;;  %v1433_v12 = vrot.slane %v8310_v21, %v8083_v42  ;;  %v7684_v21 = vld [vmem:[%s8045_s25 + $0x888] sm:$0xff]  }
  0xf1   : > { %6977 = vmatpush3.bf16.msra.mxu1 %v7635_v11  ;;  %v7675_v11 = vld [vmem:[%s8045_s25 + $0x7b8] sm:$0xff]  }
  0xf2   : > { %6978 = vmatprep.subr.bf16.mxu1 %v7637_v13  ;;  %v7677_v13 = vld [vmem:[%s8045_s25 + $0x840] sm:$0xff]   ;;  %v1449_v17 = vcombine.high %v1433_v12, %v1433_v12 }
  0xf3   : > { %6957 = vmatpush3.bf16.msra.mxu0 %v7638_v15  ;;  %v7679_v15 = vld [vmem:[%s8045_s25 + $0x800] sm:$0xff]  }
  0xf4   : > { %6958 = vmatprep.subr.bf16.mxu0 %v7640_v19  ;;  %v7682_v19 = vld [vmem:[%s8045_s25 + $0x8c8] sm:$0xff]  }
  0xf5   : > { %6979 = vmatpush3.bf16.msra.mxu1 %v7639_v18  ;;  %v7681_v18 = vld [vmem:[%s8045_s25 + $0x848] sm:$0xff]  }
  0xf6   : > { %6980 = vmatprep.subr.bf16.mxu1 %v7641_v22  ;;  %v7685_v22 = vld [vmem:[%s8045_s25 + $0x850] sm:$0xff]  }
  0xf7   : > { %6959 = vmatpush3.bf16.msra.mxu0 %v7642_v23  ;;  %v7686_v23 = vld [vmem:[%s8045_s25 + $0x8d0] sm:$0xff]  }
  0xf8   : > { %6988 = vmatprep.subr.bf16.mxu0 %v7644_v29  ;;  %v7692_v29 = vld [vmem:[%s8045_s25 + $0x898] sm:$0xff]  }
  0xf9   : > { %6981 = vmatpush3.bf16.msra.mxu1 %v7643_v26  ;;  %v7689_v26 = vld [vmem:[%s8045_s25 + $0x858] sm:$0xff]  }
  0xfa   : > { %5297 = vmatmul.mubr.bf16.vlgmr.msra.gmra.mrb[24].mxu0 %v1426_v28  ;;  %7010 = vmatprep.subr.bf16.mxu1 %v7645_v30  ;;  %v7691_v28 = vld [vmem:[%s8045_s25 + $0x818] sm:$0xff]   ;;  %v7693_v30 = vld [vmem:[%s8045_s25 + $0x860] sm:$0xff]  }
  0xfb   : > { %6989 = vmatpush3.bf16.msra.mxu0 %v7646_v32  ;;  %5376 = vmatprep.mubr.bf16.mxu0 %v1447_v31  ;;  %v7694_v31 = vld [vmem:[%s8045_s25 + $0x8e0] sm:$0xff]  }
  0xfc   : > { %5337 = vmatmul.mubr.bf16.vlgmr.msra.gmra.mrb[24].mxu1 %v1448_v34  ;;  %6990 = vmatprep.subr.bf16.mxu0 %v7648_v35  ;;  %v7695_v32 = vld [vmem:[%s8045_s25 + $0x820] sm:$0xff]   ;;  %v7697_v34 = vld [vmem:[%s8045_s25 + $0x868] sm:$0xff]  }
  0xfd   : > { %7011 = vmatpush3.bf16.msra.mxu1 %v7647_v33  ;;  %5416 = vmatprep.mubr.bf16.mxu1 %v1451_v37  ;;  %v7696_v33 = vld [vmem:[%s8045_s25 + $0x8a0] sm:$0xff]   ;;  %v7698_v35 = vld [vmem:[%s8045_s25 + $0x8e8] sm:$0xff]  }
  0xfe   : > { %7012 = vmatprep.subr.bf16.mxu1 %v7649_v36  ;;  %v7699_v36 = vld [vmem:[%s8045_s25 + $0x828] sm:$0xff]  }
  0xff   : > { %6991 = vmatpush3.bf16.msra.mxu0 %v7650_v38  ;;  %v7700_v37 = vld [vmem:[%s8045_s25 + $0x8a8] sm:$0xff]   ;;  %v7701_v38 = vld [vmem:[%s8045_s25 + $0x870] sm:$0xff]  }
 0x100   : > { %6992 = vmatprep.subr.bf16.mxu0 %v7652_v40  ;;  %v7702_v40 = vld [vmem:[%s8045_s25 + $0x8f0] sm:$0xff]  }
 0x101   : > { %7013 = vmatpush3.bf16.msra.mxu1 %v7651_v39 }
 0x102   : > { %7014 = vmatprep.subr.bf16.mxu1 %v7653_v41  ;;  %v220_v41 = vld [vmem:[%s8040_s21 + $0x20] sm:$0xff] }
 0x103   : > { %6993 = vmatpush3.bf16.msra.mxu0 %v7654_v43 }
 0x104   : > { %6994 = vmatprep.subr.bf16.mxu0 %v7656_v45  ;;  %v1459_v45 = vrot.slane %v220_v41, %v8083_v42 }
 0x105   : > { %7015 = vmatpush3.bf16.msra.mxu1 %v7655_v44  ;;  %v7703_v44 = vld [vmem:[%s8045_s25 + $0x830] sm:$0xff]  }
 0x106   : > { %7016 = vmatprep.subr.bf16.mxu1 %v7657_v46  ;;  %v1452_v46 = vcombine.high %v220_v41, %v220_v41 }
 0x107   : > { %6995 = vmatpush3.bf16.msra.mxu0 %v7658_v47 }
 0x108   : > { %6996 = vmatprep.subr.bf16.mxu0 %v7660_v49 }
 0x109   : > { %7017 = vmatpush3.bf16.msra.mxu1 %v7659_v48 }
 0x10a   : > { %7018 = vmatprep.subr.bf16.mxu1 %v7661_v50 }
 0x10b   : > { %6997 = vmatpush3.bf16.msra.mxu0 %v7662_v51 }
 0x10c   : > { %6998 = vmatprep.subr.bf16.mxu0 %v7664_v53  ;;  %v7705_v53 = vld [vmem:[%s8045_s25 + $0x878] sm:$0xff]  }
 0x10d   : > { %7019 = vmatpush3.bf16.msra.mxu1 %v7663_v52  ;;  %v6696_v58 = vpop.f32.mrb[0].mxu0  ;;  %v7704_v52 = vld [vmem:[%s8045_s25 + $0x8b0] sm:$0xff]  }
 0x10e   : > { %v6697_v60 = vpop.f32.mrb[1].mxu0  ;;  %7020 = vmatprep.subr.bf16.mxu1 %v7665_v54  ;;  %v6718_v62 = vpop.f32.mrb[0].mxu1  ;;  %v1467_v54 = vcombine.high %v1459_v45, %v1459_v45 }
 0x10f   : > { %v6698_v63 = vadd.f32 %v6697_v60, %v6696_v58  ;;  %v6699_v0 = vpop.f32.mrb[2].mxu0  ;;  %6999 = vmatpush3.bf16.msra.mxu0 %v7666_v55  ;;  %v6719_v3 = vpop.f32.mrb[1].mxu1  ;;  %v8388_v55 = vrot.slane %v1452_v46, %v8083_v42 }
 0x110   : > { %v6700_v4 = vpop.f32.mrb[3].mxu0  ;;  %7000 = vmatprep.subr.bf16.mxu0 %v7668_v57  ;;  %v6720_v5 = vadd.f32 %v6719_v3, %v6718_v62  ;;  %v6721_v6 = vpop.f32.mrb[2].mxu1  ;;  %v1489_v62 = vrot.slane %v1467_v54, %v8083_v42  ;;  %v1475_v3 = vrot.slane %v1459_v45, %v8083_v42  ;;  %v7743_v54 = vld [vmem:[%s8045_s25 + $0xac0] sm:$0xff]  }
 0x111   : > { %7021 = vmatpush3.bf16.msra.mxu1 %v7667_v56  ;;  %v6722_v8 = vpop.f32.mrb[3].mxu1  ;;  %v7709_v4 = vld [vmem:[%s8045_s25 + $0x940] sm:$0xff]  }
 0x112   : > { %7022 = vmatprep.subr.bf16.mxu1 %v7669_v59  ;;  %v8351_v10 = vadd.f32 %v6720_v5, %v6698_v63  ;;  %v7706_v59 = vld [vmem:[%s8045_s25 + $0x8f8] sm:$0xff]   ;;  %v1468_v63 = vcombine.high %v8388_v55, %v8388_v55  ;;  %v7710_v5 = vld [vmem:[%s8045_s25 + $0x9c0] sm:$0xff]  }
 0x113   : > { %7001 = vmatpush3.bf16.msra.mxu0 %v7670_v61  ;;  %v7707_v61 = vld [vmem:[%s8045_s25 + $0x838] sm:$0xff]   ;;  %v7712_v8 = vld [vmem:[%s8045_s25 + $0x980] sm:$0xff]  }
 0x114   : > { %7002 = vmatprep.subr.bf16.mxu0 %v7672_v2  ;;  %v1499_v2 = vcombine.high %v1489_v62, %v1489_v62  ;;  %v1496_v6 = vrot.slane %v1468_v63, %v8083_v42  ;;  %v7751_v63 = vld [vmem:[%s8045_s25 + $0xad0] sm:$0xff]  }
 0x115   : > { %7023 = vmatpush3.bf16.msra.mxu1 %v7671_v1  ;;  %v7708_v1 = vld [vmem:[%s8045_s25 + $0x8b8] sm:$0xff]  }
 0x116   : > { %7024 = vmatprep.subr.bf16.mxu1 %v7673_v7  ;;  %v7711_v7 = vld [vmem:[%s8045_s25 + $0x900] sm:$0xff]  }
 0x117   : > { %7003 = vmatpush3.bf16.msra.mxu0 %v7674_v9  ;;  %v1497_v9 = vcombine.high %v1475_v3, %v1475_v3 }
 0x118   : > { %7032 = vmatprep.subr.bf16.mxu0 %v7677_v13  ;;  %v7715_v13 = vld [vmem:[%s8045_s25 + $0x908] sm:$0xff]  }
 0x119   : > { %7025 = vmatpush3.bf16.msra.mxu1 %v7675_v11  ;;  %v7714_v11 = vld [vmem:[%s8045_s25 + $0x9c8] sm:$0xff]  }
 0x11a   : > { %5377 = vmatmul.mubr.bf16.vlgmr.msra.gmra.mrb[28].mxu0 %v1433_v12  ;;  %7054 = vmatprep.subr.bf16.mxu1 %v7678_v14  ;;  %v1500_v12 = vcombine.high %v1496_v6, %v1496_v6  ;;  %v7716_v14 = vld [vmem:[%s8045_s25 + $0x988] sm:$0xff]  }
 0x11b   : > { %7033 = vmatpush3.bf16.msra.mxu0 %v7679_v15  ;;  %5456 = vmatprep.mubr.bf16.mxu0 %v1489_v62  ;;  %v7717_v15 = vld [vmem:[%s8045_s25 + $0x950] sm:$0xff]  }
 0x11c   : > { %5417 = vmatmul.mubr.bf16.vlgmr.msra.gmra.mrb[28].mxu1 %v1449_v17  ;;  %7034 = vmatprep.subr.bf16.mxu0 %v7681_v18  ;;  %v7719_v17 = vld [vmem:[%s8045_s25 + $0x910] sm:$0xff]  }
 0x11d   : > { %7055 = vmatpush3.bf16.msra.mxu1 %v7680_v16  ;;  %5496 = vmatprep.mubr.bf16.mxu1 %v1499_v2  ;;  %v7718_v16 = vld [vmem:[%s8045_s25 + $0x9d0] sm:$0xff]   ;;  %v7754_v2 = vld [vmem:[%s8045_s25 + $0xa58] sm:$0xff]  }
 0x11e   : > { %7056 = vmatprep.subr.bf16.mxu1 %v7682_v19  ;;  %v7720_v18 = vld [vmem:[%s8045_s25 + $0x990] sm:$0xff]   ;;  %v7721_v19 = vld [vmem:[%s8045_s25 + $0x958] sm:$0xff]  }
 0x11f   : > { %7035 = vmatpush3.bf16.msra.mxu0 %v7683_v20  ;;  %v7722_v20 = vld [vmem:[%s8045_s25 + $0x9d8] sm:$0xff]   ;;  %v7750_v62 = vld [vmem:[%s8045_s25 + $0xa50] sm:$0xff]  }
 0x120   : > { %7036 = vmatprep.subr.bf16.mxu0 %v7685_v22  ;;  %v7724_v22 = vld [vmem:[%s8045_s25 + $0x998] sm:$0xff]  }
 0x121   : > { %7057 = vmatpush3.bf16.msra.mxu1 %v7684_v21  ;;  %v7723_v21 = vld [vmem:[%s8045_s25 + $0x918] sm:$0xff]  }
 0x122   : > { %7058 = vmatprep.subr.bf16.mxu1 %v7686_v23  ;;  %v7725_v23 = vld [vmem:[%s8045_s25 + $0x960] sm:$0xff]  }
 0x123   : > { %7037 = vmatpush3.bf16.msra.mxu0 %v7687_v24  ;;  %v7726_v24 = vld [vmem:[%s8045_s25 + $0x9e0] sm:$0xff]  }
 0x124   : > { %7038 = vmatprep.subr.bf16.mxu0 %v7689_v26  ;;  %v7728_v26 = vld [vmem:[%s8045_s25 + $0x9a0] sm:$0xff]  }
 0x125   : > { %7059 = vmatpush3.bf16.msra.mxu1 %v7688_v25  ;;  %v7727_v25 = vld [vmem:[%s8045_s25 + $0x920] sm:$0xff]  }
 0x126   : > { %7060 = vmatprep.subr.bf16.mxu1 %v7690_v27  ;;  %v7729_v27 = vld [vmem:[%s8045_s25 + $0x968] sm:$0xff]  }
 0x127   : > { %7039 = vmatpush3.bf16.msra.mxu0 %v7691_v28  ;;  %v7730_v28 = vld [vmem:[%s8045_s25 + $0x9e8] sm:$0xff]  }
 0x128   : > { %7040 = vmatprep.subr.bf16.mxu0 %v7693_v30  ;;  %v7732_v30 = vld [vmem:[%s8045_s25 + $0x9a8] sm:$0xff]  }
 0x129   : > { %7061 = vmatpush3.bf16.msra.mxu1 %v7692_v29  ;;  %v7731_v29 = vld [vmem:[%s8045_s25 + $0x928] sm:$0xff]  }
 0x12a   : > { %7062 = vmatprep.subr.bf16.mxu1 %v7694_v31  ;;  %v7733_v31 = vld [vmem:[%s8045_s25 + $0x970] sm:$0xff]  }
 0x12b   : > { %7041 = vmatpush3.bf16.msra.mxu0 %v7695_v32 }
 0x12c   : > { %7042 = vmatprep.subr.bf16.mxu0 %v7697_v34 }
 0x12d   : > { %7063 = vmatpush3.bf16.msra.mxu1 %v7696_v33  ;;  %v6740_v39 = vpop.f32.mrb[4].mxu0  ;;  %v7734_v33 = vld [vmem:[%s8045_s25 + $0x9f0] sm:$0xff]  }
 0x12e   : > { %v6741_v43 = vpop.f32.mrb[5].mxu0  ;;  %7064 = vmatprep.subr.bf16.mxu1 %v7698_v35  ;;  %v6762_v47 = vpop.f32.mrb[4].mxu1  ;;  %v7735_v35 = vld [vmem:[%s8045_s25 + $0x930] sm:$0xff]  }
 0x12f   : > { %v6742_v48 = vadd.f32 %v6741_v43, %v6740_v39  ;;  %v6743_v49 = vpop.f32.mrb[6].mxu0  ;;  %7043 = vmatpush3.bf16.msra.mxu0 %v7699_v36  ;;  %v6763_v50 = vpop.f32.mrb[5].mxu1  ;;  %v7736_v39 = vld [vmem:[%s8045_s25 + $0x9b0] sm:$0xff]  }
 0x130   : > { %v6744_v51 = vpop.f32.mrb[7].mxu0  ;;  %7044 = vmatprep.subr.bf16.mxu0 %v7701_v38  ;;  %v6764_v57 = vadd.f32 %v6763_v50, %v6762_v47  ;;  %v6765_v58 = vpop.f32.mrb[6].mxu1  ;;  %v7738_v47 = vld [vmem:[%s8045_s25 + $0x9f8] sm:$0xff]  }
 0x131   : > { %v4899_v56 = vadd.f32 %v6742_v48, %v8351_v10  ;;  %7065 = vmatpush3.bf16.msra.mxu1 %v7700_v37  ;;  %v6766_v60 = vpop.f32.mrb[7].mxu1  ;;  %v7713_v10 = vld [vmem:[%s8045_s25 + $0x948] sm:$0xff]   ;;  %v7739_v49 = vld [vmem:[%s8045_s25 + $0x938] sm:$0xff]  }
 0x132   : > { %7066 = vmatprep.subr.bf16.mxu1 %v7702_v40  ;;  %v7737_v40 = vld [vmem:[%s8045_s25 + $0x978] sm:$0xff]   ;;  %v7747_v60 = vld [vmem:[%s8045_s25 + $0xac8] sm:$0xff]  }
 0x133   : > { %v8396_v0 = vadd.f32 %v6764_v57, %v4899_v56  ;;  %7045 = vmatpush3.bf16.msra.mxu0 %v7703_v44  ;;  %v7740_v51 = vld [vmem:[%s8045_s25 + $0x9b8] sm:$0xff]   ;;  %v7744_v56 = vld [vmem:[%s8045_s25 + $0xa00] sm:$0xff]  }
 0x134   : > { %7046 = vmatprep.subr.bf16.mxu0 %v7705_v53  ;;  %v7742_v53 = vld [vmem:[%s8045_s25 + $0xa40] sm:$0xff]  }
 0x135   : > { %7067 = vmatpush3.bf16.msra.mxu1 %v7704_v52  ;;  %v1482_v52 = vrot.slane %v8388_v55, %v8083_v42  ;;  %v7745_v57 = vld [vmem:[%s8045_s25 + $0xa80] sm:$0xff]   ;;  %v7748_v55 = vld [vmem:[%s8045_s25 + $0xa08] sm:$0xff]  }
 0x136   : > { %7068 = vmatprep.subr.bf16.mxu1 %v7706_v59  ;;  %v7746_v59 = vld [vmem:[%s8045_s25 + $0xa48] sm:$0xff]  }
 0x137   : > { %7047 = vmatpush3.bf16.msra.mxu0 %v7707_v61  ;;  %v1498_v58 = vcombine.high %v1482_v52, %v1482_v52  ;;  %v7749_v61 = vld [vmem:[%s8045_s25 + $0xa88] sm:$0xff]  }
 0x138   : > { %7076 = vmatprep.subr.bf16.mxu0 %v7709_v4  ;;  %v7756_v4 = vld [vmem:[%s8045_s25 + $0xa18] sm:$0xff]  }
 0x139   : > { %7069 = vmatpush3.bf16.msra.mxu1 %v7708_v1  ;;  %v7753_v1 = vld [vmem:[%s8045_s25 + $0xa90] sm:$0xff]  }
 0x13a   : > { %5457 = vmatmul.mubr.bf16.vlgmr.msra.gmra.mrb[32].mxu0 %v1475_v3  ;;  %7098 = vmatprep.subr.bf16.mxu1 %v7710_v5  ;;  %v7755_v3 = vld [vmem:[%s8045_s25 + $0xad8] sm:$0xff]  }
 0x13b   : > { %7077 = vmatpush3.bf16.msra.mxu0 %v7711_v7  ;;  %5536 = vmatprep.mubr.bf16.mxu0 %v1496_v6  ;;  %v7757_v5 = vld [vmem:[%s8045_s25 + $0xa98] sm:$0xff]   ;;  %v7758_v6 = vld [vmem:[%s8045_s25 + $0xa60] sm:$0xff]  }
 0x13c   : > { %5497 = vmatmul.mubr.bf16.vlgmr.msra.gmra.mrb[32].mxu1 %v1497_v9  ;;  %7078 = vmatprep.subr.bf16.mxu0 %v7713_v10  ;;  %v7759_v7 = vld [vmem:[%s8045_s25 + $0xae0] sm:$0xff]   ;;  %v7762_v10 = vld [vmem:[%s8045_s25 + $0xa68] sm:$0xff]  }
 0x13d   : > { %7099 = vmatpush3.bf16.msra.mxu1 %v7712_v8  ;;  %5576 = vmatprep.mubr.bf16.mxu1 %v1500_v12  ;;  %v7760_v8 = vld [vmem:[%s8045_s25 + $0xa20] sm:$0xff]   ;;  %v7764_v12 = vld [vmem:[%s8045_s25 + $0xa28] sm:$0xff]  }
 0x13e   : > { %7100 = vmatprep.subr.bf16.mxu1 %v7714_v11  ;;  %v7761_v9 = vld [vmem:[%s8045_s25 + $0xaa0] sm:$0xff]   ;;  %v7763_v11 = vld [vmem:[%s8045_s25 + $0xae8] sm:$0xff]  }
 0x13f   : > { %7079 = vmatpush3.bf16.msra.mxu0 %v7715_v13  ;;  %v7765_v13 = vld [vmem:[%s8045_s25 + $0xaa8] sm:$0xff]  }
 0x140   : > { %7080 = vmatprep.subr.bf16.mxu0 %v7717_v15 }
 0x141   : > { %7101 = vmatpush3.bf16.msra.mxu1 %v7716_v14  ;;  %v7766_v14 = vld [vmem:[%s8045_s25 + $0xa70] sm:$0xff]  }
 0x142   : > { %7102 = vmatprep.subr.bf16.mxu1 %v7718_v16  ;;  %v7767_v16 = vld [vmem:[%s8045_s25 + $0xaf0] sm:$0xff]  }
 0x143   : > { %7081 = vmatpush3.bf16.msra.mxu0 %v7719_v17 }
 0x144   : > { %7082 = vmatprep.subr.bf16.mxu0 %v7721_v19  ;;  %v221_v19 = vld [vmem:[%s8040_s21 + $0x28] sm:$0xff] }
 0x145   : > { %7103 = vmatpush3.bf16.msra.mxu1 %v7720_v18  ;;  %v7768_v18 = vld [vmem:[%s8045_s25 + $0xa30] sm:$0xff]  }
 0x146   : > { %7104 = vmatprep.subr.bf16.mxu1 %v7722_v20 }
 0x147   : > { %7083 = vmatpush3.bf16.msra.mxu0 %v7723_v21 }
 0x148   : > { %7084 = vmatprep.subr.bf16.mxu0 %v7725_v23  ;;  %v1508_v23 = vrot.slane %v221_v19, %v8083_v42 }
 0x149   : > { %7105 = vmatpush3.bf16.msra.mxu1 %v7724_v22 }
 0x14a   : > { %7106 = vmatprep.subr.bf16.mxu1 %v7726_v24  ;;  %v1501_v24 = vcombine.high %v221_v19, %v221_v19 }
 0x14b   : > { %7085 = vmatpush3.bf16.msra.mxu0 %v7727_v25 }
 0x14c   : > { %7086 = vmatprep.subr.bf16.mxu0 %v7729_v27  ;;  %v7769_v27 = vld [vmem:[%s8045_s25 + $0xab0] sm:$0xff]  }
 0x14d   : > { %7107 = vmatpush3.bf16.msra.mxu1 %v7728_v26  ;;  %v6784_v32 = vpop.f32.mrb[8].mxu0 }
 0x14e   : > { %v6785_v34 = vpop.f32.mrb[9].mxu0  ;;  %7108 = vmatprep.subr.bf16.mxu1 %v7730_v28  ;;  %v7770_v28 = vld [vmem:[%s8045_s25 + $0xa78] sm:$0xff]  }
 0x14f   : > { %v6806_v36 = vpop.f32.mrb[8].mxu1  ;;  %v6786_v37 = vadd.f32 %v6785_v34, %v6784_v32  ;;  %v6787_v38 = vpop.f32.mrb[10].mxu0  ;;  %7087 = vmatpush3.bf16.msra.mxu0 %v7731_v29  ;;  %v7771_v32 = vld [vmem:[%s8045_s25 + $0xaf8] sm:$0xff]  }
 0x150   : > { %v6807_v41 = vpop.f32.mrb[9].mxu1  ;;  %v6788_v43 = vpop.f32.mrb[11].mxu0  ;;  %7088 = vmatprep.subr.bf16.mxu0 %v7733_v31  ;;  %v7773_v38 = vld [vmem:[%s8045_s25 + $0xab8] sm:$0xff]  }
 0x151   : > { %v4979_v44 = vadd.f32 %v6786_v37, %v8396_v0  ;;  %v6808_v45 = vadd.f32 %v6807_v41, %v6806_v36  ;;  %v6809_v46 = vpop.f32.mrb[10].mxu1  ;;  %7109 = vmatpush3.bf16.msra.mxu1 %v7732_v30  ;;  %v7752_v0 = vld [vmem:[%s8045_s25 + $0xa10] sm:$0xff]   ;;  %v8473_v36 = vrot.slane %v1501_v24, %v8083_v42  ;;  %v7774_v41 = vld [vmem:[%s8045_s25 + $0xb40] sm:$0xff]   ;;  %v7804_v24 = vld [vmem:[%s8045_s25 + $0xb38] sm:$0xff]  }
 0x152   : > { %v6810_v48 = vpop.f32.mrb[11].mxu1  ;;  %7110 = vmatprep.subr.bf16.mxu1 %v7734_v33  ;;  %v1516_v33 = vcombine.high %v1508_v23, %v1508_v23  ;;  %v7776_v46 = vld [vmem:[%s8045_s25 + $0xb00] sm:$0xff]  }
 0x153   : > { %v8433_v50 = vadd.f32 %v6808_v45, %v4979_v44  ;;  %7089 = vmatpush3.bf16.msra.mxu0 %v7735_v35  ;;  %v7772_v35 = vld [vmem:[%s8045_s25 + $0xa38] sm:$0xff]   ;;  %v1517_v43 = vcombine.high %v8473_v36, %v8473_v36  ;;  %v7775_v45 = vld [vmem:[%s8045_s25 + $0xbc0] sm:$0xff]  }
 0x154   : > { %7090 = vmatprep.subr.bf16.mxu0 %v7737_v40  ;;  %v1524_v40 = vrot.slane %v1508_v23, %v8083_v42  ;;  %v7777_v48 = vld [vmem:[%s8045_s25 + $0xb80] sm:$0xff]  }
 0x155   : > { %7111 = vmatpush3.bf16.msra.mxu1 %v7736_v39  ;;  %v1538_v39 = vrot.slane %v1516_v33, %v8083_v42  ;;  %v7811_v33 = vld [vmem:[%s8045_s25 + $0xc48] sm:$0xff]  }
 0x156   : > { %7112 = vmatprep.subr.bf16.mxu1 %v7738_v47  ;;  %v1545_v47 = vrot.slane %v1517_v43, %v8083_v42  ;;  %v7820_v43 = vld [vmem:[%s8045_s25 + $0xcd8] sm:$0xff]  }
 0x157   : > { %7091 = vmatpush3.bf16.msra.mxu0 %v7739_v49  ;;  %v1548_v44 = vcombine.high %v1538_v39, %v1538_v39  ;;  %v1546_v49 = vcombine.high %v1524_v40, %v1524_v40 }
 0x158   : > { %7120 = vmatprep.subr.bf16.mxu0 %v7742_v53  ;;  %v7780_v53 = vld [vmem:[%s8045_s25 + $0xb08] sm:$0xff]  }
 0x159   : > { %7113 = vmatpush3.bf16.msra.mxu1 %v7740_v51  ;;  %v7779_v51 = vld [vmem:[%s8045_s25 + $0xbc8] sm:$0xff]  }
 0x15a   : > { %5537 = vmatmul.mubr.bf16.vlgmr.msra.gmra.mrb[36].mxu0 %v1482_v52  ;;  %7142 = vmatprep.subr.bf16.mxu1 %v7743_v54  ;;  %v1549_v52 = vcombine.high %v1545_v47, %v1545_v47  ;;  %v7781_v54 = vld [vmem:[%s8045_s25 + $0xb88] sm:$0xff]  }
 0x15b   : > { %7121 = vmatpush3.bf16.msra.mxu0 %v7744_v56  ;;  %5616 = vmatprep.mubr.bf16.mxu0 %v1538_v39  ;;  %v7782_v56 = vld [vmem:[%s8045_s25 + $0xb50] sm:$0xff]  }
 0x15c   : > { %5577 = vmatmul.mubr.bf16.vlgmr.msra.gmra.mrb[36].mxu1 %v1498_v58  ;;  %7122 = vmatprep.subr.bf16.mxu0 %v7746_v59  ;;  %v7784_v58 = vld [vmem:[%s8045_s25 + $0xb10] sm:$0xff]  }
 0x15d   : > { %7143 = vmatpush3.bf16.msra.mxu1 %v7745_v57  ;;  %5656 = vmatprep.mubr.bf16.mxu1 %v1548_v44  ;;  %v7783_v57 = vld [vmem:[%s8045_s25 + $0xbd0] sm:$0xff]   ;;  %v7821_v44 = vld [vmem:[%s8045_s25 + $0xc18] sm:$0xff]  }
 0x15e   : > { %7144 = vmatprep.subr.bf16.mxu1 %v7747_v60  ;;  %v7785_v59 = vld [vmem:[%s8045_s25 + $0xb90] sm:$0xff]   ;;  %v7786_v60 = vld [vmem:[%s8045_s25 + $0xb58] sm:$0xff]  }
 0x15f   : > { %7123 = vmatpush3.bf16.msra.mxu0 %v7748_v55  ;;  %v7787_v55 = vld [vmem:[%s8045_s25 + $0xbd8] sm:$0xff]   ;;  %v7817_v39 = vld [vmem:[%s8045_s25 + $0xc10] sm:$0xff]  }
 0x160   : > { %7124 = vmatprep.subr.bf16.mxu0 %v7750_v62  ;;  %v7789_v62 = vld [vmem:[%s8045_s25 + $0xb98] sm:$0xff]  }
 0x161   : > { %7145 = vmatpush3.bf16.msra.mxu1 %v7749_v61  ;;  %v7788_v61 = vld [vmem:[%s8045_s25 + $0xb18] sm:$0xff]  }
 0x162   : > { %7146 = vmatprep.subr.bf16.mxu1 %v7751_v63  ;;  %v7790_v63 = vld [vmem:[%s8045_s25 + $0xb60] sm:$0xff]  }
 0x163   : > { %7125 = vmatpush3.bf16.msra.mxu0 %v7752_v0  ;;  %v7791_v0 = vld [vmem:[%s8045_s25 + $0xbe0] sm:$0xff]  }
 0x164   : > { %7126 = vmatprep.subr.bf16.mxu0 %v7754_v2  ;;  %v7793_v2 = vld [vmem:[%s8045_s25 + $0xba0] sm:$0xff]  }
 0x165   : > { %7147 = vmatpush3.bf16.msra.mxu1 %v7753_v1  ;;  %v7792_v1 = vld [vmem:[%s8045_s25 + $0xb20] sm:$0xff]  }
 0x166   : > { %7148 = vmatprep.subr.bf16.mxu1 %v7755_v3  ;;  %v7794_v3 = vld [vmem:[%s8045_s25 + $0xb68] sm:$0xff]  }
 0x167   : > { %7127 = vmatpush3.bf16.msra.mxu0 %v7756_v4  ;;  %v7795_v4 = vld [vmem:[%s8045_s25 + $0xbe8] sm:$0xff]  }
 0x168   : > { %7128 = vmatprep.subr.bf16.mxu0 %v7758_v6  ;;  %v7797_v6 = vld [vmem:[%s8045_s25 + $0xba8] sm:$0xff]  }
 0x169   : > { %7149 = vmatpush3.bf16.msra.mxu1 %v7757_v5  ;;  %v7796_v5 = vld [vmem:[%s8045_s25 + $0xb28] sm:$0xff]  }
 0x16a   : > { %7150 = vmatprep.subr.bf16.mxu1 %v7759_v7  ;;  %v7798_v7 = vld [vmem:[%s8045_s25 + $0xb70] sm:$0xff]  }
 0x16b   : > { %7129 = vmatpush3.bf16.msra.mxu0 %v7760_v8 }
 0x16c   : > { %7130 = vmatprep.subr.bf16.mxu0 %v7762_v10 }
 0x16d   : > { %7151 = vmatpush3.bf16.msra.mxu1 %v7761_v9  ;;  %v6828_v15 = vpop.f32.mrb[12].mxu0  ;;  %v7799_v9 = vld [vmem:[%s8045_s25 + $0xbf0] sm:$0xff]  }
 0x16e   : > { %v6829_v17 = vpop.f32.mrb[13].mxu0  ;;  %7152 = vmatprep.subr.bf16.mxu1 %v7763_v11  ;;  %v7800_v11 = vld [vmem:[%s8045_s25 + $0xb30] sm:$0xff]  }
 0x16f   : > { %v6850_v20 = vpop.f32.mrb[12].mxu1  ;;  %v6830_v21 = vadd.f32 %v6829_v17, %v6828_v15  ;;  %v6831_v22 = vpop.f32.mrb[14].mxu0  ;;  %7131 = vmatpush3.bf16.msra.mxu0 %v7764_v12  ;;  %v7801_v15 = vld [vmem:[%s8045_s25 + $0xbb0] sm:$0xff]  }
 0x170   : > { %v6851_v25 = vpop.f32.mrb[13].mxu1  ;;  %v6832_v26 = vpop.f32.mrb[15].mxu0  ;;  %7132 = vmatprep.subr.bf16.mxu0 %v7766_v14  ;;  %v7803_v22 = vld [vmem:[%s8045_s25 + $0xbf8] sm:$0xff]  }
 0x171   : > { %v5059_v29 = vadd.f32 %v6830_v21, %v8433_v50  ;;  %v6852_v30 = vadd.f32 %v6851_v25, %v6850_v20  ;;  %v6853_v31 = vpop.f32.mrb[14].mxu1  ;;  %7153 = vmatpush3.bf16.msra.mxu1 %v7765_v13  ;;  %v7778_v50 = vld [vmem:[%s8045_s25 + $0xb48] sm:$0xff]   ;;  %v7805_v26 = vld [vmem:[%s8045_s25 + $0xbb8] sm:$0xff]  }
 0x172   : > { %v6854_v34 = vpop.f32.mrb[15].mxu1  ;;  %7154 = vmatprep.subr.bf16.mxu1 %v7767_v16  ;;  %v7802_v16 = vld [vmem:[%s8045_s25 + $0xb78] sm:$0xff]   ;;  %v7810_v31 = vld [vmem:[%s8045_s25 + $0xc80] sm:$0xff]  }
 0x173   : > { %v8475_v37 = vadd.f32 %v6852_v30, %v5059_v29  ;;  %7133 = vmatpush3.bf16.msra.mxu0 %v7768_v18  ;;  %v7808_v29 = vld [vmem:[%s8045_s25 + $0xcc0] sm:$0xff]   ;;  %v7812_v34 = vld [vmem:[%s8045_s25 + $0xcc8] sm:$0xff]  }
 0x174   : > { %7134 = vmatprep.subr.bf16.mxu0 %v7770_v28  ;;  %v7807_v28 = vld [vmem:[%s8045_s25 + $0xc40] sm:$0xff]  }
 0x175   : > { %7155 = vmatpush3.bf16.msra.mxu1 %v7769_v27  ;;  %v1531_v27 = vrot.slane %v8473_v36, %v8083_v42  ;;  %v7809_v30 = vld [vmem:[%s8045_s25 + $0xc00] sm:$0xff]   ;;  %v7814_v36 = vld [vmem:[%s8045_s25 + $0xc88] sm:$0xff]  }
 0x176   : > { %7156 = vmatprep.subr.bf16.mxu1 %v7771_v32 }
 0x177   : > { %7135 = vmatpush3.bf16.msra.mxu0 %v7772_v35  ;;  %v1547_v32 = vcombine.high %v1531_v27, %v1531_v27  ;;  %v7813_v35 = vld [vmem:[%s8045_s25 + $0xc08] sm:$0xff]  }
 0x178   : > { %7164 = vmatprep.subr.bf16.mxu0 %v7774_v41  ;;  %v7819_v41 = vld [vmem:[%s8045_s25 + $0xc58] sm:$0xff]  }
 0x179   : > { %7157 = vmatpush3.bf16.msra.mxu1 %v7773_v38  ;;  %v7816_v38 = vld [vmem:[%s8045_s25 + $0xcd0] sm:$0xff]  }
 0x17a   : > { %5617 = vmatmul.mubr.bf16.vlgmr.msra.gmra.mrb[40].mxu0 %v1524_v40  ;;  %7186 = vmatprep.subr.bf16.mxu1 %v7775_v45  ;;  %v7818_v40 = vld [vmem:[%s8045_s25 + $0xc90] sm:$0xff]   ;;  %v7822_v45 = vld [vmem:[%s8045_s25 + $0xc98] sm:$0xff]  }
 0x17b   : > { %7165 = vmatpush3.bf16.msra.mxu0 %v7776_v46  ;;  %5696 = vmatprep.mubr.bf16.mxu0 %v1545_v47  ;;  %v7823_v46 = vld [vmem:[%s8045_s25 + $0xc60] sm:$0xff]  }
 0x17c   : > { %5657 = vmatmul.mubr.bf16.vlgmr.msra.gmra.mrb[40].mxu1 %v1546_v49  ;;  %7166 = vmatprep.subr.bf16.mxu0 %v7778_v50  ;;  %v7824_v47 = vld [vmem:[%s8045_s25 + $0xce0] sm:$0xff]   ;;  %v7827_v50 = vld [vmem:[%s8045_s25 + $0xc68] sm:$0xff]  }
 0x17d   : > { %7187 = vmatpush3.bf16.msra.mxu1 %v7777_v48  ;;  %5736 = vmatprep.mubr.bf16.mxu1 %v1549_v52  ;;  %v7825_v48 = vld [vmem:[%s8045_s25 + $0xc20] sm:$0xff]   ;;  %v7829_v52 = vld [vmem:[%s8045_s25 + $0xc28] sm:$0xff]  }
 0x17e   : > { %7188 = vmatprep.subr.bf16.mxu1 %v7779_v51  ;;  %v7826_v49 = vld [vmem:[%s8045_s25 + $0xca0] sm:$0xff]   ;;  %v7828_v51 = vld [vmem:[%s8045_s25 + $0xce8] sm:$0xff]  }
 0x17f   : > { %7167 = vmatpush3.bf16.msra.mxu0 %v7780_v53  ;;  %v7830_v53 = vld [vmem:[%s8045_s25 + $0xca8] sm:$0xff]  }
 0x180   : > { %7168 = vmatprep.subr.bf16.mxu0 %v7782_v56 }
 0x181   : > { %7189 = vmatpush3.bf16.msra.mxu1 %v7781_v54  ;;  %v7831_v54 = vld [vmem:[%s8045_s25 + $0xc70] sm:$0xff]  }
 0x182   : > { %7190 = vmatprep.subr.bf16.mxu1 %v7783_v57  ;;  %v7832_v57 = vld [vmem:[%s8045_s25 + $0xcf0] sm:$0xff]  }
 0x183   : > { %7169 = vmatpush3.bf16.msra.mxu0 %v7784_v58 }
 0x184   : > { %7170 = vmatprep.subr.bf16.mxu0 %v7786_v60 }
 0x185   : > { %7191 = vmatpush3.bf16.msra.mxu1 %v7785_v59  ;;  %v7833_v59 = vld [vmem:[%s8045_s25 + $0xc30] sm:$0xff]  }
 0x186   : > { %7192 = vmatprep.subr.bf16.mxu1 %v7787_v55 }
 0x187   : > { %7171 = vmatpush3.bf16.msra.mxu0 %v7788_v61 }
 0x188   : > { %7172 = vmatprep.subr.bf16.mxu0 %v7790_v63  ;;  %v7835_v63 = vld [vmem:[%s8045_s25 + $0xc78] sm:$0xff]  }
 0x189   : > { %7193 = vmatpush3.bf16.msra.mxu1 %v7789_v62  ;;  %v7834_v62 = vld [vmem:[%s8045_s25 + $0xcb0] sm:$0xff]  }
 0x18a   : > { %7194 = vmatprep.subr.bf16.mxu1 %v7791_v0  ;;  %v222_v0 = vld [vmem:[%s8040_s21 + $0x30] sm:$0xff] }
 0x18b   : > { %7173 = vmatpush3.bf16.msra.mxu0 %v7792_v1 }
 0x18c   : > { %7174 = vmatprep.subr.bf16.mxu0 %v7794_v3  ;;  %v1557_v3 = vrot.slane %v222_v0, %v8083_v42 }
 0x18d   : > { %7195 = vmatpush3.bf16.msra.mxu1 %v7793_v2  ;;  %v6872_v8 = vpop.f32.mrb[16].mxu0 }
 0x18e   : > { %v6873_v10 = vpop.f32.mrb[17].mxu0  ;;  %7196 = vmatprep.subr.bf16.mxu1 %v7795_v4  ;;  %v1550_v4 = vcombine.high %v222_v0, %v222_v0  ;;  %v7869_v0 = vld [vmem:[%s8045_s25 + $0xd38] sm:$0xff]  }
 0x18f   : > { %v6894_v12 = vpop.f32.mrb[16].mxu1  ;;  %v6874_v13 = vadd.f32 %v6873_v10, %v6872_v8  ;;  %v6875_v14 = vpop.f32.mrb[18].mxu0  ;;  %7175 = vmatpush3.bf16.msra.mxu0 %v7796_v5  ;;  %v7836_v8 = vld [vmem:[%s8045_s25 + $0xcf8] sm:$0xff]  }
 0x190   : > { %v6895_v17 = vpop.f32.mrb[17].mxu1  ;;  %v6876_v18 = vpop.f32.mrb[19].mxu0  ;;  %7176 = vmatprep.subr.bf16.mxu0 %v7798_v7  ;;  %v7837_v10 = vld [vmem:[%s8045_s25 + $0xc38] sm:$0xff]  }
 0x191   : > { %v5139_v19 = vadd.f32 %v6874_v13, %v8475_v37  ;;  %v6896_v20 = vadd.f32 %v6895_v17, %v6894_v12  ;;  %v6897_v21 = vpop.f32.mrb[18].mxu1  ;;  %7197 = vmatpush3.bf16.msra.mxu1 %v7797_v6  ;;  %v7815_v37 = vld [vmem:[%s8045_s25 + $0xc50] sm:$0xff]   ;;  %v8555_v12 = vrot.slane %v1550_v4, %v8083_v42  ;;  %v7838_v14 = vld [vmem:[%s8045_s25 + $0xcb8] sm:$0xff]   ;;  %v7839_v17 = vld [vmem:[%s8045_s25 + $0xd40] sm:$0xff]  }
 0x192   : > { %v6898_v23 = vpop.f32.mrb[19].mxu1  ;;  %7198 = vmatprep.subr.bf16.mxu1 %v7799_v9  ;;  %v7841_v21 = vld [vmem:[%s8045_s25 + $0xd00] sm:$0xff]  }
 0x193   : > { %v8515_v25 = vadd.f32 %v6896_v20, %v5139_v19  ;;  %7177 = vmatpush3.bf16.msra.mxu0 %v7800_v11  ;;  %v1565_v11 = vcombine.high %v1557_v3, %v1557_v3  ;;  %v1566_v18 = vcombine.high %v8555_v12, %v8555_v12  ;;  %v7840_v19 = vld [vmem:[%s8045_s25 + $0xdc0] sm:$0xff]  }
 0x194   : > { %7178 = vmatprep.subr.bf16.mxu0 %v7802_v16  ;;  %v1573_v16 = vrot.slane %v1557_v3, %v8083_v42  ;;  %v7842_v23 = vld [vmem:[%s8045_s25 + $0xd80] sm:$0xff]   ;;  %v1580_v3 = vrot.slane %v8555_v12, %v8083_v42  ;;  %v7879_v12 = vld [vmem:[%s8045_s25 + $0xe88] sm:$0xff]  }
 0x195   : > { %7199 = vmatpush3.bf16.msra.mxu1 %v7801_v15  ;;  %v1587_v15 = vrot.slane %v1565_v11, %v8083_v42  ;;  %v7872_v4 = vld [vmem:[%s8045_s25 + $0xe40] sm:$0xff]   ;;  %v7878_v11 = vld [vmem:[%s8045_s25 + $0xe08] sm:$0xff]  }
 0x196   : > { %7200 = vmatprep.subr.bf16.mxu1 %v7803_v22  ;;  %v1594_v22 = vrot.slane %v1566_v18, %v8083_v42  ;;  %v7885_v18 = vld [vmem:[%s8045_s25 + $0xed8] sm:$0xff]  }
 0x197   : > { %7179 = vmatpush3.bf16.msra.mxu0 %v7804_v24  ;;  %v1597_v20 = vcombine.high %v1587_v15, %v1587_v15  ;;  %v1595_v24 = vcombine.high %v1573_v16, %v1573_v16 }
 0x198   : > { %7208 = vmatprep.subr.bf16.mxu0 %v7807_v28  ;;  %v7845_v28 = vld [vmem:[%s8045_s25 + $0xd08] sm:$0xff]  }
 0x199   : > { %7201 = vmatpush3.bf16.msra.mxu1 %v7805_v26  ;;  %v7844_v26 = vld [vmem:[%s8045_s25 + $0xdc8] sm:$0xff]  }
 0x19a   : > { %5697 = vmatmul.mubr.bf16.vlgmr.msra.gmra.mrb[44].mxu0 %v1531_v27  ;;  %7230 = vmatprep.subr.bf16.mxu1 %v7808_v29  ;;  %v1598_v27 = vcombine.high %v1594_v22, %v1594_v22  ;;  %v7846_v29 = vld [vmem:[%s8045_s25 + $0xd88] sm:$0xff]  }
 0x19b   : > { %7209 = vmatpush3.bf16.msra.mxu0 %v7809_v30  ;;  %5776 = vmatprep.mubr.bf16.mxu0 %v1587_v15  ;;  %v7847_v30 = vld [vmem:[%s8045_s25 + $0xd50] sm:$0xff]  }
 0x19c   : > { %5737 = vmatmul.mubr.bf16.vlgmr.msra.gmra.mrb[44].mxu1 %v1547_v32  ;;  %7210 = vmatprep.subr.bf16.mxu0 %v7811_v33  ;;  %v7849_v32 = vld [vmem:[%s8045_s25 + $0xd10] sm:$0xff]  }
 0x19d   : > { %7231 = vmatpush3.bf16.msra.mxu1 %v7810_v31  ;;  %5816 = vmatprep.mubr.bf16.mxu1 %v1597_v20  ;;  %v7848_v31 = vld [vmem:[%s8045_s25 + $0xdd0] sm:$0xff]   ;;  %v7887_v20 = vld [vmem:[%s8045_s25 + $0xe98] sm:$0xff]  }
 0x19e   : > { %7232 = vmatprep.subr.bf16.mxu1 %v7812_v34  ;;  %v7850_v33 = vld [vmem:[%s8045_s25 + $0xd90] sm:$0xff]   ;;  %v7851_v34 = vld [vmem:[%s8045_s25 + $0xd58] sm:$0xff]  }
 0x19f   : > { %7211 = vmatpush3.bf16.msra.mxu0 %v7813_v35  ;;  %v7852_v35 = vld [vmem:[%s8045_s25 + $0xdd8] sm:$0xff]   ;;  %v7882_v15 = vld [vmem:[%s8045_s25 + $0xe10] sm:$0xff]  }
 0x1a0   : > { %7212 = vmatprep.subr.bf16.mxu0 %v7815_v37  ;;  %v7854_v37 = vld [vmem:[%s8045_s25 + $0xd98] sm:$0xff]  }
 0x1a1   : > { %7233 = vmatpush3.bf16.msra.mxu1 %v7814_v36  ;;  %v7853_v36 = vld [vmem:[%s8045_s25 + $0xd18] sm:$0xff]  }
 0x1a2   : > { %7234 = vmatprep.subr.bf16.mxu1 %v7816_v38  ;;  %v7855_v38 = vld [vmem:[%s8045_s25 + $0xd60] sm:$0xff]  }
 0x1a3   : > { %7213 = vmatpush3.bf16.msra.mxu0 %v7817_v39  ;;  %v7856_v39 = vld [vmem:[%s8045_s25 + $0xde0] sm:$0xff]  }
 0x1a4   : > { %7214 = vmatprep.subr.bf16.mxu0 %v7819_v41  ;;  %v7858_v41 = vld [vmem:[%s8045_s25 + $0xda0] sm:$0xff]  }
 0x1a5   : > { %7235 = vmatpush3.bf16.msra.mxu1 %v7818_v40  ;;  %v7857_v40 = vld [vmem:[%s8045_s25 + $0xd20] sm:$0xff]  }
 0x1a6   : > { %7236 = vmatprep.subr.bf16.mxu1 %v7820_v43  ;;  %v7859_v43 = vld [vmem:[%s8045_s25 + $0xd68] sm:$0xff]  }
 0x1a7   : > { %7215 = vmatpush3.bf16.msra.mxu0 %v7821_v44  ;;  %v7860_v44 = vld [vmem:[%s8045_s25 + $0xde8] sm:$0xff]  }
 0x1a8   : > { %7216 = vmatprep.subr.bf16.mxu0 %v7823_v46  ;;  %v7862_v46 = vld [vmem:[%s8045_s25 + $0xda8] sm:$0xff]  }
 0x1a9   : > { %7237 = vmatpush3.bf16.msra.mxu1 %v7822_v45  ;;  %v7861_v45 = vld [vmem:[%s8045_s25 + $0xd28] sm:$0xff]  }
 0x1aa   : > { %7238 = vmatprep.subr.bf16.mxu1 %v7824_v47  ;;  %v7863_v47 = vld [vmem:[%s8045_s25 + $0xd70] sm:$0xff]  }
 0x1ab   : > { %7217 = vmatpush3.bf16.msra.mxu0 %v7825_v48 }
 0x1ac   : > { %7218 = vmatprep.subr.bf16.mxu0 %v7827_v50 }
 0x1ad   : > { %7239 = vmatpush3.bf16.msra.mxu1 %v7826_v49  ;;  %v6916_v56 = vpop.f32.mrb[20].mxu0  ;;  %v7864_v49 = vld [vmem:[%s8045_s25 + $0xdf0] sm:$0xff]  }
 0x1ae   : > { %v6917_v58 = vpop.f32.mrb[21].mxu0  ;;  %7240 = vmatprep.subr.bf16.mxu1 %v7828_v51  ;;  %v7865_v51 = vld [vmem:[%s8045_s25 + $0xd30] sm:$0xff]  }
 0x1af   : > { %v6938_v60 = vpop.f32.mrb[20].mxu1  ;;  %v6918_v55 = vadd.f32 %v6917_v58, %v6916_v56  ;;  %v6919_v61 = vpop.f32.mrb[22].mxu0  ;;  %7219 = vmatpush3.bf16.msra.mxu0 %v7829_v52  ;;  %v7866_v56 = vld [vmem:[%s8045_s25 + $0xdb0] sm:$0xff]  }
 0x1b0   : > { %v6939_v1 = vpop.f32.mrb[21].mxu1  ;;  %v6920_v2 = vpop.f32.mrb[23].mxu0  ;;  %7220 = vmatprep.subr.bf16.mxu0 %v7831_v54 }
 0x1b1   : > { %v5219_v5 = vadd.f32 %v6918_v55, %v8515_v25  ;;  %v6940_v6 = vadd.f32 %v6939_v1, %v6938_v60  ;;  %v6941_v7 = vpop.f32.mrb[22].mxu1  ;;  %7241 = vmatpush3.bf16.msra.mxu1 %v7830_v53  ;;  %v7843_v25 = vld [vmem:[%s8045_s25 + $0xd48] sm:$0xff]   ;;  %v7870_v2 = vld [vmem:[%s8045_s25 + $0xdb8] sm:$0xff]  }
 0x1b2   : > { %v6942_v9 = vpop.f32.mrb[23].mxu1  ;;  %7242 = vmatprep.subr.bf16.mxu1 %v7832_v57  ;;  %v7867_v57 = vld [vmem:[%s8045_s25 + $0xd78] sm:$0xff]   ;;  %v7875_v7 = vld [vmem:[%s8045_s25 + $0xe80] sm:$0xff]  }
 0x1b3   : > { %v8557_v13 = vadd.f32 %v6940_v6, %v5219_v5  ;;  %7221 = vmatpush3.bf16.msra.mxu0 %v7833_v59  ;;  %v7873_v5 = vld [vmem:[%s8045_s25 + $0xec0] sm:$0xff]   ;;  %v7876_v9 = vld [vmem:[%s8045_s25 + $0xe48] sm:$0xff]  }
 0x1b4   : > { %7222 = vmatprep.subr.bf16.mxu0 %v7835_v63  ;;  %v7874_v6 = vld [vmem:[%s8045_s25 + $0xe00] sm:$0xff]  }
 0x1b5   : > { %7243 = vmatpush3.bf16.msra.mxu1 %v7834_v62  ;;  %v7868_v62 = vld [vmem:[%s8045_s25 + $0xdf8] sm:$0xff]  }
 0x1b6   : > { %7244 = vmatprep.subr.bf16.mxu1 %v7836_v8  ;;  %v1596_v8 = vcombine.high %v1580_v3, %v1580_v3 }
 0x1b7   : > { %7223 = vmatpush3.bf16.msra.mxu0 %v7837_v10  ;;  %v7877_v10 = vld [vmem:[%s8045_s25 + $0xec8] sm:$0xff]  }
 0x1b8   : > { %7252 = vmatprep.subr.bf16.mxu0 %v7839_v17  ;;  %v7884_v17 = vld [vmem:[%s8045_s25 + $0xe58] sm:$0xff]  }
 0x1b9   : > { %7245 = vmatpush3.bf16.msra.mxu1 %v7838_v14  ;;  %v7881_v14 = vld [vmem:[%s8045_s25 + $0xed0] sm:$0xff]  }
 0x1ba   : > { %5777 = vmatmul.mubr.bf16.vlgmr.msra.gmra.mrb[48].mxu0 %v1573_v16  ;;  %7274 = vmatprep.subr.bf16.mxu1 %v7840_v19  ;;  %v7883_v16 = vld [vmem:[%s8045_s25 + $0xe90] sm:$0xff]   ;;  %v7886_v19 = vld [vmem:[%s8045_s25 + $0xe18] sm:$0xff]  }
 0x1bb   : > { %7253 = vmatpush3.bf16.msra.mxu0 %v7841_v21  ;;  %5856 = vmatprep.mubr.bf16.mxu0 %v1594_v22  ;;  %v7888_v21 = vld [vmem:[%s8045_s25 + $0xe60] sm:$0xff]  }
 0x1bc   : > { %5817 = vmatmul.mubr.bf16.vlgmr.msra.gmra.mrb[48].mxu1 %v1595_v24  ;;  %7254 = vmatprep.subr.bf16.mxu0 %v7843_v25  ;;  %v7889_v22 = vld [vmem:[%s8045_s25 + $0xee0] sm:$0xff]   ;;  %v7892_v25 = vld [vmem:[%s8045_s25 + $0xe68] sm:$0xff]  }
 0x1bd   : > { %7275 = vmatpush3.bf16.msra.mxu1 %v7842_v23  ;;  %5896 = vmatprep.mubr.bf16.mxu1 %v1598_v27  ;;  %v7890_v23 = vld [vmem:[%s8045_s25 + $0xe20] sm:$0xff]   ;;  %v7894_v27 = vld [vmem:[%s8045_s25 + $0xe28] sm:$0xff]  }
 0x1be   : > { %7276 = vmatprep.subr.bf16.mxu1 %v7844_v26  ;;  %v7891_v24 = vld [vmem:[%s8045_s25 + $0xea0] sm:$0xff]   ;;  %v7893_v26 = vld [vmem:[%s8045_s25 + $0xee8] sm:$0xff]  }
 0x1bf   : > { %7255 = vmatpush3.bf16.msra.mxu0 %v7845_v28  ;;  %v7895_v28 = vld [vmem:[%s8045_s25 + $0xea8] sm:$0xff]  }
 0x1c0   : > { %7256 = vmatprep.subr.bf16.mxu0 %v7847_v30 }
 0x1c1   : > { %7277 = vmatpush3.bf16.msra.mxu1 %v7846_v29  ;;  %v7896_v29 = vld [vmem:[%s8045_s25 + $0xe70] sm:$0xff]  }
 0x1c2   : > { %7278 = vmatprep.subr.bf16.mxu1 %v7848_v31  ;;  %v7897_v31 = vld [vmem:[%s8045_s25 + $0xef0] sm:$0xff]  }
 0x1c3   : > { %7257 = vmatpush3.bf16.msra.mxu0 %v7849_v32 }
 0x1c4   : > { %7258 = vmatprep.subr.bf16.mxu0 %v7851_v34 }
 0x1c5   : > { %7279 = vmatpush3.bf16.msra.mxu1 %v7850_v33  ;;  %v7898_v33 = vld [vmem:[%s8045_s25 + $0xe30] sm:$0xff]  }
 0x1c6   : > { %7280 = vmatprep.subr.bf16.mxu1 %v7852_v35 }
 0x1c7   : > { %7259 = vmatpush3.bf16.msra.mxu0 %v7853_v36 }
 0x1c8   : > { %7260 = vmatprep.subr.bf16.mxu0 %v7855_v38  ;;  %v7900_v38 = vld [vmem:[%s8045_s25 + $0xe78] sm:$0xff]  }
 0x1c9   : > { %7281 = vmatpush3.bf16.msra.mxu1 %v7854_v37  ;;  %v7899_v37 = vld [vmem:[%s8045_s25 + $0xeb0] sm:$0xff]  }
 0x1ca   : > { %7282 = vmatprep.subr.bf16.mxu1 %v7856_v39 }
 0x1cb   : > { %7261 = vmatpush3.bf16.msra.mxu0 %v7857_v40 }
 0x1cc   : > { %7262 = vmatprep.subr.bf16.mxu0 %v7859_v43 }
 0x1cd   : > { %7283 = vmatpush3.bf16.msra.mxu1 %v7858_v41  ;;  %v6960_v48 = vpop.f32.mrb[24].mxu0 }
 0x1ce   : > { %v6961_v50 = vpop.f32.mrb[25].mxu0  ;;  %7284 = vmatprep.subr.bf16.mxu1 %v7860_v44 }
 0x1cf   : > { %v6982_v52 = vpop.f32.mrb[24].mxu1  ;;  %v6962_v53 = vadd.f32 %v6961_v50, %v6960_v48  ;;  %v6963_v54 = vpop.f32.mrb[26].mxu0  ;;  %7263 = vmatpush3.bf16.msra.mxu0 %v7861_v45  ;;  %v223_v45 = vld [vmem:[%s8040_s21 + $0x38] sm:$0xff] }
 0x1d0   : > { %v6983_v58 = vpop.f32.mrb[25].mxu1  ;;  %v6964_v59 = vpop.f32.mrb[27].mxu0  ;;  %7264 = vmatprep.subr.bf16.mxu0 %v7863_v47  ;;  %v7901_v47 = vld [vmem:[%s8045_s25 + $0xef8] sm:$0xff]   ;;  %v1606_v48 = vrot.slane %v223_v45, %v8083_v42  ;;  %v7904_v54 = vld [vmem:[%s8045_s25 + $0xf40] sm:$0xff]  }
 0x1d1   : > { %v5299_v60 = vadd.f32 %v6962_v53, %v8557_v13  ;;  %v6984_v55 = vadd.f32 %v6983_v58, %v6982_v52  ;;  %v6985_v61 = vpop.f32.mrb[26].mxu1  ;;  %7285 = vmatpush3.bf16.msra.mxu1 %v7862_v46  ;;  %v7880_v13 = vld [vmem:[%s8045_s25 + $0xe50] sm:$0xff]   ;;  %v7905_v59 = vld [vmem:[%s8045_s25 + $0xfc0] sm:$0xff]  }
 0x1d2   : > { %v6986_v63 = vpop.f32.mrb[27].mxu1  ;;  %7286 = vmatprep.subr.bf16.mxu1 %v7864_v49  ;;  %v1599_v49 = vcombine.high %v223_v45, %v223_v45  ;;  %v1614_v52 = vcombine.high %v1606_v48, %v1606_v48  ;;  %v1622_v53 = vrot.slane %v1606_v48, %v8083_v42 }
 0x1d3   : > { %v8597_v1 = vadd.f32 %v6984_v55, %v5299_v60  ;;  %7265 = vmatpush3.bf16.msra.mxu0 %v7865_v51  ;;  %v7902_v51 = vld [vmem:[%s8045_s25 + $0xe38] sm:$0xff]   ;;  %v7906_v55 = vld [vmem:[%s8045_s25 + $0xf00] sm:$0xff]   ;;  %v7908_v63 = vld [vmem:[%s8045_s25 + $0xf48] sm:$0xff]  }
 0x1d4   : > { %7266 = vmatprep.subr.bf16.mxu0 %v7867_v57  ;;  %v7903_v57 = vld [vmem:[%s8045_s25 + $0xeb8] sm:$0xff]   ;;  %v1636_v58 = vrot.slane %v1614_v52, %v8083_v42 }
 0x1d5   : > { %7287 = vmatpush3.bf16.msra.mxu1 %v7866_v56  ;;  %v8641_v56 = vrot.slane %v1599_v49, %v8083_v42 }
 0x1d6   : > { %7288 = vmatprep.subr.bf16.mxu1 %v7868_v62  ;;  %v1646_v61 = vcombine.high %v1636_v58, %v1636_v58  ;;  %v1644_v62 = vcombine.high %v1622_v53, %v1622_v53 }
 0x1d7   : > { %7267 = vmatpush3.bf16.msra.mxu0 %v7869_v0  ;;  %v1615_v60 = vcombine.high %v8641_v56, %v8641_v56 }
 0x1d8   : > { %7296 = vmatprep.subr.bf16.mxu0 %v7872_v4  ;;  %v7910_v4 = vld [vmem:[%s8045_s25 + $0xf08] sm:$0xff]  }
 0x1d9   : > { %7289 = vmatpush3.bf16.msra.mxu1 %v7870_v2  ;;  %v1643_v0 = vrot.slane %v1615_v60, %v8083_v42  ;;  %v7909_v2 = vld [vmem:[%s8045_s25 + $0xfc8] sm:$0xff]  }
 0x1da   : > { %5857 = vmatmul.mubr.bf16.vlgmr.msra.gmra.mrb[52].mxu0 %v1580_v3  ;;  %7318 = vmatprep.subr.bf16.mxu1 %v7873_v5  ;;  %v7912_v5 = vld [vmem:[%s8045_s25 + $0xf50] sm:$0xff]  }
 0x1db   : > { %7297 = vmatpush3.bf16.msra.mxu0 %v7874_v6  ;;  %5936 = vmatprep.mubr.bf16.mxu0 %v1636_v58  ;;  %v1647_v3 = vcombine.high %v1643_v0, %v1643_v0  ;;  %v7911_v6 = vld [vmem:[%s8045_s25 + $0xf88] sm:$0xff]  }
 0x1dc   : > { %5897 = vmatmul.mubr.bf16.vlgmr.msra.gmra.mrb[52].mxu1 %v1596_v8  ;;  %7298 = vmatprep.subr.bf16.mxu0 %v7876_v9  ;;  %v7914_v8 = vld [vmem:[%s8045_s25 + $0xf10] sm:$0xff]   ;;  %v7916_v9 = vld [vmem:[%s8045_s25 + $0xf58] sm:$0xff]  }
 0x1dd   : > { %7319 = vmatpush3.bf16.msra.mxu1 %v7875_v7  ;;  %5976 = vmatprep.mubr.bf16.mxu1 %v1646_v61  ;;  %v7913_v7 = vld [vmem:[%s8045_s25 + $0xfd0] sm:$0xff]  }
 0x1de   : > { %7320 = vmatprep.subr.bf16.mxu1 %v7877_v10  ;;  %v7915_v10 = vld [vmem:[%s8045_s25 + $0xf90] sm:$0xff]  }
 0x1df   : > { %7299 = vmatpush3.bf16.msra.mxu0 %v7878_v11  ;;  %v7917_v11 = vld [vmem:[%s8045_s25 + $0xfd8] sm:$0xff]  }
 0x1e0   : > { %7300 = vmatprep.subr.bf16.mxu0 %v7880_v13  ;;  %v7920_v13 = vld [vmem:[%s8045_s25 + $0xf60] sm:$0xff]  }
 0x1e1   : > { %7321 = vmatpush3.bf16.msra.mxu1 %v7879_v12  ;;  %v7918_v12 = vld [vmem:[%s8045_s25 + $0xf18] sm:$0xff]  }
 0x1e2   : > { %7322 = vmatprep.subr.bf16.mxu1 %v7881_v14  ;;  %v7919_v14 = vld [vmem:[%s8045_s25 + $0xf98] sm:$0xff]  }
 0x1e3   : > { %7301 = vmatpush3.bf16.msra.mxu0 %v7882_v15  ;;  %v7921_v15 = vld [vmem:[%s8045_s25 + $0xfe0] sm:$0xff]  }
 0x1e4   : > { %7302 = vmatprep.subr.bf16.mxu0 %v7884_v17  ;;  %v7924_v17 = vld [vmem:[%s8045_s25 + $0xf68] sm:$0xff]  }
 0x1e5   : > { %7323 = vmatpush3.bf16.msra.mxu1 %v7883_v16  ;;  %v7922_v16 = vld [vmem:[%s8045_s25 + $0xf20] sm:$0xff]  }
 0x1e6   : > { %7324 = vmatprep.subr.bf16.mxu1 %v7885_v18  ;;  %v7923_v18 = vld [vmem:[%s8045_s25 + $0xfa0] sm:$0xff]  }
 0x1e7   : > { %7303 = vmatpush3.bf16.msra.mxu0 %v7886_v19  ;;  %v7925_v19 = vld [vmem:[%s8045_s25 + $0xfe8] sm:$0xff]  }
 0x1e8   : > { %7304 = vmatprep.subr.bf16.mxu0 %v7888_v21  ;;  %v7928_v21 = vld [vmem:[%s8045_s25 + $0xf70] sm:$0xff]  }
 0x1e9   : > { %7325 = vmatpush3.bf16.msra.mxu1 %v7887_v20  ;;  %v7926_v20 = vld [vmem:[%s8045_s25 + $0xf28] sm:$0xff]  }
 0x1ea   : > { %7326 = vmatprep.subr.bf16.mxu1 %v7889_v22 }
 0x1eb   : > { %7305 = vmatpush3.bf16.msra.mxu0 %v7890_v23  ;;  %v7927_v23 = vld [vmem:[%s8045_s25 + $0xfa8] sm:$0xff]  }
 0x1ec   : > { %7306 = vmatprep.subr.bf16.mxu0 %v7892_v25  ;;  %v7929_v25 = vld [vmem:[%s8045_s25 + $0xff0] sm:$0xff]  }
 0x1ed   : > { %7327 = vmatpush3.bf16.msra.mxu1 %v7891_v24  ;;  %v7004_v30 = vpop.f32.mrb[28].mxu0 }
 0x1ee   : > { %v7005_v32 = vpop.f32.mrb[29].mxu0  ;;  %7328 = vmatprep.subr.bf16.mxu1 %v7893_v26 }
 0x1ef   : > { %v7026_v34 = vpop.f32.mrb[28].mxu1  ;;  %v7006_v35 = vadd.f32 %v7005_v32, %v7004_v30  ;;  %v7007_v36 = vpop.f32.mrb[30].mxu0  ;;  %7307 = vmatpush3.bf16.msra.mxu0 %v7894_v27  ;;  %v7932_v30 = vld [vmem:[%s8045_s25 + $0xf78] sm:$0xff]  }
 0x1f0   : > { %v7027_v39 = vpop.f32.mrb[29].mxu1  ;;  %v7008_v40 = vpop.f32.mrb[31].mxu0  ;;  %7308 = vmatprep.subr.bf16.mxu0 %v7896_v29  ;;  %v7930_v29 = vld [vmem:[%s8045_s25 + $0xf30] sm:$0xff]  }
 0x1f1   : > { %v5379_v41 = vadd.f32 %v7006_v35, %v8597_v1  ;;  %v7028_v43 = vadd.f32 %v7027_v39, %v7026_v34  ;;  %v7029_v44 = vpop.f32.mrb[30].mxu1  ;;  %7329 = vmatpush3.bf16.msra.mxu1 %v7895_v28  ;;  %v7907_v1 = vld [vmem:[%s8045_s25 + $0xf80] sm:$0xff]   ;;  %v7931_v36 = vld [vmem:[%s8045_s25 + $0xfb0] sm:$0xff]   ;;  %v7934_v40 = vld [vmem:[%s8045_s25 + $0xf38] sm:$0xff]  }
 0x1f2   : > { %v7030_v46 = vpop.f32.mrb[31].mxu1  ;;  %7330 = vmatprep.subr.bf16.mxu1 %v7897_v31 }
 0x1f3   : > { %v8635_v50 = vadd.f32 %v7028_v43, %v5379_v41  ;;  %7309 = vmatpush3.bf16.msra.mxu0 %v7898_v33  ;;  %v1629_v41 = vrot.slane %v8641_v56, %v8083_v42  ;;  %v7935_v43 = vld [vmem:[%s8045_s25 + $0xfb8] sm:$0xff]  }
 0x1f4   : > { %7310 = vmatprep.subr.bf16.mxu0 %v7900_v38  ;;  %v7933_v38 = vld [vmem:[%s8045_s25 + $0xff8] sm:$0xff]  }
 0x1f5   : > { %7331 = vmatpush3.bf16.msra.mxu1 %v7899_v37  ;;  %v1645_v44 = vcombine.high %v1629_v41, %v1629_v41 }
 0x1f6   : > { %7332 = vmatprep.subr.bf16.mxu1 %v7901_v47 }
 0x1f7   : > { %7311 = vmatpush3.bf16.msra.mxu0 %v7902_v51 }
 0x1f8   : > { %7340 = vmatprep.subr.bf16.mxu0 %v7904_v54 }
 0x1f9   : > { %7333 = vmatpush3.bf16.msra.mxu1 %v7903_v57 }
 0x1fa   : > { %5937 = vmatmul.mubr.bf16.vlgmr.msra.gmra.mrb[56].mxu0 %v1622_v53  ;;  %7362 = vmatprep.subr.bf16.mxu1 %v7905_v59 }
 0x1fb   : > { %7341 = vmatpush3.bf16.msra.mxu0 %v7906_v55  ;;  %6016 = vmatprep.mubr.bf16.mxu0 %v1643_v0 }
 0x1fc   : > { %5977 = vmatmul.mubr.bf16.vlgmr.msra.gmra.mrb[56].mxu1 %v1644_v62  ;;  %7342 = vmatprep.subr.bf16.mxu0 %v7908_v63 }
 0x1fd   : > { %7363 = vmatpush3.bf16.msra.mxu1 %v7907_v1  ;;  %6056 = vmatprep.mubr.bf16.mxu1 %v1647_v3 }
 0x1fe   : > { %7364 = vmatprep.subr.bf16.mxu1 %v7909_v2 }
 0x1ff   : > { %7343 = vmatpush3.bf16.msra.mxu0 %v7910_v4 }
 0x200   : > { %7344 = vmatprep.subr.bf16.mxu0 %v7912_v5 }
 0x201   : > { %7365 = vmatpush3.bf16.msra.mxu1 %v7911_v6 }
 0x202   : > { %7366 = vmatprep.subr.bf16.mxu1 %v7913_v7 }
 0x203   : > { %7345 = vmatpush3.bf16.msra.mxu0 %v7914_v8 }
 0x204   : > { %7346 = vmatprep.subr.bf16.mxu0 %v7916_v9 }
 0x205   : > { %7367 = vmatpush3.bf16.msra.mxu1 %v7915_v10 }
 0x206   : > { %7368 = vmatprep.subr.bf16.mxu1 %v7917_v11 }
 0x207   : > { %7347 = vmatpush3.bf16.msra.mxu0 %v7918_v12 }
 0x208   : > { %7348 = vmatprep.subr.bf16.mxu0 %v7920_v13 }
 0x209   : > { %7369 = vmatpush3.bf16.msra.mxu1 %v7919_v14 }
 0x20a   : > { %7370 = vmatprep.subr.bf16.mxu1 %v7921_v15 }
 0x20b   : > { %7349 = vmatpush3.bf16.msra.mxu0 %v7922_v16 }
 0x20c   : > { %7350 = vmatprep.subr.bf16.mxu0 %v7924_v17 }
 0x20d   : > { %7371 = vmatpush3.bf16.msra.mxu1 %v7923_v18  ;;  %v7048_v22 = vpop.f32.mrb[32].mxu0 }
 0x20e   : > { %v7049_v24 = vpop.f32.mrb[33].mxu0  ;;  %7372 = vmatprep.subr.bf16.mxu1 %v7925_v19 }
 0x20f   : > { %v7070_v26 = vpop.f32.mrb[32].mxu1  ;;  %v7050_v27 = vadd.f32 %v7049_v24, %v7048_v22  ;;  %v7051_v28 = vpop.f32.mrb[34].mxu0  ;;  %7351 = vmatpush3.bf16.msra.mxu0 %v7926_v20 }
 0x210   : > { %v7071_v31 = vpop.f32.mrb[33].mxu1  ;;  %v7052_v32 = vpop.f32.mrb[35].mxu0  ;;  %7352 = vmatprep.subr.bf16.mxu0 %v7928_v21 }
 0x211   : > { %v5459_v33 = vadd.f32 %v7050_v27, %v8635_v50  ;;  %v7072_v34 = vadd.f32 %v7071_v31, %v7070_v26  ;;  %v7073_v35 = vpop.f32.mrb[34].mxu1  ;;  %7373 = vmatpush3.bf16.msra.mxu1 %v7927_v23 }
 0x212   : > { %v7074_v37 = vpop.f32.mrb[35].mxu1  ;;  %7374 = vmatprep.subr.bf16.mxu1 %v7929_v25 }
 0x213   : > { %v5499_v39 = vadd.f32 %v7072_v34, %v5459_v33  ;;  %7353 = vmatpush3.bf16.msra.mxu0 %v7930_v29 }
 0x214   : > { %7354 = vmatprep.subr.bf16.mxu0 %v7932_v30 }
 0x215   : > { %7375 = vmatpush3.bf16.msra.mxu1 %v7931_v36 }
 0x216   : > { %7376 = vmatprep.subr.bf16.mxu1 %v7933_v38 }
 0x217   : > { %7355 = vmatpush3.bf16.msra.mxu0 %v7934_v40 }
 0x219   : > { %7377 = vmatpush3.bf16.msra.mxu1 %v7935_v43 }
 0x21a   : > { %6017 = vmatmul.mubr.bf16.vlgmr.msra.gmra.mrb[60].mxu0 %v1629_v41 }
 0x21c   : > { %6057 = vmatmul.mubr.bf16.vlgmr.msra.gmra.mrb[60].mxu1 %v1645_v44 }
 0x22d   : > { %v7092_v45 = vpop.f32.mrb[36].mxu0 }
 0x22e   : > { %v7093_v46 = vpop.f32.mrb[37].mxu0 }
 0x22f   : > { %v7114_v47 = vpop.f32.mrb[36].mxu1  ;;  %v7094_v48 = vadd.f32 %v7093_v46, %v7092_v45  ;;  %v7095_v49 = vpop.f32.mrb[38].mxu0 }
 0x230   : > { %v7115_v50 = vpop.f32.mrb[37].mxu1  ;;  %v7096_v51 = vpop.f32.mrb[39].mxu0 }
 0x231   : > { %v5539_v52 = vadd.f32 %v7094_v48, %v5499_v39  ;;  %v7116_v53 = vadd.f32 %v7115_v50, %v7114_v47  ;;  %v7117_v54 = vpop.f32.mrb[38].mxu1 }
 0x232   : > { %v7118_v57 = vpop.f32.mrb[39].mxu1 }
 0x233   : > { %v5579_v42 = vadd.f32 %v7116_v53, %v5539_v52 }
 0x24d   : > { %v7136_v56 = vpop.f32.mrb[40].mxu0 }
 0x24e   : > { %v7137_v58 = vpop.f32.mrb[41].mxu0 }
 0x24f   : > { %v7158_v59 = vpop.f32.mrb[40].mxu1  ;;  %v7138_v60 = vadd.f32 %v7137_v58, %v7136_v56  ;;  %v7139_v55 = vpop.f32.mrb[42].mxu0 }
 0x250   : > { %v7159_v61 = vpop.f32.mrb[41].mxu1  ;;  %v7140_v62 = vpop.f32.mrb[43].mxu0 }
 0x251   : > { %v5619_v63 = vadd.f32 %v7138_v60, %v5579_v42  ;;  %v7160_v0 = vadd.f32 %v7159_v61, %v7158_v59  ;;  %v7161_v1 = vpop.f32.mrb[42].mxu1  ;;  %v215_v62 = vld [vmem:[#allocation2] sm:$0x3] }
 0x252   : > { %v7162_v2 = vpop.f32.mrb[43].mxu1 }
 0x253   : > { %v5659_v3 = vadd.f32 %v7160_v0, %v5619_v63 }
 0x26d   : > { %v7180_v4 = vpop.f32.mrb[44].mxu0 }
 0x26e   : > { %v7181_v5 = vpop.f32.mrb[45].mxu0 }
 0x26f   : > { %v7202_v6 = vpop.f32.mrb[44].mxu1  ;;  %v7182_v7 = vadd.f32 %v7181_v5, %v7180_v4  ;;  %v7183_v8 = vpop.f32.mrb[46].mxu0 }
 0x270   : > { %v7203_v9 = vpop.f32.mrb[45].mxu1  ;;  %v7184_v10 = vpop.f32.mrb[47].mxu0 }
 0x271   : > { %v5699_v11 = vadd.f32 %v7182_v7, %v5659_v3  ;;  %v7204_v12 = vadd.f32 %v7203_v9, %v7202_v6  ;;  %v7205_v13 = vpop.f32.mrb[46].mxu1  ;;  %v6675_v3 = vld [vmem:[%s8725_s2] ss:$0 sm:$0xff] (!%p6674_p7) }
 0x272   : > { %v7206_v14 = vpop.f32.mrb[47].mxu1 }
 0x273   : > { %v5739_v15 = vadd.f32 %v7204_v12, %v5699_v11 }
 0x28d   : > { %v7224_v16 = vpop.f32.mrb[48].mxu0 }
 0x28e   : > { %v7225_v17 = vpop.f32.mrb[49].mxu0 }
 0x28f   : > { %v7246_v18 = vpop.f32.mrb[48].mxu1  ;;  %v7226_v19 = vadd.f32 %v7225_v17, %v7224_v16  ;;  %v7227_v20 = vpop.f32.mrb[50].mxu0 }
 0x290   : > { %v7247_v21 = vpop.f32.mrb[49].mxu1  ;;  %v7228_v22 = vpop.f32.mrb[51].mxu0 }
 0x291   : > { %v5779_v23 = vadd.f32 %v7226_v19, %v5739_v15  ;;  %v7248_v24 = vadd.f32 %v7247_v21, %v7246_v18  ;;  %v7249_v25 = vpop.f32.mrb[50].mxu1 }
 0x292   : > { %v7250_v26 = vpop.f32.mrb[51].mxu1 }
 0x293   : > { %v5819_v27 = vadd.f32 %v7248_v24, %v5779_v23 }
 0x2ad   : > { %v7268_v28 = vpop.f32.mrb[52].mxu0 }
 0x2ae   : > { %v7269_v29 = vpop.f32.mrb[53].mxu0 }
 0x2af   : > { %v7290_v30 = vpop.f32.mrb[52].mxu1  ;;  %v7270_v31 = vadd.f32 %v7269_v29, %v7268_v28  ;;  %v7271_v32 = vpop.f32.mrb[54].mxu0 }
 0x2b0   : > { %v7291_v33 = vpop.f32.mrb[53].mxu1  ;;  %v7272_v34 = vpop.f32.mrb[55].mxu0 }
 0x2b1   : > { %v5859_v35 = vadd.f32 %v7270_v31, %v5819_v27  ;;  %v7292_v36 = vadd.f32 %v7291_v33, %v7290_v30  ;;  %v7293_v37 = vpop.f32.mrb[54].mxu1 }
 0x2b2   : > { %v7294_v38 = vpop.f32.mrb[55].mxu1 }
 0x2b3   : > { %v5899_v39 = vadd.f32 %v7292_v36, %v5859_v35 }
 0x2cd   : > { %v7312_v40 = vpop.f32.mrb[56].mxu0 }
 0x2ce   : > { %v7313_v41 = vpop.f32.mrb[57].mxu0 }
 0x2cf   : > { %v7334_v43 = vpop.f32.mrb[56].mxu1  ;;  %v7314_v44 = vadd.f32 %v7313_v41, %v7312_v40  ;;  %v7315_v45 = vpop.f32.mrb[58].mxu0 }
 0x2d0   : > { %v7335_v46 = vpop.f32.mrb[57].mxu1  ;;  %v7316_v47 = vpop.f32.mrb[59].mxu0 }
 0x2d1   : > { %v5939_v48 = vadd.f32 %v7314_v44, %v5899_v39  ;;  %v7336_v49 = vadd.f32 %v7335_v46, %v7334_v43  ;;  %v7337_v50 = vpop.f32.mrb[58].mxu1 }
 0x2d2   : > { %v7338_v51 = vpop.f32.mrb[59].mxu1 }
 0x2d3   : > { %v5979_v52 = vadd.f32 %v7336_v49, %v5939_v48 }
 0x2ed   : > { %v7356_v53 = vpop.f32.mrb[60].mxu0 }
 0x2ee   : > { %v7357_v54 = vpop.f32.mrb[61].mxu0 }
 0x2ef   : > { %v7378_v57 = vpop.f32.mrb[60].mxu1  ;;  %v7358_v42 = vadd.f32 %v7357_v54, %v7356_v53  ;;  %v7359_v56 = vpop.f32.mrb[62].mxu0 }
 0x2f0   : > { %v7379_v58 = vpop.f32.mrb[61].mxu1  ;;  %v7360_v59 = vpop.f32.mrb[63].mxu0 }
 0x2f1   : > { %v6019_v60 = vadd.f32 %v7358_v42, %v5979_v52  ;;  %v7380_v55 = vadd.f32 %v7379_v58, %v7378_v57  ;;  %v7381_v61 = vpop.f32.mrb[62].mxu1  ;;  %6069 = sbr.rel (%p6674_p7) target bundleno = 770 (0x302), region = 40 }
 0x2f2   : > { %v7382_v63 = vpop.f32.mrb[63].mxu1 }
 0x2f3   : > { %v6059_v0 = vadd.f32 %v7380_v55, %v6019_v60 }
 0x2f5   : > { %v6064_v1 = vadd.f32 %v6059_v0, %v215_v62 }
 0x2f7   : > { %6065 = vst [vmem:[#allocation2] sm:$0x3] %v6064_v1 }
 0x2fe   : > { %v6070_v2 = vld [vmem:[#allocation2] sm:$0x3] }
 0x2ff   : > { %v6078_v4 = vadd.f32 %v6675_v3, %v6070_v2 }
 0x301   : > { %6079 = vst [vmem:[#allocation3] sm:$0x3] %v6078_v4 }
 0x302 PF: > { %p8688_p8 = scmp.eq.s32.totalorder %s6154_s15, 7  ;;  %s7993_s29 = smov [#allocation3]  }
 0x303   : > { %s6089_s30 = sshll.u32 %s7993_s29, 4  ;;  %s6090_s30 = int_to_ptr.vmem [resolvable:$true] %s6089_s30 }
 0x304   : > { %s7937_s4 = scalar_lea.vmem %s6090_s30, 32  ;;  %p7944_p12 = scmp.lt.s32.totalorder %s6090_s30, %s6090_s30 }
 0x305   : > { %p7938_p9 = scmp.ne.s32.totalorder %s6090_s30, %s7937_s4  ;;  %p7945_p13 = scmp.lt.s32.totalorder %s7937_s4, %s7937_s4 }
 0x307   : > { %p7939_p10 = pnand %p7938_p9, %p8688_p8  ;;  %p7946_p0 = por %p7945_p13, %p7944_p12 }
 0x309   : > { %p7940_p11 = pneg %p7939_p10 }
 0x30b   : > { %p7947_p1 = pnand %p7946_p0, %p7940_p11 }
 0x30d   : > { %7950 = shalt.err (!%p7947_p1)
}
 0x30e   : > { %s7951_s7 = scalar_lea.hbm %s8726_s3, 32 }
 0x30f   : > { %p7952_p2 = scmp.ne.s32.totalorder %s8726_s3, %s7951_s7  ;;  %p7957_p5 = scmp.lt.u32.totalorder %s7951_s7, %s8726_s3 }
 0x311   : > { %p7953_p3 = pnand %p7952_p2, %p8688_p8 }
 0x313   : > { %p7954_p4 = pneg %p7953_p3 }
 0x315   : > { %p7959_p6 = pnand %p7957_p5, %p7954_p4 }
 0x317   : > { %7962 = shalt.err (!%p7959_p6)
}
 0x318   : > { %7385 = dma.vmem_to_hbm [thread:$0]  (%p8688_p8), %s6090_s30, 32, %s8726_s3, [#allocation4]  }
 0x319   : > { %7976 = dma.done.wait (%p8688_p8), [#allocation4], 32  }
 0x31a   : > { %7978 = vsyncadd (%p8688_p8), [#allocation4], 4294967264 }
 0x31b PF: > { %s14_s14 = sadd.s32 1, %s7989_s14   ;;  %s8728_s12 = smov %s7985_s13 }
 0x31c   : > { %p11_p7 = scmp.ge.s32.totalorder %s14_s14, 10   ;;  %s8729_s13 = smov %s8731_s16 }
 0x31e   :  { %13 = sbr.rel (!%p11_p7) target bundleno = 2 (0x2), region = 71 }
 0x325   :  { %6102 = vsyncpa [#allocation4], 1 }
 0x326   :  { %6104 = vsyncpa [#allocation4 + $0x1], 1 }

</bundles_post_ra>
